<compile_context>
chip_gen: v7x
topology: tpu7x:2x2x1
jax: 0.10.0
libtpu: 0.0.40
codegen_flags: <defaults>
</compile_context>

<pallas_src>
import functools

import jax
import jax.numpy as jnp
from jax.experimental import pallas as pl
from jax.experimental.pallas import tpu as pltpu

EPS = 1e-5


def _round_up(x, m):
    return (x + m - 1) // m * m


# ---------------------------------------------------------------------------
# Fused conv(GEMM) + BatchNorm(train stats) [+ residual] [+ ReLU] kernel
# ---------------------------------------------------------------------------

def _fused_body(a_ref, w_ref, gamma_ref, beta_ref, r_ref, o_ref, *,
                relu, groups_in_block):
    rows = a_ref.shape[0]
    mg = rows // groups_in_block
    w = w_ref[...]
    gamma = gamma_ref[...]
    beta = beta_ref[...]
    for h in range(groups_in_block):                 # static unroll (<= 2)
        sl = pl.ds(h * mg, mg)
        # MXU matmul, f32 accumulation.
        y = jnp.dot(a_ref[sl, :], w, preferred_element_type=jnp.float32)
        # Training-mode BN batch statistics over this group's rows.
        mean = jnp.mean(y, axis=0, keepdims=True)
        var = jnp.mean(y * y, axis=0, keepdims=True) - mean * mean
        var = jnp.maximum(var, 0.0)                  # clamp bf16 round-off
        scale = gamma * jax.lax.rsqrt(var + EPS)
        bias = beta - mean * scale
        z = y * scale + bias
        if r_ref is not None:
            z = z + r_ref[sl, :].astype(jnp.float32)
        if relu:
            z = jnp.maximum(z, 0.0)
        o_ref[sl, :] = z.astype(o_ref.dtype)


def conv_bn_act_kernel(a_ref, w_ref, gamma_ref, beta_ref, o_ref, *,
                       relu, groups_in_block):
    _fused_body(a_ref, w_ref, gamma_ref, beta_ref, None, o_ref,
                relu=relu, groups_in_block=groups_in_block)


def conv_bn_res_act_kernel(a_ref, w_ref, gamma_ref, beta_ref, r_ref, o_ref, *,
                           relu, groups_in_block):
    _fused_body(a_ref, w_ref, gamma_ref, beta_ref, r_ref, o_ref,
                relu=relu, groups_in_block=groups_in_block)


def conv_bn_pallas(a, w, gamma, beta, res, relu, groups):
    """a: (M, Kp) bf16, w: (Kp, cout) bf16, res: (M, cout) bf16 or None."""
    M, Kp = a.shape
    cout = w.shape[1]
    assert M % groups == 0
    Mg = M // groups

    # One block per BN group (2 parallel grid steps -> both v7x TensorCores)
    # when the group row count is aligned to the bf16 native sublane tile (16);
    # otherwise a single block over all groups, grouping handled in-kernel.
    if Mg % 16 == 0:
        bm, gib, grid = Mg, 1, (groups,)
    else:
        bm, gib, grid = M, groups, (1,)

    a_spec = pl.BlockSpec((bm, Kp), lambda h: (h, 0))
    w_spec = pl.BlockSpec((Kp, cout), lambda h: (0, 0))
    p_spec = pl.BlockSpec((1, cout), lambda h: (0, 0))
    o_spec = pl.BlockSpec((bm, cout), lambda h: (h, 0))

    gamma2 = gamma.reshape(1, cout).astype(jnp.float32)
    beta2 = beta.reshape(1, cout).astype(jnp.float32)

    if res is None:
        kern = functools.partial(conv_bn_act_kernel, relu=relu,
                                 groups_in_block=gib)
        in_specs = [a_spec, w_spec, p_spec, p_spec]
        args = (a, w, gamma2, beta2)
    else:
        kern = functools.partial(conv_bn_res_act_kernel, relu=relu,
                                 groups_in_block=gib)
        in_specs = [a_spec, w_spec, p_spec, p_spec,
                    pl.BlockSpec((bm, cout), lambda h: (h, 0))]
        args = (a, w, gamma2, beta2, res)

    return pl.pallas_call(
        kern,
        out_shape=jax.ShapeDtypeStruct((M, cout), jnp.bfloat16),
        grid_spec=pltpu.PrefetchScalarGridSpec(
            num_scalar_prefetch=0,
            grid=grid,
            in_specs=in_specs,
            out_specs=o_spec),
        compiler_params=pltpu.CompilerParams(
            dimension_semantics=("parallel",)),
    )(*args)


# ---------------------------------------------------------------------------
# JAX glue: im2col, conv wrapper, pooling, residual blocks, tail
# ---------------------------------------------------------------------------

def extract_patches(x, kh, kw, stride, pad):
    N, H, W, C = x.shape
    xp = jnp.pad(x, ((0, 0), (pad, pad), (pad, pad), (0, 0)))
    Ho = (H + 2 * pad - kh) // stride + 1
    Wo = (W + 2 * pad - kw) // stride + 1
    cols = []
    for dy in range(kh):
        for dx in range(kw):
            cols.append(xp[:, dy:dy + stride * Ho:stride,
                           dx:dx + stride * Wo:stride, :])
    patches = jnp.stack(cols, axis=3)          # (N, Ho, Wo, kh*kw, C)
    return patches, Ho, Wo


def conv_bn_act(x, w, bn, stride, pad, relu, residual=None, groups=1):
    kh, kw, cin, cout = w.shape
    N = x.shape[0]
    patches, Ho, Wo = extract_patches(x, kh, kw, stride, pad)
    M = N * Ho * Wo
    K = kh * kw * cin
    a = patches.reshape(M, K)
    # Zero-pad K to a multiple of 128: clean lane tiling on the patch matrix
    # and clean bf16 sublane tiling on the weight matrix (numerically free).
    Kp = _round_up(K, 128)
    w2 = w.reshape(K, cout)
    if Kp != K:
        a = jnp.pad(a, ((0, 0), (0, Kp - K)))
        w2 = jnp.pad(w2, ((0, Kp - K), (0, 0)))
    gamma, beta = bn
    res2 = None if residual is None else residual.reshape(M, cout)
    y = conv_bn_pallas(a.astype(jnp.bfloat16), w2.astype(jnp.bfloat16),
                       gamma, beta, res2, relu, groups)
    return y.reshape(N, Ho, Wo, cout)


def maxpool2d(x, k, stride, pad):
    # k*k shifted maximums fused by XLA; no patch tensor, no kernel launch.
    N, H, W, C = x.shape
    xp = jnp.pad(x, ((0, 0), (pad, pad), (pad, pad), (0, 0)),
                 constant_values=-jnp.inf)
    Ho = (H + 2 * pad - k) // stride + 1
    Wo = (W + 2 * pad - k) // stride + 1
    out = None
    for dy in range(k):
        for dx in range(k):
            v = xp[:, dy:dy + stride * Ho:stride,
                   dx:dx + stride * Wo:stride, :]
            out = v if out is None else jnp.maximum(out, v)
    return out


def residual_block(x, p, groups):
    stride = p['stride']
    out = conv_bn_act(x, p['conv1'], p['bn1'], stride=stride, pad=1,
                      relu=True, groups=groups)
    if 'down_conv' in p:
        identity = conv_bn_act(x, p['down_conv'], p['down_bn'], stride=stride,
                               pad=0, relu=False, groups=groups)
    else:
        identity = x
    # conv2 -> bn2 -> (+identity) -> relu, all fused in one kernel.
    out = conv_bn_act(out, p['conv2'], p['bn2'], stride=1, pad=1,
                      relu=True, residual=identity, groups=groups)
    return out


def feature_extract(params, img_nchw, groups=1):
    x = jnp.transpose(img_nchw, (0, 2, 3, 1)).astype(jnp.bfloat16)   # -> NHWC
    x = conv_bn_act(x, params['stem_conv'], params['stem_bn'],
                    stride=2, pad=3, relu=True, groups=groups)
    x = maxpool2d(x, 3, 2, 1)
    for blk in params['layer1'] + params['layer2'] + params['layer3']:
        x = residual_block(x, blk, groups)
    # Tail ops in plain jnp/f32: ~32 KFLOP total, launch overhead would
    # dominate any Pallas kernel here (per perf review).
    z = jnp.mean(x.astype(jnp.float32), axis=(1, 2))        # (N, 128)
    z = z @ params['emb_w'] + params['emb_b']                # (N, emb) f32
    return z


def forward(params, img1, img2):
    # Batch both images through one pass; BN stats stay per original call
    # (groups=2) so numerics match running the tower twice in PyTorch train().
    assert img1.shape == img2.shape
    n = img1.shape[0]
    imgs = jnp.concatenate([img1, img2], axis=0)
    z = feature_extract(params, imgs, groups=2)
    return z[:n], z[n:]


# ---------------------------------------------------------------------------
# Deterministic parameter construction (synthetic weights)
# ---------------------------------------------------------------------------

def make_params(key, embedding_size=64):
    keys = jax.random.split(key, 16)

    def conv_w(k, kh, kw, cin, cout):
        fan_in = kh * kw * cin
        return jax.random.normal(k, (kh, kw, cin, cout), jnp.float32) \
            * (2.0 / fan_in) ** 0.5

    def bn_p(k, c):
        k1, k2 = jax.random.split(k)
        gamma = 1.0 + 0.1 * jax.random.normal(k1, (c,), jnp.float32)
        beta = 0.1 * jax.random.normal(k2, (c,), jnp.float32)
        return (gamma, beta)

    def block(k, cin, cout, stride):
        ks = jax.random.split(k, 6)
        p = {'stride': stride,
             'conv1': conv_w(ks[0], 3, 3, cin, cout), 'bn1': bn_p(ks[1], cout),
             'conv2': conv_w(ks[2], 3, 3, cout, cout), 'bn2': bn_p(ks[3], cout)}
        if stride != 1 or cin != cout:
            p['down_conv'] = conv_w(ks[4], 1, 1, cin, cout)
            p['down_bn'] = bn_p(ks[5], cout)
        return p

    return {
        'stem_conv': conv_w(keys[0], 7, 7, 3, 32),
        'stem_bn': bn_p(keys[1], 32),
        'layer1': [block(keys[2], 32, 32, 1), block(keys[3], 32, 32, 1)],
        'layer2': [block(keys[4], 32, 64, 2), block(keys[5], 64, 64, 1)],
        'layer3': [block(keys[6], 64, 128, 2)],
        'emb_w': jax.random.normal(keys[7], (128, embedding_size),
                                   jnp.float32) * (1.0 / 128 ** 0.5),
        'emb_b': 0.1 * jax.random.normal(keys[8], (embedding_size,),
                                         jnp.float32),
    }


if __name__ == "__main__":
    key = jax.random.PRNGKey(0)
    kp, k1, k2 = jax.random.split(key, 3)
    params = make_params(kp, embedding_size=64)

    img1 = jax.random.normal(k1, (2, 3, 32, 32), jnp.float32)  # NCHW like torch
    img2 = jax.random.normal(k2, (2, 3, 32, 32), jnp.float32)

    fwd = jax.jit(functools.partial(forward, params))
    z1, z2 = fwd(img1, img2)
    jax.block_until_ready((z1, z2))
    assert z1.shape == (2, 64) and z2.shape == (2, 64)
    assert z1.dtype == jnp.float32 and z2.dtype == jnp.float32
    assert bool(jnp.all(jnp.isfinite(z1))) and bool(jnp.all(jnp.isfinite(z2)))
    print("KERNEL_OK")
</pallas_src>

<mosaic_0001>
module attributes {stable_mosaic.version = 11 : i64} {
  func.func @conv_bn_act_kernel(%arg0: i32, %arg1: memref<512x256xbf16, #tpu.memory_space<vmem>>, %arg2: memref<256x32xbf16, #tpu.memory_space<vmem>>, %arg3: memref<1x32xf32, #tpu.memory_space<vmem>>, %arg4: memref<1x32xf32, #tpu.memory_space<vmem>>, %arg5: memref<512x32xbf16, #tpu.memory_space<vmem>>) attributes {dimension_semantics = [#tpu.dimension_semantics<parallel>], iteration_bounds = array<i64: 2>, scalar_prefetch = 0 : i64, scratch_operands = 0 : i64, tpu.core_type = #tpu.core_type<tc>, window_params = [{transform_indices = @transform_0, window_bounds = array<i64: 512, 256>}, {pipeline_mode = #tpu.pipeline_mode<synchronous>, transform_indices = @transform_1, window_bounds = array<i64: 256, 32>}, {pipeline_mode = #tpu.pipeline_mode<synchronous>, transform_indices = @transform_2, window_bounds = array<i64: 1, 32>}, {pipeline_mode = #tpu.pipeline_mode<synchronous>, transform_indices = @transform_3, window_bounds = array<i64: 1, 32>}, {transform_indices = @transform_4, window_bounds = array<i64: 512, 32>}]} {
    %c0 = arith.constant 0 : index
    %c0_0 = arith.constant 0 : index
    %0 = vector.load %arg2[%c0, %c0_0] : memref<256x32xbf16, #tpu.memory_space<vmem>>, vector<256x32xbf16>
    %c0_1 = arith.constant 0 : index
    %c0_2 = arith.constant 0 : index
    %1 = vector.load %arg3[%c0_1, %c0_2] : memref<1x32xf32, #tpu.memory_space<vmem>>, vector<1x32xf32>
    %c0_3 = arith.constant 0 : index
    %c0_4 = arith.constant 0 : index
    %2 = vector.load %arg4[%c0_3, %c0_4] : memref<1x32xf32, #tpu.memory_space<vmem>>, vector<1x32xf32>
    %c0_5 = arith.constant 0 : index
    %c0_6 = arith.constant 0 : index
    %3 = vector.load %arg1[%c0_5, %c0_6] : memref<512x256xbf16, #tpu.memory_space<vmem>>, vector<512x256xbf16>
    %cst = arith.constant dense<0.000000e+00> : vector<512x32xf32>
    %4 = tpu.matmul %3, %0, %cst {dimension_numbers = #tpu.dot_dimension_numbers<[1], [0], [0], [1], [0, 0, 1, 1], [], []>} : vector<512x256xbf16>, vector<256x32xbf16>, vector<512x32xf32> -> vector<512x32xf32>
    %cst_7 = arith.constant dense<0.000000e+00> : vector<32xf32>
    %5 = vector.multi_reduction <add>, %4, %cst_7 [0] : vector<512x32xf32> to vector<32xf32>
    %6 = vector.shape_cast %5 : vector<32xf32> to vector<1x32xf32>
    %cst_8 = arith.constant 5.120000e+02 : f32
    %7 = vector.broadcast %cst_8 : f32 to vector<1x32xf32>
    %8 = arith.divf %6, %7 : vector<1x32xf32>
    %9 = arith.mulf %4, %4 : vector<512x32xf32>
    %cst_9 = arith.constant dense<0.000000e+00> : vector<32xf32>
    %10 = vector.multi_reduction <add>, %9, %cst_9 [0] : vector<512x32xf32> to vector<32xf32>
    %11 = vector.shape_cast %10 : vector<32xf32> to vector<1x32xf32>
    %cst_10 = arith.constant 5.120000e+02 : f32
    %12 = vector.broadcast %cst_10 : f32 to vector<1x32xf32>
    %13 = arith.divf %11, %12 : vector<1x32xf32>
    %14 = arith.mulf %8, %8 : vector<1x32xf32>
    %15 = arith.subf %13, %14 : vector<1x32xf32>
    %cst_11 = arith.constant 0.000000e+00 : f32
    %16 = vector.broadcast %cst_11 : f32 to vector<1x32xf32>
    %17 = arith.maximumf %15, %16 : vector<1x32xf32>
    %cst_12 = arith.constant 9.99999974E-6 : f32
    %18 = vector.broadcast %cst_12 : f32 to vector<1x32xf32>
    %19 = arith.addf %17, %18 : vector<1x32xf32>
    %20 = math.rsqrt %19 : vector<1x32xf32>
    %21 = arith.mulf %1, %20 : vector<1x32xf32>
    %22 = arith.mulf %8, %21 : vector<1x32xf32>
    %23 = arith.subf %2, %22 : vector<1x32xf32>
    %24 = vector.broadcast %21 : vector<1x32xf32> to vector<512x32xf32>
    %25 = arith.mulf %4, %24 : vector<512x32xf32>
    %26 = vector.broadcast %23 : vector<1x32xf32> to vector<512x32xf32>
    %27 = arith.addf %25, %26 : vector<512x32xf32>
    %cst_13 = arith.constant 0.000000e+00 : f32
    %28 = vector.broadcast %cst_13 : f32 to vector<512x32xf32>
    %29 = arith.maximumf %27, %28 : vector<512x32xf32>
    %30 = arith.truncf %29 : vector<512x32xf32> to vector<512x32xbf16>
    %c0_14 = arith.constant 0 : index
    %c0_15 = arith.constant 0 : index
    %31 = vector.load %arg5[%c0_14, %c0_15] : memref<512x32xbf16, #tpu.memory_space<vmem>>, vector<512x32xbf16>
    tpu.vector_store %arg5[%c0_14, %c0_15], %30 {strides = array<i32>} : memref<512x32xbf16, #tpu.memory_space<vmem>>, vector<512x32xbf16>,
    return
  }
  func.func @transform_0(%arg0: i32) -> (i32, i32) {
    %c0_i32 = arith.constant 0 : i32
    %c0_i32_0 = arith.constant 0 : i32
    return %arg0, %c0_i32 : i32, i32
  }
  func.func @transform_1(%arg0: i32) -> (i32, i32) {
    %c0_i32 = arith.constant 0 : i32
    %c0_i32_0 = arith.constant 0 : i32
    %c0_i32_1 = arith.constant 0 : i32
    return %c0_i32, %c0_i32_0 : i32, i32
  }
  func.func @transform_2(%arg0: i32) -> (i32, i32) {
    %c0_i32 = arith.constant 0 : i32
    %c0_i32_0 = arith.constant 0 : i32
    %c0_i32_1 = arith.constant 0 : i32
    return %c0_i32, %c0_i32_0 : i32, i32
  }
  func.func @transform_3(%arg0: i32) -> (i32, i32) {
    %c0_i32 = arith.constant 0 : i32
    %c0_i32_0 = arith.constant 0 : i32
    %c0_i32_1 = arith.constant 0 : i32
    return %c0_i32, %c0_i32_0 : i32, i32
  }
  func.func @transform_4(%arg0: i32) -> (i32, i32) {
    %c0_i32 = arith.constant 0 : i32
    %c0_i32_0 = arith.constant 0 : i32
    return %arg0, %c0_i32 : i32, i32
  }
}

module attributes {stable_mosaic.version = 11 : i64} {
  func.func @conv_bn_act_kernel(%arg0: i32, %arg1: memref<128x384xbf16, #tpu.memory_space<vmem>>, %arg2: memref<384x32xbf16, #tpu.memory_space<vmem>>, %arg3: memref<1x32xf32, #tpu.memory_space<vmem>>, %arg4: memref<1x32xf32, #tpu.memory_space<vmem>>, %arg5: memref<128x32xbf16, #tpu.memory_space<vmem>>) attributes {dimension_semantics = [#tpu.dimension_semantics<parallel>], iteration_bounds = array<i64: 2>, scalar_prefetch = 0 : i64, scratch_operands = 0 : i64, tpu.core_type = #tpu.core_type<tc>, window_params = [{transform_indices = @transform_0, window_bounds = array<i64: 128, 384>}, {pipeline_mode = #tpu.pipeline_mode<synchronous>, transform_indices = @transform_1, window_bounds = array<i64: 384, 32>}, {pipeline_mode = #tpu.pipeline_mode<synchronous>, transform_indices = @transform_2, window_bounds = array<i64: 1, 32>}, {pipeline_mode = #tpu.pipeline_mode<synchronous>, transform_indices = @transform_3, window_bounds = array<i64: 1, 32>}, {transform_indices = @transform_4, window_bounds = array<i64: 128, 32>}]} {
    %c0 = arith.constant 0 : index
    %c0_0 = arith.constant 0 : index
    %0 = vector.load %arg2[%c0, %c0_0] : memref<384x32xbf16, #tpu.memory_space<vmem>>, vector<384x32xbf16>
    %c0_1 = arith.constant 0 : index
    %c0_2 = arith.constant 0 : index
    %1 = vector.load %arg3[%c0_1, %c0_2] : memref<1x32xf32, #tpu.memory_space<vmem>>, vector<1x32xf32>
    %c0_3 = arith.constant 0 : index
    %c0_4 = arith.constant 0 : index
    %2 = vector.load %arg4[%c0_3, %c0_4] : memref<1x32xf32, #tpu.memory_space<vmem>>, vector<1x32xf32>
    %c0_5 = arith.constant 0 : index
    %c0_6 = arith.constant 0 : index
    %3 = vector.load %arg1[%c0_5, %c0_6] : memref<128x384xbf16, #tpu.memory_space<vmem>>, vector<128x384xbf16>
    %cst = arith.constant dense<0.000000e+00> : vector<128x32xf32>
    %4 = tpu.matmul %3, %0, %cst {dimension_numbers = #tpu.dot_dimension_numbers<[1], [0], [0], [1], [0, 0, 1, 1], [], []>} : vector<128x384xbf16>, vector<384x32xbf16>, vector<128x32xf32> -> vector<128x32xf32>
    %cst_7 = arith.constant dense<0.000000e+00> : vector<32xf32>
    %5 = vector.multi_reduction <add>, %4, %cst_7 [0] : vector<128x32xf32> to vector<32xf32>
    %6 = vector.shape_cast %5 : vector<32xf32> to vector<1x32xf32>
    %cst_8 = arith.constant 1.280000e+02 : f32
    %7 = vector.broadcast %cst_8 : f32 to vector<1x32xf32>
    %8 = arith.divf %6, %7 : vector<1x32xf32>
    %9 = arith.mulf %4, %4 : vector<128x32xf32>
    %cst_9 = arith.constant dense<0.000000e+00> : vector<32xf32>
    %10 = vector.multi_reduction <add>, %9, %cst_9 [0] : vector<128x32xf32> to vector<32xf32>
    %11 = vector.shape_cast %10 : vector<32xf32> to vector<1x32xf32>
    %cst_10 = arith.constant 1.280000e+02 : f32
    %12 = vector.broadcast %cst_10 : f32 to vector<1x32xf32>
    %13 = arith.divf %11, %12 : vector<1x32xf32>
    %14 = arith.mulf %8, %8 : vector<1x32xf32>
    %15 = arith.subf %13, %14 : vector<1x32xf32>
    %cst_11 = arith.constant 0.000000e+00 : f32
    %16 = vector.broadcast %cst_11 : f32 to vector<1x32xf32>
    %17 = arith.maximumf %15, %16 : vector<1x32xf32>
    %cst_12 = arith.constant 9.99999974E-6 : f32
    %18 = vector.broadcast %cst_12 : f32 to vector<1x32xf32>
    %19 = arith.addf %17, %18 : vector<1x32xf32>
    %20 = math.rsqrt %19 : vector<1x32xf32>
    %21 = arith.mulf %1, %20 : vector<1x32xf32>
    %22 = arith.mulf %8, %21 : vector<1x32xf32>
    %23 = arith.subf %2, %22 : vector<1x32xf32>
    %24 = vector.broadcast %21 : vector<1x32xf32> to vector<128x32xf32>
    %25 = arith.mulf %4, %24 : vector<128x32xf32>
    %26 = vector.broadcast %23 : vector<1x32xf32> to vector<128x32xf32>
    %27 = arith.addf %25, %26 : vector<128x32xf32>
    %cst_13 = arith.constant 0.000000e+00 : f32
    %28 = vector.broadcast %cst_13 : f32 to vector<128x32xf32>
    %29 = arith.maximumf %27, %28 : vector<128x32xf32>
    %30 = arith.truncf %29 : vector<128x32xf32> to vector<128x32xbf16>
    %c0_14 = arith.constant 0 : index
    %c0_15 = arith.constant 0 : index
    %31 = vector.load %arg5[%c0_14, %c0_15] : memref<128x32xbf16, #tpu.memory_space<vmem>>, vector<128x32xbf16>
    tpu.vector_store %arg5[%c0_14, %c0_15], %30 {strides = array<i32>} : memref<128x32xbf16, #tpu.memory_space<vmem>>, vector<128x32xbf16>,
    return
  }
  func.func @transform_0(%arg0: i32) -> (i32, i32) {
    %c0_i32 = arith.constant 0 : i32
    %c0_i32_0 = arith.constant 0 : i32
    return %arg0, %c0_i32 : i32, i32
  }
  func.func @transform_1(%arg0: i32) -> (i32, i32) {
    %c0_i32 = arith.constant 0 : i32
    %c0_i32_0 = arith.constant 0 : i32
    %c0_i32_1 = arith.constant 0 : i32
    return %c0_i32, %c0_i32_0 : i32, i32
  }
  func.func @transform_2(%arg0: i32) -> (i32, i32) {
    %c0_i32 = arith.constant 0 : i32
    %c0_i32_0 = arith.constant 0 : i32
    %c0_i32_1 = arith.constant 0 : i32
    return %c0_i32, %c0_i32_0 : i32, i32
  }
  func.func @transform_3(%arg0: i32) -> (i32, i32) {
    %c0_i32 = arith.constant 0 : i32
    %c0_i32_0 = arith.constant 0 : i32
    %c0_i32_1 = arith.constant 0 : i32
    return %c0_i32, %c0_i32_0 : i32, i32
  }
  func.func @transform_4(%arg0: i32) -> (i32, i32) {
    %c0_i32 = arith.constant 0 : i32
    %c0_i32_0 = arith.constant 0 : i32
    return %arg0, %c0_i32 : i32, i32
  }
}

module attributes {stable_mosaic.version = 11 : i64} {
  func.func @conv_bn_res_act_kernel(%arg0: i32, %arg1: memref<128x384xbf16, #tpu.memory_space<vmem>>, %arg2: memref<384x32xbf16, #tpu.memory_space<vmem>>, %arg3: memref<1x32xf32, #tpu.memory_space<vmem>>, %arg4: memref<1x32xf32, #tpu.memory_space<vmem>>, %arg5: memref<128x32xbf16, #tpu.memory_space<vmem>>, %arg6: memref<128x32xbf16, #tpu.memory_space<vmem>>) attributes {dimension_semantics = [#tpu.dimension_semantics<parallel>], iteration_bounds = array<i64: 2>, scalar_prefetch = 0 : i64, scratch_operands = 0 : i64, tpu.core_type = #tpu.core_type<tc>, window_params = [{transform_indices = @transform_0, window_bounds = array<i64: 128, 384>}, {pipeline_mode = #tpu.pipeline_mode<synchronous>, transform_indices = @transform_1, window_bounds = array<i64: 384, 32>}, {pipeline_mode = #tpu.pipeline_mode<synchronous>, transform_indices = @transform_2, window_bounds = array<i64: 1, 32>}, {pipeline_mode = #tpu.pipeline_mode<synchronous>, transform_indices = @transform_3, window_bounds = array<i64: 1, 32>}, {transform_indices = @transform_4, window_bounds = array<i64: 128, 32>}, {transform_indices = @transform_5, window_bounds = array<i64: 128, 32>}]} {
    %c0 = arith.constant 0 : index
    %c0_0 = arith.constant 0 : index
    %0 = vector.load %arg2[%c0, %c0_0] : memref<384x32xbf16, #tpu.memory_space<vmem>>, vector<384x32xbf16>
    %c0_1 = arith.constant 0 : index
    %c0_2 = arith.constant 0 : index
    %1 = vector.load %arg3[%c0_1, %c0_2] : memref<1x32xf32, #tpu.memory_space<vmem>>, vector<1x32xf32>
    %c0_3 = arith.constant 0 : index
    %c0_4 = arith.constant 0 : index
    %2 = vector.load %arg4[%c0_3, %c0_4] : memref<1x32xf32, #tpu.memory_space<vmem>>, vector<1x32xf32>
    %c0_5 = arith.constant 0 : index
    %c0_6 = arith.constant 0 : index
    %3 = vector.load %arg1[%c0_5, %c0_6] : memref<128x384xbf16, #tpu.memory_space<vmem>>, vector<128x384xbf16>
    %cst = arith.constant dense<0.000000e+00> : vector<128x32xf32>
    %4 = tpu.matmul %3, %0, %cst {dimension_numbers = #tpu.dot_dimension_numbers<[1], [0], [0], [1], [0, 0, 1, 1], [], []>} : vector<128x384xbf16>, vector<384x32xbf16>, vector<128x32xf32> -> vector<128x32xf32>
    %cst_7 = arith.constant dense<0.000000e+00> : vector<32xf32>
    %5 = vector.multi_reduction <add>, %4, %cst_7 [0] : vector<128x32xf32> to vector<32xf32>
    %6 = vector.shape_cast %5 : vector<32xf32> to vector<1x32xf32>
    %cst_8 = arith.constant 1.280000e+02 : f32
    %7 = vector.broadcast %cst_8 : f32 to vector<1x32xf32>
    %8 = arith.divf %6, %7 : vector<1x32xf32>
    %9 = arith.mulf %4, %4 : vector<128x32xf32>
    %cst_9 = arith.constant dense<0.000000e+00> : vector<32xf32>
    %10 = vector.multi_reduction <add>, %9, %cst_9 [0] : vector<128x32xf32> to vector<32xf32>
    %11 = vector.shape_cast %10 : vector<32xf32> to vector<1x32xf32>
    %cst_10 = arith.constant 1.280000e+02 : f32
    %12 = vector.broadcast %cst_10 : f32 to vector<1x32xf32>
    %13 = arith.divf %11, %12 : vector<1x32xf32>
    %14 = arith.mulf %8, %8 : vector<1x32xf32>
    %15 = arith.subf %13, %14 : vector<1x32xf32>
    %cst_11 = arith.constant 0.000000e+00 : f32
    %16 = vector.broadcast %cst_11 : f32 to vector<1x32xf32>
    %17 = arith.maximumf %15, %16 : vector<1x32xf32>
    %cst_12 = arith.constant 9.99999974E-6 : f32
    %18 = vector.broadcast %cst_12 : f32 to vector<1x32xf32>
    %19 = arith.addf %17, %18 : vector<1x32xf32>
    %20 = math.rsqrt %19 : vector<1x32xf32>
    %21 = arith.mulf %1, %20 : vector<1x32xf32>
    %22 = arith.mulf %8, %21 : vector<1x32xf32>
    %23 = arith.subf %2, %22 : vector<1x32xf32>
    %24 = vector.broadcast %21 : vector<1x32xf32> to vector<128x32xf32>
    %25 = arith.mulf %4, %24 : vector<128x32xf32>
    %26 = vector.broadcast %23 : vector<1x32xf32> to vector<128x32xf32>
    %27 = arith.addf %25, %26 : vector<128x32xf32>
    %c0_13 = arith.constant 0 : index
    %c0_14 = arith.constant 0 : index
    %28 = vector.load %arg5[%c0_13, %c0_14] : memref<128x32xbf16, #tpu.memory_space<vmem>>, vector<128x32xbf16>
    %29 = arith.extf %28 : vector<128x32xbf16> to vector<128x32xf32>
    %30 = arith.addf %27, %29 : vector<128x32xf32>
    %cst_15 = arith.constant 0.000000e+00 : f32
    %31 = vector.broadcast %cst_15 : f32 to vector<128x32xf32>
    %32 = arith.maximumf %30, %31 : vector<128x32xf32>
    %33 = arith.truncf %32 : vector<128x32xf32> to vector<128x32xbf16>
    %c0_16 = arith.constant 0 : index
    %c0_17 = arith.constant 0 : index
    %34 = vector.load %arg6[%c0_16, %c0_17] : memref<128x32xbf16, #tpu.memory_space<vmem>>, vector<128x32xbf16>
    tpu.vector_store %arg6[%c0_16, %c0_17], %33 {strides = array<i32>} : memref<128x32xbf16, #tpu.memory_space<vmem>>, vector<128x32xbf16>,
    return
  }
  func.func @transform_0(%arg0: i32) -> (i32, i32) {
    %c0_i32 = arith.constant 0 : i32
    %c0_i32_0 = arith.constant 0 : i32
    return %arg0, %c0_i32 : i32, i32
  }
  func.func @transform_1(%arg0: i32) -> (i32, i32) {
    %c0_i32 = arith.constant 0 : i32
    %c0_i32_0 = arith.constant 0 : i32
    %c0_i32_1 = arith.constant 0 : i32
    return %c0_i32, %c0_i32_0 : i32, i32
  }
  func.func @transform_2(%arg0: i32) -> (i32, i32) {
    %c0_i32 = arith.constant 0 : i32
    %c0_i32_0 = arith.constant 0 : i32
    %c0_i32_1 = arith.constant 0 : i32
    return %c0_i32, %c0_i32_0 : i32, i32
  }
  func.func @transform_3(%arg0: i32) -> (i32, i32) {
    %c0_i32 = arith.constant 0 : i32
    %c0_i32_0 = arith.constant 0 : i32
    %c0_i32_1 = arith.constant 0 : i32
    return %c0_i32, %c0_i32_0 : i32, i32
  }
  func.func @transform_4(%arg0: i32) -> (i32, i32) {
    %c0_i32 = arith.constant 0 : i32
    %c0_i32_0 = arith.constant 0 : i32
    return %arg0, %c0_i32 : i32, i32
  }
  func.func @transform_5(%arg0: i32) -> (i32, i32) {
    %c0_i32 = arith.constant 0 : i32
    %c0_i32_0 = arith.constant 0 : i32
    return %arg0, %c0_i32 : i32, i32
  }
}

module attributes {stable_mosaic.version = 11 : i64} {
  func.func @conv_bn_act_kernel(%arg0: i32, %arg1: memref<32x384xbf16, #tpu.memory_space<vmem>>, %arg2: memref<384x64xbf16, #tpu.memory_space<vmem>>, %arg3: memref<1x64xf32, #tpu.memory_space<vmem>>, %arg4: memref<1x64xf32, #tpu.memory_space<vmem>>, %arg5: memref<32x64xbf16, #tpu.memory_space<vmem>>) attributes {dimension_semantics = [#tpu.dimension_semantics<parallel>], iteration_bounds = array<i64: 2>, scalar_prefetch = 0 : i64, scratch_operands = 0 : i64, tpu.core_type = #tpu.core_type<tc>, window_params = [{transform_indices = @transform_0, window_bounds = array<i64: 32, 384>}, {pipeline_mode = #tpu.pipeline_mode<synchronous>, transform_indices = @transform_1, window_bounds = array<i64: 384, 64>}, {pipeline_mode = #tpu.pipeline_mode<synchronous>, transform_indices = @transform_2, window_bounds = array<i64: 1, 64>}, {pipeline_mode = #tpu.pipeline_mode<synchronous>, transform_indices = @transform_3, window_bounds = array<i64: 1, 64>}, {transform_indices = @transform_4, window_bounds = array<i64: 32, 64>}]} {
    %c0 = arith.constant 0 : index
    %c0_0 = arith.constant 0 : index
    %0 = vector.load %arg2[%c0, %c0_0] : memref<384x64xbf16, #tpu.memory_space<vmem>>, vector<384x64xbf16>
    %c0_1 = arith.constant 0 : index
    %c0_2 = arith.constant 0 : index
    %1 = vector.load %arg3[%c0_1, %c0_2] : memref<1x64xf32, #tpu.memory_space<vmem>>, vector<1x64xf32>
    %c0_3 = arith.constant 0 : index
    %c0_4 = arith.constant 0 : index
    %2 = vector.load %arg4[%c0_3, %c0_4] : memref<1x64xf32, #tpu.memory_space<vmem>>, vector<1x64xf32>
    %c0_5 = arith.constant 0 : index
    %c0_6 = arith.constant 0 : index
    %3 = vector.load %arg1[%c0_5, %c0_6] : memref<32x384xbf16, #tpu.memory_space<vmem>>, vector<32x384xbf16>
    %cst = arith.constant dense<0.000000e+00> : vector<32x64xf32>
    %4 = tpu.matmul %3, %0, %cst {dimension_numbers = #tpu.dot_dimension_numbers<[1], [0], [0], [1], [0, 0, 1, 1], [], []>} : vector<32x384xbf16>, vector<384x64xbf16>, vector<32x64xf32> -> vector<32x64xf32>
    %cst_7 = arith.constant dense<0.000000e+00> : vector<64xf32>
    %5 = vector.multi_reduction <add>, %4, %cst_7 [0] : vector<32x64xf32> to vector<64xf32>
    %6 = vector.shape_cast %5 : vector<64xf32> to vector<1x64xf32>
    %cst_8 = arith.constant 3.200000e+01 : f32
    %7 = vector.broadcast %cst_8 : f32 to vector<1x64xf32>
    %8 = arith.divf %6, %7 : vector<1x64xf32>
    %9 = arith.mulf %4, %4 : vector<32x64xf32>
    %cst_9 = arith.constant dense<0.000000e+00> : vector<64xf32>
    %10 = vector.multi_reduction <add>, %9, %cst_9 [0] : vector<32x64xf32> to vector<64xf32>
    %11 = vector.shape_cast %10 : vector<64xf32> to vector<1x64xf32>
    %cst_10 = arith.constant 3.200000e+01 : f32
    %12 = vector.broadcast %cst_10 : f32 to vector<1x64xf32>
    %13 = arith.divf %11, %12 : vector<1x64xf32>
    %14 = arith.mulf %8, %8 : vector<1x64xf32>
    %15 = arith.subf %13, %14 : vector<1x64xf32>
    %cst_11 = arith.constant 0.000000e+00 : f32
    %16 = vector.broadcast %cst_11 : f32 to vector<1x64xf32>
    %17 = arith.maximumf %15, %16 : vector<1x64xf32>
    %cst_12 = arith.constant 9.99999974E-6 : f32
    %18 = vector.broadcast %cst_12 : f32 to vector<1x64xf32>
    %19 = arith.addf %17, %18 : vector<1x64xf32>
    %20 = math.rsqrt %19 : vector<1x64xf32>
    %21 = arith.mulf %1, %20 : vector<1x64xf32>
    %22 = arith.mulf %8, %21 : vector<1x64xf32>
    %23 = arith.subf %2, %22 : vector<1x64xf32>
    %24 = vector.broadcast %21 : vector<1x64xf32> to vector<32x64xf32>
    %25 = arith.mulf %4, %24 : vector<32x64xf32>
    %26 = vector.broadcast %23 : vector<1x64xf32> to vector<32x64xf32>
    %27 = arith.addf %25, %26 : vector<32x64xf32>
    %cst_13 = arith.constant 0.000000e+00 : f32
    %28 = vector.broadcast %cst_13 : f32 to vector<32x64xf32>
    %29 = arith.maximumf %27, %28 : vector<32x64xf32>
    %30 = arith.truncf %29 : vector<32x64xf32> to vector<32x64xbf16>
    %c0_14 = arith.constant 0 : index
    %c0_15 = arith.constant 0 : index
    %31 = vector.load %arg5[%c0_14, %c0_15] : memref<32x64xbf16, #tpu.memory_space<vmem>>, vector<32x64xbf16>
    tpu.vector_store %arg5[%c0_14, %c0_15], %30 {strides = array<i32>} : memref<32x64xbf16, #tpu.memory_space<vmem>>, vector<32x64xbf16>,
    return
  }
  func.func @transform_0(%arg0: i32) -> (i32, i32) {
    %c0_i32 = arith.constant 0 : i32
    %c0_i32_0 = arith.constant 0 : i32
    return %arg0, %c0_i32 : i32, i32
  }
  func.func @transform_1(%arg0: i32) -> (i32, i32) {
    %c0_i32 = arith.constant 0 : i32
    %c0_i32_0 = arith.constant 0 : i32
    %c0_i32_1 = arith.constant 0 : i32
    return %c0_i32, %c0_i32_0 : i32, i32
  }
  func.func @transform_2(%arg0: i32) -> (i32, i32) {
    %c0_i32 = arith.constant 0 : i32
    %c0_i32_0 = arith.constant 0 : i32
    %c0_i32_1 = arith.constant 0 : i32
    return %c0_i32, %c0_i32_0 : i32, i32
  }
  func.func @transform_3(%arg0: i32) -> (i32, i32) {
    %c0_i32 = arith.constant 0 : i32
    %c0_i32_0 = arith.constant 0 : i32
    %c0_i32_1 = arith.constant 0 : i32
    return %c0_i32, %c0_i32_0 : i32, i32
  }
  func.func @transform_4(%arg0: i32) -> (i32, i32) {
    %c0_i32 = arith.constant 0 : i32
    %c0_i32_0 = arith.constant 0 : i32
    return %arg0, %c0_i32 : i32, i32
  }
}

module attributes {stable_mosaic.version = 11 : i64} {
  func.func @conv_bn_act_kernel(%arg0: i32, %arg1: memref<32x128xbf16, #tpu.memory_space<vmem>>, %arg2: memref<128x64xbf16, #tpu.memory_space<vmem>>, %arg3: memref<1x64xf32, #tpu.memory_space<vmem>>, %arg4: memref<1x64xf32, #tpu.memory_space<vmem>>, %arg5: memref<32x64xbf16, #tpu.memory_space<vmem>>) attributes {dimension_semantics = [#tpu.dimension_semantics<parallel>], iteration_bounds = array<i64: 2>, scalar_prefetch = 0 : i64, scratch_operands = 0 : i64, tpu.core_type = #tpu.core_type<tc>, window_params = [{transform_indices = @transform_0, window_bounds = array<i64: 32, 128>}, {pipeline_mode = #tpu.pipeline_mode<synchronous>, transform_indices = @transform_1, window_bounds = array<i64: 128, 64>}, {pipeline_mode = #tpu.pipeline_mode<synchronous>, transform_indices = @transform_2, window_bounds = array<i64: 1, 64>}, {pipeline_mode = #tpu.pipeline_mode<synchronous>, transform_indices = @transform_3, window_bounds = array<i64: 1, 64>}, {transform_indices = @transform_4, window_bounds = array<i64: 32, 64>}]} {
    %c0 = arith.constant 0 : index
    %c0_0 = arith.constant 0 : index
    %0 = vector.load %arg2[%c0, %c0_0] : memref<128x64xbf16, #tpu.memory_space<vmem>>, vector<128x64xbf16>
    %c0_1 = arith.constant 0 : index
    %c0_2 = arith.constant 0 : index
    %1 = vector.load %arg3[%c0_1, %c0_2] : memref<1x64xf32, #tpu.memory_space<vmem>>, vector<1x64xf32>
    %c0_3 = arith.constant 0 : index
    %c0_4 = arith.constant 0 : index
    %2 = vector.load %arg4[%c0_3, %c0_4] : memref<1x64xf32, #tpu.memory_space<vmem>>, vector<1x64xf32>
    %c0_5 = arith.constant 0 : index
    %c0_6 = arith.constant 0 : index
    %3 = vector.load %arg1[%c0_5, %c0_6] : memref<32x128xbf16, #tpu.memory_space<vmem>>, vector<32x128xbf16>
    %cst = arith.constant dense<0.000000e+00> : vector<32x64xf32>
    %4 = tpu.matmul %3, %0, %cst {dimension_numbers = #tpu.dot_dimension_numbers<[1], [0], [0], [1], [0, 0, 1, 1], [], []>} : vector<32x128xbf16>, vector<128x64xbf16>, vector<32x64xf32> -> vector<32x64xf32>
    %cst_7 = arith.constant dense<0.000000e+00> : vector<64xf32>
    %5 = vector.multi_reduction <add>, %4, %cst_7 [0] : vector<32x64xf32> to vector<64xf32>
    %6 = vector.shape_cast %5 : vector<64xf32> to vector<1x64xf32>
    %cst_8 = arith.constant 3.200000e+01 : f32
    %7 = vector.broadcast %cst_8 : f32 to vector<1x64xf32>
    %8 = arith.divf %6, %7 : vector<1x64xf32>
    %9 = arith.mulf %4, %4 : vector<32x64xf32>
    %cst_9 = arith.constant dense<0.000000e+00> : vector<64xf32>
    %10 = vector.multi_reduction <add>, %9, %cst_9 [0] : vector<32x64xf32> to vector<64xf32>
    %11 = vector.shape_cast %10 : vector<64xf32> to vector<1x64xf32>
    %cst_10 = arith.constant 3.200000e+01 : f32
    %12 = vector.broadcast %cst_10 : f32 to vector<1x64xf32>
    %13 = arith.divf %11, %12 : vector<1x64xf32>
    %14 = arith.mulf %8, %8 : vector<1x64xf32>
    %15 = arith.subf %13, %14 : vector<1x64xf32>
    %cst_11 = arith.constant 0.000000e+00 : f32
    %16 = vector.broadcast %cst_11 : f32 to vector<1x64xf32>
    %17 = arith.maximumf %15, %16 : vector<1x64xf32>
    %cst_12 = arith.constant 9.99999974E-6 : f32
    %18 = vector.broadcast %cst_12 : f32 to vector<1x64xf32>
    %19 = arith.addf %17, %18 : vector<1x64xf32>
    %20 = math.rsqrt %19 : vector<1x64xf32>
    %21 = arith.mulf %1, %20 : vector<1x64xf32>
    %22 = arith.mulf %8, %21 : vector<1x64xf32>
    %23 = arith.subf %2, %22 : vector<1x64xf32>
    %24 = vector.broadcast %21 : vector<1x64xf32> to vector<32x64xf32>
    %25 = arith.mulf %4, %24 : vector<32x64xf32>
    %26 = vector.broadcast %23 : vector<1x64xf32> to vector<32x64xf32>
    %27 = arith.addf %25, %26 : vector<32x64xf32>
    %28 = arith.truncf %27 : vector<32x64xf32> to vector<32x64xbf16>
    %c0_13 = arith.constant 0 : index
    %c0_14 = arith.constant 0 : index
    %29 = vector.load %arg5[%c0_13, %c0_14] : memref<32x64xbf16, #tpu.memory_space<vmem>>, vector<32x64xbf16>
    tpu.vector_store %arg5[%c0_13, %c0_14], %28 {strides = array<i32>} : memref<32x64xbf16, #tpu.memory_space<vmem>>, vector<32x64xbf16>,
    return
  }
  func.func @transform_0(%arg0: i32) -> (i32, i32) {
    %c0_i32 = arith.constant 0 : i32
    %c0_i32_0 = arith.constant 0 : i32
    return %arg0, %c0_i32 : i32, i32
  }
  func.func @transform_1(%arg0: i32) -> (i32, i32) {
    %c0_i32 = arith.constant 0 : i32
    %c0_i32_0 = arith.constant 0 : i32
    %c0_i32_1 = arith.constant 0 : i32
    return %c0_i32, %c0_i32_0 : i32, i32
  }
  func.func @transform_2(%arg0: i32) -> (i32, i32) {
    %c0_i32 = arith.constant 0 : i32
    %c0_i32_0 = arith.constant 0 : i32
    %c0_i32_1 = arith.constant 0 : i32
    return %c0_i32, %c0_i32_0 : i32, i32
  }
  func.func @transform_3(%arg0: i32) -> (i32, i32) {
    %c0_i32 = arith.constant 0 : i32
    %c0_i32_0 = arith.constant 0 : i32
    %c0_i32_1 = arith.constant 0 : i32
    return %c0_i32, %c0_i32_0 : i32, i32
  }
  func.func @transform_4(%arg0: i32) -> (i32, i32) {
    %c0_i32 = arith.constant 0 : i32
    %c0_i32_0 = arith.constant 0 : i32
    return %arg0, %c0_i32 : i32, i32
  }
}

module attributes {stable_mosaic.version = 11 : i64} {
  func.func @conv_bn_res_act_kernel(%arg0: i32, %arg1: memref<32x640xbf16, #tpu.memory_space<vmem>>, %arg2: memref<640x64xbf16, #tpu.memory_space<vmem>>, %arg3: memref<1x64xf32, #tpu.memory_space<vmem>>, %arg4: memref<1x64xf32, #tpu.memory_space<vmem>>, %arg5: memref<32x64xbf16, #tpu.memory_space<vmem>>, %arg6: memref<32x64xbf16, #tpu.memory_space<vmem>>) attributes {dimension_semantics = [#tpu.dimension_semantics<parallel>], iteration_bounds = array<i64: 2>, scalar_prefetch = 0 : i64, scratch_operands = 0 : i64, tpu.core_type = #tpu.core_type<tc>, window_params = [{transform_indices = @transform_0, window_bounds = array<i64: 32, 640>}, {pipeline_mode = #tpu.pipeline_mode<synchronous>, transform_indices = @transform_1, window_bounds = array<i64: 640, 64>}, {pipeline_mode = #tpu.pipeline_mode<synchronous>, transform_indices = @transform_2, window_bounds = array<i64: 1, 64>}, {pipeline_mode = #tpu.pipeline_mode<synchronous>, transform_indices = @transform_3, window_bounds = array<i64: 1, 64>}, {transform_indices = @transform_4, window_bounds = array<i64: 32, 64>}, {transform_indices = @transform_5, window_bounds = array<i64: 32, 64>}]} {
    %c0 = arith.constant 0 : index
    %c0_0 = arith.constant 0 : index
    %0 = vector.load %arg2[%c0, %c0_0] : memref<640x64xbf16, #tpu.memory_space<vmem>>, vector<640x64xbf16>
    %c0_1 = arith.constant 0 : index
    %c0_2 = arith.constant 0 : index
    %1 = vector.load %arg3[%c0_1, %c0_2] : memref<1x64xf32, #tpu.memory_space<vmem>>, vector<1x64xf32>
    %c0_3 = arith.constant 0 : index
    %c0_4 = arith.constant 0 : index
    %2 = vector.load %arg4[%c0_3, %c0_4] : memref<1x64xf32, #tpu.memory_space<vmem>>, vector<1x64xf32>
    %c0_5 = arith.constant 0 : index
    %c0_6 = arith.constant 0 : index
    %3 = vector.load %arg1[%c0_5, %c0_6] : memref<32x640xbf16, #tpu.memory_space<vmem>>, vector<32x640xbf16>
    %cst = arith.constant dense<0.000000e+00> : vector<32x64xf32>
    %4 = tpu.matmul %3, %0, %cst {dimension_numbers = #tpu.dot_dimension_numbers<[1], [0], [0], [1], [0, 0, 1, 1], [], []>} : vector<32x640xbf16>, vector<640x64xbf16>, vector<32x64xf32> -> vector<32x64xf32>
    %cst_7 = arith.constant dense<0.000000e+00> : vector<64xf32>
    %5 = vector.multi_reduction <add>, %4, %cst_7 [0] : vector<32x64xf32> to vector<64xf32>
    %6 = vector.shape_cast %5 : vector<64xf32> to vector<1x64xf32>
    %cst_8 = arith.constant 3.200000e+01 : f32
    %7 = vector.broadcast %cst_8 : f32 to vector<1x64xf32>
    %8 = arith.divf %6, %7 : vector<1x64xf32>
    %9 = arith.mulf %4, %4 : vector<32x64xf32>
    %cst_9 = arith.constant dense<0.000000e+00> : vector<64xf32>
    %10 = vector.multi_reduction <add>, %9, %cst_9 [0] : vector<32x64xf32> to vector<64xf32>
    %11 = vector.shape_cast %10 : vector<64xf32> to vector<1x64xf32>
    %cst_10 = arith.constant 3.200000e+01 : f32
    %12 = vector.broadcast %cst_10 : f32 to vector<1x64xf32>
    %13 = arith.divf %11, %12 : vector<1x64xf32>
    %14 = arith.mulf %8, %8 : vector<1x64xf32>
    %15 = arith.subf %13, %14 : vector<1x64xf32>
    %cst_11 = arith.constant 0.000000e+00 : f32
    %16 = vector.broadcast %cst_11 : f32 to vector<1x64xf32>
    %17 = arith.maximumf %15, %16 : vector<1x64xf32>
    %cst_12 = arith.constant 9.99999974E-6 : f32
    %18 = vector.broadcast %cst_12 : f32 to vector<1x64xf32>
    %19 = arith.addf %17, %18 : vector<1x64xf32>
    %20 = math.rsqrt %19 : vector<1x64xf32>
    %21 = arith.mulf %1, %20 : vector<1x64xf32>
    %22 = arith.mulf %8, %21 : vector<1x64xf32>
    %23 = arith.subf %2, %22 : vector<1x64xf32>
    %24 = vector.broadcast %21 : vector<1x64xf32> to vector<32x64xf32>
    %25 = arith.mulf %4, %24 : vector<32x64xf32>
    %26 = vector.broadcast %23 : vector<1x64xf32> to vector<32x64xf32>
    %27 = arith.addf %25, %26 : vector<32x64xf32>
    %c0_13 = arith.constant 0 : index
    %c0_14 = arith.constant 0 : index
    %28 = vector.load %arg5[%c0_13, %c0_14] : memref<32x64xbf16, #tpu.memory_space<vmem>>, vector<32x64xbf16>
    %29 = arith.extf %28 : vector<32x64xbf16> to vector<32x64xf32>
    %30 = arith.addf %27, %29 : vector<32x64xf32>
    %cst_15 = arith.constant 0.000000e+00 : f32
    %31 = vector.broadcast %cst_15 : f32 to vector<32x64xf32>
    %32 = arith.maximumf %30, %31 : vector<32x64xf32>
    %33 = arith.truncf %32 : vector<32x64xf32> to vector<32x64xbf16>
    %c0_16 = arith.constant 0 : index
    %c0_17 = arith.constant 0 : index
    %34 = vector.load %arg6[%c0_16, %c0_17] : memref<32x64xbf16, #tpu.memory_space<vmem>>, vector<32x64xbf16>
    tpu.vector_store %arg6[%c0_16, %c0_17], %33 {strides = array<i32>} : memref<32x64xbf16, #tpu.memory_space<vmem>>, vector<32x64xbf16>,
    return
  }
  func.func @transform_0(%arg0: i32) -> (i32, i32) {
    %c0_i32 = arith.constant 0 : i32
    %c0_i32_0 = arith.constant 0 : i32
    return %arg0, %c0_i32 : i32, i32
  }
  func.func @transform_1(%arg0: i32) -> (i32, i32) {
    %c0_i32 = arith.constant 0 : i32
    %c0_i32_0 = arith.constant 0 : i32
    %c0_i32_1 = arith.constant 0 : i32
    return %c0_i32, %c0_i32_0 : i32, i32
  }
  func.func @transform_2(%arg0: i32) -> (i32, i32) {
    %c0_i32 = arith.constant 0 : i32
    %c0_i32_0 = arith.constant 0 : i32
    %c0_i32_1 = arith.constant 0 : i32
    return %c0_i32, %c0_i32_0 : i32, i32
  }
  func.func @transform_3(%arg0: i32) -> (i32, i32) {
    %c0_i32 = arith.constant 0 : i32
    %c0_i32_0 = arith.constant 0 : i32
    %c0_i32_1 = arith.constant 0 : i32
    return %c0_i32, %c0_i32_0 : i32, i32
  }
  func.func @transform_4(%arg0: i32) -> (i32, i32) {
    %c0_i32 = arith.constant 0 : i32
    %c0_i32_0 = arith.constant 0 : i32
    return %arg0, %c0_i32 : i32, i32
  }
  func.func @transform_5(%arg0: i32) -> (i32, i32) {
    %c0_i32 = arith.constant 0 : i32
    %c0_i32_0 = arith.constant 0 : i32
    return %arg0, %c0_i32 : i32, i32
  }
}

module attributes {stable_mosaic.version = 11 : i64} {
  func.func @conv_bn_act_kernel(%arg0: i32, %arg1: memref<32x640xbf16, #tpu.memory_space<vmem>>, %arg2: memref<640x64xbf16, #tpu.memory_space<vmem>>, %arg3: memref<1x64xf32, #tpu.memory_space<vmem>>, %arg4: memref<1x64xf32, #tpu.memory_space<vmem>>, %arg5: memref<32x64xbf16, #tpu.memory_space<vmem>>) attributes {dimension_semantics = [#tpu.dimension_semantics<parallel>], iteration_bounds = array<i64: 2>, scalar_prefetch = 0 : i64, scratch_operands = 0 : i64, tpu.core_type = #tpu.core_type<tc>, window_params = [{transform_indices = @transform_0, window_bounds = array<i64: 32, 640>}, {pipeline_mode = #tpu.pipeline_mode<synchronous>, transform_indices = @transform_1, window_bounds = array<i64: 640, 64>}, {pipeline_mode = #tpu.pipeline_mode<synchronous>, transform_indices = @transform_2, window_bounds = array<i64: 1, 64>}, {pipeline_mode = #tpu.pipeline_mode<synchronous>, transform_indices = @transform_3, window_bounds = array<i64: 1, 64>}, {transform_indices = @transform_4, window_bounds = array<i64: 32, 64>}]} {
    %c0 = arith.constant 0 : index
    %c0_0 = arith.constant 0 : index
    %0 = vector.load %arg2[%c0, %c0_0] : memref<640x64xbf16, #tpu.memory_space<vmem>>, vector<640x64xbf16>
    %c0_1 = arith.constant 0 : index
    %c0_2 = arith.constant 0 : index
    %1 = vector.load %arg3[%c0_1, %c0_2] : memref<1x64xf32, #tpu.memory_space<vmem>>, vector<1x64xf32>
    %c0_3 = arith.constant 0 : index
    %c0_4 = arith.constant 0 : index
    %2 = vector.load %arg4[%c0_3, %c0_4] : memref<1x64xf32, #tpu.memory_space<vmem>>, vector<1x64xf32>
    %c0_5 = arith.constant 0 : index
    %c0_6 = arith.constant 0 : index
    %3 = vector.load %arg1[%c0_5, %c0_6] : memref<32x640xbf16, #tpu.memory_space<vmem>>, vector<32x640xbf16>
    %cst = arith.constant dense<0.000000e+00> : vector<32x64xf32>
    %4 = tpu.matmul %3, %0, %cst {dimension_numbers = #tpu.dot_dimension_numbers<[1], [0], [0], [1], [0, 0, 1, 1], [], []>} : vector<32x640xbf16>, vector<640x64xbf16>, vector<32x64xf32> -> vector<32x64xf32>
    %cst_7 = arith.constant dense<0.000000e+00> : vector<64xf32>
    %5 = vector.multi_reduction <add>, %4, %cst_7 [0] : vector<32x64xf32> to vector<64xf32>
    %6 = vector.shape_cast %5 : vector<64xf32> to vector<1x64xf32>
    %cst_8 = arith.constant 3.200000e+01 : f32
    %7 = vector.broadcast %cst_8 : f32 to vector<1x64xf32>
    %8 = arith.divf %6, %7 : vector<1x64xf32>
    %9 = arith.mulf %4, %4 : vector<32x64xf32>
    %cst_9 = arith.constant dense<0.000000e+00> : vector<64xf32>
    %10 = vector.multi_reduction <add>, %9, %cst_9 [0] : vector<32x64xf32> to vector<64xf32>
    %11 = vector.shape_cast %10 : vector<64xf32> to vector<1x64xf32>
    %cst_10 = arith.constant 3.200000e+01 : f32
    %12 = vector.broadcast %cst_10 : f32 to vector<1x64xf32>
    %13 = arith.divf %11, %12 : vector<1x64xf32>
    %14 = arith.mulf %8, %8 : vector<1x64xf32>
    %15 = arith.subf %13, %14 : vector<1x64xf32>
    %cst_11 = arith.constant 0.000000e+00 : f32
    %16 = vector.broadcast %cst_11 : f32 to vector<1x64xf32>
    %17 = arith.maximumf %15, %16 : vector<1x64xf32>
    %cst_12 = arith.constant 9.99999974E-6 : f32
    %18 = vector.broadcast %cst_12 : f32 to vector<1x64xf32>
    %19 = arith.addf %17, %18 : vector<1x64xf32>
    %20 = math.rsqrt %19 : vector<1x64xf32>
    %21 = arith.mulf %1, %20 : vector<1x64xf32>
    %22 = arith.mulf %8, %21 : vector<1x64xf32>
    %23 = arith.subf %2, %22 : vector<1x64xf32>
    %24 = vector.broadcast %21 : vector<1x64xf32> to vector<32x64xf32>
    %25 = arith.mulf %4, %24 : vector<32x64xf32>
    %26 = vector.broadcast %23 : vector<1x64xf32> to vector<32x64xf32>
    %27 = arith.addf %25, %26 : vector<32x64xf32>
    %cst_13 = arith.constant 0.000000e+00 : f32
    %28 = vector.broadcast %cst_13 : f32 to vector<32x64xf32>
    %29 = arith.maximumf %27, %28 : vector<32x64xf32>
    %30 = arith.truncf %29 : vector<32x64xf32> to vector<32x64xbf16>
    %c0_14 = arith.constant 0 : index
    %c0_15 = arith.constant 0 : index
    %31 = vector.load %arg5[%c0_14, %c0_15] : memref<32x64xbf16, #tpu.memory_space<vmem>>, vector<32x64xbf16>
    tpu.vector_store %arg5[%c0_14, %c0_15], %30 {strides = array<i32>} : memref<32x64xbf16, #tpu.memory_space<vmem>>, vector<32x64xbf16>,
    return
  }
  func.func @transform_0(%arg0: i32) -> (i32, i32) {
    %c0_i32 = arith.constant 0 : i32
    %c0_i32_0 = arith.constant 0 : i32
    return %arg0, %c0_i32 : i32, i32
  }
  func.func @transform_1(%arg0: i32) -> (i32, i32) {
    %c0_i32 = arith.constant 0 : i32
    %c0_i32_0 = arith.constant 0 : i32
    %c0_i32_1 = arith.constant 0 : i32
    return %c0_i32, %c0_i32_0 : i32, i32
  }
  func.func @transform_2(%arg0: i32) -> (i32, i32) {
    %c0_i32 = arith.constant 0 : i32
    %c0_i32_0 = arith.constant 0 : i32
    %c0_i32_1 = arith.constant 0 : i32
    return %c0_i32, %c0_i32_0 : i32, i32
  }
  func.func @transform_3(%arg0: i32) -> (i32, i32) {
    %c0_i32 = arith.constant 0 : i32
    %c0_i32_0 = arith.constant 0 : i32
    %c0_i32_1 = arith.constant 0 : i32
    return %c0_i32, %c0_i32_0 : i32, i32
  }
  func.func @transform_4(%arg0: i32) -> (i32, i32) {
    %c0_i32 = arith.constant 0 : i32
    %c0_i32_0 = arith.constant 0 : i32
    return %arg0, %c0_i32 : i32, i32
  }
}

module attributes {stable_mosaic.version = 11 : i64} {
  func.func @conv_bn_act_kernel(%arg0: i32, %arg1: memref<16x640xbf16, #tpu.memory_space<vmem>>, %arg2: memref<640x128xbf16, #tpu.memory_space<vmem>>, %arg3: memref<1x128xf32, #tpu.memory_space<vmem>>, %arg4: memref<1x128xf32, #tpu.memory_space<vmem>>, %arg5: memref<16x128xbf16, #tpu.memory_space<vmem>>) attributes {dimension_semantics = [#tpu.dimension_semantics<parallel>], iteration_bounds = array<i64: 1>, scalar_prefetch = 0 : i64, scratch_operands = 0 : i64, tpu.core_type = #tpu.core_type<tc>, window_params = [{transform_indices = @transform_0, window_bounds = array<i64: 16, 640>}, {pipeline_mode = #tpu.pipeline_mode<synchronous>, transform_indices = @transform_1, window_bounds = array<i64: 640, 128>}, {pipeline_mode = #tpu.pipeline_mode<synchronous>, transform_indices = @transform_2, window_bounds = array<i64: 1, 128>}, {pipeline_mode = #tpu.pipeline_mode<synchronous>, transform_indices = @transform_3, window_bounds = array<i64: 1, 128>}, {transform_indices = @transform_4, window_bounds = array<i64: 16, 128>}]} {
    %c0 = arith.constant 0 : index
    %c0_0 = arith.constant 0 : index
    %0 = vector.load %arg2[%c0, %c0_0] : memref<640x128xbf16, #tpu.memory_space<vmem>>, vector<640x128xbf16>
    %c0_1 = arith.constant 0 : index
    %c0_2 = arith.constant 0 : index
    %1 = vector.load %arg3[%c0_1, %c0_2] : memref<1x128xf32, #tpu.memory_space<vmem>>, vector<1x128xf32>
    %c0_3 = arith.constant 0 : index
    %c0_4 = arith.constant 0 : index
    %2 = vector.load %arg4[%c0_3, %c0_4] : memref<1x128xf32, #tpu.memory_space<vmem>>, vector<1x128xf32>
    %c0_5 = arith.constant 0 : index
    %c0_6 = arith.constant 0 : index
    %3 = vector.load %arg1[%c0_5, %c0_6] : memref<16x640xbf16, #tpu.memory_space<vmem>>, vector<8x640xbf16>
    %cst = arith.constant dense<0.000000e+00> : vector<8x128xf32>
    %4 = tpu.matmul %3, %0, %cst {dimension_numbers = #tpu.dot_dimension_numbers<[1], [0], [0], [1], [0, 0, 1, 1], [], []>} : vector<8x640xbf16>, vector<640x128xbf16>, vector<8x128xf32> -> vector<8x128xf32>
    %cst_7 = arith.constant dense<0.000000e+00> : vector<128xf32>
    %5 = vector.multi_reduction <add>, %4, %cst_7 [0] : vector<8x128xf32> to vector<128xf32>
    %6 = vector.shape_cast %5 : vector<128xf32> to vector<1x128xf32>
    %cst_8 = arith.constant 8.000000e+00 : f32
    %7 = vector.broadcast %cst_8 : f32 to vector<1x128xf32>
    %8 = arith.divf %6, %7 : vector<1x128xf32>
    %9 = arith.mulf %4, %4 : vector<8x128xf32>
    %cst_9 = arith.constant dense<0.000000e+00> : vector<128xf32>
    %10 = vector.multi_reduction <add>, %9, %cst_9 [0] : vector<8x128xf32> to vector<128xf32>
    %11 = vector.shape_cast %10 : vector<128xf32> to vector<1x128xf32>
    %cst_10 = arith.constant 8.000000e+00 : f32
    %12 = vector.broadcast %cst_10 : f32 to vector<1x128xf32>
    %13 = arith.divf %11, %12 : vector<1x128xf32>
    %14 = arith.mulf %8, %8 : vector<1x128xf32>
    %15 = arith.subf %13, %14 : vector<1x128xf32>
    %cst_11 = arith.constant 0.000000e+00 : f32
    %16 = vector.broadcast %cst_11 : f32 to vector<1x128xf32>
    %17 = arith.maximumf %15, %16 : vector<1x128xf32>
    %cst_12 = arith.constant 9.99999974E-6 : f32
    %18 = vector.broadcast %cst_12 : f32 to vector<1x128xf32>
    %19 = arith.addf %17, %18 : vector<1x128xf32>
    %20 = math.rsqrt %19 : vector<1x128xf32>
    %21 = arith.mulf %1, %20 : vector<1x128xf32>
    %22 = arith.mulf %8, %21 : vector<1x128xf32>
    %23 = arith.subf %2, %22 : vector<1x128xf32>
    %24 = vector.broadcast %21 : vector<1x128xf32> to vector<8x128xf32>
    %25 = arith.mulf %4, %24 : vector<8x128xf32>
    %26 = vector.broadcast %23 : vector<1x128xf32> to vector<8x128xf32>
    %27 = arith.addf %25, %26 : vector<8x128xf32>
    %cst_13 = arith.constant 0.000000e+00 : f32
    %28 = vector.broadcast %cst_13 : f32 to vector<8x128xf32>
    %29 = arith.maximumf %27, %28 : vector<8x128xf32>
    %30 = arith.truncf %29 : vector<8x128xf32> to vector<8x128xbf16>
    %c0_14 = arith.constant 0 : index
    %c0_15 = arith.constant 0 : index
    %31 = vector.load %arg5[%c0_14, %c0_15] : memref<16x128xbf16, #tpu.memory_space<vmem>>, vector<8x128xbf16>
    tpu.vector_store %arg5[%c0_14, %c0_15], %30 {strides = array<i32>} : memref<16x128xbf16, #tpu.memory_space<vmem>>, vector<8x128xbf16>,
    %c8 = arith.constant 8 : index
    %c0_16 = arith.constant 0 : index
    %32 = vector.load %arg1[%c8, %c0_16] : memref<16x640xbf16, #tpu.memory_space<vmem>>, vector<8x640xbf16>
    %cst_17 = arith.constant dense<0.000000e+00> : vector<8x128xf32>
    %33 = tpu.matmul %32, %0, %cst_17 {dimension_numbers = #tpu.dot_dimension_numbers<[1], [0], [0], [1], [0, 0, 1, 1], [], []>} : vector<8x640xbf16>, vector<640x128xbf16>, vector<8x128xf32> -> vector<8x128xf32>
    %cst_18 = arith.constant dense<0.000000e+00> : vector<128xf32>
    %34 = vector.multi_reduction <add>, %33, %cst_18 [0] : vector<8x128xf32> to vector<128xf32>
    %35 = vector.shape_cast %34 : vector<128xf32> to vector<1x128xf32>
    %cst_19 = arith.constant 8.000000e+00 : f32
    %36 = vector.broadcast %cst_19 : f32 to vector<1x128xf32>
    %37 = arith.divf %35, %36 : vector<1x128xf32>
    %38 = arith.mulf %33, %33 : vector<8x128xf32>
    %cst_20 = arith.constant dense<0.000000e+00> : vector<128xf32>
    %39 = vector.multi_reduction <add>, %38, %cst_20 [0] : vector<8x128xf32> to vector<128xf32>
    %40 = vector.shape_cast %39 : vector<128xf32> to vector<1x128xf32>
    %cst_21 = arith.constant 8.000000e+00 : f32
    %41 = vector.broadcast %cst_21 : f32 to vector<1x128xf32>
    %42 = arith.divf %40, %41 : vector<1x128xf32>
    %43 = arith.mulf %37, %37 : vector<1x128xf32>
    %44 = arith.subf %42, %43 : vector<1x128xf32>
    %cst_22 = arith.constant 0.000000e+00 : f32
    %45 = vector.broadcast %cst_22 : f32 to vector<1x128xf32>
    %46 = arith.maximumf %44, %45 : vector<1x128xf32>
    %cst_23 = arith.constant 9.99999974E-6 : f32
    %47 = vector.broadcast %cst_23 : f32 to vector<1x128xf32>
    %48 = arith.addf %46, %47 : vector<1x128xf32>
    %49 = math.rsqrt %48 : vector<1x128xf32>
    %50 = arith.mulf %1, %49 : vector<1x128xf32>
    %51 = arith.mulf %37, %50 : vector<1x128xf32>
    %52 = arith.subf %2, %51 : vector<1x128xf32>
    %53 = vector.broadcast %50 : vector<1x128xf32> to vector<8x128xf32>
    %54 = arith.mulf %33, %53 : vector<8x128xf32>
    %55 = vector.broadcast %52 : vector<1x128xf32> to vector<8x128xf32>
    %56 = arith.addf %54, %55 : vector<8x128xf32>
    %cst_24 = arith.constant 0.000000e+00 : f32
    %57 = vector.broadcast %cst_24 : f32 to vector<8x128xf32>
    %58 = arith.maximumf %56, %57 : vector<8x128xf32>
    %59 = arith.truncf %58 : vector<8x128xf32> to vector<8x128xbf16>
    %c8_25 = arith.constant 8 : index
    %c0_26 = arith.constant 0 : index
    %60 = vector.load %arg5[%c8_25, %c0_26] : memref<16x128xbf16, #tpu.memory_space<vmem>>, vector<8x128xbf16>
    tpu.vector_store %arg5[%c8_25, %c0_26], %59 {strides = array<i32>} : memref<16x128xbf16, #tpu.memory_space<vmem>>, vector<8x128xbf16>,
    return
  }
  func.func @transform_0(%arg0: i32) -> (i32, i32) {
    %c0_i32 = arith.constant 0 : i32
    %c0_i32_0 = arith.constant 0 : i32
    return %arg0, %c0_i32 : i32, i32
  }
  func.func @transform_1(%arg0: i32) -> (i32, i32) {
    %c0_i32 = arith.constant 0 : i32
    %c0_i32_0 = arith.constant 0 : i32
    %c0_i32_1 = arith.constant 0 : i32
    return %c0_i32, %c0_i32_0 : i32, i32
  }
  func.func @transform_2(%arg0: i32) -> (i32, i32) {
    %c0_i32 = arith.constant 0 : i32
    %c0_i32_0 = arith.constant 0 : i32
    %c0_i32_1 = arith.constant 0 : i32
    return %c0_i32, %c0_i32_0 : i32, i32
  }
  func.func @transform_3(%arg0: i32) -> (i32, i32) {
    %c0_i32 = arith.constant 0 : i32
    %c0_i32_0 = arith.constant 0 : i32
    %c0_i32_1 = arith.constant 0 : i32
    return %c0_i32, %c0_i32_0 : i32, i32
  }
  func.func @transform_4(%arg0: i32) -> (i32, i32) {
    %c0_i32 = arith.constant 0 : i32
    %c0_i32_0 = arith.constant 0 : i32
    return %arg0, %c0_i32 : i32, i32
  }
}

module attributes {stable_mosaic.version = 11 : i64} {
  func.func @conv_bn_act_kernel(%arg0: i32, %arg1: memref<16x128xbf16, #tpu.memory_space<vmem>>, %arg2: memref<128x128xbf16, #tpu.memory_space<vmem>>, %arg3: memref<1x128xf32, #tpu.memory_space<vmem>>, %arg4: memref<1x128xf32, #tpu.memory_space<vmem>>, %arg5: memref<16x128xbf16, #tpu.memory_space<vmem>>) attributes {dimension_semantics = [#tpu.dimension_semantics<parallel>], iteration_bounds = array<i64: 1>, scalar_prefetch = 0 : i64, scratch_operands = 0 : i64, tpu.core_type = #tpu.core_type<tc>, window_params = [{transform_indices = @transform_0, window_bounds = array<i64: 16, 128>}, {pipeline_mode = #tpu.pipeline_mode<synchronous>, transform_indices = @transform_1, window_bounds = array<i64: 128, 128>}, {pipeline_mode = #tpu.pipeline_mode<synchronous>, transform_indices = @transform_2, window_bounds = array<i64: 1, 128>}, {pipeline_mode = #tpu.pipeline_mode<synchronous>, transform_indices = @transform_3, window_bounds = array<i64: 1, 128>}, {transform_indices = @transform_4, window_bounds = array<i64: 16, 128>}]} {
    %c0 = arith.constant 0 : index
    %c0_0 = arith.constant 0 : index
    %0 = vector.load %arg2[%c0, %c0_0] : memref<128x128xbf16, #tpu.memory_space<vmem>>, vector<128x128xbf16>
    %c0_1 = arith.constant 0 : index
    %c0_2 = arith.constant 0 : index
    %1 = vector.load %arg3[%c0_1, %c0_2] : memref<1x128xf32, #tpu.memory_space<vmem>>, vector<1x128xf32>
    %c0_3 = arith.constant 0 : index
    %c0_4 = arith.constant 0 : index
    %2 = vector.load %arg4[%c0_3, %c0_4] : memref<1x128xf32, #tpu.memory_space<vmem>>, vector<1x128xf32>
    %c0_5 = arith.constant 0 : index
    %c0_6 = arith.constant 0 : index
    %3 = vector.load %arg1[%c0_5, %c0_6] : memref<16x128xbf16, #tpu.memory_space<vmem>>, vector<8x128xbf16>
    %cst = arith.constant dense<0.000000e+00> : vector<8x128xf32>
    %4 = tpu.matmul %3, %0, %cst {dimension_numbers = #tpu.dot_dimension_numbers<[1], [0], [0], [1], [0, 0, 1, 1], [], []>} : vector<8x128xbf16>, vector<128x128xbf16>, vector<8x128xf32> -> vector<8x128xf32>
    %cst_7 = arith.constant dense<0.000000e+00> : vector<128xf32>
    %5 = vector.multi_reduction <add>, %4, %cst_7 [0] : vector<8x128xf32> to vector<128xf32>
    %6 = vector.shape_cast %5 : vector<128xf32> to vector<1x128xf32>
    %cst_8 = arith.constant 8.000000e+00 : f32
    %7 = vector.broadcast %cst_8 : f32 to vector<1x128xf32>
    %8 = arith.divf %6, %7 : vector<1x128xf32>
    %9 = arith.mulf %4, %4 : vector<8x128xf32>
    %cst_9 = arith.constant dense<0.000000e+00> : vector<128xf32>
    %10 = vector.multi_reduction <add>, %9, %cst_9 [0] : vector<8x128xf32> to vector<128xf32>
    %11 = vector.shape_cast %10 : vector<128xf32> to vector<1x128xf32>
    %cst_10 = arith.constant 8.000000e+00 : f32
    %12 = vector.broadcast %cst_10 : f32 to vector<1x128xf32>
    %13 = arith.divf %11, %12 : vector<1x128xf32>
    %14 = arith.mulf %8, %8 : vector<1x128xf32>
    %15 = arith.subf %13, %14 : vector<1x128xf32>
    %cst_11 = arith.constant 0.000000e+00 : f32
    %16 = vector.broadcast %cst_11 : f32 to vector<1x128xf32>
    %17 = arith.maximumf %15, %16 : vector<1x128xf32>
    %cst_12 = arith.constant 9.99999974E-6 : f32
    %18 = vector.broadcast %cst_12 : f32 to vector<1x128xf32>
    %19 = arith.addf %17, %18 : vector<1x128xf32>
    %20 = math.rsqrt %19 : vector<1x128xf32>
    %21 = arith.mulf %1, %20 : vector<1x128xf32>
    %22 = arith.mulf %8, %21 : vector<1x128xf32>
    %23 = arith.subf %2, %22 : vector<1x128xf32>
    %24 = vector.broadcast %21 : vector<1x128xf32> to vector<8x128xf32>
    %25 = arith.mulf %4, %24 : vector<8x128xf32>
    %26 = vector.broadcast %23 : vector<1x128xf32> to vector<8x128xf32>
    %27 = arith.addf %25, %26 : vector<8x128xf32>
    %28 = arith.truncf %27 : vector<8x128xf32> to vector<8x128xbf16>
    %c0_13 = arith.constant 0 : index
    %c0_14 = arith.constant 0 : index
    %29 = vector.load %arg5[%c0_13, %c0_14] : memref<16x128xbf16, #tpu.memory_space<vmem>>, vector<8x128xbf16>
    tpu.vector_store %arg5[%c0_13, %c0_14], %28 {strides = array<i32>} : memref<16x128xbf16, #tpu.memory_space<vmem>>, vector<8x128xbf16>,
    %c8 = arith.constant 8 : index
    %c0_15 = arith.constant 0 : index
    %30 = vector.load %arg1[%c8, %c0_15] : memref<16x128xbf16, #tpu.memory_space<vmem>>, vector<8x128xbf16>
    %cst_16 = arith.constant dense<0.000000e+00> : vector<8x128xf32>
    %31 = tpu.matmul %30, %0, %cst_16 {dimension_numbers = #tpu.dot_dimension_numbers<[1], [0], [0], [1], [0, 0, 1, 1], [], []>} : vector<8x128xbf16>, vector<128x128xbf16>, vector<8x128xf32> -> vector<8x128xf32>
    %cst_17 = arith.constant dense<0.000000e+00> : vector<128xf32>
    %32 = vector.multi_reduction <add>, %31, %cst_17 [0] : vector<8x128xf32> to vector<128xf32>
    %33 = vector.shape_cast %32 : vector<128xf32> to vector<1x128xf32>
    %cst_18 = arith.constant 8.000000e+00 : f32
    %34 = vector.broadcast %cst_18 : f32 to vector<1x128xf32>
    %35 = arith.divf %33, %34 : vector<1x128xf32>
    %36 = arith.mulf %31, %31 : vector<8x128xf32>
    %cst_19 = arith.constant dense<0.000000e+00> : vector<128xf32>
    %37 = vector.multi_reduction <add>, %36, %cst_19 [0] : vector<8x128xf32> to vector<128xf32>
    %38 = vector.shape_cast %37 : vector<128xf32> to vector<1x128xf32>
    %cst_20 = arith.constant 8.000000e+00 : f32
    %39 = vector.broadcast %cst_20 : f32 to vector<1x128xf32>
    %40 = arith.divf %38, %39 : vector<1x128xf32>
    %41 = arith.mulf %35, %35 : vector<1x128xf32>
    %42 = arith.subf %40, %41 : vector<1x128xf32>
    %cst_21 = arith.constant 0.000000e+00 : f32
    %43 = vector.broadcast %cst_21 : f32 to vector<1x128xf32>
    %44 = arith.maximumf %42, %43 : vector<1x128xf32>
    %cst_22 = arith.constant 9.99999974E-6 : f32
    %45 = vector.broadcast %cst_22 : f32 to vector<1x128xf32>
    %46 = arith.addf %44, %45 : vector<1x128xf32>
    %47 = math.rsqrt %46 : vector<1x128xf32>
    %48 = arith.mulf %1, %47 : vector<1x128xf32>
    %49 = arith.mulf %35, %48 : vector<1x128xf32>
    %50 = arith.subf %2, %49 : vector<1x128xf32>
    %51 = vector.broadcast %48 : vector<1x128xf32> to vector<8x128xf32>
    %52 = arith.mulf %31, %51 : vector<8x128xf32>
    %53 = vector.broadcast %50 : vector<1x128xf32> to vector<8x128xf32>
    %54 = arith.addf %52, %53 : vector<8x128xf32>
    %55 = arith.truncf %54 : vector<8x128xf32> to vector<8x128xbf16>
    %c8_23 = arith.constant 8 : index
    %c0_24 = arith.constant 0 : index
    %56 = vector.load %arg5[%c8_23, %c0_24] : memref<16x128xbf16, #tpu.memory_space<vmem>>, vector<8x128xbf16>
    tpu.vector_store %arg5[%c8_23, %c0_24], %55 {strides = array<i32>} : memref<16x128xbf16, #tpu.memory_space<vmem>>, vector<8x128xbf16>,
    return
  }
  func.func @transform_0(%arg0: i32) -> (i32, i32) {
    %c0_i32 = arith.constant 0 : i32
    %c0_i32_0 = arith.constant 0 : i32
    return %arg0, %c0_i32 : i32, i32
  }
  func.func @transform_1(%arg0: i32) -> (i32, i32) {
    %c0_i32 = arith.constant 0 : i32
    %c0_i32_0 = arith.constant 0 : i32
    %c0_i32_1 = arith.constant 0 : i32
    return %c0_i32, %c0_i32_0 : i32, i32
  }
  func.func @transform_2(%arg0: i32) -> (i32, i32) {
    %c0_i32 = arith.constant 0 : i32
    %c0_i32_0 = arith.constant 0 : i32
    %c0_i32_1 = arith.constant 0 : i32
    return %c0_i32, %c0_i32_0 : i32, i32
  }
  func.func @transform_3(%arg0: i32) -> (i32, i32) {
    %c0_i32 = arith.constant 0 : i32
    %c0_i32_0 = arith.constant 0 : i32
    %c0_i32_1 = arith.constant 0 : i32
    return %c0_i32, %c0_i32_0 : i32, i32
  }
  func.func @transform_4(%arg0: i32) -> (i32, i32) {
    %c0_i32 = arith.constant 0 : i32
    %c0_i32_0 = arith.constant 0 : i32
    return %arg0, %c0_i32 : i32, i32
  }
}

module attributes {stable_mosaic.version = 11 : i64} {
  func.func @conv_bn_res_act_kernel(%arg0: i32, %arg1: memref<16x1152xbf16, #tpu.memory_space<vmem>>, %arg2: memref<1152x128xbf16, #tpu.memory_space<vmem>>, %arg3: memref<1x128xf32, #tpu.memory_space<vmem>>, %arg4: memref<1x128xf32, #tpu.memory_space<vmem>>, %arg5: memref<16x128xbf16, #tpu.memory_space<vmem>>, %arg6: memref<16x128xbf16, #tpu.memory_space<vmem>>) attributes {dimension_semantics = [#tpu.dimension_semantics<parallel>], iteration_bounds = array<i64: 1>, scalar_prefetch = 0 : i64, scratch_operands = 0 : i64, tpu.core_type = #tpu.core_type<tc>, window_params = [{transform_indices = @transform_0, window_bounds = array<i64: 16, 1152>}, {pipeline_mode = #tpu.pipeline_mode<synchronous>, transform_indices = @transform_1, window_bounds = array<i64: 1152, 128>}, {pipeline_mode = #tpu.pipeline_mode<synchronous>, transform_indices = @transform_2, window_bounds = array<i64: 1, 128>}, {pipeline_mode = #tpu.pipeline_mode<synchronous>, transform_indices = @transform_3, window_bounds = array<i64: 1, 128>}, {transform_indices = @transform_4, window_bounds = array<i64: 16, 128>}, {transform_indices = @transform_5, window_bounds = array<i64: 16, 128>}]} {
    %c0 = arith.constant 0 : index
    %c0_0 = arith.constant 0 : index
    %0 = vector.load %arg2[%c0, %c0_0] : memref<1152x128xbf16, #tpu.memory_space<vmem>>, vector<1152x128xbf16>
    %c0_1 = arith.constant 0 : index
    %c0_2 = arith.constant 0 : index
    %1 = vector.load %arg3[%c0_1, %c0_2] : memref<1x128xf32, #tpu.memory_space<vmem>>, vector<1x128xf32>
    %c0_3 = arith.constant 0 : index
    %c0_4 = arith.constant 0 : index
    %2 = vector.load %arg4[%c0_3, %c0_4] : memref<1x128xf32, #tpu.memory_space<vmem>>, vector<1x128xf32>
    %c0_5 = arith.constant 0 : index
    %c0_6 = arith.constant 0 : index
    %3 = vector.load %arg1[%c0_5, %c0_6] : memref<16x1152xbf16, #tpu.memory_space<vmem>>, vector<8x1152xbf16>
    %cst = arith.constant dense<0.000000e+00> : vector<8x128xf32>
    %4 = tpu.matmul %3, %0, %cst {dimension_numbers = #tpu.dot_dimension_numbers<[1], [0], [0], [1], [0, 0, 1, 1], [], []>} : vector<8x1152xbf16>, vector<1152x128xbf16>, vector<8x128xf32> -> vector<8x128xf32>
    %cst_7 = arith.constant dense<0.000000e+00> : vector<128xf32>
    %5 = vector.multi_reduction <add>, %4, %cst_7 [0] : vector<8x128xf32> to vector<128xf32>
    %6 = vector.shape_cast %5 : vector<128xf32> to vector<1x128xf32>
    %cst_8 = arith.constant 8.000000e+00 : f32
    %7 = vector.broadcast %cst_8 : f32 to vector<1x128xf32>
    %8 = arith.divf %6, %7 : vector<1x128xf32>
    %9 = arith.mulf %4, %4 : vector<8x128xf32>
    %cst_9 = arith.constant dense<0.000000e+00> : vector<128xf32>
    %10 = vector.multi_reduction <add>, %9, %cst_9 [0] : vector<8x128xf32> to vector<128xf32>
    %11 = vector.shape_cast %10 : vector<128xf32> to vector<1x128xf32>
    %cst_10 = arith.constant 8.000000e+00 : f32
    %12 = vector.broadcast %cst_10 : f32 to vector<1x128xf32>
    %13 = arith.divf %11, %12 : vector<1x128xf32>
    %14 = arith.mulf %8, %8 : vector<1x128xf32>
    %15 = arith.subf %13, %14 : vector<1x128xf32>
    %cst_11 = arith.constant 0.000000e+00 : f32
    %16 = vector.broadcast %cst_11 : f32 to vector<1x128xf32>
    %17 = arith.maximumf %15, %16 : vector<1x128xf32>
    %cst_12 = arith.constant 9.99999974E-6 : f32
    %18 = vector.broadcast %cst_12 : f32 to vector<1x128xf32>
    %19 = arith.addf %17, %18 : vector<1x128xf32>
    %20 = math.rsqrt %19 : vector<1x128xf32>
    %21 = arith.mulf %1, %20 : vector<1x128xf32>
    %22 = arith.mulf %8, %21 : vector<1x128xf32>
    %23 = arith.subf %2, %22 : vector<1x128xf32>
    %24 = vector.broadcast %21 : vector<1x128xf32> to vector<8x128xf32>
    %25 = arith.mulf %4, %24 : vector<8x128xf32>
    %26 = vector.broadcast %23 : vector<1x128xf32> to vector<8x128xf32>
    %27 = arith.addf %25, %26 : vector<8x128xf32>
    %c0_13 = arith.constant 0 : index
    %c0_14 = arith.constant 0 : index
    %28 = vector.load %arg5[%c0_13, %c0_14] : memref<16x128xbf16, #tpu.memory_space<vmem>>, vector<8x128xbf16>
    %29 = arith.extf %28 : vector<8x128xbf16> to vector<8x128xf32>
    %30 = arith.addf %27, %29 : vector<8x128xf32>
    %cst_15 = arith.constant 0.000000e+00 : f32
    %31 = vector.broadcast %cst_15 : f32 to vector<8x128xf32>
    %32 = arith.maximumf %30, %31 : vector<8x128xf32>
    %33 = arith.truncf %32 : vector<8x128xf32> to vector<8x128xbf16>
    %c0_16 = arith.constant 0 : index
    %c0_17 = arith.constant 0 : index
    %34 = vector.load %arg6[%c0_16, %c0_17] : memref<16x128xbf16, #tpu.memory_space<vmem>>, vector<8x128xbf16>
    tpu.vector_store %arg6[%c0_16, %c0_17], %33 {strides = array<i32>} : memref<16x128xbf16, #tpu.memory_space<vmem>>, vector<8x128xbf16>,
    %c8 = arith.constant 8 : index
    %c0_18 = arith.constant 0 : index
    %35 = vector.load %arg1[%c8, %c0_18] : memref<16x1152xbf16, #tpu.memory_space<vmem>>, vector<8x1152xbf16>
    %cst_19 = arith.constant dense<0.000000e+00> : vector<8x128xf32>
    %36 = tpu.matmul %35, %0, %cst_19 {dimension_numbers = #tpu.dot_dimension_numbers<[1], [0], [0], [1], [0, 0, 1, 1], [], []>} : vector<8x1152xbf16>, vector<1152x128xbf16>, vector<8x128xf32> -> vector<8x128xf32>
    %cst_20 = arith.constant dense<0.000000e+00> : vector<128xf32>
    %37 = vector.multi_reduction <add>, %36, %cst_20 [0] : vector<8x128xf32> to vector<128xf32>
    %38 = vector.shape_cast %37 : vector<128xf32> to vector<1x128xf32>
    %cst_21 = arith.constant 8.000000e+00 : f32
    %39 = vector.broadcast %cst_21 : f32 to vector<1x128xf32>
    %40 = arith.divf %38, %39 : vector<1x128xf32>
    %41 = arith.mulf %36, %36 : vector<8x128xf32>
    %cst_22 = arith.constant dense<0.000000e+00> : vector<128xf32>
    %42 = vector.multi_reduction <add>, %41, %cst_22 [0] : vector<8x128xf32> to vector<128xf32>
    %43 = vector.shape_cast %42 : vector<128xf32> to vector<1x128xf32>
    %cst_23 = arith.constant 8.000000e+00 : f32
    %44 = vector.broadcast %cst_23 : f32 to vector<1x128xf32>
    %45 = arith.divf %43, %44 : vector<1x128xf32>
    %46 = arith.mulf %40, %40 : vector<1x128xf32>
    %47 = arith.subf %45, %46 : vector<1x128xf32>
    %cst_24 = arith.constant 0.000000e+00 : f32
    %48 = vector.broadcast %cst_24 : f32 to vector<1x128xf32>
    %49 = arith.maximumf %47, %48 : vector<1x128xf32>
    %cst_25 = arith.constant 9.99999974E-6 : f32
    %50 = vector.broadcast %cst_25 : f32 to vector<1x128xf32>
    %51 = arith.addf %49, %50 : vector<1x128xf32>
    %52 = math.rsqrt %51 : vector<1x128xf32>
    %53 = arith.mulf %1, %52 : vector<1x128xf32>
    %54 = arith.mulf %40, %53 : vector<1x128xf32>
    %55 = arith.subf %2, %54 : vector<1x128xf32>
    %56 = vector.broadcast %53 : vector<1x128xf32> to vector<8x128xf32>
    %57 = arith.mulf %36, %56 : vector<8x128xf32>
    %58 = vector.broadcast %55 : vector<1x128xf32> to vector<8x128xf32>
    %59 = arith.addf %57, %58 : vector<8x128xf32>
    %c8_26 = arith.constant 8 : index
    %c0_27 = arith.constant 0 : index
    %60 = vector.load %arg5[%c8_26, %c0_27] : memref<16x128xbf16, #tpu.memory_space<vmem>>, vector<8x128xbf16>
    %61 = arith.extf %60 : vector<8x128xbf16> to vector<8x128xf32>
    %62 = arith.addf %59, %61 : vector<8x128xf32>
    %cst_28 = arith.constant 0.000000e+00 : f32
    %63 = vector.broadcast %cst_28 : f32 to vector<8x128xf32>
    %64 = arith.maximumf %62, %63 : vector<8x128xf32>
    %65 = arith.truncf %64 : vector<8x128xf32> to vector<8x128xbf16>
    %c8_29 = arith.constant 8 : index
    %c0_30 = arith.constant 0 : index
    %66 = vector.load %arg6[%c8_29, %c0_30] : memref<16x128xbf16, #tpu.memory_space<vmem>>, vector<8x128xbf16>
    tpu.vector_store %arg6[%c8_29, %c0_30], %65 {strides = array<i32>} : memref<16x128xbf16, #tpu.memory_space<vmem>>, vector<8x128xbf16>,
    return
  }
  func.func @transform_0(%arg0: i32) -> (i32, i32) {
    %c0_i32 = arith.constant 0 : i32
    %c0_i32_0 = arith.constant 0 : i32
    return %arg0, %c0_i32 : i32, i32
  }
  func.func @transform_1(%arg0: i32) -> (i32, i32) {
    %c0_i32 = arith.constant 0 : i32
    %c0_i32_0 = arith.constant 0 : i32
    %c0_i32_1 = arith.constant 0 : i32
    return %c0_i32, %c0_i32_0 : i32, i32
  }
  func.func @transform_2(%arg0: i32) -> (i32, i32) {
    %c0_i32 = arith.constant 0 : i32
    %c0_i32_0 = arith.constant 0 : i32
    %c0_i32_1 = arith.constant 0 : i32
    return %c0_i32, %c0_i32_0 : i32, i32
  }
  func.func @transform_3(%arg0: i32) -> (i32, i32) {
    %c0_i32 = arith.constant 0 : i32
    %c0_i32_0 = arith.constant 0 : i32
    %c0_i32_1 = arith.constant 0 : i32
    return %c0_i32, %c0_i32_0 : i32, i32
  }
  func.func @transform_4(%arg0: i32) -> (i32, i32) {
    %c0_i32 = arith.constant 0 : i32
    %c0_i32_0 = arith.constant 0 : i32
    return %arg0, %c0_i32 : i32, i32
  }
  func.func @transform_5(%arg0: i32) -> (i32, i32) {
    %c0_i32 = arith.constant 0 : i32
    %c0_i32_0 = arith.constant 0 : i32
    return %arg0, %c0_i32 : i32, i32
  }
}

</mosaic_0001>

<bundles_post_ra>
// kernel: forward.13
= control target key start
LH: loop header
LB: loop body
LE: loop exit
PB: predicated region body
PF: predicated region fallthrough
CT: control target
= control target key end

     0   :  { %s2341_s15 = smov 0   ;;  %s3880_s0 = inlined_call_operand.vmem [shape: bf16[1024,256], index: 0, kind: input, shape index: {}]   ;;  %s3881_s1 = inlined_call_operand.vmem [shape: bf16[256,32], index: 1, kind: input, shape index: {}]   ;;  %s3882_s2 = inlined_call_operand.vmem [shape: f32[1,32], index: 2, kind: input, shape index: {}]   ;;  %s3883_s3 = inlined_call_operand.vmem [shape: f32[1,32], index: 3, kind: input, shape index: {}]   ;;  %s3884_s4 = inlined_call_operand.vmem [shape: bf16[1024,32], index: 4, kind: output, shape index: {}]  }
   0x1 LB: > { %s1931_s16 = sadd.s32 4294967295, %s2313_s15   ;;  %p1935_p0 = scmp.ge.s32.totalorder %s2313_s15, 1  ;;  %s2313_s15 = sphi %s2341_s15, %s14_s15  }
   0x2   : > { %p164_p1 = scmp.lt.s32.totalorder %s2313_s15, 3 }
   0x4   : > { %p165_p2 = pnand %p1935_p0, %p164_p1 }
   0x6   : > { %168 = sbr.rel (%p165_p2) target bundleno = 595 (0x253), region = 36 }
   0xd   : > { %v2193_v0 = vld [vmem:[%s3881_s1] sm:$0xff]   ;;  %v2315_v1 = vmov 0   ;;  %s1936_s19 = sshll.u32 %s1931_s16, 6  ;;  %v2194_v2 = vld [vmem:[%s3881_s1 + $0x8] sm:$0xff]   ;;  %v2195_v3 = vld [vmem:[%s3881_s1 + $0x10] sm:$0xff]   ;;  %vm1008_vm0 = vcmask 261120  }
   0xe   : > { %719 = vmatprep.subr.bf16.mxu0 %v2315_v1  ;;  %2152 = vmatprep.subr.bf16.mxu1 %v2315_v1  ;;  %p192_p3 = scmp.lt.s32.totalorder %s1936_s19, 127  ;;  %v2196_v4 = vld [vmem:[%s3881_s1 + $0x18] sm:$0xff]   ;;  %v2197_v5 = vld [vmem:[%s3881_s1 + $0x20] sm:$0xff]   ;;  %v2198_v7 = vld [vmem:[%s3881_s1 + $0x28] sm:$0xff]   ;;  %vm1810_vm1 = vcmask 257024  }
   0xf   : > { %720 = vmatpush1.bf16.msra.mxu0 %v2193_v0  ;;  %2168 = vmatpush1.bf16.msra.mxu1 %v2193_v0  ;;  %v2199_v8 = vld [vmem:[%s3881_s1 + $0x30] sm:$0xff]   ;;  %v2200_v9 = vld [vmem:[%s3881_s1 + $0x38] sm:$0xff]   ;;  %v2201_v11 = vld [vmem:[%s3881_s1 + $0x40] sm:$0xff]  }
  0x10   : > { %721 = vmatprep.subr.bf16.mxu0 %v2315_v1  ;;  %2153 = vmatprep.subr.bf16.mxu1 %v2315_v1  ;;  %s4102_s19 = smov (!%p192_p3, %s1936_s19), 127  ;;  %v2202_v12 = vld [vmem:[%s3881_s1 + $0x48] sm:$0xff]   ;;  %v2203_v13 = vld [vmem:[%s3881_s1 + $0x50] sm:$0xff]   ;;  %v2204_v14 = vld [vmem:[%s3881_s1 + $0x58] sm:$0xff]  }
  0x11   : > { %s2087_s26 = sshll.u32 %s4102_s19, 3  ;;  %v2205_v15 = vld [vmem:[%s3881_s1 + $0x60] sm:$0xff]   ;;  %v2206_v16 = vld [vmem:[%s3881_s1 + $0x68] sm:$0xff]   ;;  %v2207_v17 = vld [vmem:[%s3881_s1 + $0x70] sm:$0xff]   ;;  %s1940_s8 = sshll.u32 %s4102_s19, 2 }
  0x12   : > { %s2378_s5 = scalar_lea.vmem %s3880_s0, %s2087_s26  ;;  %v2208_v18 = vld [vmem:[%s3881_s1 + $0x78] sm:$0xff]   ;;  %s3551_s10 = scalar_lea.vmem %s3884_s4, %s1940_s8 }
  0x13   : > { %722 = vmatpush1.bf16.msra.mxu0 %v2194_v2  ;;  %2169 = vmatpush1.bf16.msra.mxu1 %v2194_v2  ;;  %v2211_v6 = vld [vmem:[%s2378_s5 + $0x4] ss:$8 sps:$4 sm:$0xff]   ;;  %v2209_v19 = vld [vmem:[%s2378_s5] ss:$8 sps:$4 sm:$0xff]   ;;  %v2212_v21 = vld [vmem:[%s2378_s5 + $0x14] ss:$8 sps:$4 sm:$0xff]  }
  0x14   : > { %723 = vmatprep.subr.bf16.mxu0 %v2315_v1  ;;  %2154 = vmatprep.subr.bf16.mxu1 %v2315_v1  ;;  %v2235_v10 = vld [vmem:[%s2378_s5 + $0x104] ss:$8 sps:$4 sm:$0xff]   ;;  %v2233_v20 = vld [vmem:[%s2378_s5 + $0x100] ss:$8 sps:$4 sm:$0xff]   ;;  %v2239_v22 = vld [vmem:[%s2378_s5 + $0x114] ss:$8 sps:$4 sm:$0xff]  }
  0x15   : > { %751 = vmatprep.mubr.bf16.mxu0 %v2211_v6  ;;  %879 = vmatprep.mubr.bf16.mxu1 %v2235_v10  ;;  %v2214_v23 = vld [vmem:[%s2378_s5 + $0x10] ss:$8 sps:$4 sm:$0xff]   ;;  %v2215_v25 = vld [vmem:[%s2378_s5 + $0x24] ss:$8 sps:$4 sm:$0xff]   ;;  %v2217_v27 = vld [vmem:[%s2378_s5 + $0x20] ss:$8 sps:$4 sm:$0xff]  }
  0x16   : > { %v2241_v24 = vld [vmem:[%s2378_s5 + $0x110] ss:$8 sps:$4 sm:$0xff]   ;;  %v2245_v26 = vld [vmem:[%s2378_s5 + $0x124] ss:$8 sps:$4 sm:$0xff]   ;;  %v2247_v28 = vld [vmem:[%s2378_s5 + $0x120] ss:$8 sps:$4 sm:$0xff]  }
  0x17   : > { %724 = vmatpush1.bf16.msra.mxu0 %v2195_v3  ;;  %2170 = vmatpush1.bf16.msra.mxu1 %v2195_v3  ;;  %v2218_v29 = vld [vmem:[%s2378_s5 + $0x34] ss:$8 sps:$4 sm:$0xff]   ;;  %v2220_v31 = vld [vmem:[%s2378_s5 + $0x30] ss:$8 sps:$4 sm:$0xff]   ;;  %v2221_v33 = vld [vmem:[%s2378_s5 + $0x44] ss:$8 sps:$4 sm:$0xff]  }
  0x18   : > { %725 = vmatprep.subr.bf16.mxu0 %v2315_v1  ;;  %2155 = vmatprep.subr.bf16.mxu1 %v2315_v1  ;;  %v2251_v30 = vld [vmem:[%s2378_s5 + $0x134] ss:$8 sps:$4 sm:$0xff]   ;;  %v2253_v32 = vld [vmem:[%s2378_s5 + $0x130] ss:$8 sps:$4 sm:$0xff]   ;;  %v2257_v34 = vld [vmem:[%s2378_s5 + $0x144] ss:$8 sps:$4 sm:$0xff]  }
  0x19   : > { %v2223_v35 = vld [vmem:[%s2378_s5 + $0x40] ss:$8 sps:$4 sm:$0xff]   ;;  %v2224_v37 = vld [vmem:[%s2378_s5 + $0x54] ss:$8 sps:$4 sm:$0xff]   ;;  %v2226_v39 = vld [vmem:[%s2378_s5 + $0x50] ss:$8 sps:$4 sm:$0xff]  }
  0x1a   : > { %v2259_v36 = vld [vmem:[%s2378_s5 + $0x140] ss:$8 sps:$4 sm:$0xff]   ;;  %v2263_v38 = vld [vmem:[%s2378_s5 + $0x154] ss:$8 sps:$4 sm:$0xff]   ;;  %v2265_v40 = vld [vmem:[%s2378_s5 + $0x150] ss:$8 sps:$4 sm:$0xff]  }
  0x1b   : > { %726 = vmatpush1.bf16.msra.mxu0 %v2196_v4  ;;  %2171 = vmatpush1.bf16.msra.mxu1 %v2196_v4  ;;  %v2227_v41 = vld [vmem:[%s2378_s5 + $0x64] ss:$8 sps:$4 sm:$0xff]   ;;  %v2229_v43 = vld [vmem:[%s2378_s5 + $0x60] ss:$8 sps:$4 sm:$0xff]   ;;  %v2230_v45 = vld [vmem:[%s2378_s5 + $0x74] ss:$8 sps:$4 sm:$0xff]  }
  0x1c   : > { %727 = vmatprep.subr.bf16.mxu0 %v2315_v1  ;;  %2156 = vmatprep.subr.bf16.mxu1 %v2315_v1  ;;  %v2269_v42 = vld [vmem:[%s2378_s5 + $0x164] ss:$8 sps:$4 sm:$0xff]   ;;  %v2271_v44 = vld [vmem:[%s2378_s5 + $0x160] ss:$8 sps:$4 sm:$0xff]   ;;  %v2275_v46 = vld [vmem:[%s2378_s5 + $0x174] ss:$8 sps:$4 sm:$0xff]  }
  0x1d   : > { %v2232_v47 = vld [vmem:[%s2378_s5 + $0x70] ss:$8 sps:$4 sm:$0xff]   ;;  %v2236_v49 = vld [vmem:[%s2378_s5 + $0x84] ss:$8 sps:$4 sm:$0xff]   ;;  %v2238_v51 = vld [vmem:[%s2378_s5 + $0x80] ss:$8 sps:$4 sm:$0xff]  }
  0x1e   : > { %v2277_v48 = vld [vmem:[%s2378_s5 + $0x170] ss:$8 sps:$4 sm:$0xff]   ;;  %v2281_v50 = vld [vmem:[%s2378_s5 + $0x184] ss:$8 sps:$4 sm:$0xff]   ;;  %v2283_v52 = vld [vmem:[%s2378_s5 + $0x180] ss:$8 sps:$4 sm:$0xff]  }
  0x1f   : > { %728 = vmatpush1.bf16.msra.mxu0 %v2197_v5  ;;  %2172 = vmatpush1.bf16.msra.mxu1 %v2197_v5  ;;  %v2242_v53 = vld [vmem:[%s2378_s5 + $0x94] ss:$8 sps:$4 sm:$0xff]   ;;  %v2244_v55 = vld [vmem:[%s2378_s5 + $0x90] ss:$8 sps:$4 sm:$0xff]   ;;  %v2248_v57 = vld [vmem:[%s2378_s5 + $0xa4] ss:$8 sps:$4 sm:$0xff]  }
  0x20   : > { %729 = vmatprep.subr.bf16.mxu0 %v2315_v1  ;;  %2157 = vmatprep.subr.bf16.mxu1 %v2315_v1  ;;  %v2284_v54 = vld [vmem:[%s2378_s5 + $0x194] ss:$8 sps:$4 sm:$0xff]   ;;  %v2286_v56 = vld [vmem:[%s2378_s5 + $0x190] ss:$8 sps:$4 sm:$0xff]   ;;  %v2287_v58 = vld [vmem:[%s2378_s5 + $0x1a4] ss:$8 sps:$4 sm:$0xff]  }
  0x21   : > { %v2250_v59 = vld [vmem:[%s2378_s5 + $0xa0] ss:$8 sps:$4 sm:$0xff]   ;;  %v2254_v61 = vld [vmem:[%s2378_s5 + $0xb4] ss:$8 sps:$4 sm:$0xff]   ;;  %v2256_v63 = vld [vmem:[%s2378_s5 + $0xb0] ss:$8 sps:$4 sm:$0xff]  }
  0x22   : > { %v2289_v60 = vld [vmem:[%s2378_s5 + $0x1a0] ss:$8 sps:$4 sm:$0xff]   ;;  %v2290_v62 = vld [vmem:[%s2378_s5 + $0x1b4] ss:$8 sps:$4 sm:$0xff]   ;;  %v2292_v0 = vld [vmem:[%s2378_s5 + $0x1b0] ss:$8 sps:$4 sm:$0xff]  }
  0x23   : > { %730 = vmatpush1.bf16.msra.mxu0 %v2198_v7  ;;  %2173 = vmatpush1.bf16.msra.mxu1 %v2198_v7  ;;  %v2293_v2 = vld [vmem:[%s2378_s5 + $0x1c4] ss:$8 sps:$4 sm:$0xff]   ;;  %v2262_v3 = vld [vmem:[%s2378_s5 + $0xc0] ss:$8 sps:$4 sm:$0xff]   ;;  %v2266_v5 = vld [vmem:[%s2378_s5 + $0xd4] ss:$8 sps:$4 sm:$0xff]  }
  0x24   : > { %731 = vmatprep.subr.bf16.mxu0 %v2315_v1  ;;  %2158 = vmatprep.subr.bf16.mxu1 %v2315_v1  ;;  %v2295_v4 = vld [vmem:[%s2378_s5 + $0x1c0] ss:$8 sps:$4 sm:$0xff]   ;;  %v2296_v6 = vld [vmem:[%s2378_s5 + $0x1d4] ss:$8 sps:$4 sm:$0xff]   ;;  %v2268_v7 = vld [vmem:[%s2378_s5 + $0xd0] ss:$8 sps:$4 sm:$0xff]  }
  0x25   : > { %v2299_v10 = vld [vmem:[%s2378_s5 + $0x1e4] ss:$8 sps:$4 sm:$0xff]  }
  0x27   : > { %732 = vmatpush1.bf16.msra.mxu0 %v2199_v8  ;;  %2174 = vmatpush1.bf16.msra.mxu1 %v2199_v8  ;;  %v2298_v8 = vld [vmem:[%s2378_s5 + $0x1d0] ss:$8 sps:$4 sm:$0xff]  }
  0x28   : > { %733 = vmatprep.subr.bf16.mxu0 %v2315_v1  ;;  %2159 = vmatprep.subr.bf16.mxu1 %v2315_v1 }
  0x2b   : > { %734 = vmatpush1.bf16.msra.mxu0 %v2200_v9  ;;  %2175 = vmatpush1.bf16.msra.mxu1 %v2200_v9  ;;  %v2272_v9 = vld [vmem:[%s2378_s5 + $0xe4] ss:$8 sps:$4 sm:$0xff]  }
  0x2c   : > { %735 = vmatprep.subr.bf16.mxu0 %v2315_v1  ;;  %2160 = vmatprep.subr.bf16.mxu1 %v2315_v1 }
  0x2f   : > { %736 = vmatpush1.bf16.msra.mxu0 %v2201_v11  ;;  %2176 = vmatpush1.bf16.msra.mxu1 %v2201_v11  ;;  %v2274_v11 = vld [vmem:[%s2378_s5 + $0xe0] ss:$8 sps:$4 sm:$0xff]  }
  0x30   : > { %737 = vmatprep.subr.bf16.mxu0 %v2315_v1  ;;  %2161 = vmatprep.subr.bf16.mxu1 %v2315_v1 }
  0x33   : > { %738 = vmatpush1.bf16.msra.mxu0 %v2202_v12  ;;  %2177 = vmatpush1.bf16.msra.mxu1 %v2202_v12  ;;  %v2301_v12 = vld [vmem:[%s2378_s5 + $0x1e0] ss:$8 sps:$4 sm:$0xff]  }
  0x34   : > { %739 = vmatprep.subr.bf16.mxu0 %v2315_v1  ;;  %2162 = vmatprep.subr.bf16.mxu1 %v2315_v1 }
  0x37   : > { %740 = vmatpush1.bf16.msra.mxu0 %v2203_v13  ;;  %2178 = vmatpush1.bf16.msra.mxu1 %v2203_v13  ;;  %v2278_v13 = vld [vmem:[%s2378_s5 + $0xf4] ss:$8 sps:$4 sm:$0xff]  }
  0x38   : > { %741 = vmatprep.subr.bf16.mxu0 %v2315_v1  ;;  %2163 = vmatprep.subr.bf16.mxu1 %v2315_v1 }
  0x3b   : > { %742 = vmatpush1.bf16.msra.mxu0 %v2204_v14  ;;  %2179 = vmatpush1.bf16.msra.mxu1 %v2204_v14  ;;  %v2302_v14 = vld [vmem:[%s2378_s5 + $0x1f4] ss:$8 sps:$4 sm:$0xff]  }
  0x3c   : > { %743 = vmatprep.subr.bf16.mxu0 %v2315_v1  ;;  %2164 = vmatprep.subr.bf16.mxu1 %v2315_v1 }
  0x3f   : > { %744 = vmatpush1.bf16.msra.mxu0 %v2205_v15  ;;  %2180 = vmatpush1.bf16.msra.mxu1 %v2205_v15  ;;  %v2280_v15 = vld [vmem:[%s2378_s5 + $0xf0] ss:$8 sps:$4 sm:$0xff]  }
  0x40   : > { %745 = vmatprep.subr.bf16.mxu0 %v2315_v1  ;;  %2165 = vmatprep.subr.bf16.mxu1 %v2315_v1 }
  0x43   : > { %746 = vmatpush1.bf16.msra.mxu0 %v2206_v16  ;;  %2181 = vmatpush1.bf16.msra.mxu1 %v2206_v16  ;;  %v2304_v16 = vld [vmem:[%s2378_s5 + $0x1f0] ss:$8 sps:$4 sm:$0xff]  }
  0x44   : > { %747 = vmatprep.subr.bf16.mxu0 %v2315_v1  ;;  %2166 = vmatprep.subr.bf16.mxu1 %v2315_v1 }
  0x47   : > { %748 = vmatpush1.bf16.msra.mxu0 %v2207_v17  ;;  %2182 = vmatpush1.bf16.msra.mxu1 %v2207_v17 }
  0x48   : > { %749 = vmatprep.subr.bf16.mxu0 %v2315_v1  ;;  %2167 = vmatprep.subr.bf16.mxu1 %v2315_v1  ;;  %v2260_v1 = vld [vmem:[%s2378_s5 + $0xc4] ss:$8 sps:$4 sm:$0xff]  }
  0x4b   : > { %750 = vmatpush1.bf16.msra.mxu0 %v2208_v18  ;;  %2183 = vmatpush1.bf16.msra.mxu1 %v2208_v18 }
  0x4e   : > { %752 = vmatmul.mubr.bf16.vlgmr.msra.gmra.mrb[0].mxu0 %v2209_v19  ;;  %880 = vmatmul.mubr.bf16.vlgmr.msra.gmra.mrb[0].mxu1 %v2233_v20 }
  0x4f   : > { %759 = vmatprep.mubr.bf16.mxu0 %v2212_v21  ;;  %887 = vmatprep.mubr.bf16.mxu1 %v2239_v22 }
  0x56   : > { %760 = vmatmul.mubr.bf16.gmra.mrb[4].mxu0 %v2214_v23  ;;  %888 = vmatmul.mubr.bf16.gmra.mrb[4].mxu1 %v2241_v24 }
  0x57   : > { %767 = vmatprep.mubr.bf16.mxu0 %v2215_v25  ;;  %895 = vmatprep.mubr.bf16.mxu1 %v2245_v26 }
  0x5e   : > { %768 = vmatmul.mubr.bf16.gmra.mrb[8].mxu0 %v2217_v27  ;;  %896 = vmatmul.mubr.bf16.gmra.mrb[8].mxu1 %v2247_v28 }
  0x5f   : > { %775 = vmatprep.mubr.bf16.mxu0 %v2218_v29  ;;  %903 = vmatprep.mubr.bf16.mxu1 %v2251_v30 }
  0x66   : > { %776 = vmatmul.mubr.bf16.gmra.mrb[12].mxu0 %v2220_v31  ;;  %904 = vmatmul.mubr.bf16.gmra.mrb[12].mxu1 %v2253_v32 }
  0x67   : > { %783 = vmatprep.mubr.bf16.mxu0 %v2221_v33  ;;  %911 = vmatprep.mubr.bf16.mxu1 %v2257_v34 }
  0x6e   : > { %784 = vmatmul.mubr.bf16.gmra.mrb[16].mxu0 %v2223_v35  ;;  %912 = vmatmul.mubr.bf16.gmra.mrb[16].mxu1 %v2259_v36 }
  0x6f   : > { %791 = vmatprep.mubr.bf16.mxu0 %v2224_v37  ;;  %919 = vmatprep.mubr.bf16.mxu1 %v2263_v38 }
  0x76   : > { %792 = vmatmul.mubr.bf16.gmra.mrb[20].mxu0 %v2226_v39  ;;  %920 = vmatmul.mubr.bf16.gmra.mrb[20].mxu1 %v2265_v40 }
  0x77   : > { %799 = vmatprep.mubr.bf16.mxu0 %v2227_v41  ;;  %927 = vmatprep.mubr.bf16.mxu1 %v2269_v42 }
  0x7e   : > { %800 = vmatmul.mubr.bf16.gmra.mrb[24].mxu0 %v2229_v43  ;;  %928 = vmatmul.mubr.bf16.gmra.mrb[24].mxu1 %v2271_v44 }
  0x7f   : > { %807 = vmatprep.mubr.bf16.mxu0 %v2230_v45  ;;  %935 = vmatprep.mubr.bf16.mxu1 %v2275_v46 }
  0x86   : > { %808 = vmatmul.mubr.bf16.gmra.mrb[28].mxu0 %v2232_v47  ;;  %936 = vmatmul.mubr.bf16.gmra.mrb[28].mxu1 %v2277_v48 }
  0x87   : > { %815 = vmatprep.mubr.bf16.mxu0 %v2236_v49  ;;  %943 = vmatprep.mubr.bf16.mxu1 %v2281_v50 }
  0x8e   : > { %816 = vmatmul.mubr.bf16.gmra.mrb[32].mxu0 %v2238_v51  ;;  %944 = vmatmul.mubr.bf16.gmra.mrb[32].mxu1 %v2283_v52 }
  0x8f   : > { %823 = vmatprep.mubr.bf16.mxu0 %v2242_v53  ;;  %951 = vmatprep.mubr.bf16.mxu1 %v2284_v54 }
  0x96   : > { %824 = vmatmul.mubr.bf16.gmra.mrb[36].mxu0 %v2244_v55  ;;  %952 = vmatmul.mubr.bf16.gmra.mrb[36].mxu1 %v2286_v56 }
  0x97   : > { %831 = vmatprep.mubr.bf16.mxu0 %v2248_v57  ;;  %959 = vmatprep.mubr.bf16.mxu1 %v2287_v58 }
  0x9e   : > { %832 = vmatmul.mubr.bf16.gmra.mrb[40].mxu0 %v2250_v59  ;;  %960 = vmatmul.mubr.bf16.gmra.mrb[40].mxu1 %v2289_v60 }
  0x9f   : > { %839 = vmatprep.mubr.bf16.mxu0 %v2254_v61  ;;  %967 = vmatprep.mubr.bf16.mxu1 %v2290_v62 }
  0xa6   : > { %840 = vmatmul.mubr.bf16.gmra.mrb[44].mxu0 %v2256_v63  ;;  %968 = vmatmul.mubr.bf16.gmra.mrb[44].mxu1 %v2292_v0 }
  0xa7   : > { %847 = vmatprep.mubr.bf16.mxu0 %v2260_v1  ;;  %975 = vmatprep.mubr.bf16.mxu1 %v2293_v2 }
  0xae   : > { %848 = vmatmul.mubr.bf16.gmra.mrb[48].mxu0 %v2262_v3  ;;  %976 = vmatmul.mubr.bf16.gmra.mrb[48].mxu1 %v2295_v4 }
  0xaf   : > { %855 = vmatprep.mubr.bf16.mxu0 %v2266_v5  ;;  %983 = vmatprep.mubr.bf16.mxu1 %v2296_v6 }
  0xb6   : > { %856 = vmatmul.mubr.bf16.gmra.mrb[52].mxu0 %v2268_v7  ;;  %984 = vmatmul.mubr.bf16.gmra.mrb[52].mxu1 %v2298_v8 }
  0xb7   : > { %863 = vmatprep.mubr.bf16.mxu0 %v2272_v9  ;;  %991 = vmatprep.mubr.bf16.mxu1 %v2299_v10 }
  0xbe   : > { %864 = vmatmul.mubr.bf16.gmra.mrb[56].mxu0 %v2274_v11  ;;  %992 = vmatmul.mubr.bf16.gmra.mrb[56].mxu1 %v2301_v12 }
  0xbf   : > { %871 = vmatprep.mubr.bf16.mxu0 %v2278_v13  ;;  %999 = vmatprep.mubr.bf16.mxu1 %v2302_v14 }
  0xc6   : > { %872 = vmatmul.mubr.bf16.gmra.mrb[60].mxu0 %v2280_v15  ;;  %1000 = vmatmul.mubr.bf16.gmra.mrb[60].mxu1 %v2304_v16 }
 0x121   : > { %v2501_v17 = vpop.f32.mrb[0].mxu0  ;;  %v2503_v18 = vpop.f32.mrb[0].mxu1 }
 0x122   : > { %v1144_v19 = vmul.f32 %v2501_v17, %v2501_v17  ;;  %v755_v20 = vpop.f32.mrb[1].mxu0  ;;  %v883_v21 = vpop.f32.mrb[1].mxu1  ;;  %v1009_v24 = vsel %vm1008_vm0, %v2501_v17, 0.0 }
 0x123   : > { %v2507_v22 = vpop.f32.mrb[2].mxu0  ;;  %v2509_v23 = vpop.f32.mrb[2].mxu1 }
 0x124   : > { %v1010_v25 = vsel %vm1008_vm0, %v2507_v22, 0.0  ;;  %v1145_v26 = vmul.f32 %v2507_v22, %v2507_v22  ;;  %v758_v27 = vpop.f32.mrb[3].mxu0  ;;  %v886_v28 = vpop.f32.mrb[3].mxu1  ;;  %v1208_v30 = vsel %vm1008_vm0, %v1144_v19, 0.0 }
 0x125   : > { %v1011_v29 = vadd.f32 %v1010_v25, %v1009_v24 }
 0x126   : > { %v1209_v31 = vsel %vm1008_vm0, %v1145_v26, 0.0 }
 0x127   : > { %v1210_v32 = vadd.f32 %v1209_v31, %v1208_v30 }
 0x129   : > { %v2519_v33 = vpop.f32.mrb[4].mxu0  ;;  %v2521_v34 = vpop.f32.mrb[4].mxu1 }
 0x12a   : > { %v1012_v35 = vsel %vm1008_vm0, %v2519_v33, 0.0  ;;  %v1146_v36 = vmul.f32 %v2519_v33, %v2519_v33  ;;  %v763_v37 = vpop.f32.mrb[5].mxu0  ;;  %v891_v38 = vpop.f32.mrb[5].mxu1 }
 0x12b   : > { %v1013_v39 = vadd.f32 %v1012_v35, %v1011_v29  ;;  %v2527_v40 = vpop.f32.mrb[6].mxu0  ;;  %v2529_v41 = vpop.f32.mrb[6].mxu1 }
 0x12c   : > { %v1211_v42 = vsel %vm1008_vm0, %v1146_v36, 0.0  ;;  %v1014_v43 = vsel %vm1008_vm0, %v2527_v40, 0.0  ;;  %v1147_v44 = vmul.f32 %v2527_v40, %v2527_v40  ;;  %v766_v45 = vpop.f32.mrb[7].mxu0  ;;  %v894_v46 = vpop.f32.mrb[7].mxu1 }
 0x12d   : > { %v1212_v47 = vadd.f32 %v1211_v42, %v1210_v32  ;;  %v1015_v48 = vadd.f32 %v1014_v43, %v1013_v39 }
 0x12e   : > { %v1213_v49 = vsel %vm1008_vm0, %v1147_v44, 0.0 }
 0x12f   : > { %v1214_v50 = vadd.f32 %v1213_v49, %v1212_v47 }
 0x131   : > { %v2537_v51 = vpop.f32.mrb[8].mxu0  ;;  %v2539_v52 = vpop.f32.mrb[8].mxu1 }
 0x132   : > { %v1016_v53 = vsel %vm1008_vm0, %v2537_v51, 0.0  ;;  %v1148_v54 = vmul.f32 %v2537_v51, %v2537_v51  ;;  %v771_v55 = vpop.f32.mrb[9].mxu0  ;;  %v899_v56 = vpop.f32.mrb[9].mxu1 }
 0x133   : > { %v1017_v57 = vadd.f32 %v1016_v53, %v1015_v48  ;;  %v2545_v58 = vpop.f32.mrb[10].mxu0  ;;  %v2547_v59 = vpop.f32.mrb[10].mxu1 }
 0x134   : > { %v1215_v60 = vsel %vm1008_vm0, %v1148_v54, 0.0  ;;  %v1018_v61 = vsel %vm1008_vm0, %v2545_v58, 0.0  ;;  %v1149_v62 = vmul.f32 %v2545_v58, %v2545_v58  ;;  %v774_v63 = vpop.f32.mrb[11].mxu0  ;;  %v902_v0 = vpop.f32.mrb[11].mxu1 }
 0x135   : > { %v1216_v1 = vadd.f32 %v1215_v60, %v1214_v50  ;;  %v1019_v2 = vadd.f32 %v1018_v61, %v1017_v57 }
 0x136   : > { %v1217_v3 = vsel %vm1008_vm0, %v1149_v62, 0.0 }
 0x137   : > { %v1218_v4 = vadd.f32 %v1217_v3, %v1216_v1 }
 0x139   : > { %v2555_v5 = vpop.f32.mrb[12].mxu0  ;;  %v2557_v6 = vpop.f32.mrb[12].mxu1 }
 0x13a   : > { %v1020_v7 = vsel %vm1008_vm0, %v2555_v5, 0.0  ;;  %v1150_v8 = vmul.f32 %v2555_v5, %v2555_v5  ;;  %v779_v9 = vpop.f32.mrb[13].mxu0  ;;  %v907_v10 = vpop.f32.mrb[13].mxu1 }
 0x13b   : > { %v1021_v11 = vadd.f32 %v1020_v7, %v1019_v2  ;;  %v2563_v12 = vpop.f32.mrb[14].mxu0  ;;  %v2565_v13 = vpop.f32.mrb[14].mxu1 }
 0x13c   : > { %v1219_v14 = vsel %vm1008_vm0, %v1150_v8, 0.0  ;;  %v1022_v15 = vsel %vm1008_vm0, %v2563_v12, 0.0  ;;  %v1151_v16 = vmul.f32 %v2563_v12, %v2563_v12  ;;  %v782_v19 = vpop.f32.mrb[15].mxu0  ;;  %v910_v20 = vpop.f32.mrb[15].mxu1 }
 0x13d   : > { %v1220_v21 = vadd.f32 %v1219_v14, %v1218_v4  ;;  %v1023_v24 = vadd.f32 %v1022_v15, %v1021_v11 }
 0x13e   : > { %v1221_v25 = vsel %vm1008_vm0, %v1151_v16, 0.0 }
 0x13f   : > { %v1222_v26 = vadd.f32 %v1221_v25, %v1220_v21 }
 0x141   : > { %v2573_v27 = vpop.f32.mrb[16].mxu0  ;;  %v2575_v28 = vpop.f32.mrb[16].mxu1 }
 0x142   : > { %v1024_v29 = vsel %vm1008_vm0, %v2573_v27, 0.0  ;;  %v1152_v30 = vmul.f32 %v2573_v27, %v2573_v27  ;;  %v787_v31 = vpop.f32.mrb[17].mxu0  ;;  %v915_v32 = vpop.f32.mrb[17].mxu1 }
 0x143   : > { %v1025_v35 = vadd.f32 %v1024_v29, %v1023_v24  ;;  %v2581_v36 = vpop.f32.mrb[18].mxu0  ;;  %v2583_v37 = vpop.f32.mrb[18].mxu1 }
 0x144   : > { %v1223_v38 = vsel %vm1008_vm0, %v1152_v30, 0.0  ;;  %v1026_v39 = vsel %vm1008_vm0, %v2581_v36, 0.0  ;;  %v1153_v42 = vmul.f32 %v2581_v36, %v2581_v36  ;;  %v790_v43 = vpop.f32.mrb[19].mxu0  ;;  %v918_v44 = vpop.f32.mrb[19].mxu1 }
 0x145   : > { %v1224_v45 = vadd.f32 %v1223_v38, %v1222_v26  ;;  %v1027_v46 = vadd.f32 %v1026_v39, %v1025_v35 }
 0x146   : > { %v1225_v47 = vsel %vm1008_vm0, %v1153_v42, 0.0 }
 0x147   : > { %v1226_v48 = vadd.f32 %v1225_v47, %v1224_v45 }
 0x149   : > { %v2591_v49 = vpop.f32.mrb[20].mxu0  ;;  %v2593_v50 = vpop.f32.mrb[20].mxu1 }
 0x14a   : > { %v1028_v53 = vsel %vm1008_vm0, %v2591_v49, 0.0  ;;  %v1154_v54 = vmul.f32 %v2591_v49, %v2591_v49  ;;  %v795_v55 = vpop.f32.mrb[21].mxu0  ;;  %v923_v56 = vpop.f32.mrb[21].mxu1 }
 0x14b   : > { %v1029_v57 = vadd.f32 %v1028_v53, %v1027_v46  ;;  %v2599_v60 = vpop.f32.mrb[22].mxu0  ;;  %v2601_v61 = vpop.f32.mrb[22].mxu1 }
 0x14c   : > { %v1227_v62 = vsel %vm1008_vm0, %v1154_v54, 0.0  ;;  %v1030_v63 = vsel %vm1008_vm0, %v2599_v60, 0.0  ;;  %v1155_v0 = vmul.f32 %v2599_v60, %v2599_v60  ;;  %v798_v1 = vpop.f32.mrb[23].mxu0  ;;  %v926_v2 = vpop.f32.mrb[23].mxu1 }
 0x14d   : > { %v1228_v3 = vadd.f32 %v1227_v62, %v1226_v48  ;;  %v1031_v4 = vadd.f32 %v1030_v63, %v1029_v57 }
 0x14e   : > { %v1229_v7 = vsel %vm1008_vm0, %v1155_v0, 0.0 }
 0x14f   : > { %v1230_v8 = vadd.f32 %v1229_v7, %v1228_v3 }
 0x151   : > { %v2609_v9 = vpop.f32.mrb[24].mxu0  ;;  %v2611_v10 = vpop.f32.mrb[24].mxu1 }
 0x152   : > { %v1032_v11 = vsel %vm1008_vm0, %v2609_v9, 0.0  ;;  %v1156_v14 = vmul.f32 %v2609_v9, %v2609_v9  ;;  %v803_v15 = vpop.f32.mrb[25].mxu0  ;;  %v931_v16 = vpop.f32.mrb[25].mxu1 }
 0x153   : > { %v1033_v19 = vadd.f32 %v1032_v11, %v1031_v4  ;;  %v2617_v20 = vpop.f32.mrb[26].mxu0  ;;  %v2619_v21 = vpop.f32.mrb[26].mxu1 }
 0x154   : > { %v1231_v24 = vsel %vm1008_vm0, %v1156_v14, 0.0  ;;  %v1034_v25 = vsel %vm1008_vm0, %v2617_v20, 0.0  ;;  %v1157_v26 = vmul.f32 %v2617_v20, %v2617_v20  ;;  %v806_v29 = vpop.f32.mrb[27].mxu0  ;;  %v934_v30 = vpop.f32.mrb[27].mxu1 }
 0x155   : > { %v1232_v31 = vadd.f32 %v1231_v24, %v1230_v8  ;;  %v1035_v32 = vadd.f32 %v1034_v25, %v1033_v19 }
 0x156   : > { %v1233_v35 = vsel %vm1008_vm0, %v1157_v26, 0.0 }
 0x157   : > { %v1234_v38 = vadd.f32 %v1233_v35, %v1232_v31 }
 0x159   : > { %v2627_v39 = vpop.f32.mrb[28].mxu0  ;;  %v2629_v42 = vpop.f32.mrb[28].mxu1 }
 0x15a   : > { %3927 = vst [vmem:[#allocation2_spill] sm:$0xff] %v2627_v39  ;;  %v1036_v43 = vsel %vm1008_vm0, %v2627_v39, 0.0  ;;  %v1158_v44 = vmul.f32 %v2627_v39, %v2627_v39  ;;  %v811_v45 = vpop.f32.mrb[29].mxu0  ;;  %v939_v46 = vpop.f32.mrb[29].mxu1  ;;  %v1074_v39 = vsel %vm1008_vm0, %v2509_v23, 0.0 }
 0x15b   : > { %v1037_v47 = vadd.f32 %v1036_v43, %v1035_v32  ;;  %v2635_v48 = vpop.f32.mrb[30].mxu0  ;;  %v2637_v53 = vpop.f32.mrb[30].mxu1 }
 0x15c   : > { %3928 = vst [vmem:[#allocation3_spill] sm:$0xff] %v2635_v48  ;;  %v1235_v54 = vsel %vm1008_vm0, %v1158_v44, 0.0  ;;  %v1038_v55 = vsel %vm1008_vm0, %v2635_v48, 0.0  ;;  %v1159_v56 = vmul.f32 %v2635_v48, %v2635_v48  ;;  %v814_v57 = vpop.f32.mrb[31].mxu0  ;;  %v942_v62 = vpop.f32.mrb[31].mxu1 }
 0x15d   : > { %v1236_v63 = vadd.f32 %v1235_v54, %v1234_v38  ;;  %v1039_v0 = vadd.f32 %v1038_v55, %v1037_v47 }
 0x15e   : > { %v1237_v1 = vsel %vm1008_vm0, %v1159_v56, 0.0 }
 0x15f   : > { %v1238_v2 = vadd.f32 %v1237_v1, %v1236_v63 }
 0x161   : > { %v2645_v3 = vpop.f32.mrb[32].mxu0  ;;  %v2647_v4 = vpop.f32.mrb[32].mxu1 }
 0x162   : > { %3929 = vst [vmem:[#allocation4_spill] sm:$0xff] %v2645_v3  ;;  %v1040_v7 = vsel %vm1008_vm0, %v2645_v3, 0.0  ;;  %v1160_v8 = vmul.f32 %v2645_v3, %v2645_v3  ;;  %v819_v11 = vpop.f32.mrb[33].mxu0  ;;  %v947_v14 = vpop.f32.mrb[33].mxu1 }
 0x163   : > { %v1041_v15 = vadd.f32 %v1040_v7, %v1039_v0  ;;  %v2653_v16 = vpop.f32.mrb[34].mxu0  ;;  %v2655_v19 = vpop.f32.mrb[34].mxu1 }
 0x164   : > { %3930 = vst [vmem:[#allocation5_spill] sm:$0xff] %v2653_v16  ;;  %v1239_v24 = vsel %vm1008_vm0, %v1160_v8, 0.0  ;;  %v1042_v25 = vsel %vm1008_vm0, %v2653_v16, 0.0  ;;  %v1161_v26 = vmul.f32 %v2653_v16, %v2653_v16  ;;  %v822_v29 = vpop.f32.mrb[35].mxu0  ;;  %v950_v30 = vpop.f32.mrb[35].mxu1 }
 0x165   : > { %v1240_v31 = vadd.f32 %v1239_v24, %v1238_v2  ;;  %v1043_v32 = vadd.f32 %v1042_v25, %v1041_v15 }
 0x166   : > { %v1241_v35 = vsel %vm1008_vm0, %v1161_v26, 0.0 }
 0x167   : > { %v1242_v38 = vadd.f32 %v1241_v35, %v1240_v31 }
 0x169   : > { %v2663_v43 = vpop.f32.mrb[36].mxu0  ;;  %v2665_v44 = vpop.f32.mrb[36].mxu1 }
 0x16a   : > { %3931 = vst [vmem:[#allocation6_spill] sm:$0xff] %v2663_v43  ;;  %v1044_v45 = vsel %vm1008_vm0, %v2663_v43, 0.0  ;;  %v1162_v46 = vmul.f32 %v2663_v43, %v2663_v43  ;;  %v827_v47 = vpop.f32.mrb[37].mxu0  ;;  %v955_v54 = vpop.f32.mrb[37].mxu1 }
 0x16b   : > { %v1045_v55 = vadd.f32 %v1044_v45, %v1043_v32  ;;  %v2671_v56 = vpop.f32.mrb[38].mxu0  ;;  %v2673_v57 = vpop.f32.mrb[38].mxu1 }
 0x16c   : > { %3932 = vst [vmem:[#allocation7_spill] sm:$0xff] %v2671_v56  ;;  %v1243_v62 = vsel %vm1008_vm0, %v1162_v46, 0.0  ;;  %v1046_v63 = vsel %vm1008_vm0, %v2671_v56, 0.0  ;;  %v1163_v0 = vmul.f32 %v2671_v56, %v2671_v56  ;;  %v830_v1 = vpop.f32.mrb[39].mxu0  ;;  %v958_v2 = vpop.f32.mrb[39].mxu1 }
 0x16d   : > { %v1244_v7 = vadd.f32 %v1243_v62, %v1242_v38  ;;  %v1047_v8 = vadd.f32 %v1046_v63, %v1045_v55 }
 0x16e   : > { %v1245_v11 = vsel %vm1008_vm0, %v1163_v0, 0.0 }
 0x16f   : > { %v1246_v14 = vadd.f32 %v1245_v11, %v1244_v7 }
 0x171   : > { %v2681_v15 = vpop.f32.mrb[40].mxu0  ;;  %v2683_v24 = vpop.f32.mrb[40].mxu1 }
 0x172   : > { %3933 = vst [vmem:[#allocation8_spill] sm:$0xff] %v2681_v15  ;;  %v1048_v25 = vsel %vm1008_vm0, %v2681_v15, 0.0  ;;  %v1164_v26 = vmul.f32 %v2681_v15, %v2681_v15  ;;  %v835_v29 = vpop.f32.mrb[41].mxu0  ;;  %v963_v30 = vpop.f32.mrb[41].mxu1 }
 0x173   : > { %v1049_v31 = vadd.f32 %v1048_v25, %v1047_v8  ;;  %v2689_v32 = vpop.f32.mrb[42].mxu0  ;;  %v2691_v35 = vpop.f32.mrb[42].mxu1 }
 0x174   : > { %3934 = vst [vmem:[#allocation9_spill] sm:$0xff] %v2689_v32  ;;  %v1247_v38 = vsel %vm1008_vm0, %v1164_v26, 0.0  ;;  %v1050_v45 = vsel %vm1008_vm0, %v2689_v32, 0.0  ;;  %v1165_v46 = vmul.f32 %v2689_v32, %v2689_v32  ;;  %v838_v47 = vpop.f32.mrb[43].mxu0  ;;  %v966_v54 = vpop.f32.mrb[43].mxu1 }
 0x175   : > { %v1248_v55 = vadd.f32 %v1247_v38, %v1246_v14  ;;  %v1051_v62 = vadd.f32 %v1050_v45, %v1049_v31 }
 0x176   : > { %v1249_v63 = vsel %vm1008_vm0, %v1165_v46, 0.0 }
 0x177   : > { %v1250_v0 = vadd.f32 %v1249_v63, %v1248_v55 }
 0x179   : > { %v2699_v1 = vpop.f32.mrb[44].mxu0  ;;  %v2701_v2 = vpop.f32.mrb[44].mxu1 }
 0x17a   : > { %3935 = vst [vmem:[#allocation10_spill] sm:$0xff] %v2699_v1  ;;  %v1052_v7 = vsel %vm1008_vm0, %v2699_v1, 0.0  ;;  %v1166_v8 = vmul.f32 %v2699_v1, %v2699_v1  ;;  %v843_v11 = vpop.f32.mrb[45].mxu0  ;;  %v971_v25 = vpop.f32.mrb[45].mxu1 }
 0x17b   : > { %v1053_v26 = vadd.f32 %v1052_v7, %v1051_v62  ;;  %v2707_v29 = vpop.f32.mrb[46].mxu0  ;;  %v2709_v14 = vpop.f32.mrb[46].mxu1 }
 0x17c   : > { %3936 = vst [vmem:[#allocation11_spill] sm:$0xff] %v2707_v29  ;;  %v1251_v30 = vsel %vm1008_vm0, %v1166_v8, 0.0  ;;  %v1054_v31 = vsel %vm1008_vm0, %v2707_v29, 0.0  ;;  %v1167_v38 = vmul.f32 %v2707_v29, %v2707_v29  ;;  %v846_v45 = vpop.f32.mrb[47].mxu0  ;;  %v974_v46 = vpop.f32.mrb[47].mxu1 }
 0x17d   : > { %v1252_v47 = vadd.f32 %v1251_v30, %v1250_v0  ;;  %v1055_v54 = vadd.f32 %v1054_v31, %v1053_v26 }
 0x17e   : > { %v1253_v55 = vsel %vm1008_vm0, %v1167_v38, 0.0 }
 0x17f   : > { %v1254_v63 = vadd.f32 %v1253_v55, %v1252_v47 }
 0x181   : > { %v2717_v62 = vpop.f32.mrb[48].mxu0  ;;  %v2719_v7 = vpop.f32.mrb[48].mxu1 }
 0x182   : > { %3937 = vst [vmem:[#allocation12_spill] sm:$0xff] %v2717_v62  ;;  %v1056_v8 = vsel %vm1008_vm0, %v2717_v62, 0.0  ;;  %v1168_v11 = vmul.f32 %v2717_v62, %v2717_v62  ;;  %v851_v25 = vpop.f32.mrb[49].mxu0  ;;  %v979_v1 = vpop.f32.mrb[49].mxu1 }
 0x183   : > { %v1057_v29 = vadd.f32 %v1056_v8, %v1055_v54  ;;  %v2725_v45 = vpop.f32.mrb[50].mxu0  ;;  %v2727_v0 = vpop.f32.mrb[50].mxu1 }
 0x184   : > { %3938 = vst [vmem:[#allocation13_spill] sm:$0xff] %v2725_v45  ;;  %3939 = vst [vmem:[#allocation14_spill] sm:$0xff] %v2727_v0  ;;  %v1255_v26 = vsel %vm1008_vm0, %v1168_v11, 0.0  ;;  %v1058_v30 = vsel %vm1008_vm0, %v2725_v45, 0.0  ;;  %v1169_v31 = vmul.f32 %v2725_v45, %v2725_v45  ;;  %v854_v38 = vpop.f32.mrb[51].mxu0  ;;  %v982_v46 = vpop.f32.mrb[51].mxu1 }
 0x185   : > { %v1256_v47 = vadd.f32 %v1255_v26, %v1254_v63  ;;  %v1059_v55 = vadd.f32 %v1058_v30, %v1057_v29 }
 0x186   : > { %v1257_v25 = vsel %vm1008_vm0, %v1169_v31, 0.0 }
 0x187   : > { %v1258_v1 = vadd.f32 %v1257_v25, %v1256_v47 }
 0x189   : > { %v2735_v54 = vpop.f32.mrb[52].mxu0  ;;  %v2737_v8 = vpop.f32.mrb[52].mxu1 }
 0x18a   : > { %3940 = vst [vmem:[#allocation15_spill] sm:$0xff] %v2735_v54  ;;  %3941 = vst [vmem:[#allocation16_spill] sm:$0xff] %v2737_v8  ;;  %v1060_v11 = vsel %vm1008_vm0, %v2735_v54, 0.0  ;;  %v1170_v62 = vmul.f32 %v2735_v54, %v2735_v54  ;;  %v859_v32 = vpop.f32.mrb[53].mxu0  ;;  %v987_v15 = vpop.f32.mrb[53].mxu1 }
 0x18b   : > { %v1061_v45 = vadd.f32 %v1060_v11, %v1059_v55  ;;  %v2743_v38 = vpop.f32.mrb[54].mxu0  ;;  %v2745_v63 = vpop.f32.mrb[54].mxu1 }
 0x18c   : > { %3942 = vst [vmem:[#allocation17_spill] sm:$0xff] %v2743_v38  ;;  %3943 = vst [vmem:[#allocation18_spill] sm:$0xff] %v2745_v63  ;;  %v1259_v29 = vsel %vm1008_vm0, %v1170_v62, 0.0  ;;  %v1062_v26 = vsel %vm1008_vm0, %v2743_v38, 0.0  ;;  %v1171_v30 = vmul.f32 %v2743_v38, %v2743_v38  ;;  %v862_v31 = vpop.f32.mrb[55].mxu0  ;;  %v990_v46 = vpop.f32.mrb[55].mxu1 }
 0x18d   : > { %v1260_v47 = vadd.f32 %v1259_v29, %v1258_v1  ;;  %v1063_v25 = vadd.f32 %v1062_v26, %v1061_v45 }
 0x18e   : > { %v1261_v32 = vsel %vm1008_vm0, %v1171_v30, 0.0 }
 0x18f   : > { %v1262_v15 = vadd.f32 %v1261_v32, %v1260_v47 }
 0x191   : > { %v2753_v55 = vpop.f32.mrb[56].mxu0  ;;  %v2755_v11 = vpop.f32.mrb[56].mxu1 }
 0x192   : > { %3944 = vst [vmem:[#allocation19_spill] sm:$0xff] %v2753_v55  ;;  %3945 = vst [vmem:[#allocation20_spill] sm:$0xff] %v2755_v11  ;;  %v1064_v62 = vsel %vm1008_vm0, %v2753_v55, 0.0  ;;  %v1172_v54 = vmul.f32 %v2753_v55, %v2753_v55  ;;  %v867_v56 = vpop.f32.mrb[57].mxu0  ;;  %v995_v43 = vpop.f32.mrb[57].mxu1 }
 0x193   : > { %v1065_v38 = vadd.f32 %v1064_v62, %v1063_v25  ;;  %v2761_v31 = vpop.f32.mrb[58].mxu0  ;;  %v2763_v1 = vpop.f32.mrb[58].mxu1 }
 0x194   : > { %3946 = vst [vmem:[#allocation21_spill] sm:$0xff] %v2761_v31  ;;  %3947 = vst [vmem:[#allocation22_spill] sm:$0xff] %v2763_v1  ;;  %v1263_v45 = vsel %vm1008_vm0, %v1172_v54, 0.0  ;;  %v1066_v29 = vsel %vm1008_vm0, %v2761_v31, 0.0  ;;  %v1173_v26 = vmul.f32 %v2761_v31, %v2761_v31  ;;  %v870_v30 = vpop.f32.mrb[59].mxu0  ;;  %v998_v46 = vpop.f32.mrb[59].mxu1 }
 0x195   : > { %v1264_v47 = vadd.f32 %v1263_v45, %v1262_v15  ;;  %v1067_v32 = vadd.f32 %v1066_v29, %v1065_v38  ;;  %v1176_v38 = vmul.f32 %v2503_v18, %v2503_v18 }
 0x196   : > { %v1265_v56 = vsel %vm1008_vm0, %v1173_v26, 0.0 }
 0x197   : > { %v1266_v43 = vadd.f32 %v1265_v56, %v1264_v47  ;;  %v1177_v56 = vmul.f32 %v2509_v23, %v2509_v23  ;;  %v1271_v48 = vsel %vm1008_vm0, %v1176_v38, 0.0 }
 0x199   : > { %v2771_v25 = vpop.f32.mrb[60].mxu0  ;;  %v2773_v62 = vpop.f32.mrb[60].mxu1 }
 0x19a   : > { %3948 = vst [vmem:[#allocation23_spill] sm:$0xff] %v2771_v25  ;;  %3949 = vst [vmem:[#allocation24_spill] sm:$0xff] %v2773_v62  ;;  %v1068_v54 = vsel %vm1008_vm0, %v2771_v25, 0.0  ;;  %v1174_v55 = vmul.f32 %v2771_v25, %v2771_v25  ;;  %v875_v16 = vpop.f32.mrb[61].mxu0  ;;  %v1003_v3 = vpop.f32.mrb[61].mxu1 }
 0x19b   : > { %v1069_v31 = vadd.f32 %v1068_v54, %v1067_v32  ;;  %v2779_v30 = vpop.f32.mrb[62].mxu0  ;;  %v2781_v15 = vpop.f32.mrb[62].mxu1  ;;  %v1072_v32 = vsel %vm1008_vm0, %v2503_v18, 0.0 }
 0x19c   : > { %3950 = vst [vmem:[#allocation25_spill] sm:$0xff] %v2781_v15  ;;  %v1267_v45 = vsel %vm1008_vm0, %v1174_v55, 0.0  ;;  %v1070_v29 = vsel %vm1008_vm0, %v2779_v30, 0.0  ;;  %v1175_v26 = vmul.f32 %v2779_v30, %v2779_v30  ;;  %v878_v46 = vpop.f32.mrb[63].mxu0  ;;  %v1006_v47 = vpop.f32.mrb[63].mxu1 }
 0x19d   : > { %v1268_v16 = vadd.f32 %v1267_v45, %v1266_v43  ;;  %v1071_v3 = vadd.f32 %v1070_v29, %v1069_v31  ;;  %v1178_v46 = vmul.f32 %v2521_v34, %v2521_v34  ;;  %v1273_v45 = vsel %vm1008_vm0, %v1177_v56, 0.0 }
 0x19e   : > { %v1269_v54 = vsel %vm1008_vm0, %v1175_v26, 0.0  ;;  %v1076_v29 = vsel %vm1008_vm0, %v2521_v34, 0.0  ;;  %v1179_v26 = vmul.f32 %v2529_v41, %v2529_v41  ;;  %v1080_v56 = vsel %vm1008_vm0, %v2539_v52, 0.0 }
 0x19f   : > { %v1073_v25 = vadd.f32 %v1072_v32, %v1071_v3  ;;  %v1270_v55 = vadd.f32 %v1269_v54, %v1268_v16  ;;  %v1275_v38 = vsel %vm1008_vm0, %v1178_v46, 0.0  ;;  %v1078_v3 = vsel %vm1008_vm0, %v2529_v41, 0.0 }
 0x1a0   : > { %v1180_v32 = vmul.f32 %v2539_v52, %v2539_v52  ;;  %v1181_v54 = vmul.f32 %v2547_v59, %v2547_v59 }
 0x1a1   : > { %v1075_v43 = vadd.f32 %v1074_v39, %v1073_v25  ;;  %v1272_v31 = vadd.f32 %v1271_v48, %v1270_v55  ;;  %v1277_v25 = vsel %vm1008_vm0, %v1179_v26, 0.0 }
 0x1a2   : > { %v1279_v46 = vsel %vm1008_vm0, %v1180_v32, 0.0  ;;  %v1281_v26 = vsel %vm1008_vm0, %v1181_v54, 0.0 }
 0x1a3   : > { %v1077_v47 = vadd.f32 %v1076_v29, %v1075_v43  ;;  %v1274_v16 = vadd.f32 %v1273_v45, %v1272_v31  ;;  %v1082_v31 = vsel %vm1008_vm0, %v2547_v59, 0.0  ;;  %v1182_v45 = vmul.f32 %v2557_v6, %v2557_v6 }
 0x1a5   : > { %v1079_v39 = vadd.f32 %v1078_v3, %v1077_v47  ;;  %v1276_v48 = vadd.f32 %v1275_v38, %v1274_v16  ;;  %v1084_v16 = vsel %vm1008_vm0, %v2557_v6, 0.0  ;;  %v1183_v38 = vmul.f32 %v2565_v13, %v2565_v13 }
 0x1a6   : > { %v1283_v32 = vsel %vm1008_vm0, %v1182_v45, 0.0 }
 0x1a7   : > { %v1081_v55 = vadd.f32 %v1080_v56, %v1079_v39  ;;  %v1278_v43 = vadd.f32 %v1277_v25, %v1276_v48  ;;  %v1086_v48 = vsel %vm1008_vm0, %v2565_v13, 0.0  ;;  %v1184_v25 = vmul.f32 %v2575_v28, %v2575_v28 }
 0x1a8   : > { %v1285_v54 = vsel %vm1008_vm0, %v1183_v38, 0.0 }
 0x1a9   : > { %v1083_v29 = vadd.f32 %v1082_v31, %v1081_v55  ;;  %v1280_v47 = vadd.f32 %v1279_v46, %v1278_v43  ;;  %v1088_v43 = vsel %vm1008_vm0, %v2575_v28, 0.0  ;;  %v1185_v46 = vmul.f32 %v2583_v37, %v2583_v37 }
 0x1aa   : > { %v1287_v45 = vsel %vm1008_vm0, %v1184_v25, 0.0 }
 0x1ab   : > { %v1085_v3 = vadd.f32 %v1084_v16, %v1083_v29  ;;  %v1282_v39 = vadd.f32 %v1281_v26, %v1280_v47  ;;  %v1090_v47 = vsel %vm1008_vm0, %v2583_v37, 0.0  ;;  %v1186_v26 = vmul.f32 %v2593_v50, %v2593_v50 }
 0x1ac   : > { %v1289_v38 = vsel %vm1008_vm0, %v1185_v46, 0.0 }
 0x1ad   : > { %v1087_v56 = vadd.f32 %v1086_v48, %v1085_v3  ;;  %v1284_v55 = vadd.f32 %v1283_v32, %v1282_v39  ;;  %v1092_v39 = vsel %vm1008_vm0, %v2593_v50, 0.0  ;;  %v1187_v32 = vmul.f32 %v2601_v61, %v2601_v61 }
 0x1ae   : > { %v1291_v25 = vsel %vm1008_vm0, %v1186_v26, 0.0 }
 0x1af   : > { %v1286_v31 = vadd.f32 %v1285_v54, %v1284_v55  ;;  %v1089_v29 = vadd.f32 %v1088_v43, %v1087_v56  ;;  %v1094_v55 = vsel %vm1008_vm0, %v2601_v61, 0.0  ;;  %v1188_v54 = vmul.f32 %v2611_v10, %v2611_v10 }
 0x1b0   : > { %v1293_v46 = vsel %vm1008_vm0, %v1187_v32, 0.0 }
 0x1b1   : > { %v1091_v16 = vadd.f32 %v1090_v47, %v1089_v29  ;;  %v1288_v3 = vadd.f32 %v1287_v45, %v1286_v31  ;;  %v1096_v29 = vsel %vm1008_vm0, %v2611_v10, 0.0  ;;  %v1189_v45 = vmul.f32 %v2619_v21, %v2619_v21 }
 0x1b2   : > { %v1295_v26 = vsel %vm1008_vm0, %v1188_v54, 0.0 }
 0x1b3   : > { %v1093_v48 = vadd.f32 %v1092_v39, %v1091_v16  ;;  %v1290_v56 = vadd.f32 %v1289_v38, %v1288_v3  ;;  %v1098_v3 = vsel %vm1008_vm0, %v2619_v21, 0.0  ;;  %v1190_v38 = vmul.f32 %v2629_v42, %v2629_v42 }
 0x1b4   : > { %v1297_v32 = vsel %vm1008_vm0, %v1189_v45, 0.0 }
 0x1b5   : > { %v1095_v43 = vadd.f32 %v1094_v55, %v1093_v48  ;;  %v1292_v31 = vadd.f32 %v1291_v25, %v1290_v56  ;;  %v1100_v56 = vsel %vm1008_vm0, %v2629_v42, 0.0  ;;  %v1191_v25 = vmul.f32 %v2637_v53, %v2637_v53 }
 0x1b6   : > { %v1299_v54 = vsel %vm1008_vm0, %v1190_v38, 0.0 }
 0x1b7   : > { %v1097_v47 = vadd.f32 %v1096_v29, %v1095_v43  ;;  %v1294_v16 = vadd.f32 %v1293_v46, %v1292_v31  ;;  %v1102_v31 = vsel %vm1008_vm0, %v2637_v53, 0.0  ;;  %v1192_v46 = vmul.f32 %v2647_v4, %v2647_v4 }
 0x1b8   : > { %v1301_v45 = vsel %vm1008_vm0, %v1191_v25, 0.0 }
 0x1b9   : > { %v1099_v39 = vadd.f32 %v1098_v3, %v1097_v47  ;;  %v1296_v48 = vadd.f32 %v1295_v26, %v1294_v16  ;;  %v1104_v16 = vsel %vm1008_vm0, %v2647_v4, 0.0  ;;  %v1193_v26 = vmul.f32 %v2655_v19, %v2655_v19 }
 0x1ba   : > { %v1303_v38 = vsel %vm1008_vm0, %v1192_v46, 0.0 }
 0x1bb   : > { %v1101_v55 = vadd.f32 %v1100_v56, %v1099_v39  ;;  %v1298_v43 = vadd.f32 %v1297_v32, %v1296_v48  ;;  %v1106_v48 = vsel %vm1008_vm0, %v2655_v19, 0.0  ;;  %v1194_v32 = vmul.f32 %v2665_v44, %v2665_v44 }
 0x1bc   : > { %v1305_v25 = vsel %vm1008_vm0, %v1193_v26, 0.0 }
 0x1bd   : > { %v1103_v29 = vadd.f32 %v1102_v31, %v1101_v55  ;;  %v1300_v47 = vadd.f32 %v1299_v54, %v1298_v43  ;;  %v1108_v43 = vsel %vm1008_vm0, %v2665_v44, 0.0  ;;  %v1195_v54 = vmul.f32 %v2673_v57, %v2673_v57 }
 0x1be   : > { %v1307_v46 = vsel %vm1008_vm0, %v1194_v32, 0.0 }
 0x1bf   : > { %v1105_v3 = vadd.f32 %v1104_v16, %v1103_v29  ;;  %v1302_v39 = vadd.f32 %v1301_v45, %v1300_v47  ;;  %v1110_v47 = vsel %vm1008_vm0, %v2673_v57, 0.0  ;;  %v1196_v45 = vmul.f32 %v2683_v24, %v2683_v24 }
 0x1c0   : > { %v1309_v26 = vsel %vm1008_vm0, %v1195_v54, 0.0 }
 0x1c1   : > { %v1304_v56 = vadd.f32 %v1303_v38, %v1302_v39  ;;  %v1107_v55 = vadd.f32 %v1106_v48, %v1105_v3  ;;  %v1112_v39 = vsel %vm1008_vm0, %v2683_v24, 0.0  ;;  %v1197_v38 = vmul.f32 %v2691_v35, %v2691_v35 }
 0x1c2   : > { %v1311_v32 = vsel %vm1008_vm0, %v1196_v45, 0.0 }
 0x1c3   : > { %v1306_v31 = vadd.f32 %v1305_v25, %v1304_v56  ;;  %v1109_v29 = vadd.f32 %v1108_v43, %v1107_v55  ;;  %v1114_v55 = vsel %vm1008_vm0, %v2691_v35, 0.0  ;;  %v1198_v25 = vmul.f32 %v2701_v2, %v2701_v2 }
 0x1c4   : > { %v1313_v54 = vsel %vm1008_vm0, %v1197_v38, 0.0 }
 0x1c5   : > { %v1308_v16 = vadd.f32 %v1307_v46, %v1306_v31  ;;  %v1111_v3 = vadd.f32 %v1110_v47, %v1109_v29  ;;  %v1116_v29 = vsel %vm1008_vm0, %v2701_v2, 0.0  ;;  %v1199_v46 = vmul.f32 %v2709_v14, %v2709_v14 }
 0x1c6   : > { %v1315_v45 = vsel %vm1008_vm0, %v1198_v25, 0.0 }
 0x1c7   : > { %v1310_v48 = vadd.f32 %v1309_v26, %v1308_v16  ;;  %v1113_v56 = vadd.f32 %v1112_v39, %v1111_v3  ;;  %v1118_v3 = vsel %vm1008_vm0, %v2709_v14, 0.0  ;;  %v1200_v26 = vmul.f32 %v2719_v7, %v2719_v7 }
 0x1c8   : > { %v1317_v38 = vsel %vm1008_vm0, %v1199_v46, 0.0 }
 0x1c9   : > { %v1312_v43 = vadd.f32 %v1311_v32, %v1310_v48  ;;  %v1115_v31 = vadd.f32 %v1114_v55, %v1113_v56  ;;  %v1120_v56 = vsel %vm1008_vm0, %v2719_v7, 0.0  ;;  %v1201_v32 = vmul.f32 %v2727_v0, %v2727_v0 }
 0x1ca   : > { %v1319_v25 = vsel %vm1008_vm0, %v1200_v26, 0.0 }
 0x1cb   : > { %v1314_v47 = vadd.f32 %v1313_v54, %v1312_v43  ;;  %v1117_v16 = vadd.f32 %v1116_v29, %v1115_v31  ;;  %v1122_v31 = vsel %vm1008_vm0, %v2727_v0, 0.0  ;;  %v1202_v54 = vmul.f32 %v2737_v8, %v2737_v8 }
 0x1cc   : > { %v1321_v46 = vsel %vm1008_vm0, %v1201_v32, 0.0 }
 0x1cd   : > { %v1316_v39 = vadd.f32 %v1315_v45, %v1314_v47  ;;  %v1119_v48 = vadd.f32 %v1118_v3, %v1117_v16  ;;  %v1124_v16 = vsel %vm1008_vm0, %v2737_v8, 0.0  ;;  %v1203_v45 = vmul.f32 %v2745_v63, %v2745_v63 }
 0x1ce   : > { %v1323_v26 = vsel %vm1008_vm0, %v1202_v54, 0.0 }
 0x1cf   : > { %v1318_v55 = vadd.f32 %v1317_v38, %v1316_v39  ;;  %v1121_v43 = vadd.f32 %v1120_v56, %v1119_v48  ;;  %v1126_v48 = vsel %vm1008_vm0, %v2745_v63, 0.0  ;;  %v1204_v38 = vmul.f32 %v2755_v11, %v2755_v11 }
 0x1d0   : > { %v1325_v32 = vsel %vm1008_vm0, %v1203_v45, 0.0 }
 0x1d1   : > { %v1320_v29 = vadd.f32 %v1319_v25, %v1318_v55  ;;  %v1123_v47 = vadd.f32 %v1122_v31, %v1121_v43  ;;  %v1128_v43 = vsel %vm1008_vm0, %v2755_v11, 0.0  ;;  %v1205_v25 = vmul.f32 %v2763_v1, %v2763_v1 }
 0x1d2   : > { %v1206_v31 = vmul.f32 %v2773_v62, %v2773_v62 }
 0x1d3   : > { %v1322_v3 = vadd.f32 %v1321_v46, %v1320_v29  ;;  %v1125_v39 = vadd.f32 %v1124_v16, %v1123_v47  ;;  %v1327_v47 = vsel %vm1008_vm0, %v1204_v38, 0.0  ;;  %v1130_v46 = vsel %vm1008_vm0, %v2763_v1, 0.0 }
 0x1d4   : > { %v1132_v16 = vsel %vm1008_vm0, %v2773_v62, 0.0  ;;  %v1134_v38 = vsel %vm1008_vm0, %v2781_v15, 0.0 }
 0x1d5   : > { %v1324_v56 = vadd.f32 %v1323_v26, %v1322_v3  ;;  %v1127_v55 = vadd.f32 %v1126_v48, %v1125_v39  ;;  %v1329_v39 = vsel %vm1008_vm0, %v1205_v25, 0.0  ;;  %v1331_v26 = vsel %vm1008_vm0, %v1206_v31, 0.0 }
 0x1d6   : > { %v1207_v48 = vmul.f32 %v2781_v15, %v2781_v15 }
 0x1d7   : > { %v1326_v54 = vadd.f32 %v1325_v32, %v1324_v56  ;;  %v1129_v29 = vadd.f32 %v1128_v43, %v1127_v55 }
 0x1d8   : > { %v1333_v43 = vsel %vm1008_vm0, %v1207_v48, 0.0  ;;  %v1351_v48 = vlaneseq }
 0x1d9   : > { %v1328_v45 = vadd.f32 %v1327_v47, %v1326_v54  ;;  %v1131_v3 = vadd.f32 %v1130_v46, %v1129_v29 }
 0x1db   : > { %v1330_v11 = vadd.f32 %v1329_v39, %v1328_v45  ;;  %v1133_v56 = vadd.f32 %v1132_v16, %v1131_v3 }
 0x1dd   : > { %v1332_v55 = vadd.f32 %v1331_v26, %v1330_v11  ;;  %v1135_v32 = vadd.f32 %v1134_v38, %v1133_v56  ;;  %v2949_v38 = vshrl.u32 %v1351_v48, 7  ;;  %v3958_v48 = vld [vmem:[#allocation9_spill] sm:$0xff] }
 0x1df   : > { %v1136_v1 = vrot.slane %v1135_v32, 4  ;;  %v1334_v62 = vadd.f32 %v1333_v43, %v1332_v55 }
 0x1e1   : > { %v1137_v54 = vadd.f32 %v1136_v1, %v1135_v32  ;;  %v1335_v29 = vrot.slane %v1334_v62, 4  ;;  %v237_v1 = vld [vmem:[%s3882_s2] sm:$0x1]  ;;  %v3966_v32 = vld [vmem:[#allocation17_spill] sm:$0xff] }
 0x1e3   : > { %v1138_v47 = vrot.slane %v1137_v54, 2  ;;  %v1336_v25 = vadd.f32 %v1335_v29, %v1334_v62  ;;  %v3909_v62 = vsub.s32 0, %v2949_v38 }
 0x1e5   : > { %v1139_v46 = vadd.f32 %v1138_v47, %v1137_v54  ;;  %v1337_v31 = vrot.slane %v1336_v25, 2 }
 0x1e7   : > { %v1140_v63 = vrot.slane %v1139_v46, 1  ;;  %v1338_v8 = vadd.f32 %v1337_v31, %v1336_v25  ;;  %v3952_v31 = vld [vmem:[#allocation3_spill] sm:$0xff] }
 0x1e9   : > { %v1141_v0 = vadd.f32 %v1140_v63, %v1139_v46  ;;  %v1339_v45 = vrot.slane %v1338_v8, 1  ;;  %v3951_v46 = vld [vmem:[#allocation2_spill] sm:$0xff] }
 0x1eb   : > { %v1143_v16 = vmul.f32 0.001953125, %v1141_v0  ;;  %v1340_v3 = vadd.f32 %v1339_v45, %v1338_v8  ;;  %v2958_v0 = vld [vmem:[%s3883_s3] sm:$0x1]  ;;  %v3953_v45 = vld [vmem:[#allocation4_spill] sm:$0xff] }
 0x1ed   : > { %v1341_v39 = vmul.f32 0.001953125, %v1340_v3  ;;  %v1342_v15 = vmul.f32 %v1143_v16, %v1143_v16  ;;  %v3955_v3 = vld [vmem:[#allocation6_spill] sm:$0xff] }
 0x1ef   : > { %v1343_v11 = vsub.f32 %v1341_v39, %v1342_v15  ;;  %v3956_v39 = vld [vmem:[#allocation7_spill] sm:$0xff] }
 0x1f1   : > { %v1344_v26 = vmax.f32 %v1343_v11, 0.0 }
 0x1f3   : > { %v1345_v56 = vadd.f32 1e-05, %v1344_v26  ;;  %v3957_v26 = vld [vmem:[#allocation8_spill] sm:$0xff] }
 0x1f5   : > { %2305 = vrsqrt.f32 %v1345_v56 }
 0x1ff   : > { %v2306_v55 = vpop.eup %2305 }
 0x200   : > { %v1347_v63 = vmul.f32 %v2306_v55, %v237_v1  ;;  %v3959_v55 = vld [vmem:[#allocation10_spill] sm:$0xff] }
 0x202   : > { %v2960_v8 = vmul.f32 %v1347_v63, %v1143_v16  ;;  %v2964_v15 = vrot.slane %v1347_v63, %v3909_v62  ;;  %v3954_v16 = vld [vmem:[#allocation5_spill] sm:$0xff]  ;;  %v3967_v62 = vld [vmem:[#allocation19_spill] sm:$0xff] }
 0x204   : > { %v2970_v43 = vmul.f32 %v2964_v15, %v2501_v17  ;;  %v2974_v54 = vmul.f32 %v2964_v15, %v2507_v22  ;;  %v2978_v29 = vmul.f32 %v2964_v15, %v2519_v33  ;;  %v2982_v47 = vmul.f32 %v2964_v15, %v2527_v40 }
 0x205   : > { %v2986_v25 = vmul.f32 %v2964_v15, %v2537_v51  ;;  %v2990_v17 = vmul.f32 %v2964_v15, %v2545_v58  ;;  %v2994_v22 = vmul.f32 %v2964_v15, %v2555_v5  ;;  %v2998_v33 = vmul.f32 %v2964_v15, %v2563_v12 }
 0x206   : > { %v3002_v40 = vmul.f32 %v2964_v15, %v2573_v27  ;;  %v3006_v51 = vmul.f32 %v2964_v15, %v2581_v36  ;;  %v3010_v58 = vmul.f32 %v2964_v15, %v2591_v49  ;;  %v3014_v5 = vmul.f32 %v2964_v15, %v2599_v60 }
 0x207   : > { %v3018_v12 = vmul.f32 %v2964_v15, %v2609_v9  ;;  %v3022_v27 = vmul.f32 %v2964_v15, %v2617_v20  ;;  %v3026_v36 = vmul.f32 %v2964_v15, %v3951_v46  ;;  %v3030_v49 = vmul.f32 %v2964_v15, %v3952_v31  ;;  %v3960_v46 = vld [vmem:[#allocation11_spill] sm:$0xff] }
 0x208   : > { %v3034_v60 = vmul.f32 %v2964_v15, %v3953_v45  ;;  %v3038_v9 = vmul.f32 %v2964_v15, %v3954_v16  ;;  %v3042_v20 = vmul.f32 %v2964_v15, %v3955_v3  ;;  %v3046_v11 = vmul.f32 %v2964_v15, %v3956_v39  ;;  %v3962_v45 = vld [vmem:[#allocation12_spill] sm:$0xff]  ;;  %v3964_v3 = vld [vmem:[#allocation13_spill] sm:$0xff] }
 0x209   : > { %v3050_v56 = vmul.f32 %v2964_v15, %v3957_v26  ;;  %v3054_v1 = vmul.f32 %v2964_v15, %v3958_v48  ;;  %v3058_v63 = vmul.f32 %v2964_v15, %v3959_v55  ;;  %v3062_v31 = vmul.f32 %v2964_v15, %v3960_v46  ;;  %v3965_v26 = vld [vmem:[#allocation15_spill] sm:$0xff] }
 0x20a   : > { %v3066_v16 = vmul.f32 %v2964_v15, %v3962_v45  ;;  %v3070_v39 = vmul.f32 %v2964_v15, %v3964_v3  ;;  %v3074_v48 = vmul.f32 %v2964_v15, %v3965_v26  ;;  %v3078_v55 = vmul.f32 %v2964_v15, %v3966_v32 }
 0x20b   : > { %3961 = vst [vmem:[#allocation2_spill] sm:$0xff] %v3062_v31  ;;  %v3082_v46 = vmul.f32 %v2964_v15, %v3967_v62  ;;  %v3968_v31 = vld [vmem:[#allocation21_spill] sm:$0xff]  ;;  %v3094_v26 = vmul.f32 %v2964_v15, %v2779_v30  ;;  %v3098_v32 = vmul.f32 %v2964_v15, %v2503_v18  ;;  %v3102_v62 = vmul.f32 %v2964_v15, %v2509_v23 }
 0x20c   : > { %3963 = vst [vmem:[#allocation3_spill] sm:$0xff] %v3066_v16  ;;  %v3086_v45 = vmul.f32 %v2964_v15, %v3968_v31  ;;  %v3969_v16 = vld [vmem:[#allocation23_spill] sm:$0xff]  ;;  %v3106_v31 = vmul.f32 %v2964_v15, %v2521_v34  ;;  %v3114_v30 = vmul.f32 %v2964_v15, %v2539_v52  ;;  %v3118_v18 = vmul.f32 %v2964_v15, %v2547_v59 }
 0x20d   : > { %v3090_v3 = vmul.f32 %v2964_v15, %v3969_v16  ;;  %v3110_v16 = vmul.f32 %v2964_v15, %v2529_v41  ;;  %v3122_v23 = vmul.f32 %v2964_v15, %v2557_v6  ;;  %v3126_v34 = vmul.f32 %v2964_v15, %v2565_v13 }
 0x20e   : > { %v3130_v41 = vmul.f32 %v2964_v15, %v2575_v28  ;;  %v3134_v52 = vmul.f32 %v2964_v15, %v2583_v37  ;;  %v3138_v59 = vmul.f32 %v2964_v15, %v2593_v50  ;;  %v3142_v6 = vmul.f32 %v2964_v15, %v2601_v61 }
 0x20f   : > { %v3146_v13 = vmul.f32 %v2964_v15, %v2611_v10  ;;  %v3150_v28 = vmul.f32 %v2964_v15, %v2619_v21  ;;  %v3154_v37 = vmul.f32 %v2964_v15, %v2629_v42  ;;  %v3158_v50 = vmul.f32 %v2964_v15, %v2637_v53 }
 0x210   : > { %v3162_v61 = vmul.f32 %v2964_v15, %v2647_v4  ;;  %v3166_v10 = vmul.f32 %v2964_v15, %v2655_v19  ;;  %v3170_v21 = vmul.f32 %v2964_v15, %v2665_v44  ;;  %v3174_v42 = vmul.f32 %v2964_v15, %v2673_v57 }
 0x211   : > { %v3178_v53 = vmul.f32 %v2964_v15, %v2683_v24  ;;  %v3182_v4 = vmul.f32 %v2964_v15, %v2691_v35  ;;  %v3186_v19 = vmul.f32 %v2964_v15, %v2701_v2  ;;  %v3190_v44 = vmul.f32 %v2964_v15, %v2709_v14 }
 0x212   : > { %3970 = vst [vmem:[#allocation4_spill] sm:$0xff] %v3174_v42  ;;  %v3194_v57 = vmul.f32 %v2964_v15, %v2719_v7  ;;  %v3976_v42 = vld [vmem:[#allocation14_spill] sm:$0xff] }
 0x213   : > { %3971 = vst [vmem:[#allocation5_spill] sm:$0xff] %v3178_v53  ;;  %3972 = vst [vmem:[#allocation6_spill] sm:$0xff] %v3182_v4  ;;  %v3198_v24 = vmul.f32 %v2964_v15, %v3976_v42  ;;  %v3978_v53 = vld [vmem:[#allocation16_spill] sm:$0xff]  ;;  %v3980_v4 = vld [vmem:[#allocation18_spill] sm:$0xff] }
 0x214   : > { %3973 = vst [vmem:[#allocation7_spill] sm:$0xff] %v3186_v19  ;;  %3974 = vst [vmem:[#allocation8_spill] sm:$0xff] %v3190_v44  ;;  %v3202_v35 = vmul.f32 %v2964_v15, %v3978_v53  ;;  %v3206_v2 = vmul.f32 %v2964_v15, %v3980_v4  ;;  %v3982_v19 = vld [vmem:[#allocation20_spill] sm:$0xff]  ;;  %v3983_v44 = vld [vmem:[#allocation22_spill] sm:$0xff]  ;;  %v3987_v4 = vsub.f32 %v2958_v0, %v2960_v8 }
 0x215   : > { %3975 = vst [vmem:[#allocation9_spill] sm:$0xff] %v3194_v57  ;;  %3977 = vst [vmem:[#allocation10_spill] sm:$0xff] %v3198_v24  ;;  %v3210_v14 = vmul.f32 %v2964_v15, %v3982_v19  ;;  %v3214_v7 = vmul.f32 %v2964_v15, %v3983_v44  ;;  %v3984_v57 = vld [vmem:[#allocation24_spill] sm:$0xff]  ;;  %v3985_v24 = vld [vmem:[#allocation25_spill] sm:$0xff] }
 0x216   : > { %3979 = vst [vmem:[#allocation11_spill] sm:$0xff] %v3202_v35  ;;  %3981 = vst [vmem:[#allocation12_spill] sm:$0xff] %v3206_v2  ;;  %v3218_v42 = vmul.f32 %v2964_v15, %v3984_v57  ;;  %v3222_v53 = vmul.f32 %v2964_v15, %v3985_v24  ;;  %v3986_v35 = vsub.s32 0, %v2949_v38 }
 0x218   : > { %v3229_v2 = vrot.slane %v3987_v4, %v3986_v35 }
 0x219   : > { %v3999_v4 = vld [vmem:[#allocation4_spill] sm:$0xff] }
 0x21a   : > { %v3233_v19 = vadd.f32 %v3229_v2, %v2970_v43  ;;  %v3237_v44 = vadd.f32 %v3229_v2, %v2974_v54  ;;  %v3241_v57 = vadd.f32 %v3229_v2, %v2978_v29  ;;  %v3245_v38 = vadd.f32 %v3229_v2, %v2982_v47 }
 0x21b   : > { %v3249_v0 = vadd.f32 %v3229_v2, %v2986_v25  ;;  %v3253_v8 = vadd.f32 %v3229_v2, %v2990_v17  ;;  %v3257_v15 = vadd.f32 %v3229_v2, %v2994_v22  ;;  %v3261_v43 = vadd.f32 %v3229_v2, %v2998_v33 }
 0x21c   : > { %v3265_v54 = vadd.f32 %v3229_v2, %v3002_v40  ;;  %v3269_v29 = vadd.f32 %v3229_v2, %v3006_v51  ;;  %v3273_v47 = vadd.f32 %v3229_v2, %v3010_v58  ;;  %v3277_v25 = vadd.f32 %v3229_v2, %v3014_v5 }
 0x21d   : > { %v3281_v17 = vadd.f32 %v3229_v2, %v3018_v12  ;;  %v3285_v22 = vadd.f32 %v3229_v2, %v3022_v27  ;;  %v3289_v33 = vadd.f32 %v3229_v2, %v3026_v36  ;;  %v3293_v40 = vadd.f32 %v3229_v2, %v3030_v49 }
 0x21e   : > { %v3297_v51 = vadd.f32 %v3229_v2, %v3034_v60  ;;  %v3301_v58 = vadd.f32 %v3229_v2, %v3038_v9  ;;  %v3305_v5 = vadd.f32 %v3229_v2, %v3042_v20  ;;  %v3309_v12 = vadd.f32 %v3229_v2, %v3046_v11  ;;  %v3988_v60 = vld [vmem:[#allocation2_spill] sm:$0xff]  ;;  %v3989_v20 = vld [vmem:[#allocation3_spill] sm:$0xff] }
 0x21f   : > { %v3313_v27 = vadd.f32 %v3229_v2, %v3050_v56  ;;  %v3317_v36 = vadd.f32 %v3229_v2, %v3054_v1  ;;  %v3321_v49 = vadd.f32 %v3229_v2, %v3058_v63  ;;  %v3325_v9 = vadd.f32 %v3229_v2, %v3988_v60  ;;  %v4001_v60 = vld [vmem:[#allocation5_spill] sm:$0xff] }
 0x220   : > { %v3329_v11 = vadd.f32 %v3229_v2, %v3989_v20  ;;  %v3333_v56 = vadd.f32 %v3229_v2, %v3070_v39  ;;  %v3337_v1 = vadd.f32 %v3229_v2, %v3074_v48  ;;  %v3341_v63 = vadd.f32 %v3229_v2, %v3078_v55  ;;  %v4003_v20 = vld [vmem:[#allocation6_spill] sm:$0xff] }
 0x221   : > { %v3345_v24 = vadd.f32 %v3229_v2, %v3082_v46  ;;  %v3349_v35 = vadd.f32 %v3229_v2, %v3086_v45  ;;  %v3353_v39 = vadd.f32 %v3229_v2, %v3090_v3  ;;  %v3357_v48 = vadd.f32 %v3229_v2, %v3094_v26 }
 0x222   : > { %v3361_v55 = vadd.f32 %v3229_v2, %v3098_v32  ;;  %v3365_v46 = vadd.f32 %v3229_v2, %v3102_v62  ;;  %v3369_v45 = vadd.f32 %v3229_v2, %v3106_v31  ;;  %v3373_v3 = vadd.f32 %v3229_v2, %v3110_v16 }
 0x223   : > { %v3377_v26 = vadd.f32 %v3229_v2, %v3114_v30  ;;  %v3381_v32 = vadd.f32 %v3229_v2, %v3118_v18  ;;  %v3385_v62 = vadd.f32 %v3229_v2, %v3122_v23  ;;  %v3389_v31 = vadd.f32 %v3229_v2, %v3126_v34 }
 0x224   : > { %v3393_v16 = vadd.f32 %v3229_v2, %v3130_v41  ;;  %v3397_v30 = vadd.f32 %v3229_v2, %v3134_v52  ;;  %v3401_v18 = vadd.f32 %v3229_v2, %v3138_v59  ;;  %v3405_v23 = vadd.f32 %v3229_v2, %v3142_v6 }
 0x225   : > { %3990 = vst [vmem:[#allocation13_spill] sm:$0xff] %v3389_v31  ;;  %v3409_v34 = vadd.f32 %v3229_v2, %v3146_v13  ;;  %v3413_v41 = vadd.f32 %v3229_v2, %v3150_v28  ;;  %v3417_v52 = vadd.f32 %v3229_v2, %v3154_v37  ;;  %v3421_v59 = vadd.f32 %v3229_v2, %v3158_v50 }
 0x226   : > { %3991 = vst [vmem:[#allocation15_spill] sm:$0xff] %v3393_v16  ;;  %3992 = vst [vmem:[#allocation17_spill] sm:$0xff] %v3397_v30  ;;  %v3425_v6 = vadd.f32 %v3229_v2, %v3162_v61  ;;  %v3429_v13 = vadd.f32 %v3229_v2, %v3166_v10  ;;  %v3433_v28 = vadd.f32 %v3229_v2, %v3170_v21  ;;  %v4029_v30 = vmax.f32 %v3241_v57, 0.0 }
 0x227   : > { %3993 = vst [vmem:[#allocation19_spill] sm:$0xff] %v3401_v18  ;;  %3994 = vst [vmem:[#allocation21_spill] sm:$0xff] %v3405_v23  ;;  %v3437_v37 = vadd.f32 %v3229_v2, %v3999_v4  ;;  %v3441_v50 = vadd.f32 %v3229_v2, %v4001_v60  ;;  %v3445_v61 = vadd.f32 %v3229_v2, %v4003_v20  ;;  %v4031_v16 = vmax.f32 %v3249_v0, 0.0 }
 0x228   : > { %3995 = vst [vmem:[#allocation23_spill] sm:$0xff] %v3421_v59  ;;  %3996 = vst [vmem:[#allocation14_spill] sm:$0xff] %v3425_v6  ;;  %v4005_v6 = vld [vmem:[#allocation7_spill] sm:$0xff]  ;;  %v2090_v18 = vpack.c.bf16 %v4029_v30, %v4029_v30  ;;  %v4034_v30 = vmax.f32 %v3261_v43, 0.0 }
 0x229   : > { %3997 = vst [vmem:[#allocation16_spill] sm:$0xff] %v3429_v13  ;;  %3998 = vst [vmem:[#allocation18_spill] sm:$0xff] %v3433_v28  ;;  %v3449_v10 = vadd.f32 %v3229_v2, %v4005_v6  ;;  %v4006_v13 = vld [vmem:[#allocation8_spill] sm:$0xff]  ;;  %v4007_v28 = vld [vmem:[#allocation9_spill] sm:$0xff] }
 0x22a   : > { %4000 = vst [vmem:[#allocation20_spill] sm:$0xff] %v3437_v37  ;;  %4002 = vst [vmem:[#allocation22_spill] sm:$0xff] %v3441_v50  ;;  %v3453_v21 = vadd.f32 %v3229_v2, %v4006_v13  ;;  %v3457_v4 = vadd.f32 %v3229_v2, %v4007_v28  ;;  %v4008_v37 = vld [vmem:[#allocation10_spill] sm:$0xff]  ;;  %v4009_v50 = vld [vmem:[#allocation11_spill] sm:$0xff]  ;;  %v3473_v13 = vadd.f32 %v3229_v2, %v3210_v14 }
 0x22b   : > { %4004 = vst [vmem:[#allocation24_spill] sm:$0xff] %v3445_v61  ;;  %v3461_v60 = vadd.f32 %v3229_v2, %v4008_v37  ;;  %v3465_v20 = vadd.f32 %v3229_v2, %v4009_v50  ;;  %v4011_v61 = vld [vmem:[#allocation12_spill] sm:$0xff]  ;;  %v3477_v28 = vadd.f32 %v3229_v2, %v3214_v7  ;;  %v3481_v37 = vadd.f32 %v3229_v2, %v3218_v42 }
 0x22c   : > { %v3469_v6 = vadd.f32 %v3229_v2, %v4011_v61  ;;  %4013 = vst [vmem:[#allocation3_spill] sm:$0xff] %v3473_v13  ;;  %v3485_v50 = vadd.f32 %v3229_v2, %v3222_v53  ;;  %v4028_v42 = vmax.f32 %v3237_v44, 0.0  ;;  %v4030_v7 = vmax.f32 %v3245_v38, 0.0  ;;  %1813 = vst.msk [vmem:[%s3551_s10 + $0x8] sm:$0xf] %vm1810_vm1, %v2090_v18 }
 0x22d   : > { %4010 = vst [vmem:[#allocation25_spill] sm:$0xff] %v3465_v20  ;;  %4014 = vst [vmem:[#allocation4_spill] sm:$0xff] %v3477_v28  ;;  %v4022_v59 = vmov %v3465_v20  ;;  %v4025_v23 = vmov %v3477_v28  ;;  %v4027_v20 = vmax.f32 %v3233_v19, 0.0  ;;  %v4032_v19 = vmax.f32 %v3253_v8, 0.0 }
 0x22e   : > { %4012 = vst [vmem:[#allocation2_spill] sm:$0xff] %v3469_v6  ;;  %4015 = vst [vmem:[#allocation5_spill] sm:$0xff] %v3481_v37  ;;  %v2089_v2 = vpack.c.bf16 %v4028_v42, %v4028_v42  ;;  %v2091_v28 = vpack.c.bf16 %v4030_v7, %v4030_v7  ;;  %v2092_v37 = vpack.c.bf16 %v4031_v16, %v4031_v16  ;;  %v4033_v44 = vmax.f32 %v3257_v15, 0.0 }
 0x22f   : > { %v2088_v31 = vpack.c.bf16 %v4027_v20, %v4027_v20  ;;  %v2093_v20 = vpack.c.bf16 %v4032_v19, %v4032_v19  ;;  %v2095_v38 = vpack.c.bf16 %v4034_v30, %v4034_v30  ;;  %v4035_v7 = vmax.f32 %v3265_v54, 0.0 }
 0x230   : > { %v4017_v53 = vld [vmem:[#allocation16_spill] sm:$0xff]  ;;  %v4018_v61 = vld [vmem:[#allocation18_spill] sm:$0xff]  ;;  %v2094_v57 = vpack.c.bf16 %v4033_v44, %v4033_v44  ;;  %v4036_v8 = vmax.f32 %v3269_v29, 0.0  ;;  %v4037_v42 = vmax.f32 %v3273_v47, 0.0  ;;  %v4038_v19 = vmax.f32 %v3277_v25, 0.0 }
 0x231   : > { %v4019_v14 = vld [vmem:[#allocation20_spill] sm:$0xff]  ;;  %v4020_v6 = vld [vmem:[#allocation22_spill] sm:$0xff]  ;;  %v2096_v0 = vpack.c.bf16 %v4035_v7, %v4035_v7  ;;  %1811 = vst.msk [vmem:[%s3551_s10] sm:$0xf] %vm1810_vm1, %v2088_v31  ;;  %1812 = vst.msk [vmem:[%s3551_s10 + $0x4] sm:$0xf] %vm1810_vm1, %v2089_v2 }
 0x232   : > { %v4021_v13 = vld [vmem:[#allocation24_spill] sm:$0xff]  ;;  %v2097_v16 = vpack.c.bf16 %v4036_v8, %v4036_v8  ;;  %v2098_v15 = vpack.c.bf16 %v4037_v42, %v4037_v42  ;;  %v2099_v43 = vpack.c.bf16 %v4038_v19, %v4038_v19  ;;  %1814 = vst.msk [vmem:[%s3551_s10 + $0xc] sm:$0xf] %vm1810_vm1, %v2091_v28  ;;  %v4039_v54 = vmax.f32 %v3281_v17, 0.0  ;;  %1815 = vst.msk [vmem:[%s3551_s10 + $0x10] sm:$0xf] %vm1810_vm1, %v2092_v37 }
 0x233   : > { %v4040_v47 = vmax.f32 %v3285_v22, 0.0  ;;  %v4041_v31 = vmax.f32 %v3289_v33, 0.0  ;;  %v4042_v2 = vmax.f32 %v3293_v40, 0.0  ;;  %1816 = vst.msk [vmem:[%s3551_s10 + $0x14] sm:$0xf] %vm1810_vm1, %v2093_v20  ;;  %v4043_v17 = vmax.f32 %v3297_v51, 0.0 }
 0x234   : > { %v2100_v29 = vpack.c.bf16 %v4039_v54, %v4039_v54  ;;  %1817 = vst.msk [vmem:[%s3551_s10 + $0x18] sm:$0xf] %vm1810_vm1, %v2094_v57  ;;  %1818 = vst.msk [vmem:[%s3551_s10 + $0x1c] sm:$0xf] %vm1810_vm1, %v2095_v38  ;;  %v4044_v33 = vmax.f32 %v3301_v58, 0.0  ;;  %v4045_v28 = vmax.f32 %v3305_v5, 0.0 }
 0x235   : > { %v2101_v25 = vpack.c.bf16 %v4040_v47, %v4040_v47  ;;  %v2102_v44 = vpack.c.bf16 %v4041_v31, %v4041_v31  ;;  %v2103_v18 = vpack.c.bf16 %v4042_v2, %v4042_v2  ;;  %v2104_v22 = vpack.c.bf16 %v4043_v17, %v4043_v17  ;;  %1819 = vst.msk [vmem:[%s3551_s10 + $0x20] sm:$0xf] %vm1810_vm1, %v2096_v0  ;;  %v4066_v17 = vld [vmem:[#allocation13_spill] sm:$0xff] }
 0x236   : > { %v2105_v40 = vpack.c.bf16 %v4044_v33, %v4044_v33  ;;  %v2106_v37 = vpack.c.bf16 %v4045_v28, %v4045_v28  ;;  %v4046_v20 = vmax.f32 %v3309_v12, 0.0  ;;  %1820 = vst.msk [vmem:[%s3551_s10 + $0x24] sm:$0xf] %vm1810_vm1, %v2097_v16  ;;  %1821 = vst.msk [vmem:[%s3551_s10 + $0x28] sm:$0xf] %vm1810_vm1, %v2098_v15  ;;  %v4047_v51 = vmax.f32 %v3313_v27, 0.0 }
 0x237   : > { %1822 = vst.msk [vmem:[%s3551_s10 + $0x2c] sm:$0xf] %vm1810_vm1, %v2099_v43  ;;  %v4048_v5 = vmax.f32 %v3317_v36, 0.0  ;;  %v4049_v30 = vmax.f32 %v3321_v49, 0.0  ;;  %v4050_v7 = vmax.f32 %v3325_v9, 0.0  ;;  %v4051_v27 = vmax.f32 %v3329_v11, 0.0 }
 0x238   : > { %v2107_v57 = vpack.c.bf16 %v4046_v20, %v4046_v20  ;;  %v2108_v58 = vpack.c.bf16 %v4047_v51, %v4047_v51  ;;  %1823 = vst.msk [vmem:[%s3551_s10 + $0x30] sm:$0xf] %vm1810_vm1, %v2100_v29  ;;  %1824 = vst.msk [vmem:[%s3551_s10 + $0x34] sm:$0xf] %vm1810_vm1, %v2101_v25  ;;  %v4052_v49 = vmax.f32 %v3333_v56, 0.0  ;;  %v4053_v8 = vmax.f32 %v3337_v1, 0.0 }
 0x239   : > { %v2109_v12 = vpack.c.bf16 %v4048_v5, %v4048_v5  ;;  %v2110_v38 = vpack.c.bf16 %v4049_v30, %v4049_v30  ;;  %v2111_v0 = vpack.c.bf16 %v4050_v7, %v4050_v7  ;;  %1825 = vst.msk [vmem:[%s3551_s10 + $0x38] sm:$0xf] %vm1810_vm1, %v2102_v44  ;;  %1826 = vst.msk [vmem:[%s3551_s10 + $0x3c] sm:$0xf] %vm1810_vm1, %v2103_v18  ;;  %v4054_v42 = vmax.f32 %v3341_v63, 0.0  ;;  %v4072_v20 = vld [vmem:[#allocation19_spill] sm:$0xff] }
 0x23a   : > { %v2112_v36 = vpack.c.bf16 %v4051_v27, %v4051_v27  ;;  %v2113_v9 = vpack.c.bf16 %v4052_v49, %v4052_v49  ;;  %v2114_v16 = vpack.c.bf16 %v4053_v8, %v4053_v8  ;;  %1827 = vst.msk [vmem:[%s3551_s10 + $0x40] sm:$0xf] %vm1810_vm1, %v2104_v22  ;;  %1828 = vst.msk [vmem:[%s3551_s10 + $0x44] sm:$0xf] %vm1810_vm1, %v2105_v40  ;;  %v4055_v11 = vmax.f32 %v3345_v24, 0.0  ;;  %v4070_v40 = vld [vmem:[#allocation17_spill] sm:$0xff] }
 0x23b   : > { %v2115_v15 = vpack.c.bf16 %v4054_v42, %v4054_v42  ;;  %1829 = vst.msk [vmem:[%s3551_s10 + $0x48] sm:$0xf] %vm1810_vm1, %v2106_v37  ;;  %1830 = vst.msk [vmem:[%s3551_s10 + $0x4c] sm:$0xf] %vm1810_vm1, %v2107_v57  ;;  %v4056_v1 = vmax.f32 %v3349_v35, 0.0  ;;  %v4057_v19 = vmax.f32 %v3353_v39, 0.0 }
 0x23c   : > { %v2116_v56 = vpack.c.bf16 %v4055_v11, %v4055_v11  ;;  %v4058_v54 = vmax.f32 %v3357_v48, 0.0  ;;  %1831 = vst.msk [vmem:[%s3551_s10 + $0x50] sm:$0xf] %vm1810_vm1, %v2108_v58  ;;  %1832 = vst.msk [vmem:[%s3551_s10 + $0x54] sm:$0xf] %vm1810_vm1, %v2109_v12  ;;  %v4059_v24 = vmax.f32 %v3361_v55, 0.0 }
 0x23d   : > { %v2117_v63 = vpack.c.bf16 %v4056_v1, %v4056_v1  ;;  %v2118_v43 = vpack.c.bf16 %v4057_v19, %v4057_v19  ;;  %1833 = vst.msk [vmem:[%s3551_s10 + $0x58] sm:$0xf] %vm1810_vm1, %v2110_v38  ;;  %1834 = vst.msk [vmem:[%s3551_s10 + $0x5c] sm:$0xf] %vm1810_vm1, %v2111_v0  ;;  %v4060_v39 = vmax.f32 %v3365_v46, 0.0  ;;  %v4061_v47 = vmax.f32 %v3369_v45, 0.0 }
 0x23e   : > { %v2119_v29 = vpack.c.bf16 %v4058_v54, %v4058_v54  ;;  %v2120_v35 = vpack.c.bf16 %v4059_v24, %v4059_v24  ;;  %v4062_v31 = vmax.f32 %v3373_v3, 0.0  ;;  %1835 = vst.msk [vmem:[%s3551_s10 + $0x60] sm:$0xf] %vm1810_vm1, %v2112_v36  ;;  %1836 = vst.msk [vmem:[%s3551_s10 + $0x64] sm:$0xf] %vm1810_vm1, %v2113_v9  ;;  %v4063_v55 = vmax.f32 %v3377_v26, 0.0 }
 0x23f   : > { %v2121_v48 = vpack.c.bf16 %v4060_v39, %v4060_v39  ;;  %v2122_v25 = vpack.c.bf16 %v4061_v47, %v4061_v47  ;;  %1837 = vst.msk [vmem:[%s3551_s10 + $0x68] sm:$0xf] %vm1810_vm1, %v2114_v16  ;;  %1838 = vst.msk [vmem:[%s3551_s10 + $0x6c] sm:$0xf] %vm1810_vm1, %v2115_v15  ;;  %v4064_v45 = vmax.f32 %v3381_v32, 0.0  ;;  %v4065_v2 = vmax.f32 %v3385_v62, 0.0 }
 0x240   : > { %v2123_v44 = vpack.c.bf16 %v4062_v31, %v4062_v31  ;;  %v2124_v46 = vpack.c.bf16 %v4063_v55, %v4063_v55  ;;  %v4067_v22 = vmax.f32 %v4066_v17, 0.0  ;;  %1839 = vst.msk [vmem:[%s3551_s10 + $0x70] sm:$0xf] %vm1810_vm1, %v2116_v56  ;;  %1840 = vst.msk [vmem:[%s3551_s10 + $0x74] sm:$0xf] %vm1810_vm1, %v2117_v63  ;;  %v4068_v26 = vld [vmem:[#allocation15_spill] sm:$0xff] }
 0x241   : > { %v2125_v3 = vpack.c.bf16 %v4064_v45, %v4064_v45  ;;  %v2126_v18 = vpack.c.bf16 %v4065_v2, %v4065_v2  ;;  %1841 = vst.msk [vmem:[%s3551_s10 + $0x78] sm:$0xf] %vm1810_vm1, %v2118_v43  ;;  %1842 = vst.msk [vmem:[%s3551_s10 + $0x7c] sm:$0xf] %vm1810_vm1, %v2119_v29  ;;  %v4069_v32 = vmax.f32 %v4068_v26, 0.0  ;;  %v4071_v28 = vmax.f32 %v4070_v40, 0.0 }
 0x242   : > { %v2127_v33 = vpack.c.bf16 %v4067_v22, %v4067_v22  ;;  %v4073_v57 = vmax.f32 %v4072_v20, 0.0  ;;  %v4074_v58 = vld [vmem:[#allocation21_spill] sm:$0xff]  ;;  %1843 = vst.msk [vmem:[%s3551_s10 + $0x80] sm:$0xf] %vm1810_vm1, %v2120_v35  ;;  %1844 = vst.msk [vmem:[%s3551_s10 + $0x84] sm:$0xf] %vm1810_vm1, %v2121_v48 }
 0x243   : > { %v2128_v62 = vpack.c.bf16 %v4069_v32, %v4069_v32  ;;  %v2129_v37 = vpack.c.bf16 %v4071_v28, %v4071_v28  ;;  %v4075_v5 = vmax.f32 %v4074_v58, 0.0  ;;  %1845 = vst.msk [vmem:[%s3551_s10 + $0x88] sm:$0xf] %vm1810_vm1, %v2122_v25  ;;  %1846 = vst.msk [vmem:[%s3551_s10 + $0x8c] sm:$0xf] %vm1810_vm1, %v2123_v44  ;;  %v4076_v30 = vmax.f32 %v3409_v34, 0.0 }
 0x244   : > { %v2130_v51 = vpack.c.bf16 %v4073_v57, %v4073_v57  ;;  %v4077_v7 = vmax.f32 %v3413_v41, 0.0  ;;  %v4078_v27 = vmax.f32 %v3417_v52, 0.0  ;;  %v4079_v49 = vld [vmem:[#allocation23_spill] sm:$0xff]  ;;  %1847 = vst.msk [vmem:[%s3551_s10 + $0x90] sm:$0xf] %vm1810_vm1, %v2124_v46  ;;  %v4081_v34 = vld [vmem:[#allocation14_spill] sm:$0xff] }
 0x245   : > { %v2131_v12 = vpack.c.bf16 %v4075_v5, %v4075_v5  ;;  %v2132_v38 = vpack.c.bf16 %v4076_v30, %v4076_v30  ;;  %v4080_v9 = vmax.f32 %v4079_v49, 0.0  ;;  %1848 = vst.msk [vmem:[%s3551_s10 + $0x94] sm:$0xf] %vm1810_vm1, %v2125_v3  ;;  %1849 = vst.msk [vmem:[%s3551_s10 + $0x98] sm:$0xf] %vm1810_vm1, %v2126_v18  ;;  %v4082_v41 = vmax.f32 %v4081_v34, 0.0 }
 0x246   : > { %v2133_v0 = vpack.c.bf16 %v4077_v7, %v4077_v7  ;;  %v2134_v36 = vpack.c.bf16 %v4078_v27, %v4078_v27  ;;  %1850 = vst.msk [vmem:[%s3551_s10 + $0x9c] sm:$0xf] %vm1810_vm1, %v2127_v33  ;;  %v4083_v16 = vmax.f32 %v4017_v53, 0.0  ;;  %v4084_v15 = vmax.f32 %v4018_v61, 0.0  ;;  %1851 = vst.msk [vmem:[%s3551_s10 + $0xa0] sm:$0xf] %vm1810_vm1, %v2128_v62 }
 0x247   : > { %v2135_v8 = vpack.c.bf16 %v4080_v9, %v4080_v9  ;;  %v2136_v52 = vpack.c.bf16 %v4082_v41, %v4082_v41  ;;  %v4085_v56 = vmax.f32 %v4019_v14, 0.0  ;;  %1852 = vst.msk [vmem:[%s3551_s10 + $0xa4] sm:$0xf] %vm1810_vm1, %v2129_v37  ;;  %1853 = vst.msk [vmem:[%s3551_s10 + $0xa8] sm:$0xf] %vm1810_vm1, %v2130_v51  ;;  %v4086_v53 = vmax.f32 %v4020_v6, 0.0 }
 0x248   : > { %v2137_v42 = vpack.c.bf16 %v4083_v16, %v4083_v16  ;;  %v2138_v11 = vpack.c.bf16 %v4084_v15, %v4084_v15  ;;  %1854 = vst.msk [vmem:[%s3551_s10 + $0xac] sm:$0xf] %vm1810_vm1, %v2131_v12  ;;  %v4087_v14 = vmax.f32 %v4021_v13, 0.0  ;;  %v4088_v19 = vmax.f32 %v3449_v10, 0.0  ;;  %1855 = vst.msk [vmem:[%s3551_s10 + $0xb0] sm:$0xf] %vm1810_vm1, %v2132_v38 }
 0x249   : > { %v2139_v1 = vpack.c.bf16 %v4085_v56, %v4085_v56  ;;  %v2140_v61 = vpack.c.bf16 %v4086_v53, %v4086_v53  ;;  %v4089_v54 = vmax.f32 %v3453_v21, 0.0  ;;  %1856 = vst.msk [vmem:[%s3551_s10 + $0xb4] sm:$0xf] %vm1810_vm1, %v2133_v0  ;;  %1857 = vst.msk [vmem:[%s3551_s10 + $0xb8] sm:$0xf] %vm1810_vm1, %v2134_v36  ;;  %v4090_v6 = vmax.f32 %v3457_v4, 0.0 }
 0x24a   : > { %v2141_v63 = vpack.c.bf16 %v4087_v14, %v4087_v14  ;;  %v2142_v43 = vpack.c.bf16 %v4088_v19, %v4088_v19  ;;  %1858 = vst.msk [vmem:[%s3551_s10 + $0xbc] sm:$0xf] %vm1810_vm1, %v2135_v8  ;;  %v4091_v21 = vmax.f32 %v3461_v60, 0.0  ;;  %v4092_v24 = vmax.f32 %v4022_v59, 0.0  ;;  %v4093_v39 = vld [vmem:[#allocation2_spill] sm:$0xff]  ;;  %v4095_v59 = vld [vmem:[#allocation3_spill] sm:$0xff] }
 0x24b   : > { %v2143_v29 = vpack.c.bf16 %v4089_v54, %v4089_v54  ;;  %v2144_v10 = vpack.c.bf16 %v4090_v6, %v4090_v6  ;;  %v4094_v48 = vmax.f32 %v4093_v39, 0.0  ;;  %1859 = vst.msk [vmem:[%s3551_s10 + $0xc0] sm:$0xf] %vm1810_vm1, %v2136_v52  ;;  %1860 = vst.msk [vmem:[%s3551_s10 + $0xc4] sm:$0xf] %vm1810_vm1, %v2137_v42  ;;  %v4096_v4 = vmax.f32 %v4095_v59, 0.0 }
 0x24c   : > { %v2145_v13 = vpack.c.bf16 %v4091_v21, %v4091_v21  ;;  %v2146_v35 = vpack.c.bf16 %v4092_v24, %v4092_v24  ;;  %1861 = vst.msk [vmem:[%s3551_s10 + $0xc8] sm:$0xf] %vm1810_vm1, %v2138_v11  ;;  %1862 = vst.msk [vmem:[%s3551_s10 + $0xcc] sm:$0xf] %vm1810_vm1, %v2139_v1  ;;  %v4097_v25 = vmax.f32 %v4025_v23, 0.0  ;;  %v4098_v44 = vld [vmem:[#allocation5_spill] sm:$0xff] }
 0x24d   : > { %v2147_v47 = vpack.c.bf16 %v4094_v48, %v4094_v48  ;;  %v2148_v60 = vpack.c.bf16 %v4096_v4, %v4096_v4  ;;  %v4099_v55 = vmax.f32 %v4098_v44, 0.0  ;;  %v4100_v45 = vmax.f32 %v3485_v50, 0.0  ;;  %1863 = vst.msk [vmem:[%s3551_s10 + $0xd0] sm:$0xf] %vm1810_vm1, %v2140_v61  ;;  %1864 = vst.msk [vmem:[%s3551_s10 + $0xd4] sm:$0xf] %vm1810_vm1, %v2141_v63 }
 0x24e   : > { %v2149_v31 = vpack.c.bf16 %v4097_v25, %v4097_v25  ;;  %1865 = vst.msk [vmem:[%s3551_s10 + $0xd8] sm:$0xf] %vm1810_vm1, %v2142_v43  ;;  %1866 = vst.msk [vmem:[%s3551_s10 + $0xdc] sm:$0xf] %vm1810_vm1, %v2143_v29 }
 0x24f   : > { %v2150_v46 = vpack.c.bf16 %v4099_v55, %v4099_v55  ;;  %v2151_v3 = vpack.c.bf16 %v4100_v45, %v4100_v45  ;;  %1867 = vst.msk [vmem:[%s3551_s10 + $0xe0] sm:$0xf] %vm1810_vm1, %v2144_v10  ;;  %1868 = vst.msk [vmem:[%s3551_s10 + $0xe4] sm:$0xf] %vm1810_vm1, %v2145_v13 }
 0x250   : > { %1869 = vst.msk [vmem:[%s3551_s10 + $0xe8] sm:$0xf] %vm1810_vm1, %v2146_v35  ;;  %1870 = vst.msk [vmem:[%s3551_s10 + $0xec] sm:$0xf] %vm1810_vm1, %v2147_v47 }
 0x251   : > { %1871 = vst.msk [vmem:[%s3551_s10 + $0xf0] sm:$0xf] %vm1810_vm1, %v2148_v60  ;;  %1872 = vst.msk [vmem:[%s3551_s10 + $0xf4] sm:$0xf] %vm1810_vm1, %v2149_v31 }
 0x252   : > { %1873 = vst.msk [vmem:[%s3551_s10 + $0xf8] sm:$0xf] %vm1810_vm1, %v2150_v46  ;;  %1874 = vst.msk [vmem:[%s3551_s10 + $0xfc] sm:$0xf] %vm1810_vm1, %v2151_v3 }
 0x253 PF: > { %s14_s15 = sadd.s32 1, %s2313_s15  }
 0x254   : > { %p11_p4 = scmp.ge.s32.totalorder %s14_s15, 4  }
 0x256   :  { %13 = sbr.rel (!%p11_p4) target bundleno = 1 (0x1), region = 66 }

// kernel: forward.14
= control target key start
LH: loop header
LB: loop body
LE: loop exit
PB: predicated region body
PF: predicated region fallthrough
CT: control target
= control target key end

     0   :  { %s1355_s15 = smov 0   ;;  %s1642_s0 = inlined_call_operand.vmem [shape: bf16[256,384], index: 0, kind: input, shape index: {}]   ;;  %s1643_s1 = inlined_call_operand.vmem [shape: bf16[384,32], index: 1, kind: input, shape index: {}]   ;;  %s1644_s2 = inlined_call_operand.vmem [shape: f32[1,32], index: 2, kind: input, shape index: {}]   ;;  %s1645_s3 = inlined_call_operand.vmem [shape: f32[1,32], index: 3, kind: input, shape index: {}]   ;;  %s1646_s4 = inlined_call_operand.vmem [shape: bf16[256,32], index: 4, kind: output, shape index: {}]  }
   0x1 LB: > { %s1052_s16 = sadd.s32 4294967295, %s1328_s15   ;;  %p1056_p0 = scmp.ge.s32.totalorder %s1328_s15, 1  ;;  %s1328_s15 = sphi %s1355_s15, %s14_s15  }
   0x2   : > { %p164_p1 = scmp.lt.s32.totalorder %s1328_s15, 3 }
   0x4   : > { %p165_p2 = pnand %p1056_p0, %p164_p1 }
   0x5   : > { %v1264_v0 = vld [vmem:[%s1643_s1 + $0x40] sm:$0xff] (!%p165_p2)   ;;  %v1267_v3 = vld [vmem:[%s1643_s1 + $0x48] sm:$0xff] (!%p165_p2)   ;;  %v1270_v6 = vld [vmem:[%s1643_s1 + $0x50] sm:$0xff] (!%p165_p2)   ;;  %s1057_s7 = sshll.u32 (!%p165_p2), %s1052_s16, 4  ;;  %vm753_vm0 = vcmask (!%p165_p2), 261120   ;;  %vm979_vm1 = vcmask (!%p165_p2), 257024  }
   0x6   : > { %168 = sbr.rel (%p165_p2) target bundleno = 378 (0x17a), region = 36  ;;  %v1265_v1 = vld [vmem:[%s1643_s1] sm:$0xff] (!%p165_p2)   ;;  %1143 = vmatprep.subr.bf16.mxu0 (!%p165_p2), %v1264_v0  ;;  %v1268_v4 = vld [vmem:[%s1643_s1 + $0x8] sm:$0xff] (!%p165_p2)   ;;  %v1271_v7 = vld [vmem:[%s1643_s1 + $0x10] sm:$0xff] (!%p165_p2)   ;;  %p192_p3 = scmp.lt.s32.totalorder (!%p165_p2), %s1057_s7, 31 }
   0x7   : > { %v1266_v2 = vld [vmem:[%s1643_s1 + $0x80] sm:$0xff] (!%p165_p2)   ;;  %1144 = vmatpush3.bf16.msra.mxu0 (!%p165_p2), %v1265_v1  ;;  %v1269_v5 = vld [vmem:[%s1643_s1 + $0x88] sm:$0xff] (!%p165_p2)   ;;  %v1272_v8 = vld [vmem:[%s1643_s1 + $0x90] sm:$0xff] (!%p165_p2)  }
   0x8   : > { %1223 = vmatprep.subr.bf16.mxu1 (!%p165_p2), %v1266_v2  ;;  %1145 = vmatprep.subr.bf16.mxu0 (!%p165_p2), %v1267_v3  ;;  %v1273_v9 = vld [vmem:[%s1643_s1 + $0x58] sm:$0xff] (!%p165_p2)   ;;  %v1276_v12 = vld [vmem:[%s1643_s1 + $0x60] sm:$0xff] (!%p165_p2)   ;;  %v1279_v15 = vld [vmem:[%s1643_s1 + $0x68] sm:$0xff] (!%p165_p2)  }
   0x9   : > { %1224 = vmatpush3.bf16.msra.mxu1 (!%p165_p2), %v1266_v2  ;;  %v1274_v10 = vld [vmem:[%s1643_s1 + $0x18] sm:$0xff] (!%p165_p2)   ;;  %v1278_v13 = vld [vmem:[%s1643_s1 + $0xa0] sm:$0xff] (!%p165_p2)   ;;  %v1281_v16 = vld [vmem:[%s1643_s1 + $0xa8] sm:$0xff] (!%p165_p2)  }
   0xa   : > { %1225 = vmatprep.subr.bf16.mxu1 (!%p165_p2), %v1269_v5  ;;  %v1275_v11 = vld [vmem:[%s1643_s1 + $0x98] sm:$0xff] (!%p165_p2)   ;;  %v1277_v14 = vld [vmem:[%s1643_s1 + $0x20] sm:$0xff] (!%p165_p2)   ;;  %v1280_v17 = vld [vmem:[%s1643_s1 + $0x28] sm:$0xff] (!%p165_p2)  }
   0xb   : > { %1146 = vmatpush3.bf16.msra.mxu0 (!%p165_p2), %v1268_v4  ;;  %v1282_v18 = vld [vmem:[%s1643_s1 + $0x70] sm:$0xff] (!%p165_p2)   ;;  %v1285_v21 = vld [vmem:[%s1643_s1 + $0x78] sm:$0xff] (!%p165_p2)  }
   0xc   : > { %1147 = vmatprep.subr.bf16.mxu0 (!%p165_p2), %v1270_v6  ;;  %v1283_v19 = vld [vmem:[%s1643_s1 + $0x30] sm:$0xff] (!%p165_p2)   ;;  %v1287_v22 = vld [vmem:[%s1643_s1 + $0xb8] sm:$0xff] (!%p165_p2)  }
   0xd   : > { %1226 = vmatpush3.bf16.msra.mxu1 %v1269_v5  ;;  %s1648_s7 = smov (!%p192_p3, %s1057_s7), 31  ;;  %v1284_v20 = vld [vmem:[%s1643_s1 + $0xb0] sm:$0xff]   ;;  %v1286_v25 = vld [vmem:[%s1643_s1 + $0x38] sm:$0xff]  }
   0xe   : > { %1227 = vmatprep.subr.bf16.mxu1 %v1272_v8  ;;  %s1255_s27 = smul.u32 12, %s1648_s7  ;;  %s1060_s25 = sshll.u32 %s1648_s7, 2 }
   0xf   : > { %1148 = vmatpush3.bf16.msra.mxu0 %v1271_v7  ;;  %s1605_s28 = scalar_lea.vmem %s1646_s4, %s1060_s25 }
  0x10   : > { %1149 = vmatprep.subr.bf16.mxu0 %v1273_v9  ;;  %s1432_s13 = scalar_lea.vmem %s1642_s0, %s1255_s27 }
  0x11   : > { %1228 = vmatpush3.bf16.msra.mxu1 %v1272_v8  ;;  %v1290_v23 = vld [vmem:[%s1432_s13 + $0x4] ss:$12 sps:$4 sm:$0xff]   ;;  %v1291_v24 = vld [vmem:[%s1432_s13 + $0x8] ss:$12 sps:$4 sm:$0xff]   ;;  %v1288_v26 = vld [vmem:[%s1432_s13] ss:$12 sps:$4 sm:$0xff]  }
  0x12   : > { %1229 = vmatprep.subr.bf16.mxu1 %v1275_v11  ;;  %591 = vmatprep.mubr.bf16.mxu0 %v1290_v23  ;;  %v1293_v27 = vld [vmem:[%s1432_s13 + $0x1c] ss:$12 sps:$4 sm:$0xff]   ;;  %v1292_v28 = vld [vmem:[%s1432_s13 + $0x20] ss:$12 sps:$4 sm:$0xff]   ;;  %v1299_v29 = vld [vmem:[%s1432_s13 + $0x38] ss:$12 sps:$4 sm:$0xff]  }
  0x13   : > { %1150 = vmatpush3.bf16.msra.mxu0 %v1274_v10  ;;  %1239 = vmatprep.mubr.bf16.mxu1 %v1291_v24  ;;  %v1295_v30 = vld [vmem:[%s1432_s13 + $0x18] ss:$12 sps:$4 sm:$0xff]   ;;  %v1296_v31 = vld [vmem:[%s1432_s13 + $0x34] ss:$12 sps:$4 sm:$0xff]   ;;  %v1300_v32 = vld [vmem:[%s1432_s13 + $0x50] ss:$12 sps:$4 sm:$0xff]  }
  0x14   : > { %1151 = vmatprep.subr.bf16.mxu0 %v1276_v12  ;;  %v1307_v33 = vld [vmem:[%s1432_s13 + $0x68] ss:$12 sps:$4 sm:$0xff]   ;;  %v1298_v34 = vld [vmem:[%s1432_s13 + $0x30] ss:$12 sps:$4 sm:$0xff]   ;;  %v1301_v35 = vld [vmem:[%s1432_s13 + $0x4c] ss:$12 sps:$4 sm:$0xff]  }
  0x15   : > { %1230 = vmatpush3.bf16.msra.mxu1 %v1275_v11  ;;  %v1308_v36 = vld [vmem:[%s1432_s13 + $0x80] ss:$12 sps:$4 sm:$0xff]   ;;  %v1315_v37 = vld [vmem:[%s1432_s13 + $0x98] ss:$12 sps:$4 sm:$0xff]   ;;  %v1303_v38 = vld [vmem:[%s1432_s13 + $0x48] ss:$12 sps:$4 sm:$0xff]  }
  0x16   : > { %1231 = vmatprep.subr.bf16.mxu1 %v1278_v13  ;;  %v1304_v39 = vld [vmem:[%s1432_s13 + $0x64] ss:$12 sps:$4 sm:$0xff]   ;;  %v1306_v41 = vld [vmem:[%s1432_s13 + $0x60] ss:$12 sps:$4 sm:$0xff]   ;;  %v1309_v42 = vld [vmem:[%s1432_s13 + $0x7c] ss:$12 sps:$4 sm:$0xff]  }
  0x17   : > { %1152 = vmatpush3.bf16.msra.mxu0 %v1277_v14  ;;  %v1316_v40 = vld [vmem:[%s1432_s13 + $0xb0] ss:$12 sps:$4 sm:$0xff]   ;;  %v1311_v43 = vld [vmem:[%s1432_s13 + $0x78] ss:$12 sps:$4 sm:$0xff]   ;;  %v1312_v44 = vld [vmem:[%s1432_s13 + $0x94] ss:$12 sps:$4 sm:$0xff]  }
  0x18   : > { %1153 = vmatprep.subr.bf16.mxu0 %v1279_v15  ;;  %v1314_v45 = vld [vmem:[%s1432_s13 + $0x90] ss:$12 sps:$4 sm:$0xff]   ;;  %v1317_v46 = vld [vmem:[%s1432_s13 + $0xac] ss:$12 sps:$4 sm:$0xff]   ;;  %v1319_v47 = vld [vmem:[%s1432_s13 + $0xa8] ss:$12 sps:$4 sm:$0xff]  }
  0x19   : > { %1232 = vmatpush3.bf16.msra.mxu1 %v1278_v13 }
  0x1a   : > { %1233 = vmatprep.subr.bf16.mxu1 %v1281_v16 }
  0x1b   : > { %1154 = vmatpush3.bf16.msra.mxu0 %v1280_v17 }
  0x1c   : > { %1155 = vmatprep.subr.bf16.mxu0 %v1282_v18 }
  0x1d   : > { %1234 = vmatpush3.bf16.msra.mxu1 %v1281_v16 }
  0x1e   : > { %1235 = vmatprep.subr.bf16.mxu1 %v1284_v20 }
  0x1f   : > { %1156 = vmatpush3.bf16.msra.mxu0 %v1283_v19 }
  0x20   : > { %1157 = vmatprep.subr.bf16.mxu0 %v1285_v21 }
  0x21   : > { %1236 = vmatpush3.bf16.msra.mxu1 %v1284_v20 }
  0x22   : > { %1237 = vmatprep.subr.bf16.mxu1 %v1287_v22 }
  0x23   : > { %1158 = vmatpush3.bf16.msra.mxu0 %v1286_v25 }
  0x25   : > { %1238 = vmatpush3.bf16.msra.mxu1 %v1287_v22 }
  0x26   : > { %592 = vmatmul.mubr.bf16.vlgmr.msra.gmra.mrb[0].mxu0 %v1288_v26 }
  0x27   : > { %599 = vmatprep.mubr.bf16.mxu0 %v1293_v27 }
  0x28   : > { %1240 = vmatmul.mubr.bf16.vlgmr.msra.gmra.mrb[0].mxu1 %v1292_v28 }
  0x29   : > { %1243 = vmatprep.mubr.bf16.mxu1 %v1299_v29 }
  0x2e   : > { %600 = vmatmul.mubr.bf16.gmra.mrb[4].mxu0 %v1295_v30 }
  0x2f   : > { %607 = vmatprep.mubr.bf16.mxu0 %v1296_v31 }
  0x30   : > { %1244 = vmatmul.mubr.bf16.gmra.mrb[4].mxu1 %v1300_v32 }
  0x31   : > { %1247 = vmatprep.mubr.bf16.mxu1 %v1307_v33 }
  0x36   : > { %608 = vmatmul.mubr.bf16.gmra.mrb[8].mxu0 %v1298_v34 }
  0x37   : > { %615 = vmatprep.mubr.bf16.mxu0 %v1301_v35 }
  0x38   : > { %1248 = vmatmul.mubr.bf16.gmra.mrb[8].mxu1 %v1308_v36 }
  0x39   : > { %1251 = vmatprep.mubr.bf16.mxu1 %v1315_v37 }
  0x3e   : > { %616 = vmatmul.mubr.bf16.gmra.mrb[12].mxu0 %v1303_v38 }
  0x3f   : > { %623 = vmatprep.mubr.bf16.mxu0 %v1304_v39 }
  0x40   : > { %1252 = vmatmul.mubr.bf16.gmra.mrb[12].mxu1 %v1316_v40 }
  0x46   : > { %624 = vmatmul.mubr.bf16.gmra.mrb[16].mxu0 %v1306_v41 }
  0x47   : > { %631 = vmatprep.mubr.bf16.mxu0 %v1309_v42 }
  0x4e   : > { %632 = vmatmul.mubr.bf16.gmra.mrb[20].mxu0 %v1311_v43 }
  0x4f   : > { %639 = vmatprep.mubr.bf16.mxu0 %v1312_v44 }
  0x56   : > { %640 = vmatmul.mubr.bf16.gmra.mrb[24].mxu0 %v1314_v45 }
  0x57   : > { %647 = vmatprep.mubr.bf16.mxu0 %v1317_v46 }
  0x5e   : > { %648 = vmatmul.mubr.bf16.gmra.mrb[28].mxu0 %v1319_v47 }
  0xf9   : > { %v1159_v48 = vpop.f32.mrb[0].mxu0 }
  0xfa   : > { %v1160_v49 = vpop.f32.mrb[1].mxu0 }
  0xfb   : > { %v1161_v50 = vadd.f32 %v1160_v49, %v1159_v48  ;;  %v1162_v51 = vpop.f32.mrb[2].mxu0  ;;  %v1241_v52 = vpop.f32.mrb[0].mxu1 }
  0xfc   : > { %v1163_v53 = vpop.f32.mrb[3].mxu0  ;;  %v690_v54 = vpop.f32.mrb[1].mxu1 }
  0xfd   : > { %v1164_v55 = vadd.f32 %v1163_v53, %v1162_v51  ;;  %v1467_v56 = vadd.f32 %v1161_v50, %v690_v54  ;;  %v1242_v57 = vpop.f32.mrb[2].mxu1 }
  0xfe   : > { %v693_v58 = vpop.f32.mrb[3].mxu1 }
  0xff   : > { %v1469_v59 = vadd.f32 %v1164_v55, %v693_v58  ;;  %v793_v8 = vmul.f32 %v1467_v56, %v1467_v56  ;;  %v754_v12 = vsel %vm753_vm0, %v1467_v56, 0.0 }
 0x101   : > { %v1165_v60 = vpop.f32.mrb[4].mxu0  ;;  %v794_v3 = vmul.f32 %v1469_v59, %v1469_v59  ;;  %v755_v9 = vsel %vm753_vm0, %v1469_v59, 0.0  ;;  %v809_v18 = vsel %vm753_vm0, %v793_v8, 0.0 }
 0x102   : > { %v1166_v61 = vpop.f32.mrb[5].mxu0  ;;  %v756_v16 = vadd.f32 %v755_v9, %v754_v12 }
 0x103   : > { %v1167_v62 = vadd.f32 %v1166_v61, %v1165_v60  ;;  %v1168_v63 = vpop.f32.mrb[6].mxu0  ;;  %v1245_v0 = vpop.f32.mrb[4].mxu1  ;;  %v810_v13 = vsel %vm753_vm0, %v794_v3, 0.0 }
 0x104   : > { %v1169_v1 = vpop.f32.mrb[7].mxu0  ;;  %v706_v2 = vpop.f32.mrb[5].mxu1  ;;  %v811_v24 = vadd.f32 %v810_v13, %v809_v18 }
 0x105   : > { %v1473_v4 = vadd.f32 %v1241_v52, %v1167_v62  ;;  %v1170_v5 = vadd.f32 %v1169_v1, %v1168_v63  ;;  %v1246_v6 = vpop.f32.mrb[6].mxu1 }
 0x106   : > { %v709_v7 = vpop.f32.mrb[7].mxu1 }
 0x107   : > { %v795_v10 = vmul.f32 %v1473_v4, %v1473_v4  ;;  %v1481_v11 = vadd.f32 %v1242_v57, %v1170_v5  ;;  %v757_v14 = vsel %vm753_vm0, %v1473_v4, 0.0 }
 0x108   : > { %v758_v25 = vadd.f32 %v757_v14, %v756_v16 }
 0x109   : > { %v1171_v15 = vpop.f32.mrb[8].mxu0  ;;  %v812_v19 = vsel %vm753_vm0, %v795_v10, 0.0  ;;  %v796_v20 = vmul.f32 %v1481_v11, %v1481_v11  ;;  %v759_v28 = vsel %vm753_vm0, %v1481_v11, 0.0 }
 0x10a   : > { %v1172_v17 = vpop.f32.mrb[9].mxu0  ;;  %v813_v32 = vadd.f32 %v812_v19, %v811_v24  ;;  %v760_v38 = vadd.f32 %v759_v28, %v758_v25 }
 0x10b   : > { %v1173_v21 = vadd.f32 %v1172_v17, %v1171_v15  ;;  %v1174_v22 = vpop.f32.mrb[10].mxu0  ;;  %v1492_v23 = vpop.f32.mrb[8].mxu1  ;;  %v814_v34 = vsel %vm753_vm0, %v796_v20, 0.0 }
 0x10c   : > { %v1175_v26 = vpop.f32.mrb[11].mxu0  ;;  %v722_v27 = vpop.f32.mrb[9].mxu1  ;;  %v815_v43 = vadd.f32 %v814_v34, %v813_v32 }
 0x10d   : > { %v1176_v29 = vadd.f32 %v1175_v26, %v1174_v22  ;;  %v1496_v30 = vadd.f32 %v1173_v21, %v706_v2  ;;  %v1498_v31 = vpop.f32.mrb[10].mxu1 }
 0x10e   : > { %v725_v33 = vpop.f32.mrb[11].mxu1 }
 0x10f   : > { %v761_v35 = vsel %vm753_vm0, %v1496_v30, 0.0  ;;  %v797_v36 = vmul.f32 %v1496_v30, %v1496_v30  ;;  %v1505_v37 = vadd.f32 %v1176_v29, %v709_v7 }
 0x110   : > { %v762_v42 = vadd.f32 %v761_v35, %v760_v38 }
 0x111   : > { %v816_v39 = vsel %vm753_vm0, %v797_v36, 0.0  ;;  %v798_v40 = vmul.f32 %v1505_v37, %v1505_v37  ;;  %v1177_v41 = vpop.f32.mrb[12].mxu0  ;;  %v763_v45 = vsel %vm753_vm0, %v1505_v37, 0.0 }
 0x112   : > { %v1178_v44 = vpop.f32.mrb[13].mxu0  ;;  %v817_v49 = vadd.f32 %v816_v39, %v815_v43  ;;  %v764_v57 = vadd.f32 %v763_v45, %v762_v42 }
 0x113   : > { %v1179_v46 = vadd.f32 %v1178_v44, %v1177_v41  ;;  %v1180_v47 = vpop.f32.mrb[14].mxu0  ;;  %v1512_v48 = vpop.f32.mrb[12].mxu1  ;;  %v818_v52 = vsel %vm753_vm0, %v798_v40, 0.0 }
 0x114   : > { %v1181_v50 = vpop.f32.mrb[15].mxu0  ;;  %v738_v51 = vpop.f32.mrb[13].mxu1  ;;  %v819_v63 = vadd.f32 %v818_v52, %v817_v49 }
 0x115   : > { %v1515_v53 = vadd.f32 %v1245_v0, %v1179_v46  ;;  %v1182_v54 = vadd.f32 %v1181_v50, %v1180_v47  ;;  %v1517_v55 = vpop.f32.mrb[14].mxu1 }
 0x116   : > { %v741_v58 = vpop.f32.mrb[15].mxu1 }
 0x117   : > { %v765_v60 = vsel %vm753_vm0, %v1515_v53, 0.0  ;;  %v799_v61 = vmul.f32 %v1515_v53, %v1515_v53  ;;  %v1523_v62 = vadd.f32 %v1246_v6, %v1182_v54 }
 0x118   : > { %v766_v1 = vadd.f32 %v765_v60, %v764_v57 }
 0x119   : > { %v820_v2 = vsel %vm753_vm0, %v799_v61, 0.0  ;;  %v767_v0 = vsel %vm753_vm0, %v1523_v62, 0.0  ;;  %v800_v3 = vmul.f32 %v1523_v62, %v1523_v62  ;;  %v1183_v5 = vpop.f32.mrb[16].mxu0 }
 0x11a   : > { %v821_v7 = vadd.f32 %v820_v2, %v819_v63  ;;  %v1184_v8 = vpop.f32.mrb[17].mxu0  ;;  %v768_v9 = vadd.f32 %v767_v0, %v766_v1 }
 0x11b   : > { %v822_v10 = vsel %vm753_vm0, %v800_v3, 0.0  ;;  %v1185_v12 = vadd.f32 %v1184_v8, %v1183_v5  ;;  %v1186_v13 = vpop.f32.mrb[18].mxu0 }
 0x11c   : > { %v1187_v6 = vpop.f32.mrb[19].mxu0  ;;  %v823_v14 = vadd.f32 %v822_v10, %v821_v7 }
 0x11d   : > { %v1188_v15 = vadd.f32 %v1187_v6, %v1186_v13  ;;  %v1531_v16 = vadd.f32 %v1185_v12, %v722_v27 }
 0x11f   : > { %v769_v17 = vsel %vm753_vm0, %v1531_v16, 0.0  ;;  %v801_v18 = vmul.f32 %v1531_v16, %v1531_v16  ;;  %v1537_v19 = vadd.f32 %v1188_v15, %v725_v33 }
 0x120   : > { %v770_v20 = vadd.f32 %v769_v17, %v768_v9 }
 0x121   : > { %v824_v21 = vsel %vm753_vm0, %v801_v18, 0.0  ;;  %v771_v22 = vsel %vm753_vm0, %v1537_v19, 0.0  ;;  %v802_v24 = vmul.f32 %v1537_v19, %v1537_v19  ;;  %v1189_v25 = vpop.f32.mrb[20].mxu0 }
 0x122   : > { %v825_v26 = vadd.f32 %v824_v21, %v823_v14  ;;  %v772_v27 = vadd.f32 %v771_v22, %v770_v20  ;;  %v1190_v28 = vpop.f32.mrb[21].mxu0 }
 0x123   : > { %v826_v29 = vsel %vm753_vm0, %v802_v24, 0.0  ;;  %v1191_v32 = vadd.f32 %v1190_v28, %v1189_v25  ;;  %v1192_v34 = vpop.f32.mrb[22].mxu0 }
 0x124   : > { %v827_v35 = vadd.f32 %v826_v29, %v825_v26  ;;  %v1193_v33 = vpop.f32.mrb[23].mxu0 }
 0x125   : > { %v1546_v36 = vadd.f32 %v1492_v23, %v1191_v32  ;;  %v1194_v38 = vadd.f32 %v1193_v33, %v1192_v34 }
 0x127   : > { %v773_v39 = vsel %vm753_vm0, %v1546_v36, 0.0  ;;  %v803_v40 = vmul.f32 %v1546_v36, %v1546_v36  ;;  %v1553_v41 = vadd.f32 %v1498_v31, %v1194_v38 }
 0x128   : > { %v774_v42 = vadd.f32 %v773_v39, %v772_v27 }
 0x129   : > { %v828_v43 = vsel %vm753_vm0, %v803_v40, 0.0  ;;  %v775_v44 = vsel %vm753_vm0, %v1553_v41, 0.0  ;;  %v804_v23 = vmul.f32 %v1553_v41, %v1553_v41  ;;  %v1195_v45 = vpop.f32.mrb[24].mxu0 }
 0x12a   : > { %v829_v46 = vadd.f32 %v828_v43, %v827_v35  ;;  %v1196_v47 = vpop.f32.mrb[25].mxu0  ;;  %v776_v49 = vadd.f32 %v775_v44, %v774_v42 }
 0x12b   : > { %v830_v50 = vsel %vm753_vm0, %v804_v23, 0.0  ;;  %v1197_v52 = vadd.f32 %v1196_v47, %v1195_v45  ;;  %v1198_v54 = vpop.f32.mrb[26].mxu0 }
 0x12c   : > { %v1199_v57 = vpop.f32.mrb[27].mxu0  ;;  %v831_v31 = vadd.f32 %v830_v50, %v829_v46 }
 0x12d   : > { %v1200_v60 = vadd.f32 %v1199_v57, %v1198_v54  ;;  %v1561_v61 = vadd.f32 %v1197_v52, %v738_v51  ;;  %v856_v54 = vlaneseq }
 0x12f   : > { %v777_v63 = vsel %vm753_vm0, %v1561_v61, 0.0  ;;  %v805_v1 = vmul.f32 %v1561_v61, %v1561_v61  ;;  %v1567_v2 = vadd.f32 %v1200_v60, %v741_v58  ;;  %v857_v57 = vshrl.u32 %v856_v54, 7 }
 0x130   : > { %v778_v0 = vadd.f32 %v777_v63, %v776_v49 }
 0x131   : > { %v832_v3 = vsel %vm753_vm0, %v805_v1, 0.0  ;;  %v779_v5 = vsel %vm753_vm0, %v1567_v2, 0.0  ;;  %v806_v7 = vmul.f32 %v1567_v2, %v1567_v2  ;;  %v1201_v8 = vpop.f32.mrb[28].mxu0  ;;  %v858_v60 = vsub.s32 0, %v857_v57 }
 0x132   : > { %v833_v51 = vadd.f32 %v832_v3, %v831_v31  ;;  %v780_v9 = vadd.f32 %v779_v5, %v778_v0  ;;  %v1202_v10 = vpop.f32.mrb[29].mxu0  ;;  %v253_v31 = vld [vmem:[%s1644_s2] sm:$0x1] }
 0x133   : > { %v834_v12 = vsel %vm753_vm0, %v806_v7, 0.0  ;;  %v1203_v13 = vadd.f32 %v1202_v10, %v1201_v8  ;;  %v1204_v6 = vpop.f32.mrb[30].mxu0  ;;  %v254_v0 = vld [vmem:[%s1645_s3] sm:$0x1] }
 0x134   : > { %v835_v14 = vadd.f32 %v834_v12, %v833_v51  ;;  %v1205_v58 = vpop.f32.mrb[31].mxu0 }
 0x135   : > { %v747_v15 = vadd.f32 %v1512_v48, %v1203_v13  ;;  %v1206_v17 = vadd.f32 %v1205_v58, %v1204_v6 }
 0x137   : > { %v781_v18 = vsel %vm753_vm0, %v747_v15, 0.0  ;;  %v807_v20 = vmul.f32 %v747_v15, %v747_v15  ;;  %v750_v21 = vadd.f32 %v1517_v55, %v1206_v17 }
 0x138   : > { %v782_v22 = vadd.f32 %v781_v18, %v780_v9 }
 0x139   : > { %v836_v24 = vsel %vm753_vm0, %v807_v20, 0.0  ;;  %v783_v25 = vsel %vm753_vm0, %v750_v21, 0.0  ;;  %v808_v26 = vmul.f32 %v750_v21, %v750_v21 }
 0x13a   : > { %v837_v27 = vadd.f32 %v836_v24, %v835_v14  ;;  %v784_v28 = vadd.f32 %v783_v25, %v782_v22 }
 0x13b   : > { %v838_v29 = vsel %vm753_vm0, %v808_v26, 0.0 }
 0x13c   : > { %v785_v32 = vrot.slane %v784_v28, 4  ;;  %v839_v34 = vadd.f32 %v838_v29, %v837_v27 }
 0x13e   : > { %v786_v35 = vadd.f32 %v785_v32, %v784_v28  ;;  %v840_v48 = vrot.slane %v839_v34, 4 }
 0x140   : > { %v787_v33 = vrot.slane %v786_v35, 2  ;;  %v841_v38 = vadd.f32 %v840_v48, %v839_v34 }
 0x142   : > { %v788_v39 = vadd.f32 %v787_v33, %v786_v35  ;;  %v842_v40 = vrot.slane %v841_v38, 2 }
 0x144   : > { %v789_v42 = vrot.slane %v788_v39, 1  ;;  %v843_v55 = vadd.f32 %v842_v40, %v841_v38 }
 0x146   : > { %v790_v43 = vadd.f32 %v789_v42, %v788_v39  ;;  %v844_v44 = vrot.slane %v843_v55, 1 }
 0x148   : > { %v792_v23 = vmul.f32 0.0078125, %v790_v43  ;;  %v845_v45 = vadd.f32 %v844_v44, %v843_v55 }
 0x14a   : > { %v846_v46 = vmul.f32 0.0078125, %v845_v45  ;;  %v847_v47 = vmul.f32 %v792_v23, %v792_v23 }
 0x14c   : > { %v848_v49 = vsub.f32 %v846_v46, %v847_v47 }
 0x14e   : > { %v849_v50 = vmax.f32 %v848_v49, 0.0 }
 0x150   : > { %v850_v52 = vadd.f32 1e-05, %v849_v50 }
 0x152   : > { %1320 = vrsqrt.f32 %v850_v52 }
 0x15c   : > { %v1321_v63 = vpop.eup %1320 }
 0x15d   : > { %v852_v1 = vmul.f32 %v1321_v63, %v253_v31 }
 0x15f   : > { %v853_v3 = vmul.f32 %v852_v1, %v792_v23  ;;  %v859_v5 = vrot.slane %v852_v1, %v858_v60 }
 0x161   : > { %v854_v7 = vsub.f32 %v254_v0, %v853_v3  ;;  %v861_v8 = vmul.f32 %v859_v5, %v1467_v56  ;;  %v862_v51 = vmul.f32 %v859_v5, %v1469_v59  ;;  %v866_v9 = vmul.f32 %v859_v5, %v1505_v37 }
 0x162   : > { %v867_v10 = vmul.f32 %v859_v5, %v1515_v53  ;;  %v868_v12 = vmul.f32 %v859_v5, %v1523_v62  ;;  %v869_v13 = vmul.f32 %v859_v5, %v1531_v16  ;;  %v870_v6 = vmul.f32 %v859_v5, %v1537_v19 }
 0x163   : > { %v871_v14 = vmul.f32 %v859_v5, %v1546_v36  ;;  %v872_v58 = vmul.f32 %v859_v5, %v1553_v41  ;;  %v873_v17 = vmul.f32 %v859_v5, %v1561_v61  ;;  %v874_v56 = vmul.f32 %v859_v5, %v1567_v2 }
 0x164   : > { %v875_v18 = vmul.f32 %v859_v5, %v747_v15  ;;  %v863_v59 = vmul.f32 %v859_v5, %v1473_v4  ;;  %v864_v37 = vmul.f32 %v859_v5, %v1481_v11  ;;  %v876_v53 = vmul.f32 %v859_v5, %v750_v21 }
 0x165   : > { %v881_v20 = vrot.slane %v854_v7, %v858_v60  ;;  %v865_v62 = vmul.f32 %v859_v5, %v1496_v30 }
 0x167   : > { %v883_v16 = vadd.f32 %v881_v20, %v861_v8  ;;  %v884_v19 = vadd.f32 %v881_v20, %v862_v51  ;;  %v885_v36 = vadd.f32 %v881_v20, %v863_v59  ;;  %v886_v22 = vadd.f32 %v881_v20, %v864_v37 }
 0x168   : > { %v887_v41 = vadd.f32 %v881_v20, %v865_v62  ;;  %v888_v24 = vadd.f32 %v881_v20, %v866_v9  ;;  %v889_v61 = vadd.f32 %v881_v20, %v867_v10  ;;  %v890_v25 = vadd.f32 %v881_v20, %v868_v12 }
 0x169   : > { %v891_v2 = vadd.f32 %v881_v20, %v869_v13  ;;  %v892_v15 = vadd.f32 %v881_v20, %v870_v6  ;;  %v893_v26 = vadd.f32 %v881_v20, %v871_v14  ;;  %v894_v4 = vadd.f32 %v881_v20, %v872_v58 }
 0x16a   : > { %v895_v27 = vadd.f32 %v881_v20, %v873_v17  ;;  %v896_v11 = vadd.f32 %v881_v20, %v874_v56  ;;  %v897_v21 = vadd.f32 %v881_v20, %v875_v18  ;;  %v898_v28 = vadd.f32 %v881_v20, %v876_v53 }
 0x16b   : > { %v899_v30 = vmax.f32 %v883_v16, 0.0  ;;  %v900_v29 = vmax.f32 %v884_v19, 0.0  ;;  %v901_v32 = vmax.f32 %v885_v36, 0.0  ;;  %v902_v34 = vmax.f32 %v886_v22, 0.0 }
 0x16c   : > { %v903_v35 = vmax.f32 %v887_v41, 0.0  ;;  %v904_v48 = vmax.f32 %v888_v24, 0.0  ;;  %v905_v33 = vmax.f32 %v889_v61, 0.0  ;;  %v906_v38 = vmax.f32 %v890_v25, 0.0 }
 0x16d   : > { %v907_v39 = vmax.f32 %v891_v2, 0.0  ;;  %v908_v40 = vmax.f32 %v892_v15, 0.0  ;;  %v909_v42 = vmax.f32 %v893_v26, 0.0  ;;  %v910_v55 = vmax.f32 %v894_v4, 0.0 }
 0x16e   : > { %v911_v43 = vmax.f32 %v895_v27, 0.0  ;;  %v912_v44 = vmax.f32 %v896_v11, 0.0  ;;  %v913_v23 = vmax.f32 %v897_v21, 0.0  ;;  %v914_v45 = vmax.f32 %v898_v28, 0.0 }
 0x16f   : > { %v1127_v46 = vpack.c.bf16 %v899_v30, %v899_v30  ;;  %v1128_v47 = vpack.c.bf16 %v900_v29, %v900_v29  ;;  %v1129_v49 = vpack.c.bf16 %v901_v32, %v901_v32  ;;  %v1130_v50 = vpack.c.bf16 %v902_v34, %v902_v34 }
 0x170   : > { %v1131_v52 = vpack.c.bf16 %v903_v35, %v903_v35  ;;  %v1132_v54 = vpack.c.bf16 %v904_v48, %v904_v48  ;;  %v1133_v57 = vpack.c.bf16 %v905_v33, %v905_v33  ;;  %v1134_v31 = vpack.c.bf16 %v906_v38, %v906_v38 }
 0x171   : > { %v1135_v60 = vpack.c.bf16 %v907_v39, %v907_v39  ;;  %v1136_v63 = vpack.c.bf16 %v908_v40, %v908_v40  ;;  %v1137_v1 = vpack.c.bf16 %v909_v42, %v909_v42  ;;  %v1138_v0 = vpack.c.bf16 %v910_v55, %v910_v55  ;;  %980 = vst.msk [vmem:[%s1605_s28] sm:$0xf] %vm979_vm1, %v1127_v46 }
 0x172   : > { %981 = vst.msk [vmem:[%s1605_s28 + $0x4] sm:$0xf] %vm979_vm1, %v1128_v47  ;;  %982 = vst.msk [vmem:[%s1605_s28 + $0x8] sm:$0xf] %vm979_vm1, %v1129_v49  ;;  %v1139_v3 = vpack.c.bf16 %v911_v43, %v911_v43  ;;  %v1140_v5 = vpack.c.bf16 %v912_v44, %v912_v44  ;;  %v1141_v7 = vpack.c.bf16 %v913_v23, %v913_v23 }
 0x173   : > { %983 = vst.msk [vmem:[%s1605_s28 + $0xc] sm:$0xf] %vm979_vm1, %v1130_v50  ;;  %v1142_v8 = vpack.c.bf16 %v914_v45, %v914_v45  ;;  %984 = vst.msk [vmem:[%s1605_s28 + $0x10] sm:$0xf] %vm979_vm1, %v1131_v52 }
 0x174   : > { %985 = vst.msk [vmem:[%s1605_s28 + $0x14] sm:$0xf] %vm979_vm1, %v1132_v54  ;;  %986 = vst.msk [vmem:[%s1605_s28 + $0x18] sm:$0xf] %vm979_vm1, %v1133_v57 }
 0x175   : > { %987 = vst.msk [vmem:[%s1605_s28 + $0x1c] sm:$0xf] %vm979_vm1, %v1134_v31  ;;  %988 = vst.msk [vmem:[%s1605_s28 + $0x20] sm:$0xf] %vm979_vm1, %v1135_v60 }
 0x176   : > { %989 = vst.msk [vmem:[%s1605_s28 + $0x24] sm:$0xf] %vm979_vm1, %v1136_v63  ;;  %990 = vst.msk [vmem:[%s1605_s28 + $0x28] sm:$0xf] %vm979_vm1, %v1137_v1 }
 0x177   : > { %991 = vst.msk [vmem:[%s1605_s28 + $0x2c] sm:$0xf] %vm979_vm1, %v1138_v0  ;;  %992 = vst.msk [vmem:[%s1605_s28 + $0x30] sm:$0xf] %vm979_vm1, %v1139_v3 }
 0x178   : > { %993 = vst.msk [vmem:[%s1605_s28 + $0x34] sm:$0xf] %vm979_vm1, %v1140_v5  ;;  %994 = vst.msk [vmem:[%s1605_s28 + $0x38] sm:$0xf] %vm979_vm1, %v1141_v7 }
 0x179   : > { %995 = vst.msk [vmem:[%s1605_s28 + $0x3c] sm:$0xf] %vm979_vm1, %v1142_v8 }
 0x17a PF: > { %s14_s15 = sadd.s32 1, %s1328_s15  }
 0x17b   : > { %p11_p4 = scmp.ge.s32.totalorder %s14_s15, 4  }
 0x17d   :  { %13 = sbr.rel (!%p11_p4) target bundleno = 1 (0x1), region = 66 }

// kernel: forward.15
= control target key start
LH: loop header
LB: loop body
LE: loop exit
PB: predicated region body
PF: predicated region fallthrough
CT: control target
= control target key end

     0   :  { %s1510_s18 = smov 0   ;;  %s1854_s0 = inlined_call_operand.vmem [shape: bf16[256,384], index: 0, kind: input, shape index: {}]   ;;  %s1855_s1 = inlined_call_operand.vmem [shape: bf16[384,32], index: 1, kind: input, shape index: {}]   ;;  %s1856_s2 = inlined_call_operand.vmem [shape: f32[1,32], index: 2, kind: input, shape index: {}]   ;;  %s1857_s3 = inlined_call_operand.vmem [shape: f32[1,32], index: 3, kind: input, shape index: {}]   ;;  %s1858_s4 = inlined_call_operand.vmem [shape: bf16[256,32], index: 4, kind: input, shape index: {}]   ;;  %s1859_s5 = inlined_call_operand.vmem [shape: bf16[256,32], index: 5, kind: output, shape index: {}]  }
   0x1 LB: > { %s1161_s19 = sadd.s32 4294967295, %s1478_s18   ;;  %p1165_p0 = scmp.ge.s32.totalorder %s1478_s18, 1  ;;  %s1478_s18 = sphi %s1510_s18, %s15_s18  }
   0x2   : > { %p200_p1 = scmp.lt.s32.totalorder %s1478_s18, 3 }
   0x4   : > { %p201_p2 = pnand %p1165_p0, %p200_p1 }
   0x5   : > { %v1414_v0 = vld [vmem:[%s1855_s1 + $0x40] sm:$0xff] (!%p201_p2)   ;;  %v1417_v3 = vld [vmem:[%s1855_s1 + $0x48] sm:$0xff] (!%p201_p2)   ;;  %v1420_v6 = vld [vmem:[%s1855_s1 + $0x50] sm:$0xff] (!%p201_p2)   ;;  %s1166_s11 = sshll.u32 (!%p201_p2), %s1161_s19, 4  ;;  %vm802_vm0 = vcmask (!%p201_p2), 261120   ;;  %vm1076_vm1 = vcmask (!%p201_p2), 257024  }
   0x6   : > { %204 = sbr.rel (%p201_p2) target bundleno = 382 (0x17e), region = 40  ;;  %v1415_v1 = vld [vmem:[%s1855_s1] sm:$0xff] (!%p201_p2)   ;;  %1293 = vmatprep.subr.bf16.mxu0 (!%p201_p2), %v1414_v0  ;;  %v1418_v4 = vld [vmem:[%s1855_s1 + $0x8] sm:$0xff] (!%p201_p2)   ;;  %v1421_v7 = vld [vmem:[%s1855_s1 + $0x10] sm:$0xff] (!%p201_p2)   ;;  %p235_p3 = scmp.lt.s32.totalorder (!%p201_p2), %s1166_s11, 31 }
   0x7   : > { %v1416_v2 = vld [vmem:[%s1855_s1 + $0x80] sm:$0xff] (!%p201_p2)   ;;  %1294 = vmatpush3.bf16.msra.mxu0 (!%p201_p2), %v1415_v1  ;;  %v1419_v5 = vld [vmem:[%s1855_s1 + $0x88] sm:$0xff] (!%p201_p2)   ;;  %v1422_v8 = vld [vmem:[%s1855_s1 + $0x90] sm:$0xff] (!%p201_p2)  }
   0x8   : > { %1373 = vmatprep.subr.bf16.mxu1 (!%p201_p2), %v1416_v2  ;;  %1295 = vmatprep.subr.bf16.mxu0 (!%p201_p2), %v1417_v3  ;;  %v1423_v9 = vld [vmem:[%s1855_s1 + $0x58] sm:$0xff] (!%p201_p2)   ;;  %v1426_v12 = vld [vmem:[%s1855_s1 + $0x60] sm:$0xff] (!%p201_p2)   ;;  %v1429_v15 = vld [vmem:[%s1855_s1 + $0x68] sm:$0xff] (!%p201_p2)  }
   0x9   : > { %1374 = vmatpush3.bf16.msra.mxu1 (!%p201_p2), %v1416_v2  ;;  %v1424_v10 = vld [vmem:[%s1855_s1 + $0x18] sm:$0xff] (!%p201_p2)   ;;  %v1428_v13 = vld [vmem:[%s1855_s1 + $0xa0] sm:$0xff] (!%p201_p2)   ;;  %v1431_v16 = vld [vmem:[%s1855_s1 + $0xa8] sm:$0xff] (!%p201_p2)  }
   0xa   : > { %1375 = vmatprep.subr.bf16.mxu1 (!%p201_p2), %v1419_v5  ;;  %v1425_v11 = vld [vmem:[%s1855_s1 + $0x98] sm:$0xff] (!%p201_p2)   ;;  %v1427_v14 = vld [vmem:[%s1855_s1 + $0x20] sm:$0xff] (!%p201_p2)   ;;  %v1430_v17 = vld [vmem:[%s1855_s1 + $0x28] sm:$0xff] (!%p201_p2)  }
   0xb   : > { %1296 = vmatpush3.bf16.msra.mxu0 (!%p201_p2), %v1418_v4  ;;  %v1432_v18 = vld [vmem:[%s1855_s1 + $0x70] sm:$0xff] (!%p201_p2)   ;;  %v1435_v21 = vld [vmem:[%s1855_s1 + $0x78] sm:$0xff] (!%p201_p2)  }
   0xc   : > { %1297 = vmatprep.subr.bf16.mxu0 (!%p201_p2), %v1420_v6  ;;  %v1433_v19 = vld [vmem:[%s1855_s1 + $0x30] sm:$0xff] (!%p201_p2)   ;;  %v1437_v22 = vld [vmem:[%s1855_s1 + $0xb8] sm:$0xff] (!%p201_p2)  }
   0xd   : > { %1376 = vmatpush3.bf16.msra.mxu1 %v1419_v5  ;;  %s1861_s11 = smov (!%p235_p3, %s1166_s11), 31  ;;  %v1434_v20 = vld [vmem:[%s1855_s1 + $0xb0] sm:$0xff]   ;;  %v1436_v25 = vld [vmem:[%s1855_s1 + $0x38] sm:$0xff]  }
   0xe   : > { %1377 = vmatprep.subr.bf16.mxu1 %v1422_v8  ;;  %s1405_s6 = smul.u32 12, %s1861_s11  ;;  %s1169_s26 = sshll.u32 %s1861_s11, 2 }
   0xf   : > { %1298 = vmatpush3.bf16.msra.mxu0 %v1421_v7  ;;  %s1752_s29 = scalar_lea.vmem %s1858_s4, %s1169_s26  ;;  %s1817_s12 = scalar_lea.vmem %s1859_s5, %s1169_s26 }
  0x10   : > { %1299 = vmatprep.subr.bf16.mxu0 %v1423_v9  ;;  %s1587_s20 = scalar_lea.vmem %s1854_s0, %s1405_s6 }
  0x11   : > { %1378 = vmatpush3.bf16.msra.mxu1 %v1422_v8  ;;  %v1440_v23 = vld [vmem:[%s1587_s20 + $0x4] ss:$12 sps:$4 sm:$0xff]   ;;  %v1441_v24 = vld [vmem:[%s1587_s20 + $0x8] ss:$12 sps:$4 sm:$0xff]   ;;  %v1438_v26 = vld [vmem:[%s1587_s20] ss:$12 sps:$4 sm:$0xff]  }
  0x12   : > { %1379 = vmatprep.subr.bf16.mxu1 %v1425_v11  ;;  %640 = vmatprep.mubr.bf16.mxu0 %v1440_v23  ;;  %v1443_v27 = vld [vmem:[%s1587_s20 + $0x1c] ss:$12 sps:$4 sm:$0xff]   ;;  %v1442_v28 = vld [vmem:[%s1587_s20 + $0x20] ss:$12 sps:$4 sm:$0xff]   ;;  %v1449_v29 = vld [vmem:[%s1587_s20 + $0x38] ss:$12 sps:$4 sm:$0xff]  }
  0x13   : > { %1300 = vmatpush3.bf16.msra.mxu0 %v1424_v10  ;;  %1389 = vmatprep.mubr.bf16.mxu1 %v1441_v24  ;;  %v1445_v30 = vld [vmem:[%s1587_s20 + $0x18] ss:$12 sps:$4 sm:$0xff]   ;;  %v1446_v31 = vld [vmem:[%s1587_s20 + $0x34] ss:$12 sps:$4 sm:$0xff]   ;;  %v1450_v32 = vld [vmem:[%s1587_s20 + $0x50] ss:$12 sps:$4 sm:$0xff]  }
  0x14   : > { %1301 = vmatprep.subr.bf16.mxu0 %v1426_v12  ;;  %v1457_v33 = vld [vmem:[%s1587_s20 + $0x68] ss:$12 sps:$4 sm:$0xff]   ;;  %v1448_v34 = vld [vmem:[%s1587_s20 + $0x30] ss:$12 sps:$4 sm:$0xff]   ;;  %v1451_v35 = vld [vmem:[%s1587_s20 + $0x4c] ss:$12 sps:$4 sm:$0xff]  }
  0x15   : > { %1380 = vmatpush3.bf16.msra.mxu1 %v1425_v11  ;;  %v1458_v36 = vld [vmem:[%s1587_s20 + $0x80] ss:$12 sps:$4 sm:$0xff]   ;;  %v1465_v37 = vld [vmem:[%s1587_s20 + $0x98] ss:$12 sps:$4 sm:$0xff]   ;;  %v1453_v38 = vld [vmem:[%s1587_s20 + $0x48] ss:$12 sps:$4 sm:$0xff]  }
  0x16   : > { %1381 = vmatprep.subr.bf16.mxu1 %v1428_v13  ;;  %v1454_v39 = vld [vmem:[%s1587_s20 + $0x64] ss:$12 sps:$4 sm:$0xff]   ;;  %v1456_v41 = vld [vmem:[%s1587_s20 + $0x60] ss:$12 sps:$4 sm:$0xff]   ;;  %v1459_v42 = vld [vmem:[%s1587_s20 + $0x7c] ss:$12 sps:$4 sm:$0xff]  }
  0x17   : > { %1302 = vmatpush3.bf16.msra.mxu0 %v1427_v14  ;;  %v1466_v40 = vld [vmem:[%s1587_s20 + $0xb0] ss:$12 sps:$4 sm:$0xff]   ;;  %v1461_v43 = vld [vmem:[%s1587_s20 + $0x78] ss:$12 sps:$4 sm:$0xff]   ;;  %v1462_v44 = vld [vmem:[%s1587_s20 + $0x94] ss:$12 sps:$4 sm:$0xff]  }
  0x18   : > { %1303 = vmatprep.subr.bf16.mxu0 %v1429_v15  ;;  %v1464_v45 = vld [vmem:[%s1587_s20 + $0x90] ss:$12 sps:$4 sm:$0xff]   ;;  %v1467_v46 = vld [vmem:[%s1587_s20 + $0xac] ss:$12 sps:$4 sm:$0xff]   ;;  %v1469_v47 = vld [vmem:[%s1587_s20 + $0xa8] ss:$12 sps:$4 sm:$0xff]  }
  0x19   : > { %1382 = vmatpush3.bf16.msra.mxu1 %v1428_v13 }
  0x1a   : > { %1383 = vmatprep.subr.bf16.mxu1 %v1431_v16 }
  0x1b   : > { %1304 = vmatpush3.bf16.msra.mxu0 %v1430_v17 }
  0x1c   : > { %1305 = vmatprep.subr.bf16.mxu0 %v1432_v18 }
  0x1d   : > { %1384 = vmatpush3.bf16.msra.mxu1 %v1431_v16 }
  0x1e   : > { %1385 = vmatprep.subr.bf16.mxu1 %v1434_v20 }
  0x1f   : > { %1306 = vmatpush3.bf16.msra.mxu0 %v1433_v19 }
  0x20   : > { %1307 = vmatprep.subr.bf16.mxu0 %v1435_v21 }
  0x21   : > { %1386 = vmatpush3.bf16.msra.mxu1 %v1434_v20 }
  0x22   : > { %1387 = vmatprep.subr.bf16.mxu1 %v1437_v22 }
  0x23   : > { %1308 = vmatpush3.bf16.msra.mxu0 %v1436_v25 }
  0x25   : > { %1388 = vmatpush3.bf16.msra.mxu1 %v1437_v22 }
  0x26   : > { %641 = vmatmul.mubr.bf16.vlgmr.msra.gmra.mrb[0].mxu0 %v1438_v26 }
  0x27   : > { %648 = vmatprep.mubr.bf16.mxu0 %v1443_v27 }
  0x28   : > { %1390 = vmatmul.mubr.bf16.vlgmr.msra.gmra.mrb[0].mxu1 %v1442_v28 }
  0x29   : > { %1393 = vmatprep.mubr.bf16.mxu1 %v1449_v29 }
  0x2e   : > { %649 = vmatmul.mubr.bf16.gmra.mrb[4].mxu0 %v1445_v30 }
  0x2f   : > { %656 = vmatprep.mubr.bf16.mxu0 %v1446_v31 }
  0x30   : > { %1394 = vmatmul.mubr.bf16.gmra.mrb[4].mxu1 %v1450_v32 }
  0x31   : > { %1397 = vmatprep.mubr.bf16.mxu1 %v1457_v33 }
  0x36   : > { %657 = vmatmul.mubr.bf16.gmra.mrb[8].mxu0 %v1448_v34 }
  0x37   : > { %664 = vmatprep.mubr.bf16.mxu0 %v1451_v35 }
  0x38   : > { %1398 = vmatmul.mubr.bf16.gmra.mrb[8].mxu1 %v1458_v36 }
  0x39   : > { %1401 = vmatprep.mubr.bf16.mxu1 %v1465_v37 }
  0x3e   : > { %665 = vmatmul.mubr.bf16.gmra.mrb[12].mxu0 %v1453_v38 }
  0x3f   : > { %672 = vmatprep.mubr.bf16.mxu0 %v1454_v39 }
  0x40   : > { %1402 = vmatmul.mubr.bf16.gmra.mrb[12].mxu1 %v1466_v40 }
  0x46   : > { %673 = vmatmul.mubr.bf16.gmra.mrb[16].mxu0 %v1456_v41 }
  0x47   : > { %680 = vmatprep.mubr.bf16.mxu0 %v1459_v42 }
  0x4e   : > { %681 = vmatmul.mubr.bf16.gmra.mrb[20].mxu0 %v1461_v43 }
  0x4f   : > { %688 = vmatprep.mubr.bf16.mxu0 %v1462_v44 }
  0x56   : > { %689 = vmatmul.mubr.bf16.gmra.mrb[24].mxu0 %v1464_v45 }
  0x57   : > { %696 = vmatprep.mubr.bf16.mxu0 %v1467_v46 }
  0x5e   : > { %697 = vmatmul.mubr.bf16.gmra.mrb[28].mxu0 %v1469_v47 }
  0xf9   : > { %v1309_v48 = vpop.f32.mrb[0].mxu0 }
  0xfa   : > { %v1310_v49 = vpop.f32.mrb[1].mxu0 }
  0xfb   : > { %v1311_v50 = vadd.f32 %v1310_v49, %v1309_v48  ;;  %v1312_v51 = vpop.f32.mrb[2].mxu0  ;;  %v1391_v52 = vpop.f32.mrb[0].mxu1 }
  0xfc   : > { %v1313_v53 = vpop.f32.mrb[3].mxu0  ;;  %v739_v54 = vpop.f32.mrb[1].mxu1 }
  0xfd   : > { %v1314_v55 = vadd.f32 %v1313_v53, %v1312_v51  ;;  %v1622_v56 = vadd.f32 %v1311_v50, %v739_v54  ;;  %v1392_v57 = vpop.f32.mrb[2].mxu1 }
  0xfe   : > { %v742_v58 = vpop.f32.mrb[3].mxu1 }
  0xff   : > { %v1624_v59 = vadd.f32 %v1314_v55, %v742_v58  ;;  %v842_v8 = vmul.f32 %v1622_v56, %v1622_v56  ;;  %v803_v12 = vsel %vm802_vm0, %v1622_v56, 0.0 }
 0x101   : > { %v1315_v60 = vpop.f32.mrb[4].mxu0  ;;  %v843_v3 = vmul.f32 %v1624_v59, %v1624_v59  ;;  %v804_v9 = vsel %vm802_vm0, %v1624_v59, 0.0  ;;  %v858_v18 = vsel %vm802_vm0, %v842_v8, 0.0 }
 0x102   : > { %v1316_v61 = vpop.f32.mrb[5].mxu0  ;;  %v805_v16 = vadd.f32 %v804_v9, %v803_v12 }
 0x103   : > { %v1317_v62 = vadd.f32 %v1316_v61, %v1315_v60  ;;  %v1318_v63 = vpop.f32.mrb[6].mxu0  ;;  %v1395_v0 = vpop.f32.mrb[4].mxu1  ;;  %v859_v13 = vsel %vm802_vm0, %v843_v3, 0.0 }
 0x104   : > { %v1319_v1 = vpop.f32.mrb[7].mxu0  ;;  %v755_v2 = vpop.f32.mrb[5].mxu1  ;;  %v860_v24 = vadd.f32 %v859_v13, %v858_v18 }
 0x105   : > { %v1628_v4 = vadd.f32 %v1391_v52, %v1317_v62  ;;  %v1320_v5 = vadd.f32 %v1319_v1, %v1318_v63  ;;  %v1396_v6 = vpop.f32.mrb[6].mxu1 }
 0x106   : > { %v758_v7 = vpop.f32.mrb[7].mxu1 }
 0x107   : > { %v844_v10 = vmul.f32 %v1628_v4, %v1628_v4  ;;  %v1636_v11 = vadd.f32 %v1392_v57, %v1320_v5  ;;  %v806_v14 = vsel %vm802_vm0, %v1628_v4, 0.0 }
 0x108   : > { %v807_v25 = vadd.f32 %v806_v14, %v805_v16 }
 0x109   : > { %v1321_v15 = vpop.f32.mrb[8].mxu0  ;;  %v861_v19 = vsel %vm802_vm0, %v844_v10, 0.0  ;;  %v845_v20 = vmul.f32 %v1636_v11, %v1636_v11  ;;  %v808_v28 = vsel %vm802_vm0, %v1636_v11, 0.0 }
 0x10a   : > { %v1322_v17 = vpop.f32.mrb[9].mxu0  ;;  %v862_v32 = vadd.f32 %v861_v19, %v860_v24  ;;  %v809_v38 = vadd.f32 %v808_v28, %v807_v25 }
 0x10b   : > { %v1323_v21 = vadd.f32 %v1322_v17, %v1321_v15  ;;  %v1324_v22 = vpop.f32.mrb[10].mxu0  ;;  %v1647_v23 = vpop.f32.mrb[8].mxu1  ;;  %v863_v34 = vsel %vm802_vm0, %v845_v20, 0.0 }
 0x10c   : > { %v1325_v26 = vpop.f32.mrb[11].mxu0  ;;  %v771_v27 = vpop.f32.mrb[9].mxu1  ;;  %v864_v43 = vadd.f32 %v863_v34, %v862_v32 }
 0x10d   : > { %v1326_v29 = vadd.f32 %v1325_v26, %v1324_v22  ;;  %v1651_v30 = vadd.f32 %v1323_v21, %v755_v2  ;;  %v1653_v31 = vpop.f32.mrb[10].mxu1 }
 0x10e   : > { %v774_v33 = vpop.f32.mrb[11].mxu1 }
 0x10f   : > { %v810_v35 = vsel %vm802_vm0, %v1651_v30, 0.0  ;;  %v846_v36 = vmul.f32 %v1651_v30, %v1651_v30  ;;  %v1660_v37 = vadd.f32 %v1326_v29, %v758_v7 }
 0x110   : > { %v811_v42 = vadd.f32 %v810_v35, %v809_v38 }
 0x111   : > { %v865_v39 = vsel %vm802_vm0, %v846_v36, 0.0  ;;  %v847_v40 = vmul.f32 %v1660_v37, %v1660_v37  ;;  %v1327_v41 = vpop.f32.mrb[12].mxu0  ;;  %v812_v45 = vsel %vm802_vm0, %v1660_v37, 0.0 }
 0x112   : > { %v1328_v44 = vpop.f32.mrb[13].mxu0  ;;  %v866_v49 = vadd.f32 %v865_v39, %v864_v43  ;;  %v813_v57 = vadd.f32 %v812_v45, %v811_v42 }
 0x113   : > { %v1329_v46 = vadd.f32 %v1328_v44, %v1327_v41  ;;  %v1330_v47 = vpop.f32.mrb[14].mxu0  ;;  %v1667_v48 = vpop.f32.mrb[12].mxu1  ;;  %v867_v52 = vsel %vm802_vm0, %v847_v40, 0.0 }
 0x114   : > { %v1331_v50 = vpop.f32.mrb[15].mxu0  ;;  %v787_v51 = vpop.f32.mrb[13].mxu1  ;;  %v868_v63 = vadd.f32 %v867_v52, %v866_v49 }
 0x115   : > { %v1670_v53 = vadd.f32 %v1395_v0, %v1329_v46  ;;  %v1332_v54 = vadd.f32 %v1331_v50, %v1330_v47  ;;  %v1672_v55 = vpop.f32.mrb[14].mxu1 }
 0x116   : > { %v790_v58 = vpop.f32.mrb[15].mxu1 }
 0x117   : > { %v814_v60 = vsel %vm802_vm0, %v1670_v53, 0.0  ;;  %v848_v61 = vmul.f32 %v1670_v53, %v1670_v53  ;;  %v1678_v62 = vadd.f32 %v1396_v6, %v1332_v54 }
 0x118   : > { %v815_v1 = vadd.f32 %v814_v60, %v813_v57 }
 0x119   : > { %v869_v2 = vsel %vm802_vm0, %v848_v61, 0.0  ;;  %v816_v0 = vsel %vm802_vm0, %v1678_v62, 0.0  ;;  %v849_v3 = vmul.f32 %v1678_v62, %v1678_v62  ;;  %v1333_v5 = vpop.f32.mrb[16].mxu0 }
 0x11a   : > { %v870_v7 = vadd.f32 %v869_v2, %v868_v63  ;;  %v1334_v8 = vpop.f32.mrb[17].mxu0  ;;  %v817_v9 = vadd.f32 %v816_v0, %v815_v1 }
 0x11b   : > { %v871_v10 = vsel %vm802_vm0, %v849_v3, 0.0  ;;  %v1335_v12 = vadd.f32 %v1334_v8, %v1333_v5  ;;  %v1336_v13 = vpop.f32.mrb[18].mxu0 }
 0x11c   : > { %v1337_v6 = vpop.f32.mrb[19].mxu0  ;;  %v872_v14 = vadd.f32 %v871_v10, %v870_v7 }
 0x11d   : > { %v1338_v15 = vadd.f32 %v1337_v6, %v1336_v13  ;;  %v1686_v16 = vadd.f32 %v1335_v12, %v771_v27 }
 0x11f   : > { %v818_v17 = vsel %vm802_vm0, %v1686_v16, 0.0  ;;  %v850_v18 = vmul.f32 %v1686_v16, %v1686_v16  ;;  %v1692_v19 = vadd.f32 %v1338_v15, %v774_v33 }
 0x120   : > { %v819_v20 = vadd.f32 %v818_v17, %v817_v9 }
 0x121   : > { %v873_v21 = vsel %vm802_vm0, %v850_v18, 0.0  ;;  %v820_v22 = vsel %vm802_vm0, %v1692_v19, 0.0  ;;  %v851_v24 = vmul.f32 %v1692_v19, %v1692_v19  ;;  %v1339_v25 = vpop.f32.mrb[20].mxu0 }
 0x122   : > { %v874_v26 = vadd.f32 %v873_v21, %v872_v14  ;;  %v821_v27 = vadd.f32 %v820_v22, %v819_v20  ;;  %v1340_v28 = vpop.f32.mrb[21].mxu0 }
 0x123   : > { %v875_v29 = vsel %vm802_vm0, %v851_v24, 0.0  ;;  %v1341_v32 = vadd.f32 %v1340_v28, %v1339_v25  ;;  %v1342_v34 = vpop.f32.mrb[22].mxu0 }
 0x124   : > { %v876_v35 = vadd.f32 %v875_v29, %v874_v26  ;;  %v1343_v33 = vpop.f32.mrb[23].mxu0 }
 0x125   : > { %v1701_v36 = vadd.f32 %v1647_v23, %v1341_v32  ;;  %v1344_v38 = vadd.f32 %v1343_v33, %v1342_v34 }
 0x127   : > { %v822_v39 = vsel %vm802_vm0, %v1701_v36, 0.0  ;;  %v852_v40 = vmul.f32 %v1701_v36, %v1701_v36  ;;  %v1708_v41 = vadd.f32 %v1653_v31, %v1344_v38 }
 0x128   : > { %v823_v42 = vadd.f32 %v822_v39, %v821_v27 }
 0x129   : > { %v877_v43 = vsel %vm802_vm0, %v852_v40, 0.0  ;;  %v824_v44 = vsel %vm802_vm0, %v1708_v41, 0.0  ;;  %v853_v23 = vmul.f32 %v1708_v41, %v1708_v41  ;;  %v1345_v45 = vpop.f32.mrb[24].mxu0 }
 0x12a   : > { %v878_v46 = vadd.f32 %v877_v43, %v876_v35  ;;  %v1346_v47 = vpop.f32.mrb[25].mxu0  ;;  %v825_v49 = vadd.f32 %v824_v44, %v823_v42 }
 0x12b   : > { %v879_v50 = vsel %vm802_vm0, %v853_v23, 0.0  ;;  %v1347_v52 = vadd.f32 %v1346_v47, %v1345_v45  ;;  %v1348_v54 = vpop.f32.mrb[26].mxu0 }
 0x12c   : > { %v1349_v57 = vpop.f32.mrb[27].mxu0  ;;  %v880_v31 = vadd.f32 %v879_v50, %v878_v46 }
 0x12d   : > { %v1350_v60 = vadd.f32 %v1349_v57, %v1348_v54  ;;  %v1716_v61 = vadd.f32 %v1347_v52, %v787_v51  ;;  %v905_v54 = vlaneseq }
 0x12f   : > { %v826_v63 = vsel %vm802_vm0, %v1716_v61, 0.0  ;;  %v854_v1 = vmul.f32 %v1716_v61, %v1716_v61  ;;  %v1722_v2 = vadd.f32 %v1350_v60, %v790_v58  ;;  %v906_v57 = vshrl.u32 %v905_v54, 7 }
 0x130   : > { %v827_v0 = vadd.f32 %v826_v63, %v825_v49  ;;  %v1758_v63 = vld [vmem:[%s1752_s29] sm:$0xff]  }
 0x131   : > { %v881_v3 = vsel %vm802_vm0, %v854_v1, 0.0  ;;  %v828_v5 = vsel %vm802_vm0, %v1722_v2, 0.0  ;;  %v855_v7 = vmul.f32 %v1722_v2, %v1722_v2  ;;  %v1351_v8 = vpop.f32.mrb[28].mxu0  ;;  %v907_v60 = vsub.s32 0, %v906_v57  ;;  %v1761_v1 = vld [vmem:[%s1752_s29 + $0x8] sm:$0xff]  }
 0x132   : > { %v882_v51 = vadd.f32 %v881_v3, %v880_v31  ;;  %v829_v9 = vadd.f32 %v828_v5, %v827_v0  ;;  %v1352_v10 = vpop.f32.mrb[29].mxu0  ;;  %v302_v31 = vld [vmem:[%s1856_s2] sm:$0x1]  ;;  %v1764_v3 = vld [vmem:[%s1752_s29 + $0x10] sm:$0xff]  }
 0x133   : > { %v883_v12 = vsel %vm802_vm0, %v855_v7, 0.0  ;;  %v1353_v13 = vadd.f32 %v1352_v10, %v1351_v8  ;;  %v1354_v6 = vpop.f32.mrb[30].mxu0  ;;  %v1767_v7 = vld [vmem:[%s1752_s29 + $0x18] sm:$0xff]   ;;  %v1770_v8 = vld [vmem:[%s1752_s29 + $0x20] sm:$0xff]   ;;  %v1257_v10 = vunpack.c.h.bf16 %v1758_v63 }
 0x134   : > { %v884_v14 = vadd.f32 %v883_v12, %v882_v51  ;;  %v1355_v58 = vpop.f32.mrb[31].mxu0  ;;  %v303_v51 = vld [vmem:[%s1857_s3] sm:$0x1]  ;;  %v1260_v12 = vunpack.c.l.bf16 %v1761_v1 }
 0x135   : > { %v1731_v15 = vadd.f32 %v1667_v48, %v1353_v13  ;;  %v1356_v17 = vadd.f32 %v1355_v58, %v1354_v6  ;;  %v1261_v13 = vunpack.c.h.bf16 %v1761_v1  ;;  %v1780_v6 = vld [vmem:[%s1752_s29 + $0x28] sm:$0xff]  }
 0x137   : > { %v830_v18 = vsel %vm802_vm0, %v1731_v15, 0.0  ;;  %v856_v20 = vmul.f32 %v1731_v15, %v1731_v15  ;;  %v1738_v21 = vadd.f32 %v1672_v55, %v1356_v17 }
 0x138   : > { %v831_v22 = vadd.f32 %v830_v18, %v829_v9  ;;  %v1256_v9 = vunpack.c.l.bf16 %v1758_v63  ;;  %v1264_v18 = vunpack.c.l.bf16 %v1764_v3 }
 0x139   : > { %v885_v24 = vsel %vm802_vm0, %v856_v20, 0.0  ;;  %v832_v25 = vsel %vm802_vm0, %v1738_v21, 0.0  ;;  %v857_v48 = vmul.f32 %v1738_v21, %v1738_v21  ;;  %v1265_v20 = vunpack.c.h.bf16 %v1764_v3 }
 0x13a   : > { %v886_v26 = vadd.f32 %v885_v24, %v884_v14  ;;  %v833_v27 = vadd.f32 %v832_v25, %v831_v22  ;;  %v1783_v14 = vld [vmem:[%s1752_s29 + $0x30] sm:$0xff]   ;;  %v1268_v22 = vunpack.c.l.bf16 %v1767_v7  ;;  %v1269_v24 = vunpack.c.h.bf16 %v1767_v7 }
 0x13b   : > { %v887_v28 = vsel %vm802_vm0, %v857_v48, 0.0  ;;  %v1272_v25 = vunpack.c.l.bf16 %v1770_v8  ;;  %v1273_v48 = vunpack.c.h.bf16 %v1770_v8 }
 0x13c   : > { %v834_v29 = vrot.slane %v833_v27, 4  ;;  %v888_v32 = vadd.f32 %v887_v28, %v886_v26  ;;  %v1277_v28 = vunpack.c.h.bf16 %v1780_v6 }
 0x13e   : > { %v835_v34 = vadd.f32 %v834_v29, %v833_v27  ;;  %v889_v35 = vrot.slane %v888_v32, 4  ;;  %v1276_v27 = vunpack.c.l.bf16 %v1780_v6  ;;  %v1280_v29 = vunpack.c.l.bf16 %v1783_v14 }
 0x140   : > { %v836_v33 = vrot.slane %v835_v34, 2  ;;  %v890_v55 = vadd.f32 %v889_v35, %v888_v32 }
 0x142   : > { %v837_v38 = vadd.f32 %v836_v33, %v835_v34  ;;  %v891_v39 = vrot.slane %v890_v55, 2 }
 0x144   : > { %v838_v40 = vrot.slane %v837_v38, 1  ;;  %v892_v42 = vadd.f32 %v891_v39, %v890_v55 }
 0x146   : > { %v839_v43 = vadd.f32 %v838_v40, %v837_v38  ;;  %v893_v44 = vrot.slane %v892_v42, 1 }
 0x148   : > { %v841_v23 = vmul.f32 0.0078125, %v839_v43  ;;  %v894_v45 = vadd.f32 %v893_v44, %v892_v42  ;;  %v1292_v42 = vld [vmem:[%s1752_s29 + $0x38] sm:$0xff]  }
 0x14a   : > { %v895_v46 = vmul.f32 0.0078125, %v894_v45  ;;  %v896_v47 = vmul.f32 %v841_v23, %v841_v23  ;;  %v1285_v45 = vunpack.c.h.bf16 %v1292_v42 }
 0x14c   : > { %v897_v49 = vsub.f32 %v895_v46, %v896_v47 }
 0x14e   : > { %v898_v50 = vmax.f32 %v897_v49, 0.0 }
 0x150   : > { %v899_v52 = vadd.f32 1e-05, %v898_v50 }
 0x152   : > { %1470 = vrsqrt.f32 %v899_v52 }
 0x15c   : > { %v1471_v0 = vpop.eup %1470 }
 0x15d   : > { %v901_v5 = vmul.f32 %v1471_v0, %v302_v31 }
 0x15f   : > { %v902_v58 = vmul.f32 %v901_v5, %v841_v23  ;;  %v908_v17 = vrot.slane %v901_v5, %v907_v60  ;;  %v1284_v23 = vunpack.c.l.bf16 %v1292_v42 }
 0x161   : > { %v903_v26 = vsub.f32 %v303_v51, %v902_v58  ;;  %v910_v32 = vmul.f32 %v908_v17, %v1622_v56  ;;  %v911_v34 = vmul.f32 %v908_v17, %v1624_v59  ;;  %v915_v35 = vmul.f32 %v908_v17, %v1660_v37 }
 0x162   : > { %v916_v33 = vmul.f32 %v908_v17, %v1670_v53  ;;  %v917_v55 = vmul.f32 %v908_v17, %v1678_v62  ;;  %v918_v38 = vmul.f32 %v908_v17, %v1686_v16  ;;  %v919_v39 = vmul.f32 %v908_v17, %v1692_v19 }
 0x163   : > { %v920_v40 = vmul.f32 %v908_v17, %v1701_v36  ;;  %v921_v43 = vmul.f32 %v908_v17, %v1708_v41  ;;  %v922_v44 = vmul.f32 %v908_v17, %v1716_v61  ;;  %v923_v56 = vmul.f32 %v908_v17, %v1722_v2 }
 0x164   : > { %v924_v59 = vmul.f32 %v908_v17, %v1731_v15  ;;  %v912_v37 = vmul.f32 %v908_v17, %v1628_v4  ;;  %v913_v53 = vmul.f32 %v908_v17, %v1636_v11  ;;  %v925_v62 = vmul.f32 %v908_v17, %v1738_v21 }
 0x165   : > { %v930_v16 = vrot.slane %v903_v26, %v907_v60  ;;  %v914_v19 = vmul.f32 %v908_v17, %v1651_v30  ;;  %v1281_v36 = vunpack.c.h.bf16 %v1783_v14 }
 0x167   : > { %v932_v41 = vadd.f32 %v930_v16, %v910_v32  ;;  %v933_v46 = vadd.f32 %v930_v16, %v911_v34  ;;  %v934_v61 = vadd.f32 %v930_v16, %v912_v37  ;;  %v935_v47 = vadd.f32 %v930_v16, %v913_v53 }
 0x168   : > { %v936_v2 = vadd.f32 %v930_v16, %v914_v19  ;;  %v937_v49 = vadd.f32 %v930_v16, %v915_v35  ;;  %v938_v15 = vadd.f32 %v930_v16, %v916_v33  ;;  %v939_v50 = vadd.f32 %v930_v16, %v917_v55 }
 0x169   : > { %v940_v4 = vadd.f32 %v930_v16, %v918_v38  ;;  %v941_v52 = vadd.f32 %v930_v16, %v919_v39  ;;  %v942_v11 = vadd.f32 %v930_v16, %v920_v40  ;;  %v943_v54 = vadd.f32 %v930_v16, %v921_v43 }
 0x16a   : > { %v944_v21 = vadd.f32 %v930_v16, %v922_v44  ;;  %v945_v57 = vadd.f32 %v930_v16, %v923_v56  ;;  %v946_v31 = vadd.f32 %v930_v16, %v924_v59  ;;  %v947_v30 = vadd.f32 %v930_v16, %v925_v62 }
 0x16b   : > { %v980_v60 = vadd.f32 %v1256_v9, %v932_v41  ;;  %v981_v63 = vadd.f32 %v1257_v10, %v933_v46  ;;  %v982_v1 = vadd.f32 %v1260_v12, %v934_v61  ;;  %v983_v0 = vadd.f32 %v1261_v13, %v935_v47 }
 0x16c   : > { %v984_v3 = vadd.f32 %v1264_v18, %v936_v2  ;;  %v985_v5 = vadd.f32 %v1265_v20, %v937_v49  ;;  %v986_v7 = vadd.f32 %v1268_v22, %v938_v15  ;;  %v987_v8 = vadd.f32 %v1269_v24, %v939_v50 }
 0x16d   : > { %v988_v51 = vadd.f32 %v1272_v25, %v940_v4  ;;  %v989_v6 = vadd.f32 %v1273_v48, %v941_v52  ;;  %v990_v14 = vadd.f32 %v1276_v27, %v942_v11  ;;  %v991_v58 = vadd.f32 %v1277_v28, %v943_v54 }
 0x16e   : > { %v992_v17 = vadd.f32 %v1280_v29, %v944_v21  ;;  %v993_v26 = vadd.f32 %v1281_v36, %v945_v57  ;;  %v994_v32 = vadd.f32 %v1284_v23, %v946_v31  ;;  %v995_v34 = vadd.f32 %v1285_v45, %v947_v30 }
 0x16f   : > { %v996_v35 = vmax.f32 %v980_v60, 0.0  ;;  %v997_v33 = vmax.f32 %v981_v63, 0.0  ;;  %v998_v55 = vmax.f32 %v982_v1, 0.0  ;;  %v999_v9 = vmax.f32 %v983_v0, 0.0 }
 0x170   : > { %v1000_v10 = vmax.f32 %v984_v3, 0.0  ;;  %v1001_v12 = vmax.f32 %v985_v5, 0.0  ;;  %v1002_v13 = vmax.f32 %v986_v7, 0.0  ;;  %v1003_v18 = vmax.f32 %v987_v8, 0.0 }
 0x171   : > { %v1004_v20 = vmax.f32 %v988_v51, 0.0  ;;  %v1005_v22 = vmax.f32 %v989_v6, 0.0  ;;  %v1006_v24 = vmax.f32 %v990_v14, 0.0  ;;  %v1007_v25 = vmax.f32 %v991_v58, 0.0 }
 0x172   : > { %v1008_v48 = vmax.f32 %v992_v17, 0.0  ;;  %v1009_v27 = vmax.f32 %v993_v26, 0.0  ;;  %v1010_v28 = vmax.f32 %v994_v32, 0.0  ;;  %v1011_v29 = vmax.f32 %v995_v34, 0.0 }
 0x173   : > { %v1238_v38 = vpack.c.bf16 %v996_v35, %v996_v35  ;;  %v1239_v39 = vpack.c.bf16 %v997_v33, %v997_v33  ;;  %v1240_v40 = vpack.c.bf16 %v998_v55, %v998_v55  ;;  %v1241_v42 = vpack.c.bf16 %v999_v9, %v999_v9 }
 0x174   : > { %v1242_v43 = vpack.c.bf16 %v1000_v10, %v1000_v10  ;;  %v1243_v44 = vpack.c.bf16 %v1001_v12, %v1001_v12  ;;  %v1244_v56 = vpack.c.bf16 %v1002_v13, %v1002_v13  ;;  %v1245_v59 = vpack.c.bf16 %v1003_v18, %v1003_v18 }
 0x175   : > { %v1246_v37 = vpack.c.bf16 %v1004_v20, %v1004_v20  ;;  %v1247_v53 = vpack.c.bf16 %v1005_v22, %v1005_v22  ;;  %v1248_v62 = vpack.c.bf16 %v1006_v24, %v1006_v24  ;;  %v1249_v16 = vpack.c.bf16 %v1007_v25, %v1007_v25  ;;  %1077 = vst.msk [vmem:[%s1817_s12] sm:$0xf] %vm1076_vm1, %v1238_v38 }
 0x176   : > { %1078 = vst.msk [vmem:[%s1817_s12 + $0x4] sm:$0xf] %vm1076_vm1, %v1239_v39  ;;  %1079 = vst.msk [vmem:[%s1817_s12 + $0x8] sm:$0xf] %vm1076_vm1, %v1240_v40  ;;  %v1250_v19 = vpack.c.bf16 %v1008_v48, %v1008_v48  ;;  %v1251_v36 = vpack.c.bf16 %v1009_v27, %v1009_v27  ;;  %v1252_v23 = vpack.c.bf16 %v1010_v28, %v1010_v28 }
 0x177   : > { %1080 = vst.msk [vmem:[%s1817_s12 + $0xc] sm:$0xf] %vm1076_vm1, %v1241_v42  ;;  %v1253_v45 = vpack.c.bf16 %v1011_v29, %v1011_v29  ;;  %1081 = vst.msk [vmem:[%s1817_s12 + $0x10] sm:$0xf] %vm1076_vm1, %v1242_v43 }
 0x178   : > { %1082 = vst.msk [vmem:[%s1817_s12 + $0x14] sm:$0xf] %vm1076_vm1, %v1243_v44  ;;  %1083 = vst.msk [vmem:[%s1817_s12 + $0x18] sm:$0xf] %vm1076_vm1, %v1244_v56 }
 0x179   : > { %1084 = vst.msk [vmem:[%s1817_s12 + $0x1c] sm:$0xf] %vm1076_vm1, %v1245_v59  ;;  %1085 = vst.msk [vmem:[%s1817_s12 + $0x20] sm:$0xf] %vm1076_vm1, %v1246_v37 }
 0x17a   : > { %1086 = vst.msk [vmem:[%s1817_s12 + $0x24] sm:$0xf] %vm1076_vm1, %v1247_v53  ;;  %1087 = vst.msk [vmem:[%s1817_s12 + $0x28] sm:$0xf] %vm1076_vm1, %v1248_v62 }
 0x17b   : > { %1088 = vst.msk [vmem:[%s1817_s12 + $0x2c] sm:$0xf] %vm1076_vm1, %v1249_v16  ;;  %1089 = vst.msk [vmem:[%s1817_s12 + $0x30] sm:$0xf] %vm1076_vm1, %v1250_v19 }
 0x17c   : > { %1090 = vst.msk [vmem:[%s1817_s12 + $0x34] sm:$0xf] %vm1076_vm1, %v1251_v36  ;;  %1091 = vst.msk [vmem:[%s1817_s12 + $0x38] sm:$0xf] %vm1076_vm1, %v1252_v23 }
 0x17d   : > { %1092 = vst.msk [vmem:[%s1817_s12 + $0x3c] sm:$0xf] %vm1076_vm1, %v1253_v45 }
 0x17e PF: > { %s15_s18 = sadd.s32 1, %s1478_s18  }
 0x17f   : > { %p12_p4 = scmp.ge.s32.totalorder %s15_s18, 4  }
 0x181   :  { %14 = sbr.rel (!%p12_p4) target bundleno = 1 (0x1), region = 73 }

// kernel: forward.18
= control target key start
LH: loop header
LB: loop body
LE: loop exit
PB: predicated region body
PF: predicated region fallthrough
CT: control target
= control target key end

     0   :  { %s863_s15 = smov 0   ;;  %s970_s0 = inlined_call_operand.vmem [shape: bf16[64,384], index: 0, kind: input, shape index: {}]   ;;  %s971_s1 = inlined_call_operand.vmem [shape: bf16[384,64], index: 1, kind: input, shape index: {}]   ;;  %s972_s2 = inlined_call_operand.vmem [shape: f32[1,64], index: 2, kind: input, shape index: {}]   ;;  %s973_s3 = inlined_call_operand.vmem [shape: f32[1,64], index: 3, kind: input, shape index: {}]   ;;  %s974_s4 = inlined_call_operand.vmem [shape: bf16[64,64], index: 4, kind: output, shape index: {}]  }
   0x1 LB: > { %s680_s16 = sadd.s32 4294967295, %s836_s15   ;;  %p684_p0 = scmp.ge.s32.totalorder %s836_s15, 1  ;;  %s836_s15 = sphi %s863_s15, %s14_s15  }
   0x2   : > { %p164_p1 = scmp.lt.s32.totalorder %s836_s15, 3 }
   0x4   : > { %p165_p2 = pnand %p684_p0, %p164_p1 }
   0x5   : > { %v796_v0 = vld [vmem:[%s971_s1 + $0x40] sm:$0xff] (!%p165_p2)   ;;  %v799_v3 = vld [vmem:[%s971_s1 + $0x48] sm:$0xff] (!%p165_p2)   ;;  %v802_v6 = vld [vmem:[%s971_s1 + $0x50] sm:$0xff] (!%p165_p2)   ;;  %s685_s7 = sshll.u32 (!%p165_p2), %s680_s16, 2  ;;  %vm537_vm0 = vcmask (!%p165_p2), 523264   ;;  %vm619_vm1 = vcmask (!%p165_p2), 519168  }
   0x6   : > { %168 = sbr.rel (%p165_p2) target bundleno = 317 (0x13d), region = 36  ;;  %v797_v1 = vld [vmem:[%s971_s1] sm:$0xff] (!%p165_p2)   ;;  %729 = vmatprep.subr.bf16.mxu0 (!%p165_p2), %v796_v0  ;;  %v800_v4 = vld [vmem:[%s971_s1 + $0x8] sm:$0xff] (!%p165_p2)   ;;  %v803_v7 = vld [vmem:[%s971_s1 + $0x10] sm:$0xff] (!%p165_p2)   ;;  %p192_p3 = scmp.lt.s32.totalorder (!%p165_p2), %s685_s7, 7 }
   0x7   : > { %v798_v2 = vld [vmem:[%s971_s1 + $0x80] sm:$0xff] (!%p165_p2)   ;;  %730 = vmatpush3.bf16.msra.mxu0 (!%p165_p2), %v797_v1  ;;  %v801_v5 = vld [vmem:[%s971_s1 + $0x88] sm:$0xff] (!%p165_p2)   ;;  %v804_v8 = vld [vmem:[%s971_s1 + $0x90] sm:$0xff] (!%p165_p2)  }
   0x8   : > { %767 = vmatprep.subr.bf16.mxu1 (!%p165_p2), %v798_v2  ;;  %731 = vmatprep.subr.bf16.mxu0 (!%p165_p2), %v799_v3  ;;  %v805_v9 = vld [vmem:[%s971_s1 + $0x58] sm:$0xff] (!%p165_p2)   ;;  %v808_v12 = vld [vmem:[%s971_s1 + $0x60] sm:$0xff] (!%p165_p2)   ;;  %v811_v15 = vld [vmem:[%s971_s1 + $0x68] sm:$0xff] (!%p165_p2)  }
   0x9   : > { %768 = vmatpush3.bf16.msra.mxu1 (!%p165_p2), %v798_v2  ;;  %v806_v10 = vld [vmem:[%s971_s1 + $0x18] sm:$0xff] (!%p165_p2)   ;;  %v810_v13 = vld [vmem:[%s971_s1 + $0xa0] sm:$0xff] (!%p165_p2)   ;;  %v813_v16 = vld [vmem:[%s971_s1 + $0xa8] sm:$0xff] (!%p165_p2)  }
   0xa   : > { %769 = vmatprep.subr.bf16.mxu1 (!%p165_p2), %v801_v5  ;;  %v807_v11 = vld [vmem:[%s971_s1 + $0x98] sm:$0xff] (!%p165_p2)   ;;  %v809_v14 = vld [vmem:[%s971_s1 + $0x20] sm:$0xff] (!%p165_p2)   ;;  %v812_v17 = vld [vmem:[%s971_s1 + $0x28] sm:$0xff] (!%p165_p2)  }
   0xb   : > { %732 = vmatpush3.bf16.msra.mxu0 (!%p165_p2), %v800_v4  ;;  %v814_v18 = vld [vmem:[%s971_s1 + $0x70] sm:$0xff] (!%p165_p2)   ;;  %v817_v21 = vld [vmem:[%s971_s1 + $0x78] sm:$0xff] (!%p165_p2)  }
   0xc   : > { %733 = vmatprep.subr.bf16.mxu0 (!%p165_p2), %v802_v6  ;;  %v815_v19 = vld [vmem:[%s971_s1 + $0x30] sm:$0xff] (!%p165_p2)   ;;  %v819_v22 = vld [vmem:[%s971_s1 + $0xb8] sm:$0xff] (!%p165_p2)  }
   0xd   : > { %770 = vmatpush3.bf16.msra.mxu1 %v801_v5  ;;  %s976_s7 = smov (!%p192_p3, %s685_s7), 7  ;;  %v816_v20 = vld [vmem:[%s971_s1 + $0xb0] sm:$0xff]   ;;  %v818_v25 = vld [vmem:[%s971_s1 + $0x38] sm:$0xff]  }
   0xe   : > { %771 = vmatprep.subr.bf16.mxu1 %v804_v8  ;;  %s787_s27 = smul.u32 12, %s976_s7  ;;  %s688_s25 = sshll.u32 %s976_s7, 2 }
   0xf   : > { %734 = vmatpush3.bf16.msra.mxu0 %v803_v7  ;;  %s202_s28 = scalar_lea.vmem %s974_s4, %s688_s25 }
  0x10   : > { %735 = vmatprep.subr.bf16.mxu0 %v805_v9  ;;  %s196_s13 = scalar_lea.vmem %s970_s0, %s787_s27 }
  0x11   : > { %772 = vmatpush3.bf16.msra.mxu1 %v804_v8  ;;  %v822_v23 = vld [vmem:[%s196_s13 + $0x4] ss:$12 sps:$4 sm:$0xff]   ;;  %v823_v24 = vld [vmem:[%s196_s13 + $0x8] ss:$12 sps:$4 sm:$0xff]   ;;  %v820_v26 = vld [vmem:[%s196_s13] ss:$12 sps:$4 sm:$0xff]  }
  0x12   : > { %773 = vmatprep.subr.bf16.mxu1 %v807_v11  ;;  %471 = vmatprep.mubr.bf16.mxu0 %v822_v23  ;;  %v825_v27 = vld [vmem:[%s196_s13 + $0x1c] ss:$12 sps:$4 sm:$0xff]   ;;  %v824_v28 = vld [vmem:[%s196_s13 + $0x20] ss:$12 sps:$4 sm:$0xff]   ;;  %v827_v29 = vld [vmem:[%s196_s13 + $0x18] ss:$12 sps:$4 sm:$0xff]  }
  0x13   : > { %736 = vmatpush3.bf16.msra.mxu0 %v806_v10  ;;  %783 = vmatprep.mubr.bf16.mxu1 %v823_v24  ;;  %v253_v24 = vld [vmem:[%s972_s2] sm:$0x1] }
  0x14   : > { %737 = vmatprep.subr.bf16.mxu0 %v808_v12 }
  0x15   : > { %774 = vmatpush3.bf16.msra.mxu1 %v807_v11 }
  0x16   : > { %775 = vmatprep.subr.bf16.mxu1 %v810_v13 }
  0x17   : > { %738 = vmatpush3.bf16.msra.mxu0 %v809_v14 }
  0x18   : > { %739 = vmatprep.subr.bf16.mxu0 %v811_v15 }
  0x19   : > { %776 = vmatpush3.bf16.msra.mxu1 %v810_v13 }
  0x1a   : > { %777 = vmatprep.subr.bf16.mxu1 %v813_v16 }
  0x1b   : > { %740 = vmatpush3.bf16.msra.mxu0 %v812_v17 }
  0x1c   : > { %741 = vmatprep.subr.bf16.mxu0 %v814_v18 }
  0x1d   : > { %778 = vmatpush3.bf16.msra.mxu1 %v813_v16 }
  0x1e   : > { %779 = vmatprep.subr.bf16.mxu1 %v816_v20 }
  0x1f   : > { %742 = vmatpush3.bf16.msra.mxu0 %v815_v19 }
  0x20   : > { %743 = vmatprep.subr.bf16.mxu0 %v817_v21 }
  0x21   : > { %780 = vmatpush3.bf16.msra.mxu1 %v816_v20 }
  0x22   : > { %781 = vmatprep.subr.bf16.mxu1 %v819_v22 }
  0x23   : > { %744 = vmatpush3.bf16.msra.mxu0 %v818_v25 }
  0x25   : > { %782 = vmatpush3.bf16.msra.mxu1 %v819_v22  ;;  %v580_v22 = vlaneseq }
  0x26   : > { %472 = vmatmul.mubr.bf16.vlgmr.msra.gmra.mrb[0].mxu0 %v820_v26 }
  0x27   : > { %479 = vmatprep.mubr.bf16.mxu0 %v825_v27  ;;  %v581_v23 = vshrl.u32 %v580_v22, 7 }
  0x28   : > { %784 = vmatmul.mubr.bf16.vlgmr.msra.gmra.mrb[0].mxu1 %v824_v28  ;;  %v254_v28 = vld [vmem:[%s973_s3] sm:$0x1] }
  0x29   : > { %v582_v25 = vsub.s32 0, %v581_v23 }
  0x2e   : > { %480 = vmatmul.mubr.bf16.gmra.mrb[4].mxu0 %v827_v29 }
  0xf9   : > { %v745_v30 = vpop.f32.mrb[0].mxu0 }
  0xfa   : > { %v746_v31 = vpop.f32.mrb[1].mxu0 }
  0xfb   : > { %v747_v32 = vadd.f32 %v746_v31, %v745_v30  ;;  %v748_v33 = vpop.f32.mrb[2].mxu0  ;;  %v785_v34 = vpop.f32.mrb[0].mxu1 }
  0xfc   : > { %v749_v35 = vpop.f32.mrb[3].mxu0  ;;  %v522_v36 = vpop.f32.mrb[1].mxu1 }
  0xfd   : > { %v750_v37 = vadd.f32 %v749_v35, %v748_v33  ;;  %v523_v38 = vadd.f32 %v747_v32, %v522_v36  ;;  %v786_v39 = vpop.f32.mrb[2].mxu1 }
  0xfe   : > { %v525_v40 = vpop.f32.mrb[3].mxu1 }
  0xff   : > { %v553_v41 = vmul.f32 %v523_v38, %v523_v38  ;;  %v526_v42 = vadd.f32 %v750_v37, %v525_v40  ;;  %v538_v43 = vsel %vm537_vm0, %v523_v38, 0.0 }
 0x101   : > { %v539_v44 = vsel %vm537_vm0, %v526_v42, 0.0  ;;  %v554_v45 = vmul.f32 %v526_v42, %v526_v42  ;;  %v751_v46 = vpop.f32.mrb[4].mxu0  ;;  %v557_v49 = vsel %vm537_vm0, %v553_v41, 0.0 }
 0x102   : > { %v540_v47 = vadd.f32 %v539_v44, %v538_v43  ;;  %v752_v48 = vpop.f32.mrb[5].mxu0 }
 0x103   : > { %v558_v50 = vsel %vm537_vm0, %v554_v45, 0.0  ;;  %v753_v51 = vadd.f32 %v752_v48, %v751_v46  ;;  %v754_v52 = vpop.f32.mrb[6].mxu0 }
 0x104   : > { %v559_v53 = vadd.f32 %v558_v50, %v557_v49  ;;  %v755_v54 = vpop.f32.mrb[7].mxu0 }
 0x105   : > { %v531_v55 = vadd.f32 %v785_v34, %v753_v51  ;;  %v756_v56 = vadd.f32 %v755_v54, %v754_v52 }
 0x107   : > { %v541_v57 = vsel %vm537_vm0, %v531_v55, 0.0  ;;  %v555_v58 = vmul.f32 %v531_v55, %v531_v55  ;;  %v534_v59 = vadd.f32 %v786_v39, %v756_v56 }
 0x108   : > { %v542_v60 = vadd.f32 %v541_v57, %v540_v47 }
 0x109   : > { %v560_v61 = vsel %vm537_vm0, %v555_v58, 0.0  ;;  %v543_v62 = vsel %vm537_vm0, %v534_v59, 0.0  ;;  %v556_v63 = vmul.f32 %v534_v59, %v534_v59 }
 0x10a   : > { %v561_v0 = vadd.f32 %v560_v61, %v559_v53  ;;  %v544_v1 = vadd.f32 %v543_v62, %v542_v60 }
 0x10b   : > { %v562_v2 = vsel %vm537_vm0, %v556_v63, 0.0 }
 0x10c   : > { %v545_v3 = vrot.slane %v544_v1, 4  ;;  %v563_v4 = vadd.f32 %v562_v2, %v561_v0 }
 0x10e   : > { %v546_v5 = vadd.f32 %v545_v3, %v544_v1  ;;  %v564_v6 = vrot.slane %v563_v4, 4 }
 0x110   : > { %v547_v7 = vrot.slane %v546_v5, 2  ;;  %v565_v8 = vadd.f32 %v564_v6, %v563_v4 }
 0x112   : > { %v548_v9 = vadd.f32 %v547_v7, %v546_v5  ;;  %v566_v10 = vrot.slane %v565_v8, 2 }
 0x114   : > { %v549_v11 = vrot.slane %v548_v9, 1  ;;  %v567_v12 = vadd.f32 %v566_v10, %v565_v8 }
 0x116   : > { %v550_v13 = vadd.f32 %v549_v11, %v548_v9  ;;  %v568_v14 = vrot.slane %v567_v12, 1 }
 0x118   : > { %v552_v15 = vmul.f32 0.03125, %v550_v13  ;;  %v569_v16 = vadd.f32 %v568_v14, %v567_v12 }
 0x11a   : > { %v570_v17 = vmul.f32 0.03125, %v569_v16  ;;  %v571_v18 = vmul.f32 %v552_v15, %v552_v15 }
 0x11c   : > { %v572_v19 = vsub.f32 %v570_v17, %v571_v18 }
 0x11e   : > { %v573_v20 = vmax.f32 %v572_v19, 0.0 }
 0x120   : > { %v574_v21 = vadd.f32 1e-05, %v573_v20 }
 0x122   : > { %828 = vrsqrt.f32 %v574_v21 }
 0x12c   : > { %v829_v26 = vpop.eup %828 }
 0x12d   : > { %v576_v27 = vmul.f32 %v829_v26, %v253_v24 }
 0x12f   : > { %v577_v29 = vmul.f32 %v576_v27, %v552_v15  ;;  %v583_v30 = vrot.slane %v576_v27, %v582_v25 }
 0x131   : > { %v578_v31 = vsub.f32 %v254_v28, %v577_v29  ;;  %v585_v32 = vmul.f32 %v583_v30, %v523_v38  ;;  %v586_v33 = vmul.f32 %v583_v30, %v526_v42  ;;  %v587_v34 = vmul.f32 %v583_v30, %v531_v55 }
 0x132   : > { %v588_v35 = vmul.f32 %v583_v30, %v534_v59 }
 0x133   : > { %v593_v36 = vrot.slane %v578_v31, %v582_v25 }
 0x135   : > { %v595_v37 = vadd.f32 %v593_v36, %v585_v32  ;;  %v596_v39 = vadd.f32 %v593_v36, %v586_v33  ;;  %v597_v40 = vadd.f32 %v593_v36, %v587_v34  ;;  %v598_v41 = vadd.f32 %v593_v36, %v588_v35 }
 0x137   : > { %v599_v43 = vmax.f32 %v595_v37, 0.0  ;;  %v600_v44 = vmax.f32 %v596_v39, 0.0  ;;  %v601_v45 = vmax.f32 %v597_v40, 0.0  ;;  %v602_v46 = vmax.f32 %v598_v41, 0.0 }
 0x139   : > { %v725_v47 = vpack.c.bf16 %v599_v43, %v599_v43  ;;  %v726_v38 = vpack.c.bf16 %v600_v44, %v600_v44  ;;  %v727_v42 = vpack.c.bf16 %v601_v45, %v601_v45  ;;  %v728_v48 = vpack.c.bf16 %v602_v46, %v602_v46 }
 0x13b   : > { %620 = vst.msk [vmem:[%s202_s28] sm:$0xf] %vm619_vm1, %v725_v47  ;;  %621 = vst.msk [vmem:[%s202_s28 + $0x4] sm:$0xf] %vm619_vm1, %v726_v38 }
 0x13c   : > { %622 = vst.msk [vmem:[%s202_s28 + $0x8] sm:$0xf] %vm619_vm1, %v727_v42  ;;  %623 = vst.msk [vmem:[%s202_s28 + $0xc] sm:$0xf] %vm619_vm1, %v728_v48 }
 0x13d PF: > { %s14_s15 = sadd.s32 1, %s836_s15  }
 0x13e   : > { %p11_p4 = scmp.ge.s32.totalorder %s14_s15, 4  }
 0x140   :  { %13 = sbr.rel (!%p11_p4) target bundleno = 1 (0x1), region = 66 }

// kernel: forward.19
= control target key start
LH: loop header
LB: loop body
LE: loop exit
PB: predicated region body
PF: predicated region fallthrough
CT: control target
= control target key end

     0   :  { %s584_s15 = smov 0   ;;  %s646_s0 = inlined_call_operand.vmem [shape: bf16[64,128], index: 0, kind: input, shape index: {}]   ;;  %s647_s1 = inlined_call_operand.vmem [shape: bf16[128,64], index: 1, kind: input, shape index: {}]   ;;  %s648_s2 = inlined_call_operand.vmem [shape: f32[1,64], index: 2, kind: input, shape index: {}]   ;;  %s649_s3 = inlined_call_operand.vmem [shape: f32[1,64], index: 3, kind: input, shape index: {}]   ;;  %s650_s4 = inlined_call_operand.vmem [shape: bf16[64,64], index: 4, kind: output, shape index: {}]  }
   0x1 LB: > { %s472_s16 = sadd.s32 4294967295, %s557_s15   ;;  %p476_p0 = scmp.ge.s32.totalorder %s557_s15, 1  ;;  %s557_s15 = sphi %s584_s15, %s14_s15  }
   0x2   : > { %p163_p1 = scmp.lt.s32.totalorder %s557_s15, 3 }
   0x4   : > { %p164_p2 = pnand %p476_p0, %p163_p1 }
   0x5   : > { %v539_v0 = vld [vmem:[%s647_s1] sm:$0xff] (!%p164_p2)   ;;  %s477_s19 = sshll.u32 (!%p164_p2), %s472_s16, 2  ;;  %v540_v1 = vld [vmem:[%s647_s1 + $0x8] sm:$0xff] (!%p164_p2)   ;;  %v541_v2 = vld [vmem:[%s647_s1 + $0x10] sm:$0xff] (!%p164_p2)   ;;  %vm333_vm0 = vcmask (!%p164_p2), 523264   ;;  %v376_v50 = vlaneseq (!%p164_p2)  ;;  %vm411_vm1 = vcmask (!%p164_p2), 519168  }
   0x6   : > { %167 = sbr.rel (%p164_p2) target bundleno = 307 (0x133), region = 36  ;;  %p190_p3 = scmp.lt.s32.totalorder (!%p164_p2), %s477_s19, 7  ;;  %511 = vmatprep.subr.bf16.mxu0 (!%p164_p2), %v539_v0  ;;  %v542_v3 = vld [vmem:[%s647_s1 + $0x18] sm:$0xff] (!%p164_p2)   ;;  %v543_v5 = vld [vmem:[%s647_s1 + $0x20] sm:$0xff] (!%p164_p2)   ;;  %v544_v6 = vld [vmem:[%s647_s1 + $0x28] sm:$0xff] (!%p164_p2)  }
   0x7   : > { %512 = vmatpush3.bf16.msra.mxu0 (!%p164_p2), %v539_v0  ;;  %v545_v7 = vld [vmem:[%s647_s1 + $0x30] sm:$0xff] (!%p164_p2)   ;;  %v546_v8 = vld [vmem:[%s647_s1 + $0x38] sm:$0xff] (!%p164_p2)   ;;  %v377_v51 = vshrl.u32 (!%p164_p2), %v376_v50, 7  ;;  %v218_v52 = vld [vmem:[%s648_s2] sm:$0x1] (!%p164_p2) }
   0x8   : > { %513 = vmatprep.subr.bf16.mxu0 (!%p164_p2), %v540_v1  ;;  %v219_v56 = vld [vmem:[%s649_s3] sm:$0x1] (!%p164_p2) }
   0x9   : > { %v378_v53 = vsub.s32 (!%p164_p2), 0, %v377_v51 }
   0xb   : > { %514 = vmatpush3.bf16.msra.mxu0 (!%p164_p2), %v540_v1 }
   0xc   : > { %515 = vmatprep.subr.bf16.mxu0 (!%p164_p2), %v541_v2 }
   0xd   : > { %s652_s19 = smov (!%p190_p3, %s477_s19), 7 }
   0xe   : > { %s478_s24 = sshll.u32 %s652_s19, 2 }
   0xf   : > { %s193_s27 = scalar_lea.vmem %s646_s0, %s478_s24  ;;  %516 = vmatpush3.bf16.msra.mxu0 %v541_v2  ;;  %s199_s20 = scalar_lea.vmem %s650_s4, %s478_s24 }
  0x10   : > { %v547_v4 = vld [vmem:[%s193_s27] sm:$0xff]   ;;  %517 = vmatprep.subr.bf16.mxu0 %v542_v3  ;;  %v548_v9 = vld [vmem:[%s193_s27 + $0x8] sm:$0xff]  }
  0x11   : > { %527 = vmatprep.mubr.bf16.mxu0 %v547_v4 }
  0x13   : > { %518 = vmatpush3.bf16.msra.mxu0 %v542_v3 }
  0x14   : > { %519 = vmatprep.subr.bf16.mxu0 %v543_v5 }
  0x17   : > { %520 = vmatpush3.bf16.msra.mxu0 %v543_v5 }
  0x18   : > { %521 = vmatprep.subr.bf16.mxu0 %v544_v6 }
  0x1b   : > { %522 = vmatpush3.bf16.msra.mxu0 %v544_v6 }
  0x1c   : > { %523 = vmatprep.subr.bf16.mxu0 %v545_v7 }
  0x1f   : > { %524 = vmatpush3.bf16.msra.mxu0 %v545_v7 }
  0x20   : > { %525 = vmatprep.subr.bf16.mxu0 %v546_v8 }
  0x23   : > { %526 = vmatpush3.bf16.msra.mxu0 %v546_v8 }
  0x26   : > { %528 = vmatmul.mubr.bf16.vlgmr.msra.gmra.mrb[0].mxu0 %v548_v9 }
  0xf9   : > { %v529_v10 = vpop.f32.mrb[0].mxu0 }
  0xfa   : > { %v318_v11 = vpop.f32.mrb[1].mxu0  ;;  %v351_v15 = vmul.f32 %v529_v10, %v529_v10  ;;  %v337_v20 = vsel %vm333_vm0, %v529_v10, 0.0 }
  0xfb   : > { %v349_v12 = vmul.f32 %v318_v11, %v318_v11  ;;  %v530_v13 = vpop.f32.mrb[2].mxu0  ;;  %v334_v16 = vsel %vm333_vm0, %v318_v11, 0.0 }
  0xfc   : > { %v321_v14 = vpop.f32.mrb[3].mxu0  ;;  %v352_v22 = vmul.f32 %v530_v13, %v530_v13  ;;  %v356_v26 = vsel %vm333_vm0, %v351_v15, 0.0  ;;  %v339_v27 = vsel %vm333_vm0, %v530_v13, 0.0 }
  0xfd   : > { %v335_v17 = vsel %vm333_vm0, %v321_v14, 0.0  ;;  %v350_v18 = vmul.f32 %v321_v14, %v321_v14  ;;  %v353_v21 = vsel %vm333_vm0, %v349_v12, 0.0 }
  0xfe   : > { %v336_v19 = vadd.f32 %v335_v17, %v334_v16  ;;  %v358_v30 = vsel %vm333_vm0, %v352_v22, 0.0 }
  0xff   : > { %v354_v23 = vsel %vm333_vm0, %v350_v18, 0.0 }
 0x100   : > { %v338_v24 = vadd.f32 %v337_v20, %v336_v19  ;;  %v355_v25 = vadd.f32 %v354_v23, %v353_v21 }
 0x102   : > { %v340_v28 = vadd.f32 %v339_v27, %v338_v24  ;;  %v357_v29 = vadd.f32 %v356_v26, %v355_v25 }
 0x104   : > { %v341_v31 = vrot.slane %v340_v28, 4  ;;  %v359_v32 = vadd.f32 %v358_v30, %v357_v29 }
 0x106   : > { %v342_v33 = vadd.f32 %v341_v31, %v340_v28  ;;  %v360_v34 = vrot.slane %v359_v32, 4 }
 0x108   : > { %v343_v35 = vrot.slane %v342_v33, 2  ;;  %v361_v36 = vadd.f32 %v360_v34, %v359_v32 }
 0x10a   : > { %v344_v37 = vadd.f32 %v343_v35, %v342_v33  ;;  %v362_v38 = vrot.slane %v361_v36, 2 }
 0x10c   : > { %v345_v39 = vrot.slane %v344_v37, 1  ;;  %v363_v40 = vadd.f32 %v362_v38, %v361_v36 }
 0x10e   : > { %v346_v41 = vadd.f32 %v345_v39, %v344_v37  ;;  %v364_v42 = vrot.slane %v363_v40, 1 }
 0x110   : > { %v348_v43 = vmul.f32 0.03125, %v346_v41  ;;  %v365_v44 = vadd.f32 %v364_v42, %v363_v40 }
 0x112   : > { %v366_v45 = vmul.f32 0.03125, %v365_v44  ;;  %v367_v46 = vmul.f32 %v348_v43, %v348_v43 }
 0x114   : > { %v368_v47 = vsub.f32 %v366_v45, %v367_v46 }
 0x116   : > { %v369_v48 = vmax.f32 %v368_v47, 0.0 }
 0x118   : > { %v370_v49 = vadd.f32 1e-05, %v369_v48 }
 0x11a   : > { %549 = vrsqrt.f32 %v370_v49 }
 0x124   : > { %v550_v54 = vpop.eup %549 }
 0x125   : > { %v372_v55 = vmul.f32 %v550_v54, %v218_v52 }
 0x127   : > { %v373_v57 = vmul.f32 %v372_v55, %v348_v43  ;;  %v379_v58 = vrot.slane %v372_v55, %v378_v53 }
 0x129   : > { %v374_v59 = vsub.f32 %v219_v56, %v373_v57  ;;  %v381_v60 = vmul.f32 %v379_v58, %v318_v11  ;;  %v382_v61 = vmul.f32 %v379_v58, %v321_v14  ;;  %v383_v62 = vmul.f32 %v529_v10, %v379_v58 }
 0x12a   : > { %v384_v63 = vmul.f32 %v530_v13, %v379_v58 }
 0x12b   : > { %v389_v0 = vrot.slane %v374_v59, %v378_v53 }
 0x12d   : > { %v391_v1 = vadd.f32 %v389_v0, %v381_v60  ;;  %v392_v2 = vadd.f32 %v389_v0, %v382_v61  ;;  %v393_v3 = vadd.f32 %v389_v0, %v383_v62  ;;  %v394_v4 = vadd.f32 %v389_v0, %v384_v63 }
 0x12f   : > { %v497_v5 = vpack.c.bf16 %v391_v1, %v391_v1  ;;  %v498_v6 = vpack.c.bf16 %v392_v2, %v392_v2  ;;  %v499_v7 = vpack.c.bf16 %v393_v3, %v393_v3  ;;  %v500_v8 = vpack.c.bf16 %v394_v4, %v394_v4 }
 0x131   : > { %412 = vst.msk [vmem:[%s199_s20] sm:$0xf] %vm411_vm1, %v497_v5  ;;  %413 = vst.msk [vmem:[%s199_s20 + $0x4] sm:$0xf] %vm411_vm1, %v498_v6 }
 0x132   : > { %414 = vst.msk [vmem:[%s199_s20 + $0x8] sm:$0xf] %vm411_vm1, %v499_v7  ;;  %415 = vst.msk [vmem:[%s199_s20 + $0xc] sm:$0xf] %vm411_vm1, %v500_v8 }
 0x133 PF: > { %s14_s15 = sadd.s32 1, %s557_s15  }
 0x134   : > { %p11_p4 = scmp.ge.s32.totalorder %s14_s15, 4  }
 0x136   :  { %13 = sbr.rel (!%p11_p4) target bundleno = 1 (0x1), region = 66 }

// kernel: forward.20
= control target key start
LH: loop header
LB: loop body
LE: loop exit
PB: predicated region body
PF: predicated region fallthrough
CT: control target
= control target key end

     0   :  { %s1223_s18 = smov 0   ;;  %s1399_s0 = inlined_call_operand.vmem [shape: bf16[64,640], index: 0, kind: input, shape index: {}]   ;;  %s1400_s1 = inlined_call_operand.vmem [shape: bf16[640,64], index: 1, kind: input, shape index: {}]   ;;  %s1401_s2 = inlined_call_operand.vmem [shape: f32[1,64], index: 2, kind: input, shape index: {}]   ;;  %s1402_s3 = inlined_call_operand.vmem [shape: f32[1,64], index: 3, kind: input, shape index: {}]   ;;  %s1403_s4 = inlined_call_operand.vmem [shape: bf16[64,64], index: 4, kind: input, shape index: {}]   ;;  %s1404_s5 = inlined_call_operand.vmem [shape: bf16[64,64], index: 5, kind: output, shape index: {}]  }
   0x1 LB: > { %s954_s19 = sadd.s32 4294967295, %s1191_s18   ;;  %p958_p0 = scmp.ge.s32.totalorder %s1191_s18, 1  ;;  %s1191_s18 = sphi %s1223_s18, %s15_s18  }
   0x2   : > { %p200_p1 = scmp.lt.s32.totalorder %s1191_s18, 3 }
   0x4   : > { %p201_p2 = pnand %p958_p0, %p200_p1 }
   0x5   : > { %v1129_v0 = vld [vmem:[%s1400_s1 + $0x40] sm:$0xff] (!%p201_p2)   ;;  %v1133_v4 = vld [vmem:[%s1400_s1 + $0x48] sm:$0xff] (!%p201_p2)   ;;  %v1137_v8 = vld [vmem:[%s1400_s1 + $0x50] sm:$0xff] (!%p201_p2)   ;;  %s959_s27 = sshll.u32 (!%p201_p2), %s954_s19, 2  ;;  %vm787_vm0 = vcmask (!%p201_p2), 523264   ;;  %vm881_vm1 = vcmask (!%p201_p2), 519168  }
   0x6   : > { %204 = sbr.rel (%p201_p2) target bundleno = 346 (0x15a), region = 40  ;;  %v1130_v1 = vld [vmem:[%s1400_s1 + $0xc0] sm:$0xff] (!%p201_p2)   ;;  %1034 = vmatprep.subr.bf16.mxu0 (!%p201_p2), %v1129_v0  ;;  %v1134_v5 = vld [vmem:[%s1400_s1 + $0xc8] sm:$0xff] (!%p201_p2)   ;;  %v1138_v9 = vld [vmem:[%s1400_s1 + $0xd0] sm:$0xff] (!%p201_p2)   ;;  %p235_p3 = scmp.lt.s32.totalorder (!%p201_p2), %s959_s27, 7 }
   0x7   : > { %v1131_v2 = vld [vmem:[%s1400_s1] sm:$0xff] (!%p201_p2)   ;;  %1062 = vmatprep.subr.bf16.mxu1 (!%p201_p2), %v1130_v1  ;;  %v1135_v6 = vld [vmem:[%s1400_s1 + $0x8] sm:$0xff] (!%p201_p2)   ;;  %v1139_v10 = vld [vmem:[%s1400_s1 + $0x10] sm:$0xff] (!%p201_p2)  }
   0x8   : > { %v1132_v3 = vld [vmem:[%s1400_s1 + $0x80] sm:$0xff] (!%p201_p2)   ;;  %1035 = vmatpush3.bf16.msra.mxu0 (!%p201_p2), %v1131_v2  ;;  %v1136_v7 = vld [vmem:[%s1400_s1 + $0x88] sm:$0xff] (!%p201_p2)   ;;  %v1140_v11 = vld [vmem:[%s1400_s1 + $0x90] sm:$0xff] (!%p201_p2)  }
   0x9   : > { %1063 = vmatpush3.bf16.msra.mxu1 (!%p201_p2), %v1132_v3  ;;  %1036 = vmatprep.subr.bf16.mxu0 (!%p201_p2), %v1133_v4  ;;  %v1141_v12 = vld [vmem:[%s1400_s1 + $0x58] sm:$0xff] (!%p201_p2)   ;;  %v1145_v16 = vld [vmem:[%s1400_s1 + $0x60] sm:$0xff] (!%p201_p2)   ;;  %v1149_v20 = vld [vmem:[%s1400_s1 + $0x68] sm:$0xff] (!%p201_p2)  }
   0xa   : > { %1064 = vmatprep.subr.bf16.mxu1 (!%p201_p2), %v1134_v5  ;;  %v1142_v13 = vld [vmem:[%s1400_s1 + $0xd8] sm:$0xff] (!%p201_p2)   ;;  %v1146_v17 = vld [vmem:[%s1400_s1 + $0xe0] sm:$0xff] (!%p201_p2)   ;;  %v1150_v21 = vld [vmem:[%s1400_s1 + $0xe8] sm:$0xff] (!%p201_p2)  }
   0xb   : > { %v1143_v14 = vld [vmem:[%s1400_s1 + $0x18] sm:$0xff] (!%p201_p2)   ;;  %v1147_v18 = vld [vmem:[%s1400_s1 + $0x20] sm:$0xff] (!%p201_p2)   ;;  %v1151_v22 = vld [vmem:[%s1400_s1 + $0x28] sm:$0xff] (!%p201_p2)  }
   0xc   : > { %1037 = vmatpush3.bf16.msra.mxu0 (!%p201_p2), %v1135_v6  ;;  %v1144_v15 = vld [vmem:[%s1400_s1 + $0x98] sm:$0xff] (!%p201_p2)   ;;  %v1148_v19 = vld [vmem:[%s1400_s1 + $0xa0] sm:$0xff] (!%p201_p2)   ;;  %v1152_v23 = vld [vmem:[%s1400_s1 + $0xa8] sm:$0xff] (!%p201_p2)  }
   0xd   : > { %1065 = vmatpush3.bf16.msra.mxu1 %v1136_v7  ;;  %1038 = vmatprep.subr.bf16.mxu0 %v1137_v8  ;;  %s1406_s27 = smov (!%p235_p3, %s959_s27), 7  ;;  %v1153_v24 = vld [vmem:[%s1400_s1 + $0x70] sm:$0xff]   ;;  %v1157_v28 = vld [vmem:[%s1400_s1 + $0x78] sm:$0xff]   ;;  %v1167_v36 = vld [vmem:[%s1400_s1 + $0x100] sm:$0xff]  }
   0xe   : > { %1066 = vmatprep.subr.bf16.mxu1 %v1138_v9  ;;  %v1154_v25 = vld [vmem:[%s1400_s1 + $0xf0] sm:$0xff]   ;;  %s1120_s26 = smul.u32 20, %s1406_s27  ;;  %v1158_v29 = vld [vmem:[%s1400_s1 + $0xf8] sm:$0xff]   ;;  %v1168_v37 = vld [vmem:[%s1400_s1 + $0x108] sm:$0xff]   ;;  %s962_s19 = sshll.u32 %s1406_s27, 2 }
   0xf   : > { %v1155_v26 = vld [vmem:[%s1400_s1 + $0x30] sm:$0xff]   ;;  %v1159_v30 = vld [vmem:[%s1400_s1 + $0x38] sm:$0xff]   ;;  %v1171_v45 = vld [vmem:[%s1400_s1 + $0x120] sm:$0xff]   ;;  %s245_s15 = scalar_lea.vmem %s1403_s4, %s962_s19  ;;  %s251_s22 = scalar_lea.vmem %s1404_s5, %s962_s19 }
  0x10   : > { %1039 = vmatpush3.bf16.msra.mxu0 %v1139_v10  ;;  %v1156_v27 = vld [vmem:[%s1400_s1 + $0xb0] sm:$0xff]   ;;  %s1329_s12 = scalar_lea.vmem %s1399_s0, %s1120_s26  ;;  %v1160_v31 = vld [vmem:[%s1400_s1 + $0xb8] sm:$0xff]   ;;  %v1176_v46 = vld [vmem:[%s1400_s1 + $0x128] sm:$0xff]  }
  0x11   : > { %1067 = vmatpush3.bf16.msra.mxu1 %v1140_v11  ;;  %1040 = vmatprep.subr.bf16.mxu0 %v1141_v12  ;;  %v1161_v32 = vld [vmem:[%s1329_s12] ss:$20 sps:$4 sm:$0xff]   ;;  %v1163_v33 = vld [vmem:[%s1329_s12 + $0x4] ss:$20 sps:$4 sm:$0xff]   ;;  %v1164_v34 = vld [vmem:[%s1329_s12 + $0x8] ss:$20 sps:$4 sm:$0xff]  }
  0x12   : > { %1068 = vmatprep.subr.bf16.mxu1 %v1142_v13  ;;  %v1166_v35 = vld [vmem:[%s1329_s12 + $0xc] ss:$20 sps:$4 sm:$0xff]   ;;  %672 = vmatprep.mubr.bf16.mxu0 %v1163_v33  ;;  %v1169_v38 = vld [vmem:[%s1400_s1 + $0x110] sm:$0xff]   ;;  %v1170_v41 = vld [vmem:[%s1400_s1 + $0x118] sm:$0xff]  }
  0x13   : > { %721 = vmatprep.mubr.bf16.mxu1 %v1166_v35  ;;  %v1172_v39 = vld [vmem:[%s1329_s12 + $0x2c] ss:$20 sps:$4 sm:$0xff]   ;;  %v1174_v40 = vld [vmem:[%s1329_s12 + $0x34] ss:$20 sps:$4 sm:$0xff]   ;;  %v1178_v43 = vld [vmem:[%s1329_s12 + $0x30] ss:$20 sps:$4 sm:$0xff]  }
  0x14   : > { %1041 = vmatpush3.bf16.msra.mxu0 %v1143_v14  ;;  %v1177_v42 = vld [vmem:[%s1329_s12 + $0x28] ss:$20 sps:$4 sm:$0xff]   ;;  %v1181_v44 = vld [vmem:[%s1329_s12 + $0x10] ss:$20 sps:$4 sm:$0xff]   ;;  %v1182_v49 = vld [vmem:[%s1329_s12 + $0x38] ss:$20 sps:$4 sm:$0xff]  }
  0x15   : > { %1069 = vmatpush3.bf16.msra.mxu1 %v1144_v15  ;;  %1042 = vmatprep.subr.bf16.mxu0 %v1145_v16  ;;  %v1179_v47 = vld [vmem:[%s1400_s1 + $0x130] sm:$0xff]   ;;  %v1180_v48 = vld [vmem:[%s1400_s1 + $0x138] sm:$0xff]  }
  0x16   : > { %1070 = vmatprep.subr.bf16.mxu1 %v1146_v17 }
  0x18   : > { %1043 = vmatpush3.bf16.msra.mxu0 %v1147_v18 }
  0x19   : > { %1071 = vmatpush3.bf16.msra.mxu1 %v1148_v19  ;;  %1044 = vmatprep.subr.bf16.mxu0 %v1149_v20 }
  0x1a   : > { %1072 = vmatprep.subr.bf16.mxu1 %v1150_v21 }
  0x1c   : > { %1045 = vmatpush3.bf16.msra.mxu0 %v1151_v22 }
  0x1d   : > { %1073 = vmatpush3.bf16.msra.mxu1 %v1152_v23  ;;  %1046 = vmatprep.subr.bf16.mxu0 %v1153_v24 }
  0x1e   : > { %1074 = vmatprep.subr.bf16.mxu1 %v1154_v25 }
  0x20   : > { %1047 = vmatpush3.bf16.msra.mxu0 %v1155_v26 }
  0x21   : > { %1075 = vmatpush3.bf16.msra.mxu1 %v1156_v27  ;;  %1048 = vmatprep.subr.bf16.mxu0 %v1157_v28 }
  0x22   : > { %1076 = vmatprep.subr.bf16.mxu1 %v1158_v29 }
  0x24   : > { %1049 = vmatpush3.bf16.msra.mxu0 %v1159_v30 }
  0x25   : > { %1077 = vmatpush3.bf16.msra.mxu1 %v1160_v31  ;;  %1100 = vmatprep.subr.bf16.mxu0 %v1167_v36 }
  0x27   : > { %673 = vmatmul.mubr.bf16.vlgmr.msra.gmra.mrb[0].mxu0 %v1161_v32 }
  0x28   : > { %722 = vmatmul.mubr.bf16.vlgmr.msra.gmra.mrb[0].mxu1 %v1164_v34  ;;  %1101 = vmatpush3.bf16.msra.mxu0 %v1167_v36 }
  0x29   : > { %1102 = vmatprep.subr.bf16.mxu0 %v1168_v37  ;;  %680 = vmatprep.mubr.bf16.mxu0 %v1172_v39 }
  0x2a   : > { %729 = vmatprep.mubr.bf16.mxu1 %v1174_v40 }
  0x2c   : > { %1103 = vmatpush3.bf16.msra.mxu0 %v1168_v37 }
  0x2d   : > { %1104 = vmatprep.subr.bf16.mxu0 %v1169_v38 }
  0x2f   : > { %681 = vmatmul.mubr.bf16.gmra.mrb[4].mxu0 %v1177_v42 }
  0x30   : > { %730 = vmatmul.mubr.bf16.gmra.mrb[4].mxu1 %v1178_v43  ;;  %1105 = vmatpush3.bf16.msra.mxu0 %v1169_v38 }
  0x31   : > { %1106 = vmatprep.subr.bf16.mxu0 %v1170_v41  ;;  %1116 = vmatprep.mubr.bf16.mxu0 %v1181_v44 }
  0x34   : > { %1107 = vmatpush3.bf16.msra.mxu0 %v1170_v41 }
  0x35   : > { %1108 = vmatprep.subr.bf16.mxu0 %v1171_v45 }
  0x38   : > { %1109 = vmatpush3.bf16.msra.mxu0 %v1171_v45 }
  0x39   : > { %1110 = vmatprep.subr.bf16.mxu0 %v1176_v46 }
  0x3c   : > { %1111 = vmatpush3.bf16.msra.mxu0 %v1176_v46 }
  0x3d   : > { %1112 = vmatprep.subr.bf16.mxu0 %v1179_v47 }
  0x40   : > { %1113 = vmatpush3.bf16.msra.mxu0 %v1179_v47 }
  0x41   : > { %1114 = vmatprep.subr.bf16.mxu0 %v1180_v48 }
  0x44   : > { %1115 = vmatpush3.bf16.msra.mxu0 %v1180_v48 }
  0x47   : > { %1117 = vmatmul.mubr.bf16.vlgmr.msra.gmra.mrb[8].mxu0 %v1182_v49 }
  0xfa   : > { %v1050_v50 = vpop.f32.mrb[0].mxu0 }
  0xfb   : > { %v1078_v51 = vpop.f32.mrb[0].mxu1  ;;  %v1051_v52 = vpop.f32.mrb[1].mxu0 }
  0xfc   : > { %v1052_v53 = vadd.f32 %v1051_v52, %v1050_v50  ;;  %v1079_v54 = vpop.f32.mrb[1].mxu1  ;;  %v1053_v55 = vpop.f32.mrb[2].mxu0 }
  0xfd   : > { %v1080_v56 = vadd.f32 %v1079_v54, %v1078_v51  ;;  %v1081_v57 = vpop.f32.mrb[2].mxu1  ;;  %v1054_v58 = vpop.f32.mrb[3].mxu0 }
  0xfe   : > { %v1055_v59 = vadd.f32 %v1054_v58, %v1053_v55  ;;  %v1082_v60 = vpop.f32.mrb[3].mxu1  ;;  %v830_v58 = vlaneseq }
  0xff   : > { %v1083_v61 = vadd.f32 %v1082_v60, %v1081_v57  ;;  %v724_v62 = vadd.f32 %v1080_v56, %v1052_v53  ;;  %v334_v60 = vld [vmem:[%s1401_s2] sm:$0x1] }
 0x101   : > { %v727_v63 = vadd.f32 %v1083_v61, %v1055_v59  ;;  %v831_v59 = vshrl.u32 %v830_v58, 7 }
 0x102   : > { %v1056_v0 = vpop.f32.mrb[4].mxu0 }
 0x103   : > { %v1084_v1 = vpop.f32.mrb[4].mxu1  ;;  %v1057_v2 = vpop.f32.mrb[5].mxu0  ;;  %v832_v61 = vsub.s32 0, %v831_v59 }
 0x104   : > { %v1058_v3 = vadd.f32 %v1057_v2, %v1056_v0  ;;  %v1085_v4 = vpop.f32.mrb[5].mxu1  ;;  %v1059_v5 = vpop.f32.mrb[6].mxu0  ;;  %v335_v0 = vld [vmem:[%s1402_s3] sm:$0x1] }
 0x105   : > { %v1086_v6 = vadd.f32 %v1085_v4, %v1084_v1  ;;  %v1087_v7 = vpop.f32.mrb[6].mxu1  ;;  %v1060_v8 = vpop.f32.mrb[7].mxu0  ;;  %v1033_v4 = vld [vmem:[%s245_s15 + $0x8] sm:$0xff]  }
 0x106   : > { %v1061_v9 = vadd.f32 %v1060_v8, %v1059_v5  ;;  %v1088_v10 = vpop.f32.mrb[7].mxu1 }
 0x107   : > { %v1089_v11 = vadd.f32 %v1088_v10, %v1087_v7  ;;  %v732_v12 = vadd.f32 %v1086_v6, %v1058_v3  ;;  %v1026_v3 = vld [vmem:[%s245_s15] sm:$0xff]  }
 0x108   : > { %v1027_v10 = vunpack.c.l.bf16 %v1026_v3 }
 0x109   : > { %v735_v13 = vadd.f32 %v1089_v11, %v1061_v9 }
 0x11a   : > { %v1118_v14 = vpop.f32.mrb[8].mxu0 }
 0x11b   : > { %v781_v15 = vadd.f32 %v1118_v14, %v732_v12  ;;  %v772_v16 = vpop.f32.mrb[9].mxu0  ;;  %v1028_v12 = vunpack.c.h.bf16 %v1026_v3  ;;  %v1032_v14 = vunpack.c.h.bf16 %v1033_v4 }
 0x11c   : > { %v773_v17 = vadd.f32 %v772_v16, %v724_v62  ;;  %v1119_v18 = vpop.f32.mrb[10].mxu0 }
 0x11d   : > { %v784_v19 = vadd.f32 %v1119_v18, %v735_v13  ;;  %v775_v20 = vpop.f32.mrb[11].mxu0  ;;  %v805_v23 = vmul.f32 %v781_v15, %v781_v15  ;;  %v791_v28 = vsel %vm787_vm0, %v781_v15, 0.0  ;;  %v1031_v13 = vunpack.c.l.bf16 %v1033_v4 }
 0x11e   : > { %v803_v21 = vmul.f32 %v773_v17, %v773_v17  ;;  %v776_v22 = vadd.f32 %v775_v20, %v727_v63  ;;  %v788_v24 = vsel %vm787_vm0, %v773_v17, 0.0 }
 0x11f   : > { %v806_v30 = vmul.f32 %v784_v19, %v784_v19  ;;  %v810_v34 = vsel %vm787_vm0, %v805_v23, 0.0  ;;  %v793_v35 = vsel %vm787_vm0, %v784_v19, 0.0 }
 0x120   : > { %v789_v25 = vsel %vm787_vm0, %v776_v22, 0.0  ;;  %v804_v26 = vmul.f32 %v776_v22, %v776_v22  ;;  %v807_v29 = vsel %vm787_vm0, %v803_v21, 0.0 }
 0x121   : > { %v790_v27 = vadd.f32 %v789_v25, %v788_v24  ;;  %v812_v38 = vsel %vm787_vm0, %v806_v30, 0.0 }
 0x122   : > { %v808_v31 = vsel %vm787_vm0, %v804_v26, 0.0 }
 0x123   : > { %v792_v32 = vadd.f32 %v791_v28, %v790_v27  ;;  %v809_v33 = vadd.f32 %v808_v31, %v807_v29 }
 0x125   : > { %v794_v36 = vadd.f32 %v793_v35, %v792_v32  ;;  %v811_v37 = vadd.f32 %v810_v34, %v809_v33 }
 0x127   : > { %v795_v39 = vrot.slane %v794_v36, 4  ;;  %v813_v40 = vadd.f32 %v812_v38, %v811_v37 }
 0x129   : > { %v796_v41 = vadd.f32 %v795_v39, %v794_v36  ;;  %v814_v42 = vrot.slane %v813_v40, 4 }
 0x12b   : > { %v797_v43 = vrot.slane %v796_v41, 2  ;;  %v815_v44 = vadd.f32 %v814_v42, %v813_v40 }
 0x12d   : > { %v798_v45 = vadd.f32 %v797_v43, %v796_v41  ;;  %v816_v46 = vrot.slane %v815_v44, 2 }
 0x12f   : > { %v799_v47 = vrot.slane %v798_v45, 1  ;;  %v817_v48 = vadd.f32 %v816_v46, %v815_v44 }
 0x131   : > { %v800_v49 = vadd.f32 %v799_v47, %v798_v45  ;;  %v818_v50 = vrot.slane %v817_v48, 1 }
 0x133   : > { %v802_v51 = vmul.f32 0.03125, %v800_v49  ;;  %v819_v52 = vadd.f32 %v818_v50, %v817_v48 }
 0x135   : > { %v820_v53 = vmul.f32 0.03125, %v819_v52  ;;  %v821_v54 = vmul.f32 %v802_v51, %v802_v51 }
 0x137   : > { %v822_v55 = vsub.f32 %v820_v53, %v821_v54 }
 0x139   : > { %v823_v56 = vmax.f32 %v822_v55, 0.0 }
 0x13b   : > { %v824_v57 = vadd.f32 1e-05, %v823_v56 }
 0x13d   : > { %1183 = vrsqrt.f32 %v824_v57 }
 0x147   : > { %v1184_v62 = vpop.eup %1183 }
 0x148   : > { %v826_v63 = vmul.f32 %v1184_v62, %v334_v60 }
 0x14a   : > { %v827_v1 = vmul.f32 %v826_v63, %v802_v51  ;;  %v833_v2 = vrot.slane %v826_v63, %v832_v61 }
 0x14c   : > { %v828_v5 = vsub.f32 %v335_v0, %v827_v1  ;;  %v835_v6 = vmul.f32 %v833_v2, %v773_v17  ;;  %v836_v7 = vmul.f32 %v833_v2, %v776_v22  ;;  %v837_v8 = vmul.f32 %v833_v2, %v781_v15 }
 0x14d   : > { %v838_v9 = vmul.f32 %v833_v2, %v784_v19 }
 0x14e   : > { %v843_v11 = vrot.slane %v828_v5, %v832_v61 }
 0x150   : > { %v845_v16 = vadd.f32 %v843_v11, %v835_v6  ;;  %v846_v18 = vadd.f32 %v843_v11, %v836_v7  ;;  %v847_v20 = vadd.f32 %v843_v11, %v837_v8  ;;  %v848_v21 = vadd.f32 %v843_v11, %v838_v9 }
 0x152   : > { %v857_v23 = vadd.f32 %v1027_v10, %v845_v16  ;;  %v858_v24 = vadd.f32 %v1028_v12, %v846_v18  ;;  %v859_v25 = vadd.f32 %v1031_v13, %v847_v20  ;;  %v860_v26 = vadd.f32 %v1032_v14, %v848_v21 }
 0x154   : > { %v861_v27 = vmax.f32 %v857_v23, 0.0  ;;  %v862_v28 = vmax.f32 %v858_v24, 0.0  ;;  %v863_v17 = vmax.f32 %v859_v25, 0.0  ;;  %v864_v15 = vmax.f32 %v860_v26, 0.0 }
 0x156   : > { %v1021_v19 = vpack.c.bf16 %v861_v27, %v861_v27  ;;  %v1022_v22 = vpack.c.bf16 %v862_v28, %v862_v28  ;;  %v1023_v29 = vpack.c.bf16 %v863_v17, %v863_v17  ;;  %v1024_v30 = vpack.c.bf16 %v864_v15, %v864_v15 }
 0x158   : > { %882 = vst.msk [vmem:[%s251_s22] sm:$0xf] %vm881_vm1, %v1021_v19  ;;  %883 = vst.msk [vmem:[%s251_s22 + $0x4] sm:$0xf] %vm881_vm1, %v1022_v22 }
 0x159   : > { %884 = vst.msk [vmem:[%s251_s22 + $0x8] sm:$0xf] %vm881_vm1, %v1023_v29  ;;  %885 = vst.msk [vmem:[%s251_s22 + $0xc] sm:$0xf] %vm881_vm1, %v1024_v30 }
 0x15a PF: > { %s15_s18 = sadd.s32 1, %s1191_s18  }
 0x15b   : > { %p12_p4 = scmp.ge.s32.totalorder %s15_s18, 4  }
 0x15d   :  { %14 = sbr.rel (!%p12_p4) target bundleno = 1 (0x1), region = 73 }

// kernel: forward.21
= control target key start
LH: loop header
LB: loop body
LE: loop exit
PB: predicated region body
PF: predicated region fallthrough
CT: control target
= control target key end

     0   :  { %s1134_s15 = smov 0   ;;  %s1303_s0 = inlined_call_operand.vmem [shape: bf16[64,640], index: 0, kind: input, shape index: {}]   ;;  %s1304_s1 = inlined_call_operand.vmem [shape: bf16[640,64], index: 1, kind: input, shape index: {}]   ;;  %s1305_s2 = inlined_call_operand.vmem [shape: f32[1,64], index: 2, kind: input, shape index: {}]   ;;  %s1306_s3 = inlined_call_operand.vmem [shape: f32[1,64], index: 3, kind: input, shape index: {}]   ;;  %s1307_s4 = inlined_call_operand.vmem [shape: bf16[64,64], index: 4, kind: output, shape index: {}]  }
   0x1 LB: > { %s881_s16 = sadd.s32 4294967295, %s1107_s15   ;;  %p885_p0 = scmp.ge.s32.totalorder %s1107_s15, 1  ;;  %s1107_s15 = sphi %s1134_s15, %s14_s15  }
   0x2   : > { %p164_p1 = scmp.lt.s32.totalorder %s1107_s15, 3 }
   0x4   : > { %p165_p2 = pnand %p885_p0, %p164_p1 }
   0x5   : > { %v1045_v0 = vld [vmem:[%s1304_s1 + $0x40] sm:$0xff] (!%p165_p2)   ;;  %v1049_v4 = vld [vmem:[%s1304_s1 + $0x48] sm:$0xff] (!%p165_p2)   ;;  %v1053_v8 = vld [vmem:[%s1304_s1 + $0x50] sm:$0xff] (!%p165_p2)   ;;  %s886_s23 = sshll.u32 (!%p165_p2), %s881_s16, 2  ;;  %vm738_vm0 = vcmask (!%p165_p2), 523264   ;;  %vm820_vm1 = vcmask (!%p165_p2), 519168  }
   0x6   : > { %168 = sbr.rel (%p165_p2) target bundleno = 344 (0x158), region = 36  ;;  %v1046_v1 = vld [vmem:[%s1304_s1 + $0xc0] sm:$0xff] (!%p165_p2)   ;;  %950 = vmatprep.subr.bf16.mxu0 (!%p165_p2), %v1045_v0  ;;  %v1050_v5 = vld [vmem:[%s1304_s1 + $0xc8] sm:$0xff] (!%p165_p2)   ;;  %v1054_v9 = vld [vmem:[%s1304_s1 + $0xd0] sm:$0xff] (!%p165_p2)   ;;  %p192_p3 = scmp.lt.s32.totalorder (!%p165_p2), %s886_s23, 7 }
   0x7   : > { %v1047_v2 = vld [vmem:[%s1304_s1] sm:$0xff] (!%p165_p2)   ;;  %978 = vmatprep.subr.bf16.mxu1 (!%p165_p2), %v1046_v1  ;;  %v1051_v6 = vld [vmem:[%s1304_s1 + $0x8] sm:$0xff] (!%p165_p2)   ;;  %v1055_v10 = vld [vmem:[%s1304_s1 + $0x10] sm:$0xff] (!%p165_p2)  }
   0x8   : > { %v1048_v3 = vld [vmem:[%s1304_s1 + $0x80] sm:$0xff] (!%p165_p2)   ;;  %951 = vmatpush3.bf16.msra.mxu0 (!%p165_p2), %v1047_v2  ;;  %v1052_v7 = vld [vmem:[%s1304_s1 + $0x88] sm:$0xff] (!%p165_p2)   ;;  %v1056_v11 = vld [vmem:[%s1304_s1 + $0x90] sm:$0xff] (!%p165_p2)  }
   0x9   : > { %979 = vmatpush3.bf16.msra.mxu1 (!%p165_p2), %v1048_v3  ;;  %952 = vmatprep.subr.bf16.mxu0 (!%p165_p2), %v1049_v4  ;;  %v1057_v12 = vld [vmem:[%s1304_s1 + $0x58] sm:$0xff] (!%p165_p2)   ;;  %v1061_v16 = vld [vmem:[%s1304_s1 + $0x60] sm:$0xff] (!%p165_p2)   ;;  %v1065_v20 = vld [vmem:[%s1304_s1 + $0x68] sm:$0xff] (!%p165_p2)  }
   0xa   : > { %980 = vmatprep.subr.bf16.mxu1 (!%p165_p2), %v1050_v5  ;;  %v1058_v13 = vld [vmem:[%s1304_s1 + $0xd8] sm:$0xff] (!%p165_p2)   ;;  %v1062_v17 = vld [vmem:[%s1304_s1 + $0xe0] sm:$0xff] (!%p165_p2)   ;;  %v1066_v21 = vld [vmem:[%s1304_s1 + $0xe8] sm:$0xff] (!%p165_p2)  }
   0xb   : > { %v1059_v14 = vld [vmem:[%s1304_s1 + $0x18] sm:$0xff] (!%p165_p2)   ;;  %v1063_v18 = vld [vmem:[%s1304_s1 + $0x20] sm:$0xff] (!%p165_p2)   ;;  %v1067_v22 = vld [vmem:[%s1304_s1 + $0x28] sm:$0xff] (!%p165_p2)  }
   0xc   : > { %953 = vmatpush3.bf16.msra.mxu0 (!%p165_p2), %v1051_v6  ;;  %v1060_v15 = vld [vmem:[%s1304_s1 + $0x98] sm:$0xff] (!%p165_p2)   ;;  %v1064_v19 = vld [vmem:[%s1304_s1 + $0xa0] sm:$0xff] (!%p165_p2)   ;;  %v1068_v23 = vld [vmem:[%s1304_s1 + $0xa8] sm:$0xff] (!%p165_p2)  }
   0xd   : > { %981 = vmatpush3.bf16.msra.mxu1 %v1052_v7  ;;  %954 = vmatprep.subr.bf16.mxu0 %v1053_v8  ;;  %s1309_s23 = smov (!%p192_p3, %s886_s23), 7  ;;  %v1069_v24 = vld [vmem:[%s1304_s1 + $0x70] sm:$0xff]   ;;  %v1073_v28 = vld [vmem:[%s1304_s1 + $0x78] sm:$0xff]   ;;  %v1083_v36 = vld [vmem:[%s1304_s1 + $0x100] sm:$0xff]  }
   0xe   : > { %982 = vmatprep.subr.bf16.mxu1 %v1054_v9  ;;  %v1070_v25 = vld [vmem:[%s1304_s1 + $0xf0] sm:$0xff]   ;;  %s1036_s21 = smul.u32 20, %s1309_s23  ;;  %v1074_v29 = vld [vmem:[%s1304_s1 + $0xf8] sm:$0xff]   ;;  %v1084_v37 = vld [vmem:[%s1304_s1 + $0x108] sm:$0xff]   ;;  %s889_s7 = sshll.u32 %s1309_s23, 2 }
   0xf   : > { %v1071_v26 = vld [vmem:[%s1304_s1 + $0x30] sm:$0xff]   ;;  %v1075_v30 = vld [vmem:[%s1304_s1 + $0x38] sm:$0xff]   ;;  %v1087_v45 = vld [vmem:[%s1304_s1 + $0x120] sm:$0xff]   ;;  %s202_s10 = scalar_lea.vmem %s1307_s4, %s889_s7 }
  0x10   : > { %955 = vmatpush3.bf16.msra.mxu0 %v1055_v10  ;;  %v1072_v27 = vld [vmem:[%s1304_s1 + $0xb0] sm:$0xff]   ;;  %s1240_s6 = scalar_lea.vmem %s1303_s0, %s1036_s21  ;;  %v1076_v31 = vld [vmem:[%s1304_s1 + $0xb8] sm:$0xff]   ;;  %v1092_v46 = vld [vmem:[%s1304_s1 + $0x128] sm:$0xff]  }
  0x11   : > { %983 = vmatpush3.bf16.msra.mxu1 %v1056_v11  ;;  %956 = vmatprep.subr.bf16.mxu0 %v1057_v12  ;;  %v1077_v32 = vld [vmem:[%s1240_s6] ss:$20 sps:$4 sm:$0xff]   ;;  %v1079_v33 = vld [vmem:[%s1240_s6 + $0x4] ss:$20 sps:$4 sm:$0xff]   ;;  %v1080_v34 = vld [vmem:[%s1240_s6 + $0x8] ss:$20 sps:$4 sm:$0xff]  }
  0x12   : > { %984 = vmatprep.subr.bf16.mxu1 %v1058_v13  ;;  %v1082_v35 = vld [vmem:[%s1240_s6 + $0xc] ss:$20 sps:$4 sm:$0xff]   ;;  %623 = vmatprep.mubr.bf16.mxu0 %v1079_v33  ;;  %v1085_v38 = vld [vmem:[%s1304_s1 + $0x110] sm:$0xff]   ;;  %v1086_v41 = vld [vmem:[%s1304_s1 + $0x118] sm:$0xff]  }
  0x13   : > { %672 = vmatprep.mubr.bf16.mxu1 %v1082_v35  ;;  %v1088_v39 = vld [vmem:[%s1240_s6 + $0x2c] ss:$20 sps:$4 sm:$0xff]   ;;  %v1090_v40 = vld [vmem:[%s1240_s6 + $0x34] ss:$20 sps:$4 sm:$0xff]   ;;  %v1094_v43 = vld [vmem:[%s1240_s6 + $0x30] ss:$20 sps:$4 sm:$0xff]  }
  0x14   : > { %957 = vmatpush3.bf16.msra.mxu0 %v1059_v14  ;;  %v1093_v42 = vld [vmem:[%s1240_s6 + $0x28] ss:$20 sps:$4 sm:$0xff]   ;;  %v1097_v44 = vld [vmem:[%s1240_s6 + $0x10] ss:$20 sps:$4 sm:$0xff]   ;;  %v1098_v49 = vld [vmem:[%s1240_s6 + $0x38] ss:$20 sps:$4 sm:$0xff]  }
  0x15   : > { %985 = vmatpush3.bf16.msra.mxu1 %v1060_v15  ;;  %958 = vmatprep.subr.bf16.mxu0 %v1061_v16  ;;  %v1095_v47 = vld [vmem:[%s1304_s1 + $0x130] sm:$0xff]   ;;  %v1096_v48 = vld [vmem:[%s1304_s1 + $0x138] sm:$0xff]  }
  0x16   : > { %986 = vmatprep.subr.bf16.mxu1 %v1062_v17 }
  0x18   : > { %959 = vmatpush3.bf16.msra.mxu0 %v1063_v18 }
  0x19   : > { %987 = vmatpush3.bf16.msra.mxu1 %v1064_v19  ;;  %960 = vmatprep.subr.bf16.mxu0 %v1065_v20 }
  0x1a   : > { %988 = vmatprep.subr.bf16.mxu1 %v1066_v21 }
  0x1c   : > { %961 = vmatpush3.bf16.msra.mxu0 %v1067_v22 }
  0x1d   : > { %989 = vmatpush3.bf16.msra.mxu1 %v1068_v23  ;;  %962 = vmatprep.subr.bf16.mxu0 %v1069_v24 }
  0x1e   : > { %990 = vmatprep.subr.bf16.mxu1 %v1070_v25 }
  0x20   : > { %963 = vmatpush3.bf16.msra.mxu0 %v1071_v26 }
  0x21   : > { %991 = vmatpush3.bf16.msra.mxu1 %v1072_v27  ;;  %964 = vmatprep.subr.bf16.mxu0 %v1073_v28 }
  0x22   : > { %992 = vmatprep.subr.bf16.mxu1 %v1074_v29 }
  0x24   : > { %965 = vmatpush3.bf16.msra.mxu0 %v1075_v30 }
  0x25   : > { %993 = vmatpush3.bf16.msra.mxu1 %v1076_v31  ;;  %1016 = vmatprep.subr.bf16.mxu0 %v1083_v36 }
  0x27   : > { %624 = vmatmul.mubr.bf16.vlgmr.msra.gmra.mrb[0].mxu0 %v1077_v32 }
  0x28   : > { %673 = vmatmul.mubr.bf16.vlgmr.msra.gmra.mrb[0].mxu1 %v1080_v34  ;;  %1017 = vmatpush3.bf16.msra.mxu0 %v1083_v36 }
  0x29   : > { %1018 = vmatprep.subr.bf16.mxu0 %v1084_v37  ;;  %631 = vmatprep.mubr.bf16.mxu0 %v1088_v39 }
  0x2a   : > { %680 = vmatprep.mubr.bf16.mxu1 %v1090_v40 }
  0x2c   : > { %1019 = vmatpush3.bf16.msra.mxu0 %v1084_v37 }
  0x2d   : > { %1020 = vmatprep.subr.bf16.mxu0 %v1085_v38 }
  0x2f   : > { %632 = vmatmul.mubr.bf16.gmra.mrb[4].mxu0 %v1093_v42 }
  0x30   : > { %681 = vmatmul.mubr.bf16.gmra.mrb[4].mxu1 %v1094_v43  ;;  %1021 = vmatpush3.bf16.msra.mxu0 %v1085_v38 }
  0x31   : > { %1022 = vmatprep.subr.bf16.mxu0 %v1086_v41  ;;  %1032 = vmatprep.mubr.bf16.mxu0 %v1097_v44 }
  0x34   : > { %1023 = vmatpush3.bf16.msra.mxu0 %v1086_v41 }
  0x35   : > { %1024 = vmatprep.subr.bf16.mxu0 %v1087_v45 }
  0x38   : > { %1025 = vmatpush3.bf16.msra.mxu0 %v1087_v45 }
  0x39   : > { %1026 = vmatprep.subr.bf16.mxu0 %v1092_v46 }
  0x3c   : > { %1027 = vmatpush3.bf16.msra.mxu0 %v1092_v46 }
  0x3d   : > { %1028 = vmatprep.subr.bf16.mxu0 %v1095_v47 }
  0x40   : > { %1029 = vmatpush3.bf16.msra.mxu0 %v1095_v47 }
  0x41   : > { %1030 = vmatprep.subr.bf16.mxu0 %v1096_v48 }
  0x44   : > { %1031 = vmatpush3.bf16.msra.mxu0 %v1096_v48 }
  0x47   : > { %1033 = vmatmul.mubr.bf16.vlgmr.msra.gmra.mrb[8].mxu0 %v1098_v49 }
  0xfa   : > { %v966_v50 = vpop.f32.mrb[0].mxu0 }
  0xfb   : > { %v994_v51 = vpop.f32.mrb[0].mxu1  ;;  %v967_v52 = vpop.f32.mrb[1].mxu0 }
  0xfc   : > { %v968_v53 = vadd.f32 %v967_v52, %v966_v50  ;;  %v995_v54 = vpop.f32.mrb[1].mxu1  ;;  %v969_v55 = vpop.f32.mrb[2].mxu0 }
  0xfd   : > { %v996_v56 = vadd.f32 %v995_v54, %v994_v51  ;;  %v997_v57 = vpop.f32.mrb[2].mxu1  ;;  %v970_v58 = vpop.f32.mrb[3].mxu0 }
  0xfe   : > { %v971_v59 = vadd.f32 %v970_v58, %v969_v55  ;;  %v998_v60 = vpop.f32.mrb[3].mxu1  ;;  %v781_v58 = vlaneseq }
  0xff   : > { %v999_v61 = vadd.f32 %v998_v60, %v997_v57  ;;  %v675_v62 = vadd.f32 %v996_v56, %v968_v53  ;;  %v285_v60 = vld [vmem:[%s1305_s2] sm:$0x1] }
 0x101   : > { %v678_v63 = vadd.f32 %v999_v61, %v971_v59  ;;  %v782_v59 = vshrl.u32 %v781_v58, 7 }
 0x102   : > { %v972_v0 = vpop.f32.mrb[4].mxu0 }
 0x103   : > { %v1000_v1 = vpop.f32.mrb[4].mxu1  ;;  %v973_v2 = vpop.f32.mrb[5].mxu0  ;;  %v783_v61 = vsub.s32 0, %v782_v59 }
 0x104   : > { %v974_v3 = vadd.f32 %v973_v2, %v972_v0  ;;  %v1001_v4 = vpop.f32.mrb[5].mxu1  ;;  %v975_v5 = vpop.f32.mrb[6].mxu0  ;;  %v286_v0 = vld [vmem:[%s1306_s3] sm:$0x1] }
 0x105   : > { %v1002_v6 = vadd.f32 %v1001_v4, %v1000_v1  ;;  %v1003_v7 = vpop.f32.mrb[6].mxu1  ;;  %v976_v8 = vpop.f32.mrb[7].mxu0 }
 0x106   : > { %v977_v9 = vadd.f32 %v976_v8, %v975_v5  ;;  %v1004_v10 = vpop.f32.mrb[7].mxu1 }
 0x107   : > { %v1005_v11 = vadd.f32 %v1004_v10, %v1003_v7  ;;  %v683_v12 = vadd.f32 %v1002_v6, %v974_v3 }
 0x109   : > { %v686_v13 = vadd.f32 %v1005_v11, %v977_v9 }
 0x11a   : > { %v1034_v14 = vpop.f32.mrb[8].mxu0 }
 0x11b   : > { %v732_v15 = vadd.f32 %v1034_v14, %v683_v12  ;;  %v723_v16 = vpop.f32.mrb[9].mxu0 }
 0x11c   : > { %v724_v17 = vadd.f32 %v723_v16, %v675_v62  ;;  %v1035_v18 = vpop.f32.mrb[10].mxu0 }
 0x11d   : > { %v735_v19 = vadd.f32 %v1035_v18, %v686_v13  ;;  %v726_v20 = vpop.f32.mrb[11].mxu0  ;;  %v756_v23 = vmul.f32 %v732_v15, %v732_v15  ;;  %v742_v28 = vsel %vm738_vm0, %v732_v15, 0.0 }
 0x11e   : > { %v754_v21 = vmul.f32 %v724_v17, %v724_v17  ;;  %v727_v22 = vadd.f32 %v726_v20, %v678_v63  ;;  %v739_v24 = vsel %vm738_vm0, %v724_v17, 0.0 }
 0x11f   : > { %v757_v30 = vmul.f32 %v735_v19, %v735_v19  ;;  %v761_v34 = vsel %vm738_vm0, %v756_v23, 0.0  ;;  %v744_v35 = vsel %vm738_vm0, %v735_v19, 0.0 }
 0x120   : > { %v740_v25 = vsel %vm738_vm0, %v727_v22, 0.0  ;;  %v755_v26 = vmul.f32 %v727_v22, %v727_v22  ;;  %v758_v29 = vsel %vm738_vm0, %v754_v21, 0.0 }
 0x121   : > { %v741_v27 = vadd.f32 %v740_v25, %v739_v24  ;;  %v763_v38 = vsel %vm738_vm0, %v757_v30, 0.0 }
 0x122   : > { %v759_v31 = vsel %vm738_vm0, %v755_v26, 0.0 }
 0x123   : > { %v743_v32 = vadd.f32 %v742_v28, %v741_v27  ;;  %v760_v33 = vadd.f32 %v759_v31, %v758_v29 }
 0x125   : > { %v745_v36 = vadd.f32 %v744_v35, %v743_v32  ;;  %v762_v37 = vadd.f32 %v761_v34, %v760_v33 }
 0x127   : > { %v746_v39 = vrot.slane %v745_v36, 4  ;;  %v764_v40 = vadd.f32 %v763_v38, %v762_v37 }
 0x129   : > { %v747_v41 = vadd.f32 %v746_v39, %v745_v36  ;;  %v765_v42 = vrot.slane %v764_v40, 4 }
 0x12b   : > { %v748_v43 = vrot.slane %v747_v41, 2  ;;  %v766_v44 = vadd.f32 %v765_v42, %v764_v40 }
 0x12d   : > { %v749_v45 = vadd.f32 %v748_v43, %v747_v41  ;;  %v767_v46 = vrot.slane %v766_v44, 2 }
 0x12f   : > { %v750_v47 = vrot.slane %v749_v45, 1  ;;  %v768_v48 = vadd.f32 %v767_v46, %v766_v44 }
 0x131   : > { %v751_v49 = vadd.f32 %v750_v47, %v749_v45  ;;  %v769_v50 = vrot.slane %v768_v48, 1 }
 0x133   : > { %v753_v51 = vmul.f32 0.03125, %v751_v49  ;;  %v770_v52 = vadd.f32 %v769_v50, %v768_v48 }
 0x135   : > { %v771_v53 = vmul.f32 0.03125, %v770_v52  ;;  %v772_v54 = vmul.f32 %v753_v51, %v753_v51 }
 0x137   : > { %v773_v55 = vsub.f32 %v771_v53, %v772_v54 }
 0x139   : > { %v774_v56 = vmax.f32 %v773_v55, 0.0 }
 0x13b   : > { %v775_v57 = vadd.f32 1e-05, %v774_v56 }
 0x13d   : > { %1099 = vrsqrt.f32 %v775_v57 }
 0x147   : > { %v1100_v62 = vpop.eup %1099 }
 0x148   : > { %v777_v63 = vmul.f32 %v1100_v62, %v285_v60 }
 0x14a   : > { %v778_v1 = vmul.f32 %v777_v63, %v753_v51  ;;  %v784_v2 = vrot.slane %v777_v63, %v783_v61 }
 0x14c   : > { %v779_v3 = vsub.f32 %v286_v0, %v778_v1  ;;  %v786_v4 = vmul.f32 %v784_v2, %v724_v17  ;;  %v787_v5 = vmul.f32 %v784_v2, %v727_v22  ;;  %v788_v6 = vmul.f32 %v784_v2, %v732_v15 }
 0x14d   : > { %v789_v7 = vmul.f32 %v784_v2, %v735_v19 }
 0x14e   : > { %v794_v8 = vrot.slane %v779_v3, %v783_v61 }
 0x150   : > { %v796_v9 = vadd.f32 %v794_v8, %v786_v4  ;;  %v797_v10 = vadd.f32 %v794_v8, %v787_v5  ;;  %v798_v11 = vadd.f32 %v794_v8, %v788_v6  ;;  %v799_v12 = vadd.f32 %v794_v8, %v789_v7 }
 0x152   : > { %v800_v13 = vmax.f32 %v796_v9, 0.0  ;;  %v801_v14 = vmax.f32 %v797_v10, 0.0  ;;  %v802_v16 = vmax.f32 %v798_v11, 0.0  ;;  %v803_v18 = vmax.f32 %v799_v12, 0.0 }
 0x154   : > { %v946_v20 = vpack.c.bf16 %v800_v13, %v800_v13  ;;  %v947_v17 = vpack.c.bf16 %v801_v14, %v801_v14  ;;  %v948_v21 = vpack.c.bf16 %v802_v16, %v802_v16  ;;  %v949_v15 = vpack.c.bf16 %v803_v18, %v803_v18 }
 0x156   : > { %821 = vst.msk [vmem:[%s202_s10] sm:$0xf] %vm820_vm1, %v946_v20  ;;  %822 = vst.msk [vmem:[%s202_s10 + $0x4] sm:$0xf] %vm820_vm1, %v947_v17 }
 0x157   : > { %823 = vst.msk [vmem:[%s202_s10 + $0x8] sm:$0xf] %vm820_vm1, %v948_v21  ;;  %824 = vst.msk [vmem:[%s202_s10 + $0xc] sm:$0xf] %vm820_vm1, %v949_v15 }
 0x158 PF: > { %s14_s15 = sadd.s32 1, %s1107_s15  }
 0x159   : > { %p11_p4 = scmp.ge.s32.totalorder %s14_s15, 4  }
 0x15b   :  { %13 = sbr.rel (!%p11_p4) target bundleno = 1 (0x1), region = 66 }

// kernel: forward.23
= control target key start
LH: loop header
LB: loop body
LE: loop exit
PB: predicated region body
PF: predicated region fallthrough
CT: control target
= control target key end

     0   :  { %v959_v39 = vmov 0.0   ;;  %vm960_vm0 = vmmov 0   ;;  %s1276_s1 = inlined_call_operand.vmem [shape: bf16[640,128], index: 1, kind: input, shape index: {}]   ;;  %s1277_s0 = inlined_call_operand.vmem [shape: bf16[16,640], index: 0, kind: input, shape index: {}]   ;;  %s1278_s2 = inlined_call_operand.vmem [shape: f32[1,128], index: 2, kind: input, shape index: {}]   ;;  %s1279_s3 = inlined_call_operand.vmem [shape: f32[1,128], index: 3, kind: input, shape index: {}]   ;;  %s1280_s4 = inlined_call_operand.vmem [shape: bf16[16,128], index: 4, kind: output, shape index: {}]  }
   0x1   :  { %v989_v0 = vld [vmem:[%s1276_s1 + $0x40] sm:$0xff]   ;;  %v1012_v4 = vld [vmem:[%s1276_s1 + $0x48] sm:$0xff]   ;;  %v1036_v8 = vld [vmem:[%s1276_s1 + $0x50] sm:$0xff]  }
   0x2   :  { %v994_v1 = vld [vmem:[%s1276_s1 + $0xc0] sm:$0xff]   ;;  %757 = vmatprep.subr.bf16.mxu0 %v989_v0  ;;  %v1018_v5 = vld [vmem:[%s1276_s1 + $0xc8] sm:$0xff]   ;;  %v1042_v9 = vld [vmem:[%s1276_s1 + $0xd0] sm:$0xff]  }
   0x3   :  { %v1000_v2 = vld [vmem:[%s1276_s1] sm:$0xff]   ;;  %779 = vmatprep.subr.bf16.mxu1 %v994_v1  ;;  %v1024_v6 = vld [vmem:[%s1276_s1 + $0x8] sm:$0xff]   ;;  %v1048_v10 = vld [vmem:[%s1276_s1 + $0x10] sm:$0xff]  }
   0x4   :  { %v1006_v3 = vld [vmem:[%s1276_s1 + $0x80] sm:$0xff]   ;;  %758 = vmatpush3.bf16.msra.mxu0 %v1000_v2  ;;  %v1030_v7 = vld [vmem:[%s1276_s1 + $0x88] sm:$0xff]   ;;  %v1054_v11 = vld [vmem:[%s1276_s1 + $0x90] sm:$0xff]  }
   0x5   :  { %780 = vmatpush3.bf16.msra.mxu1 %v1006_v3  ;;  %759 = vmatprep.subr.bf16.mxu0 %v1012_v4  ;;  %v1060_v12 = vld [vmem:[%s1276_s1 + $0x58] sm:$0xff]   ;;  %v1084_v16 = vld [vmem:[%s1276_s1 + $0x60] sm:$0xff]   ;;  %v1108_v20 = vld [vmem:[%s1276_s1 + $0x68] sm:$0xff]  }
   0x6   :  { %781 = vmatprep.subr.bf16.mxu1 %v1018_v5  ;;  %v1066_v13 = vld [vmem:[%s1276_s1 + $0xd8] sm:$0xff]   ;;  %v1090_v17 = vld [vmem:[%s1276_s1 + $0xe0] sm:$0xff]   ;;  %v1114_v21 = vld [vmem:[%s1276_s1 + $0xe8] sm:$0xff]  }
   0x7   :  { %v1072_v14 = vld [vmem:[%s1276_s1 + $0x18] sm:$0xff]   ;;  %v1096_v18 = vld [vmem:[%s1276_s1 + $0x20] sm:$0xff]   ;;  %v1120_v22 = vld [vmem:[%s1276_s1 + $0x28] sm:$0xff]  }
   0x8   :  { %760 = vmatpush3.bf16.msra.mxu0 %v1024_v6  ;;  %v1078_v15 = vld [vmem:[%s1276_s1 + $0x98] sm:$0xff]   ;;  %v1102_v19 = vld [vmem:[%s1276_s1 + $0xa0] sm:$0xff]   ;;  %v1126_v23 = vld [vmem:[%s1276_s1 + $0xa8] sm:$0xff]  }
   0x9   :  { %782 = vmatpush3.bf16.msra.mxu1 %v1030_v7  ;;  %761 = vmatprep.subr.bf16.mxu0 %v1036_v8  ;;  %v1132_v24 = vld [vmem:[%s1276_s1 + $0x70] sm:$0xff]   ;;  %v933_v28 = vld [vmem:[%s1276_s1 + $0x78] sm:$0xff]   ;;  %v100_v32 = vld [vmem:[%s1277_s0] sm:$0xff] }
   0xa   :  { %783 = vmatprep.subr.bf16.mxu1 %v1042_v9  ;;  %v1138_v25 = vld [vmem:[%s1276_s1 + $0xf0] sm:$0xff]   ;;  %v1160_v29 = vld [vmem:[%s1276_s1 + $0xf8] sm:$0xff]   ;;  %v101_v33 = vld [vmem:[%s1277_s0 + $0x8] sm:$0xff]  ;;  %v707_v34 = vcombine.low %v100_v32, %v100_v32  ;;  %v708_v35 = vcombine.high %v100_v32, %v100_v32 }
   0xb   :  { %v1144_v26 = vld [vmem:[%s1276_s1 + $0x30] sm:$0xff]   ;;  %v935_v30 = vld [vmem:[%s1276_s1 + $0x38] sm:$0xff]   ;;  %v709_v36 = vcombine.low %v101_v33, %v101_v33  ;;  %v710_v37 = vcombine.high %v101_v33, %v101_v33  ;;  %v941_v38 = vld [vmem:[%s1276_s1 + $0x100] sm:$0xff]  }
   0xc   :  { %762 = vmatpush3.bf16.msra.mxu0 %v1048_v10  ;;  %v1150_v27 = vld [vmem:[%s1276_s1 + $0xb0] sm:$0xff]   ;;  %v1169_v31 = vld [vmem:[%s1276_s1 + $0xb8] sm:$0xff]   ;;  %393 = vmatprep.mubr.bf16.mxu0 %v708_v35  ;;  %v942_v40 = vld [vmem:[%s1276_s1 + $0x108] sm:$0xff]  }
   0xd   :  { %784 = vmatpush3.bf16.msra.mxu1 %v1054_v11  ;;  %763 = vmatprep.subr.bf16.mxu0 %v1060_v12  ;;  %v943_v41 = vld [vmem:[%s1276_s1 + $0x110] sm:$0xff]   ;;  %v944_v44 = vld [vmem:[%s1276_s1 + $0x118] sm:$0xff]   ;;  %v945_v45 = vld [vmem:[%s1276_s1 + $0x120] sm:$0xff]  }
   0xe   :  { %785 = vmatprep.subr.bf16.mxu1 %v1066_v13  ;;  %433 = vmatprep.mubr.bf16.mxu1 %v710_v37  ;;  %v522_v42 = vld [vmem:[%s1277_s0 + $0x14] sm:$0xff]  ;;  %v946_v46 = vld [vmem:[%s1276_s1 + $0x128] sm:$0xff]   ;;  %v949_v49 = vld [vmem:[%s1277_s0 + $0x10] ss:$0 sps:$4 sm:$0xff]  }
   0xf   :  { %v753_v43 = vcombine.high %v522_v42, %v522_v42  ;;  %v947_v47 = vld [vmem:[%s1276_s1 + $0x130] sm:$0xff]   ;;  %v948_v48 = vld [vmem:[%s1276_s1 + $0x138] sm:$0xff]   ;;  %v752_v50 = vcombine.low %v522_v42, %v522_v42  ;;  %v954_v54 = vld [vmem:[%s1277_s0 + $0x24] ss:$0 sps:$4 sm:$0xff]  }
  0x10   :  { %764 = vmatpush3.bf16.msra.mxu0 %v1072_v14  ;;  %v523_v51 = vld [vmem:[%s1277_s0 + $0x1c] sm:$0xff] }
  0x11   :  { %786 = vmatpush3.bf16.msra.mxu1 %v1078_v15  ;;  %765 = vmatprep.subr.bf16.mxu0 %v1084_v16  ;;  %v755_v52 = vcombine.high %v523_v51, %v523_v51  ;;  %v754_v53 = vcombine.low %v523_v51, %v523_v51  ;;  %v98_v35 = vld [vmem:[%s1278_s2] sm:$0x1] }
  0x12   :  { %787 = vmatprep.subr.bf16.mxu1 %v1090_v17 }
  0x14   :  { %766 = vmatpush3.bf16.msra.mxu0 %v1096_v18 }
  0x15   :  { %788 = vmatpush3.bf16.msra.mxu1 %v1102_v19  ;;  %767 = vmatprep.subr.bf16.mxu0 %v1108_v20 }
  0x16   :  { %789 = vmatprep.subr.bf16.mxu1 %v1114_v21 }
  0x18   :  { %768 = vmatpush3.bf16.msra.mxu0 %v1120_v22 }
  0x19   :  { %790 = vmatpush3.bf16.msra.mxu1 %v1126_v23  ;;  %769 = vmatprep.subr.bf16.mxu0 %v1132_v24 }
  0x1a   :  { %791 = vmatprep.subr.bf16.mxu1 %v1138_v25 }
  0x1c   :  { %770 = vmatpush3.bf16.msra.mxu0 %v1144_v26 }
  0x1d   :  { %792 = vmatpush3.bf16.msra.mxu1 %v1150_v27  ;;  %771 = vmatprep.subr.bf16.mxu0 %v933_v28 }
  0x1e   :  { %793 = vmatprep.subr.bf16.mxu1 %v1160_v29 }
  0x20   :  { %772 = vmatpush3.bf16.msra.mxu0 %v935_v30 }
  0x21   :  { %794 = vmatpush3.bf16.msra.mxu1 %v1169_v31  ;;  %863 = vmatprep.subr.bf16.mxu0 %v959_v39 }
  0x22   :  { %810 = vmatprep.subr.bf16.mxu1 %v989_v0 }
  0x23   :  { %394 = vmatmul.mubr.bf16.vlgmr.msra.gmra.mrb[0].mxu0 %v707_v34 }
  0x24   :  { %434 = vmatmul.mubr.bf16.vlgmr.msra.gmra.mrb[0].mxu1 %v709_v36  ;;  %864 = vmatpush3.bf16.msra.mxu0 %v941_v38 }
  0x25   :  { %811 = vmatpush3.bf16.msra.mxu1 %v1000_v2  ;;  %865 = vmatprep.subr.bf16.mxu0 %v959_v39 }
  0x26   :  { %812 = vmatprep.subr.bf16.mxu1 %v1012_v4  ;;  %879 = vmatprep.mubr.msk.bf16.mxu0 %vm960_vm0, %v959_v39 }
  0x27   :  { %575 = vmatprep.mubr.bf16.mxu1 %v753_v43 }
  0x28   :  { %866 = vmatpush3.bf16.msra.mxu0 %v942_v40 }
  0x29   :  { %813 = vmatpush3.bf16.msra.mxu1 %v1024_v6  ;;  %867 = vmatprep.subr.bf16.mxu0 %v959_v39 }
  0x2a   :  { %814 = vmatprep.subr.bf16.mxu1 %v1036_v8 }
  0x2c   :  { %868 = vmatpush3.bf16.msra.mxu0 %v943_v41 }
  0x2d   :  { %815 = vmatpush3.bf16.msra.mxu1 %v1048_v10  ;;  %869 = vmatprep.subr.bf16.mxu0 %v959_v39 }
  0x2e   :  { %816 = vmatprep.subr.bf16.mxu1 %v1060_v12 }
  0x30   :  { %870 = vmatpush3.bf16.msra.mxu0 %v944_v44 }
  0x31   :  { %817 = vmatpush3.bf16.msra.mxu1 %v1072_v14  ;;  %871 = vmatprep.subr.bf16.mxu0 %v959_v39 }
  0x32   :  { %818 = vmatprep.subr.bf16.mxu1 %v1084_v16 }
  0x34   :  { %872 = vmatpush3.bf16.msra.mxu0 %v945_v45 }
  0x35   :  { %819 = vmatpush3.bf16.msra.mxu1 %v1096_v18  ;;  %873 = vmatprep.subr.bf16.mxu0 %v959_v39 }
  0x36   :  { %820 = vmatprep.subr.bf16.mxu1 %v1108_v20 }
  0x38   :  { %874 = vmatpush3.bf16.msra.mxu0 %v946_v46 }
  0x39   :  { %821 = vmatpush3.bf16.msra.mxu1 %v1120_v22  ;;  %875 = vmatprep.subr.bf16.mxu0 %v959_v39 }
  0x3a   :  { %822 = vmatprep.subr.bf16.mxu1 %v1132_v24 }
  0x3c   :  { %876 = vmatpush3.bf16.msra.mxu0 %v947_v47 }
  0x3d   :  { %823 = vmatpush3.bf16.msra.mxu1 %v1144_v26  ;;  %877 = vmatprep.subr.bf16.mxu0 %v959_v39 }
  0x3e   :  { %824 = vmatprep.subr.bf16.mxu1 %v933_v28 }
  0x40   :  { %878 = vmatpush3.bf16.msra.mxu0 %v948_v48 }
  0x41   :  { %825 = vmatpush3.bf16.msra.mxu1 %v935_v30  ;;  %832 = vmatprep.subr.bf16.mxu0 %v994_v1 }
  0x42   :  { %883 = vmatprep.subr.bf16.mxu1 %v959_v39 }
  0x43   :  { %880 = vmatmul.mubr.bf16.vlgmr.msra.gmra.mrb[4].mxu0 %v949_v49 }
  0x44   :  { %576 = vmatmul.mubr.bf16.vlgmr.msra.gmra.mrb[4].mxu1 %v752_v50  ;;  %833 = vmatpush3.bf16.msra.mxu0 %v1006_v3 }
  0x45   :  { %884 = vmatpush3.bf16.msra.mxu1 %v941_v38  ;;  %834 = vmatprep.subr.bf16.mxu0 %v1018_v5 }
  0x46   :  { %885 = vmatprep.subr.bf16.mxu1 %v959_v39  ;;  %615 = vmatprep.mubr.bf16.mxu0 %v755_v52 }
  0x47   :  { %899 = vmatprep.mubr.msk.bf16.mxu1 %vm960_vm0, %v959_v39 }
  0x48   :  { %835 = vmatpush3.bf16.msra.mxu0 %v1030_v7 }
  0x49   :  { %886 = vmatpush3.bf16.msra.mxu1 %v942_v40  ;;  %836 = vmatprep.subr.bf16.mxu0 %v1042_v9 }
  0x4a   :  { %887 = vmatprep.subr.bf16.mxu1 %v959_v39 }
  0x4c   :  { %837 = vmatpush3.bf16.msra.mxu0 %v1054_v11 }
  0x4d   :  { %888 = vmatpush3.bf16.msra.mxu1 %v943_v41  ;;  %838 = vmatprep.subr.bf16.mxu0 %v1066_v13 }
  0x4e   :  { %889 = vmatprep.subr.bf16.mxu1 %v959_v39 }
  0x50   :  { %839 = vmatpush3.bf16.msra.mxu0 %v1078_v15 }
  0x51   :  { %890 = vmatpush3.bf16.msra.mxu1 %v944_v44  ;;  %840 = vmatprep.subr.bf16.mxu0 %v1090_v17 }
  0x52   :  { %891 = vmatprep.subr.bf16.mxu1 %v959_v39 }
  0x54   :  { %841 = vmatpush3.bf16.msra.mxu0 %v1102_v19 }
  0x55   :  { %892 = vmatpush3.bf16.msra.mxu1 %v945_v45  ;;  %842 = vmatprep.subr.bf16.mxu0 %v1114_v21 }
  0x56   :  { %893 = vmatprep.subr.bf16.mxu1 %v959_v39 }
  0x58   :  { %843 = vmatpush3.bf16.msra.mxu0 %v1126_v23 }
  0x59   :  { %894 = vmatpush3.bf16.msra.mxu1 %v946_v46  ;;  %844 = vmatprep.subr.bf16.mxu0 %v1138_v25 }
  0x5a   :  { %895 = vmatprep.subr.bf16.mxu1 %v959_v39 }
  0x5c   :  { %845 = vmatpush3.bf16.msra.mxu0 %v1150_v27 }
  0x5d   :  { %896 = vmatpush3.bf16.msra.mxu1 %v947_v47  ;;  %846 = vmatprep.subr.bf16.mxu0 %v1160_v29  ;;  %v99_v47 = vld [vmem:[%s1279_s3] sm:$0x1] }
  0x5e   :  { %897 = vmatprep.subr.bf16.mxu1 %v959_v39 }
  0x60   :  { %847 = vmatpush3.bf16.msra.mxu0 %v1169_v31  ;;  %v506_v31 = vlaneseq }
  0x61   :  { %898 = vmatpush3.bf16.msra.mxu1 %v948_v48 }
  0x62   :  { %v507_v32 = vshrl.u32 %v506_v31, 7 }
  0x63   :  { %616 = vmatmul.mubr.bf16.vlgmr.msra.gmra.mrb[8].mxu0 %v754_v53 }
  0x64   :  { %900 = vmatmul.mubr.bf16.vlgmr.msra.gmra.mrb[8].mxu1 %v954_v54  ;;  %v508_v38 = vsub.s32 0, %v507_v32 }
  0xf6   :  { %v773_v55 = vpop.f32.mrb[0].mxu0 }
  0xf7   :  { %v795_v56 = vpop.f32.mrb[0].mxu1  ;;  %v774_v57 = vpop.f32.mrb[1].mxu0 }
  0xf8   :  { %v796_v58 = vpop.f32.mrb[1].mxu1  ;;  %v775_v59 = vadd.f32 %v774_v57, %v773_v55  ;;  %v776_v61 = vpop.f32.mrb[2].mxu0 }
  0xf9   :  { %v797_v60 = vadd.f32 %v796_v58, %v795_v56  ;;  %v798_v62 = vpop.f32.mrb[2].mxu1  ;;  %v777_v63 = vpop.f32.mrb[3].mxu0 }
  0xfa   :  { %v799_v0 = vpop.f32.mrb[3].mxu1 }
  0xfb   :  { %v436_v1 = vadd.f32 %v797_v60, %v775_v59 }
 0x116   :  { %v475_v2 = vpop.f32.mrb[4].mxu0 }
 0x117   :  { %v826_v3 = vpop.f32.mrb[4].mxu1  ;;  %v476_v4 = vadd.f32 %v475_v2, %v436_v1  ;;  %v881_v5 = vpop.f32.mrb[5].mxu0 }
 0x118   :  { %v827_v6 = vpop.f32.mrb[5].mxu1  ;;  %v478_v7 = vpop.f32.mrb[6].mxu0 }
 0x119   :  { %v828_v8 = vadd.f32 %v827_v6, %v826_v3  ;;  %v829_v9 = vpop.f32.mrb[6].mxu1  ;;  %v481_v10 = vrot.slane %v476_v4, 4  ;;  %v489_v11 = vmul.f32 %v476_v4, %v476_v4  ;;  %v882_v12 = vpop.f32.mrb[7].mxu0 }
 0x11a   :  { %v830_v13 = vpop.f32.mrb[7].mxu1 }
 0x11b   :  { %v482_v14 = vadd.f32 %v481_v10, %v476_v4  ;;  %v490_v15 = vrot.slane %v489_v11, 4 }
 0x11d   :  { %v483_v16 = vrot.slane %v482_v14, 2  ;;  %v491_v17 = vadd.f32 %v490_v15, %v489_v11 }
 0x11f   :  { %v484_v18 = vadd.f32 %v483_v16, %v482_v14  ;;  %v492_v19 = vrot.slane %v491_v17, 2 }
 0x121   :  { %v485_v20 = vrot.slane %v484_v18, 1  ;;  %v493_v21 = vadd.f32 %v492_v19, %v491_v17 }
 0x123   :  { %v486_v22 = vadd.f32 %v485_v20, %v484_v18  ;;  %v494_v23 = vrot.slane %v493_v21, 1 }
 0x125   :  { %v488_v24 = vmul.f32 0.125, %v486_v22  ;;  %v495_v25 = vadd.f32 %v494_v23, %v493_v21 }
 0x127   :  { %v496_v26 = vmul.f32 0.125, %v495_v25  ;;  %v497_v27 = vmul.f32 %v488_v24, %v488_v24 }
 0x129   :  { %v498_v28 = vsub.f32 %v496_v26, %v497_v27 }
 0x12b   :  { %v499_v29 = vmax.f32 %v498_v28, 0.0 }
 0x12d   :  { %v500_v30 = vadd.f32 1e-05, %v499_v29 }
 0x12f   :  { %955 = vrsqrt.f32 %v500_v30 }
 0x136   :  { %v848_v33 = vpop.f32.mrb[8].mxu0 }
 0x137   :  { %v657_v34 = vpop.f32.mrb[8].mxu1  ;;  %v849_v36 = vpop.f32.mrb[9].mxu0 }
 0x138   :  { %v901_v37 = vpop.f32.mrb[9].mxu1  ;;  %v850_v39 = vadd.f32 %v849_v36, %v848_v33  ;;  %v851_v40 = vpop.f32.mrb[10].mxu0 }
 0x139   :  { %v660_v41 = vpop.f32.mrb[10].mxu1  ;;  %v956_v42 = vpop.eup %955 }
 0x13a   :  { %v852_v43 = vpop.f32.mrb[11].mxu0  ;;  %v902_v44 = vpop.f32.mrb[11].mxu1  ;;  %v502_v45 = vmul.f32 %v956_v42, %v98_v35  ;;  %v618_v46 = vadd.f32 %v850_v39, %v828_v8 }
 0x13c   :  { %v503_v48 = vmul.f32 %v502_v45, %v488_v24  ;;  %v509_v49 = vrot.slane %v502_v45, %v508_v38  ;;  %v658_v50 = vadd.f32 %v657_v34, %v618_v46 }
 0x13e   :  { %v504_v51 = vsub.f32 %v99_v47, %v503_v48  ;;  %v663_v52 = vrot.slane %v658_v50, 4  ;;  %v670_v53 = vmul.f32 %v658_v50, %v658_v50  ;;  %v511_v54 = vmul.f32 %v509_v49, %v476_v4 }
 0x140   :  { %v516_v55 = vrot.slane %v504_v51, %v508_v38  ;;  %v664_v56 = vadd.f32 %v663_v52, %v658_v50  ;;  %v671_v57 = vrot.slane %v670_v53, 4 }
 0x142   :  { %v518_v58 = vadd.f32 %v516_v55, %v511_v54  ;;  %v665_v59 = vrot.slane %v664_v56, 2  ;;  %v672_v60 = vadd.f32 %v671_v57, %v670_v53 }
 0x144   :  { %v519_v61 = vmax.f32 %v518_v58, 0.0  ;;  %v666_v62 = vadd.f32 %v665_v59, %v664_v56  ;;  %v673_v63 = vrot.slane %v672_v60, 2 }
 0x146   :  { %v520_v0 = vpack.c.bf16 %v519_v61, %v519_v61  ;;  %v667_v1 = vrot.slane %v666_v62, 1  ;;  %v674_v2 = vadd.f32 %v673_v63, %v672_v60 }
 0x148   :  { %521 = vst [vmem:[%s1280_s4] sm:$0xf] %v520_v0  ;;  %v668_v3 = vadd.f32 %v667_v1, %v666_v62  ;;  %v675_v5 = vrot.slane %v674_v2, 1 }
 0x14a   :  { %v669_v6 = vmul.f32 0.125, %v668_v3  ;;  %v676_v4 = vadd.f32 %v675_v5, %v674_v2 }
 0x14c   :  { %v677_v7 = vmul.f32 0.125, %v676_v4  ;;  %v678_v8 = vmul.f32 %v669_v6, %v669_v6 }
 0x14e   :  { %v679_v9 = vsub.f32 %v677_v7, %v678_v8 }
 0x150   :  { %v680_v10 = vmax.f32 %v679_v9, 0.0 }
 0x152   :  { %v681_v11 = vadd.f32 1e-05, %v680_v10 }
 0x154   :  { %957 = vrsqrt.f32 %v681_v11 }
 0x15e   :  { %v958_v12 = vpop.eup %957 }
 0x15f   :  { %v683_v13 = vmul.f32 %v958_v12, %v98_v35 }
 0x161   :  { %v684_v14 = vmul.f32 %v683_v13, %v669_v6  ;;  %v690_v15 = vrot.slane %v683_v13, %v508_v38 }
 0x163   :  { %v685_v16 = vsub.f32 %v99_v47, %v684_v14  ;;  %v692_v17 = vmul.f32 %v690_v15, %v658_v50 }
 0x165   :  { %v697_v18 = vrot.slane %v685_v16, %v508_v38 }
 0x167   :  { %v699_v19 = vadd.f32 %v697_v18, %v692_v17 }
 0x169   :  { %v700_v20 = vmax.f32 %v699_v19, 0.0 }
 0x16b   :  { %v701_v21 = vpack.c.bf16 %v700_v20, %v700_v20 }
 0x16d   :  { %702 = vst [vmem:[%s1280_s4 + $0x4] sm:$0xf] %v701_v21 }

// kernel: forward.24
= control target key start
LH: loop header
LB: loop body
LE: loop exit
PB: predicated region body
PF: predicated region fallthrough
CT: control target
= control target key end

     0   :  { %v329_v0 = vmov 0.0   ;;  %vm330_vm0 = vmmov 0   ;;  %v150_v57 = vlaneseq  ;;  %s412_s1 = inlined_call_operand.vmem [shape: bf16[128,128], index: 1, kind: input, shape index: {}]   ;;  %s413_s0 = inlined_call_operand.vmem [shape: bf16[16,128], index: 0, kind: input, shape index: {}]   ;;  %s414_s2 = inlined_call_operand.vmem [shape: f32[1,128], index: 2, kind: input, shape index: {}]   ;;  %s415_s3 = inlined_call_operand.vmem [shape: f32[1,128], index: 3, kind: input, shape index: {}]   ;;  %s416_s4 = inlined_call_operand.vmem [shape: bf16[16,128], index: 4, kind: output, shape index: {}]  }
   0x1   :  { %275 = vmatprep.subr.bf16.mxu0 %v329_v0  ;;  %295 = vmatprep.subr.bf16.mxu1 %v329_v0  ;;  %v317_v1 = vld [vmem:[%s412_s1] sm:$0xff]   ;;  %v318_v2 = vld [vmem:[%s412_s1 + $0x8] sm:$0xff]   ;;  %v319_v3 = vld [vmem:[%s412_s1 + $0x10] sm:$0xff]  }
   0x2   :  { %291 = vmatprep.mubr.msk.bf16.mxu0 %vm330_vm0, %v329_v0  ;;  %311 = vmatprep.mubr.msk.bf16.mxu1 %vm330_vm0, %v329_v0  ;;  %v320_v4 = vld [vmem:[%s412_s1 + $0x18] sm:$0xff]   ;;  %v321_v5 = vld [vmem:[%s412_s1 + $0x20] sm:$0xff]   ;;  %v322_v6 = vld [vmem:[%s412_s1 + $0x28] sm:$0xff]   ;;  %v151_v58 = vshrl.u32 %v150_v57, 7 }
   0x3   :  { %276 = vmatpush3.bf16.msra.mxu0 %v317_v1  ;;  %296 = vmatpush3.bf16.msra.mxu1 %v317_v1  ;;  %v323_v7 = vld [vmem:[%s412_s1 + $0x30] sm:$0xff]   ;;  %v324_v8 = vld [vmem:[%s412_s1 + $0x38] sm:$0xff]   ;;  %v36_v9 = vld [vmem:[%s413_s0] sm:$0xf] }
   0x4   :  { %277 = vmatprep.subr.bf16.mxu0 %v329_v0  ;;  %297 = vmatprep.subr.bf16.mxu1 %v329_v0  ;;  %v165_v10 = vld [vmem:[%s413_s0 + $0x4] sm:$0xf]  ;;  %v34_v59 = vld [vmem:[%s414_s2] sm:$0x1]  ;;  %v152_v60 = vsub.s32 0, %v151_v58 }
   0x7   :  { %278 = vmatpush3.bf16.msra.mxu0 %v318_v2  ;;  %298 = vmatpush3.bf16.msra.mxu1 %v318_v2 }
   0x8   :  { %279 = vmatprep.subr.bf16.mxu0 %v329_v0  ;;  %299 = vmatprep.subr.bf16.mxu1 %v329_v0 }
   0xb   :  { %280 = vmatpush3.bf16.msra.mxu0 %v319_v3  ;;  %300 = vmatpush3.bf16.msra.mxu1 %v319_v3 }
   0xc   :  { %281 = vmatprep.subr.bf16.mxu0 %v329_v0  ;;  %301 = vmatprep.subr.bf16.mxu1 %v329_v0 }
   0xf   :  { %282 = vmatpush3.bf16.msra.mxu0 %v320_v4  ;;  %302 = vmatpush3.bf16.msra.mxu1 %v320_v4 }
  0x10   :  { %283 = vmatprep.subr.bf16.mxu0 %v329_v0  ;;  %303 = vmatprep.subr.bf16.mxu1 %v329_v0 }
  0x13   :  { %284 = vmatpush3.bf16.msra.mxu0 %v321_v5  ;;  %304 = vmatpush3.bf16.msra.mxu1 %v321_v5 }
  0x14   :  { %285 = vmatprep.subr.bf16.mxu0 %v329_v0  ;;  %305 = vmatprep.subr.bf16.mxu1 %v329_v0 }
  0x17   :  { %286 = vmatpush3.bf16.msra.mxu0 %v322_v6  ;;  %306 = vmatpush3.bf16.msra.mxu1 %v322_v6 }
  0x18   :  { %287 = vmatprep.subr.bf16.mxu0 %v329_v0  ;;  %307 = vmatprep.subr.bf16.mxu1 %v329_v0 }
  0x1b   :  { %288 = vmatpush3.bf16.msra.mxu0 %v323_v7  ;;  %308 = vmatpush3.bf16.msra.mxu1 %v323_v7 }
  0x1c   :  { %289 = vmatprep.subr.bf16.mxu0 %v329_v0  ;;  %309 = vmatprep.subr.bf16.mxu1 %v329_v0  ;;  %v35_v0 = vld [vmem:[%s415_s3] sm:$0x1] }
  0x1f   :  { %290 = vmatpush3.bf16.msra.mxu0 %v324_v8  ;;  %310 = vmatpush3.bf16.msra.mxu1 %v324_v8 }
  0x22   :  { %292 = vmatmul.mubr.bf16.vlgmr.msra.gmra.mrb[0].mxu0 %v36_v9  ;;  %312 = vmatmul.mubr.bf16.vlgmr.msra.gmra.mrb[0].mxu1 %v165_v10 }
  0xf5   :  { %v386_v11 = vpop.f32.mrb[0].mxu0  ;;  %v388_v12 = vpop.f32.mrb[0].mxu1 }
  0xf6   :  { %v125_v13 = vrot.slane %v386_v11, 4  ;;  %v133_v14 = vmul.f32 %v386_v11, %v386_v11  ;;  %v206_v15 = vrot.slane %v388_v12, 4  ;;  %v213_v16 = vmul.f32 %v388_v12, %v388_v12  ;;  %v293_v17 = vpop.f32.mrb[1].mxu0  ;;  %v313_v18 = vpop.f32.mrb[1].mxu1 }
  0xf7   :  { %v122_v19 = vpop.f32.mrb[2].mxu0  ;;  %v203_v20 = vpop.f32.mrb[2].mxu1 }
  0xf8   :  { %v126_v21 = vadd.f32 %v125_v13, %v386_v11  ;;  %v134_v22 = vrot.slane %v133_v14, 4  ;;  %v207_v23 = vadd.f32 %v206_v15, %v388_v12  ;;  %v214_v24 = vrot.slane %v213_v16, 4  ;;  %v294_v25 = vpop.f32.mrb[3].mxu0  ;;  %v314_v26 = vpop.f32.mrb[3].mxu1 }
  0xfa   :  { %v127_v27 = vrot.slane %v126_v21, 2  ;;  %v135_v28 = vadd.f32 %v134_v22, %v133_v14  ;;  %v208_v29 = vrot.slane %v207_v23, 2  ;;  %v215_v30 = vadd.f32 %v214_v24, %v213_v16 }
  0xfc   :  { %v128_v31 = vadd.f32 %v127_v27, %v126_v21  ;;  %v136_v32 = vrot.slane %v135_v28, 2  ;;  %v209_v33 = vadd.f32 %v208_v29, %v207_v23  ;;  %v216_v34 = vrot.slane %v215_v30, 2 }
  0xfe   :  { %v129_v35 = vrot.slane %v128_v31, 1  ;;  %v137_v36 = vadd.f32 %v136_v32, %v135_v28  ;;  %v210_v37 = vrot.slane %v209_v33, 1  ;;  %v217_v38 = vadd.f32 %v216_v34, %v215_v30 }
 0x100   :  { %v130_v39 = vadd.f32 %v129_v35, %v128_v31  ;;  %v138_v40 = vrot.slane %v137_v36, 1  ;;  %v211_v41 = vadd.f32 %v210_v37, %v209_v33  ;;  %v218_v42 = vrot.slane %v217_v38, 1 }
 0x102   :  { %v132_v43 = vmul.f32 0.125, %v130_v39  ;;  %v139_v44 = vadd.f32 %v138_v40, %v137_v36  ;;  %v212_v45 = vmul.f32 0.125, %v211_v41  ;;  %v219_v46 = vadd.f32 %v218_v42, %v217_v38 }
 0x104   :  { %v140_v47 = vmul.f32 0.125, %v139_v44  ;;  %v141_v48 = vmul.f32 %v132_v43, %v132_v43  ;;  %v220_v49 = vmul.f32 0.125, %v219_v46  ;;  %v221_v50 = vmul.f32 %v212_v45, %v212_v45 }
 0x106   :  { %v142_v51 = vsub.f32 %v140_v47, %v141_v48  ;;  %v222_v52 = vsub.f32 %v220_v49, %v221_v50 }
 0x108   :  { %v143_v53 = vmax.f32 %v142_v51, 0.0  ;;  %v223_v54 = vmax.f32 %v222_v52, 0.0 }
 0x10a   :  { %v144_v55 = vadd.f32 1e-05, %v143_v53  ;;  %v224_v56 = vadd.f32 1e-05, %v223_v54 }
 0x10c   :  { %325 = vrsqrt.f32 %v144_v55 }
 0x10d   :  { %327 = vrsqrt.f32 %v224_v56 }
 0x116   :  { %v326_v61 = vpop.eup %325 }
 0x117   :  { %v328_v62 = vpop.eup %327  ;;  %v146_v63 = vmul.f32 %v326_v61, %v34_v59 }
 0x118   :  { %v226_v1 = vmul.f32 %v328_v62, %v34_v59 }
 0x119   :  { %v147_v2 = vmul.f32 %v146_v63, %v132_v43  ;;  %v153_v3 = vrot.slane %v146_v63, %v152_v60 }
 0x11a   :  { %v227_v4 = vmul.f32 %v226_v1, %v212_v45  ;;  %v233_v5 = vrot.slane %v226_v1, %v152_v60 }
 0x11b   :  { %v148_v6 = vsub.f32 %v35_v0, %v147_v2  ;;  %v155_v8 = vmul.f32 %v153_v3, %v386_v11 }
 0x11c   :  { %v228_v7 = vsub.f32 %v35_v0, %v227_v4  ;;  %v235_v10 = vmul.f32 %v233_v5, %v388_v12 }
 0x11d   :  { %v160_v9 = vrot.slane %v148_v6, %v152_v60 }
 0x11e   :  { %v240_v13 = vrot.slane %v228_v7, %v152_v60 }
 0x11f   :  { %v162_v14 = vadd.f32 %v160_v9, %v155_v8 }
 0x120   :  { %v242_v15 = vadd.f32 %v240_v13, %v235_v10 }
 0x121   :  { %v163_v16 = vpack.c.bf16 %v162_v14, %v162_v14 }
 0x122   :  { %v243_v17 = vpack.c.bf16 %v242_v15, %v242_v15 }
 0x123   :  { %164 = vst [vmem:[%s416_s4] sm:$0xf] %v163_v16 }
 0x124   :  { %244 = vst [vmem:[%s416_s4 + $0x4] sm:$0xf] %v243_v17 }

// kernel: forward.25
= control target key start
LH: loop header
LB: loop body
LE: loop exit
PB: predicated region body
PF: predicated region fallthrough
CT: control target
= control target key end

     0   :  { %vm1585_vm0 = vmmov 0   ;;  %s2195_s1 = inlined_call_operand.vmem [shape: bf16[1152,128], index: 1, kind: input, shape index: {}]   ;;  %s2196_s0 = inlined_call_operand.vmem [shape: bf16[16,1152], index: 0, kind: input, shape index: {}]   ;;  %s2197_s2 = inlined_call_operand.vmem [shape: f32[1,128], index: 2, kind: input, shape index: {}]   ;;  %s2198_s3 = inlined_call_operand.vmem [shape: f32[1,128], index: 3, kind: input, shape index: {}]   ;;  %s2199_s4 = inlined_call_operand.vmem [shape: bf16[16,128], index: 4, kind: input, shape index: {}]   ;;  %s2200_s5 = inlined_call_operand.vmem [shape: bf16[16,128], index: 5, kind: output, shape index: {}]  }
   0x1   :  { %v1619_v0 = vld [vmem:[%s2195_s1 + $0x40] sm:$0xff]   ;;  %v1642_v4 = vld [vmem:[%s2195_s1 + $0x48] sm:$0xff]   ;;  %v1666_v8 = vld [vmem:[%s2195_s1 + $0x50] sm:$0xff]  }
   0x2   :  { %v1624_v1 = vld [vmem:[%s2195_s1 + $0xc0] sm:$0xff]   ;;  %1254 = vmatprep.subr.bf16.mxu0 %v1619_v0  ;;  %v1648_v5 = vld [vmem:[%s2195_s1 + $0xc8] sm:$0xff]   ;;  %v1672_v9 = vld [vmem:[%s2195_s1 + $0xd0] sm:$0xff]  }
   0x3   :  { %v1630_v2 = vld [vmem:[%s2195_s1] sm:$0xff]   ;;  %1276 = vmatprep.subr.bf16.mxu1 %v1624_v1  ;;  %v1654_v6 = vld [vmem:[%s2195_s1 + $0x8] sm:$0xff]   ;;  %v1678_v10 = vld [vmem:[%s2195_s1 + $0x10] sm:$0xff]  }
   0x4   :  { %v1636_v3 = vld [vmem:[%s2195_s1 + $0x80] sm:$0xff]   ;;  %1255 = vmatpush3.bf16.msra.mxu0 %v1630_v2  ;;  %v1660_v7 = vld [vmem:[%s2195_s1 + $0x88] sm:$0xff]   ;;  %v1684_v11 = vld [vmem:[%s2195_s1 + $0x90] sm:$0xff]  }
   0x5   :  { %1277 = vmatpush3.bf16.msra.mxu1 %v1636_v3  ;;  %1256 = vmatprep.subr.bf16.mxu0 %v1642_v4  ;;  %v1690_v12 = vld [vmem:[%s2195_s1 + $0x58] sm:$0xff]   ;;  %v1714_v16 = vld [vmem:[%s2195_s1 + $0x60] sm:$0xff]   ;;  %v1738_v20 = vld [vmem:[%s2195_s1 + $0x68] sm:$0xff]  }
   0x6   :  { %1278 = vmatprep.subr.bf16.mxu1 %v1648_v5  ;;  %v1696_v13 = vld [vmem:[%s2195_s1 + $0xd8] sm:$0xff]   ;;  %v1720_v17 = vld [vmem:[%s2195_s1 + $0xe0] sm:$0xff]   ;;  %v1744_v21 = vld [vmem:[%s2195_s1 + $0xe8] sm:$0xff]  }
   0x7   :  { %v1702_v14 = vld [vmem:[%s2195_s1 + $0x18] sm:$0xff]   ;;  %v1726_v18 = vld [vmem:[%s2195_s1 + $0x20] sm:$0xff]   ;;  %v1750_v22 = vld [vmem:[%s2195_s1 + $0x28] sm:$0xff]  }
   0x8   :  { %1257 = vmatpush3.bf16.msra.mxu0 %v1654_v6  ;;  %v1708_v15 = vld [vmem:[%s2195_s1 + $0x98] sm:$0xff]   ;;  %v1732_v19 = vld [vmem:[%s2195_s1 + $0xa0] sm:$0xff]   ;;  %v1756_v23 = vld [vmem:[%s2195_s1 + $0xa8] sm:$0xff]  }
   0x9   :  { %1279 = vmatpush3.bf16.msra.mxu1 %v1660_v7  ;;  %1258 = vmatprep.subr.bf16.mxu0 %v1666_v8  ;;  %v1762_v24 = vld [vmem:[%s2195_s1 + $0x70] sm:$0xff]   ;;  %v1786_v28 = vld [vmem:[%s2195_s1 + $0x78] sm:$0xff]   ;;  %v167_v32 = vld [vmem:[%s2196_s0] sm:$0xff] }
   0xa   :  { %1280 = vmatprep.subr.bf16.mxu1 %v1672_v9  ;;  %v1768_v25 = vld [vmem:[%s2195_s1 + $0xf0] sm:$0xff]   ;;  %v1792_v29 = vld [vmem:[%s2195_s1 + $0xf8] sm:$0xff]   ;;  %v168_v33 = vld [vmem:[%s2196_s0 + $0x8] sm:$0xff]  ;;  %v1164_v34 = vcombine.low %v167_v32, %v167_v32  ;;  %v1165_v35 = vcombine.high %v167_v32, %v167_v32 }
   0xb   :  { %v1774_v26 = vld [vmem:[%s2195_s1 + $0x30] sm:$0xff]   ;;  %v1798_v30 = vld [vmem:[%s2195_s1 + $0x38] sm:$0xff]   ;;  %v1166_v36 = vcombine.low %v168_v33, %v168_v33  ;;  %v1167_v37 = vcombine.high %v168_v33, %v168_v33  ;;  %v1817_v38 = vld [vmem:[%s2195_s1 + $0x140] sm:$0xff]  }
   0xc   :  { %1259 = vmatpush3.bf16.msra.mxu0 %v1678_v10  ;;  %v1780_v27 = vld [vmem:[%s2195_s1 + $0xb0] sm:$0xff]   ;;  %v1804_v31 = vld [vmem:[%s2195_s1 + $0xb8] sm:$0xff]   ;;  %v1822_v39 = vld [vmem:[%s2195_s1 + $0x100] sm:$0xff]   ;;  %668 = vmatprep.mubr.bf16.mxu0 %v1165_v35 }
   0xd   :  { %1281 = vmatpush3.bf16.msra.mxu1 %v1684_v11  ;;  %1260 = vmatprep.subr.bf16.mxu0 %v1690_v12  ;;  %v1827_v40 = vld [vmem:[%s2195_s1 + $0x1c0] sm:$0xff]   ;;  %v1839_v42 = vld [vmem:[%s2195_s1 + $0x148] sm:$0xff]   ;;  %v1863_v46 = vld [vmem:[%s2195_s1 + $0x150] sm:$0xff]  }
   0xe   :  { %1282 = vmatprep.subr.bf16.mxu1 %v1696_v13  ;;  %708 = vmatprep.mubr.bf16.mxu1 %v1167_v37  ;;  %v1832_v41 = vld [vmem:[%s2195_s1 + $0x180] sm:$0xff]   ;;  %v1846_v43 = vld [vmem:[%s2195_s1 + $0x108] sm:$0xff]   ;;  %v1870_v47 = vld [vmem:[%s2195_s1 + $0x110] sm:$0xff]  }
   0xf   :  { %v1852_v44 = vld [vmem:[%s2195_s1 + $0x1c8] sm:$0xff]   ;;  %v1876_v48 = vld [vmem:[%s2195_s1 + $0x1d0] sm:$0xff]   ;;  %v1887_v50 = vld [vmem:[%s2195_s1 + $0x158] sm:$0xff]  }
  0x10   :  { %1261 = vmatpush3.bf16.msra.mxu0 %v1702_v14  ;;  %v1857_v45 = vld [vmem:[%s2195_s1 + $0x188] sm:$0xff]   ;;  %v1881_v49 = vld [vmem:[%s2195_s1 + $0x190] sm:$0xff]   ;;  %v1894_v51 = vld [vmem:[%s2195_s1 + $0x118] sm:$0xff]  }
  0x11   :  { %1283 = vmatpush3.bf16.msra.mxu1 %v1708_v15  ;;  %1262 = vmatprep.subr.bf16.mxu0 %v1714_v16  ;;  %v1900_v52 = vld [vmem:[%s2195_s1 + $0x1d8] sm:$0xff]   ;;  %v1911_v54 = vld [vmem:[%s2195_s1 + $0x160] sm:$0xff]   ;;  %v1935_v58 = vld [vmem:[%s2195_s1 + $0x168] sm:$0xff]  }
  0x12   :  { %1284 = vmatprep.subr.bf16.mxu1 %v1720_v17  ;;  %2209 = vst [vmem:[#allocation2_spill] sm:$0xff] %v1900_v52  ;;  %v1905_v53 = vld [vmem:[%s2195_s1 + $0x198] sm:$0xff]   ;;  %v1918_v55 = vld [vmem:[%s2195_s1 + $0x120] sm:$0xff]   ;;  %v1942_v59 = vld [vmem:[%s2195_s1 + $0x128] sm:$0xff]  }
  0x13   :  { %2210 = vst [vmem:[#allocation3_spill] sm:$0xff] %v1905_v53  ;;  %v1924_v56 = vld [vmem:[%s2195_s1 + $0x1e0] sm:$0xff]   ;;  %v1948_v60 = vld [vmem:[%s2195_s1 + $0x1e8] sm:$0xff]   ;;  %v1959_v62 = vld [vmem:[%s2195_s1 + $0x170] sm:$0xff]  }
  0x14   :  { %1263 = vmatpush3.bf16.msra.mxu0 %v1726_v18  ;;  %2211 = vst [vmem:[#allocation4_spill] sm:$0xff] %v1924_v56  ;;  %v1929_v57 = vld [vmem:[%s2195_s1 + $0x1a0] sm:$0xff]   ;;  %2213 = vst [vmem:[#allocation6_spill] sm:$0xff] %v1948_v60  ;;  %v1953_v61 = vld [vmem:[%s2195_s1 + $0x1a8] sm:$0xff]  }
  0x15   :  { %1285 = vmatpush3.bf16.msra.mxu1 %v1732_v19  ;;  %1264 = vmatprep.subr.bf16.mxu0 %v1738_v20  ;;  %2212 = vst [vmem:[#allocation5_spill] sm:$0xff] %v1929_v57  ;;  %2214 = vst [vmem:[#allocation7_spill] sm:$0xff] %v1953_v61  ;;  %v1966_v63 = vld [vmem:[%s2195_s1 + $0x130] sm:$0xff]   ;;  %v1990_v35 = vld [vmem:[%s2195_s1 + $0x138] sm:$0xff]  }
  0x16   :  { %1286 = vmatprep.subr.bf16.mxu1 %v1744_v21  ;;  %v1972_v32 = vld [vmem:[%s2195_s1 + $0x1f0] sm:$0xff]  }
  0x17   :  { %2215 = vst [vmem:[#allocation8_spill] sm:$0xff] %v1972_v32  ;;  %v1977_v33 = vld [vmem:[%s2195_s1 + $0x1b0] sm:$0xff]  }
  0x18   :  { %1265 = vmatpush3.bf16.msra.mxu0 %v1750_v22  ;;  %2216 = vst [vmem:[#allocation9_spill] sm:$0xff] %v1977_v33  ;;  %v169_v37 = vld [vmem:[%s2196_s0 + $0x10] sm:$0xff] }
  0x19   :  { %1287 = vmatpush3.bf16.msra.mxu1 %v1756_v23  ;;  %1266 = vmatprep.subr.bf16.mxu0 %v1762_v24 }
  0x1a   :  { %1288 = vmatprep.subr.bf16.mxu1 %v1768_v25 }
  0x1c   :  { %1267 = vmatpush3.bf16.msra.mxu0 %v1774_v26 }
  0x1d   :  { %1289 = vmatpush3.bf16.msra.mxu1 %v1780_v27  ;;  %1268 = vmatprep.subr.bf16.mxu0 %v1786_v28 }
  0x1e   :  { %1290 = vmatprep.subr.bf16.mxu1 %v1792_v29 }
  0x20   :  { %1269 = vmatpush3.bf16.msra.mxu0 %v1798_v30 }
  0x21   :  { %1291 = vmatpush3.bf16.msra.mxu1 %v1804_v31  ;;  %1298 = vmatprep.subr.bf16.mxu0 %v1817_v38 }
  0x22   :  { %1320 = vmatprep.subr.bf16.mxu1 %v1827_v40 }
  0x23   :  { %669 = vmatmul.mubr.bf16.vlgmr.msra.gmra.mrb[0].mxu0 %v1164_v34  ;;  %v1983_v34 = vld [vmem:[%s2195_s1 + $0x178] sm:$0xff]  }
  0x24   :  { %709 = vmatmul.mubr.bf16.vlgmr.msra.gmra.mrb[0].mxu1 %v1166_v36  ;;  %1299 = vmatpush3.bf16.msra.mxu0 %v1822_v39  ;;  %v1996_v36 = vld [vmem:[%s2195_s1 + $0x1f8] sm:$0xff]  }
  0x25   :  { %1321 = vmatpush3.bf16.msra.mxu1 %v1832_v41  ;;  %1300 = vmatprep.subr.bf16.mxu0 %v1839_v42 }
  0x26   :  { %1322 = vmatprep.subr.bf16.mxu1 %v1852_v44 }
  0x28   :  { %1301 = vmatpush3.bf16.msra.mxu0 %v1846_v43 }
  0x29   :  { %1323 = vmatpush3.bf16.msra.mxu1 %v1857_v45  ;;  %1302 = vmatprep.subr.bf16.mxu0 %v1863_v46 }
  0x2a   :  { %1324 = vmatprep.subr.bf16.mxu1 %v1876_v48 }
  0x2c   :  { %1303 = vmatpush3.bf16.msra.mxu0 %v1870_v47 }
  0x2d   :  { %1325 = vmatpush3.bf16.msra.mxu1 %v1881_v49  ;;  %1304 = vmatprep.subr.bf16.mxu0 %v1887_v50 }
  0x2e   :  { %1326 = vmatprep.subr.bf16.mxu1 %v1900_v52  ;;  %v1584_v52 = vmov 0.0  }
  0x30   :  { %1305 = vmatpush3.bf16.msra.mxu0 %v1894_v51 }
  0x31   :  { %1327 = vmatpush3.bf16.msra.mxu1 %v1905_v53  ;;  %1306 = vmatprep.subr.bf16.mxu0 %v1911_v54  ;;  %v2014_v53 = vld [vmem:[%s2195_s1 + $0x200] sm:$0xff]  }
  0x32   :  { %1328 = vmatprep.subr.bf16.mxu1 %v1924_v56 }
  0x34   :  { %1307 = vmatpush3.bf16.msra.mxu0 %v1918_v55 }
  0x35   :  { %1329 = vmatpush3.bf16.msra.mxu1 %v1929_v57  ;;  %1308 = vmatprep.subr.bf16.mxu0 %v1935_v58 }
  0x36   :  { %1330 = vmatprep.subr.bf16.mxu1 %v1948_v60  ;;  %v170_v60 = vld [vmem:[%s2196_s0 + $0x18] sm:$0xff] }
  0x37   :  { %v1170_v57 = vcombine.low %v170_v60, %v170_v60  ;;  %v1171_v56 = vcombine.high %v170_v60, %v170_v60  ;;  %v2023_v60 = vld [vmem:[%s2195_s1 + $0x208] sm:$0xff]  }
  0x38   :  { %1309 = vmatpush3.bf16.msra.mxu0 %v1942_v59 }
  0x39   :  { %1331 = vmatpush3.bf16.msra.mxu1 %v1953_v61  ;;  %1310 = vmatprep.subr.bf16.mxu0 %v1959_v62  ;;  %v1168_v61 = vcombine.low %v169_v37, %v169_v37 }
  0x3a   :  { %1332 = vmatprep.subr.bf16.mxu1 %v1972_v32  ;;  %v1169_v32 = vcombine.high %v169_v37, %v169_v37  ;;  %788 = vmatprep.mubr.bf16.mxu1 %v1171_v56  ;;  %v880_v56 = vld [vmem:[%s2196_s0 + $0x24] sm:$0xff] }
  0x3c   :  { %1311 = vmatpush3.bf16.msra.mxu0 %v1966_v63  ;;  %748 = vmatprep.mubr.bf16.mxu0 %v1169_v32 }
  0x3d   :  { %1333 = vmatpush3.bf16.msra.mxu1 %v1977_v33  ;;  %1312 = vmatprep.subr.bf16.mxu0 %v1983_v34  ;;  %v2004_v33 = vld [vmem:[%s2195_s1 + $0x1b8] sm:$0xff]  }
  0x3e   :  { %1334 = vmatprep.subr.bf16.mxu1 %v1996_v36 }
  0x40   :  { %1313 = vmatpush3.bf16.msra.mxu0 %v1990_v35 }
  0x41   :  { %1335 = vmatpush3.bf16.msra.mxu1 %v2004_v33  ;;  %1448 = vmatprep.subr.bf16.mxu0 %v1584_v52 }
  0x42   :  { %1351 = vmatprep.subr.bf16.mxu1 %v1619_v0  ;;  %v2034_v0 = vld [vmem:[%s2195_s1 + $0x210] sm:$0xff]  }
  0x43   :  { %749 = vmatmul.mubr.bf16.vlgmr.msra.gmra.mrb[4].mxu0 %v1168_v61 }
  0x44   :  { %1449 = vmatpush3.bf16.msra.mxu0 %v2014_v53  ;;  %789 = vmatmul.mubr.bf16.vlgmr.msra.gmra.mrb[4].mxu1 %v1170_v57 }
  0x45   :  { %1352 = vmatpush3.bf16.msra.mxu1 %v1630_v2  ;;  %1450 = vmatprep.subr.bf16.mxu0 %v1584_v52  ;;  %v1246_v2 = vcombine.high %v880_v56, %v880_v56 }
  0x46   :  { %1353 = vmatprep.subr.bf16.mxu1 %v1642_v4  ;;  %1464 = vmatprep.mubr.msk.bf16.mxu0 %vm1585_vm0, %v1584_v52  ;;  %v2046_v4 = vld [vmem:[%s2195_s1 + $0x218] sm:$0xff]  }
  0x47   :  { %949 = vmatprep.mubr.bf16.mxu1 %v1246_v2 }
  0x48   :  { %1451 = vmatpush3.bf16.msra.mxu0 %v2023_v60 }
  0x49   :  { %1354 = vmatpush3.bf16.msra.mxu1 %v1654_v6  ;;  %1452 = vmatprep.subr.bf16.mxu0 %v1584_v52  ;;  %v2055_v6 = vld [vmem:[%s2195_s1 + $0x220] sm:$0xff]  }
  0x4a   :  { %1355 = vmatprep.subr.bf16.mxu1 %v1666_v8  ;;  %v2064_v8 = vld [vmem:[%s2195_s1 + $0x228] sm:$0xff]  }
  0x4c   :  { %1453 = vmatpush3.bf16.msra.mxu0 %v2034_v0 }
  0x4d   :  { %1356 = vmatpush3.bf16.msra.mxu1 %v1678_v10  ;;  %1454 = vmatprep.subr.bf16.mxu0 %v1584_v52  ;;  %v2073_v10 = vld [vmem:[%s2195_s1 + $0x230] sm:$0xff]  }
  0x4e   :  { %1357 = vmatprep.subr.bf16.mxu1 %v1690_v12  ;;  %v2082_v12 = vld [vmem:[%s2195_s1 + $0x238] sm:$0xff]  }
  0x50   :  { %1455 = vmatpush3.bf16.msra.mxu0 %v2046_v4 }
  0x51   :  { %1358 = vmatpush3.bf16.msra.mxu1 %v1702_v14  ;;  %1456 = vmatprep.subr.bf16.mxu0 %v1584_v52  ;;  %v1570_v14 = vld [vmem:[%s2196_s0 + $0x20] ss:$0 sps:$4 sm:$0xff]  }
  0x52   :  { %1359 = vmatprep.subr.bf16.mxu1 %v1714_v16  ;;  %v881_v16 = vld [vmem:[%s2196_s0 + $0x2c] sm:$0xff] }
  0x54   :  { %1457 = vmatpush3.bf16.msra.mxu0 %v2055_v6 }
  0x55   :  { %1360 = vmatpush3.bf16.msra.mxu1 %v1726_v18  ;;  %1458 = vmatprep.subr.bf16.mxu0 %v1584_v52  ;;  %v1245_v18 = vcombine.low %v880_v56, %v880_v56 }
  0x56   :  { %1361 = vmatprep.subr.bf16.mxu1 %v1738_v20  ;;  %v882_v20 = vld [vmem:[%s2196_s0 + $0x34] sm:$0xff] }
  0x58   :  { %1459 = vmatpush3.bf16.msra.mxu0 %v2064_v8 }
  0x59   :  { %1362 = vmatpush3.bf16.msra.mxu1 %v1750_v22  ;;  %1460 = vmatprep.subr.bf16.mxu0 %v1584_v52  ;;  %v1248_v22 = vcombine.high %v881_v16, %v881_v16 }
  0x5a   :  { %1363 = vmatprep.subr.bf16.mxu1 %v1762_v24  ;;  %v1250_v24 = vcombine.high %v882_v20, %v882_v20 }
  0x5c   :  { %1461 = vmatpush3.bf16.msra.mxu0 %v2073_v10 }
  0x5d   :  { %1364 = vmatpush3.bf16.msra.mxu1 %v1774_v26  ;;  %1462 = vmatprep.subr.bf16.mxu0 %v1584_v52  ;;  %v1579_v26 = vld [vmem:[%s2196_s0 + $0x44] ss:$0 sps:$4 sm:$0xff]  }
  0x5e   :  { %1365 = vmatprep.subr.bf16.mxu1 %v1786_v28 }
  0x60   :  { %1463 = vmatpush3.bf16.msra.mxu0 %v2082_v12 }
  0x61   :  { %1366 = vmatpush3.bf16.msra.mxu1 %v1798_v30  ;;  %1373 = vmatprep.subr.bf16.mxu0 %v1624_v1  ;;  %v1247_v1 = vcombine.low %v881_v16, %v881_v16 }
  0x62   :  { %1395 = vmatprep.subr.bf16.mxu1 %v1817_v38 }
  0x63   :  { %1465 = vmatmul.mubr.bf16.vlgmr.msra.gmra.mrb[8].mxu0 %v1570_v14 }
  0x64   :  { %1374 = vmatpush3.bf16.msra.mxu0 %v1636_v3  ;;  %950 = vmatmul.mubr.bf16.vlgmr.msra.gmra.mrb[8].mxu1 %v1245_v18  ;;  %v883_v3 = vld [vmem:[%s2196_s0 + $0x3c] sm:$0xff] }
  0x65   :  { %1396 = vmatpush3.bf16.msra.mxu1 %v1822_v39  ;;  %1375 = vmatprep.subr.bf16.mxu0 %v1648_v5  ;;  %v1249_v5 = vcombine.low %v882_v20, %v882_v20 }
  0x66   :  { %1397 = vmatprep.subr.bf16.mxu1 %v1839_v42  ;;  %989 = vmatprep.mubr.bf16.mxu0 %v1248_v22 }
  0x67   :  { %1029 = vmatprep.mubr.bf16.mxu1 %v1250_v24 }
  0x68   :  { %1376 = vmatpush3.bf16.msra.mxu0 %v1660_v7  ;;  %v1252_v7 = vcombine.high %v883_v3, %v883_v3 }
  0x69   :  { %1398 = vmatpush3.bf16.msra.mxu1 %v1846_v43  ;;  %1377 = vmatprep.subr.bf16.mxu0 %v1672_v9  ;;  %v2217_v9 = vld [vmem:[#allocation2_spill] sm:$0xff] }
  0x6a   :  { %1399 = vmatprep.subr.bf16.mxu1 %v1863_v46 }
  0x6c   :  { %1378 = vmatpush3.bf16.msra.mxu0 %v1684_v11  ;;  %v2218_v11 = vld [vmem:[#allocation3_spill] sm:$0xff] }
  0x6d   :  { %1400 = vmatpush3.bf16.msra.mxu1 %v1870_v47  ;;  %1379 = vmatprep.subr.bf16.mxu0 %v1696_v13  ;;  %v2219_v13 = vld [vmem:[#allocation4_spill] sm:$0xff] }
  0x6e   :  { %1401 = vmatprep.subr.bf16.mxu1 %v1887_v50 }
  0x70   :  { %1380 = vmatpush3.bf16.msra.mxu0 %v1708_v15  ;;  %v2220_v15 = vld [vmem:[#allocation5_spill] sm:$0xff] }
  0x71   :  { %1402 = vmatpush3.bf16.msra.mxu1 %v1894_v51  ;;  %1381 = vmatprep.subr.bf16.mxu0 %v1720_v17  ;;  %v2221_v17 = vld [vmem:[#allocation6_spill] sm:$0xff] }
  0x72   :  { %1403 = vmatprep.subr.bf16.mxu1 %v1911_v54 }
  0x74   :  { %1382 = vmatpush3.bf16.msra.mxu0 %v1732_v19  ;;  %v2222_v19 = vld [vmem:[#allocation7_spill] sm:$0xff] }
  0x75   :  { %1404 = vmatpush3.bf16.msra.mxu1 %v1918_v55  ;;  %1383 = vmatprep.subr.bf16.mxu0 %v1744_v21  ;;  %v2223_v21 = vld [vmem:[#allocation8_spill] sm:$0xff] }
  0x76   :  { %1405 = vmatprep.subr.bf16.mxu1 %v1935_v58 }
  0x78   :  { %1384 = vmatpush3.bf16.msra.mxu0 %v1756_v23  ;;  %v2224_v23 = vld [vmem:[#allocation9_spill] sm:$0xff] }
  0x79   :  { %1406 = vmatpush3.bf16.msra.mxu1 %v1942_v59  ;;  %1385 = vmatprep.subr.bf16.mxu0 %v1768_v25  ;;  %v1251_v25 = vcombine.low %v883_v3, %v883_v3 }
  0x7a   :  { %1407 = vmatprep.subr.bf16.mxu1 %v1959_v62 }
  0x7c   :  { %1386 = vmatpush3.bf16.msra.mxu0 %v1780_v27 }
  0x7d   :  { %1408 = vmatpush3.bf16.msra.mxu1 %v1966_v63  ;;  %1387 = vmatprep.subr.bf16.mxu0 %v1792_v29 }
  0x7e   :  { %1409 = vmatprep.subr.bf16.mxu1 %v1983_v34 }
  0x80   :  { %1388 = vmatpush3.bf16.msra.mxu0 %v1804_v31 }
  0x81   :  { %1410 = vmatpush3.bf16.msra.mxu1 %v1990_v35  ;;  %1417 = vmatprep.subr.bf16.mxu0 %v1827_v40 }
  0x82   :  { %1468 = vmatprep.subr.bf16.mxu1 %v1584_v52 }
  0x83   :  { %990 = vmatmul.mubr.bf16.vlgmr.msra.gmra.mrb[12].mxu0 %v1247_v1 }
  0x84   :  { %1418 = vmatpush3.bf16.msra.mxu0 %v1832_v41  ;;  %1030 = vmatmul.mubr.bf16.vlgmr.msra.gmra.mrb[12].mxu1 %v1249_v5  ;;  %v861_v5 = vlaneseq }
  0x85   :  { %1469 = vmatpush3.bf16.msra.mxu1 %v2014_v53  ;;  %1419 = vmatprep.subr.bf16.mxu0 %v1852_v44 }
  0x86   :  { %1470 = vmatprep.subr.bf16.mxu1 %v1584_v52  ;;  %1069 = vmatprep.mubr.bf16.mxu0 %v1252_v7  ;;  %v862_v7 = vshrl.u32 %v861_v5, 7 }
  0x87   :  { %1484 = vmatprep.mubr.msk.bf16.mxu1 %vm1585_vm0, %v1584_v52 }
  0x88   :  { %1420 = vmatpush3.bf16.msra.mxu0 %v1857_v45 }
  0x89   :  { %1471 = vmatpush3.bf16.msra.mxu1 %v2023_v60  ;;  %1421 = vmatprep.subr.bf16.mxu0 %v1876_v48 }
  0x8a   :  { %1472 = vmatprep.subr.bf16.mxu1 %v1584_v52 }
  0x8c   :  { %1422 = vmatpush3.bf16.msra.mxu0 %v1881_v49 }
  0x8d   :  { %1473 = vmatpush3.bf16.msra.mxu1 %v2034_v0  ;;  %1423 = vmatprep.subr.bf16.mxu0 %v2217_v9 }
  0x8e   :  { %1474 = vmatprep.subr.bf16.mxu1 %v1584_v52 }
  0x90   :  { %1424 = vmatpush3.bf16.msra.mxu0 %v2218_v11  ;;  %v2173_v11 = vld [vmem:[%s2197_s2] sm:$0x1] }
  0x91   :  { %1475 = vmatpush3.bf16.msra.mxu1 %v2046_v4  ;;  %1425 = vmatprep.subr.bf16.mxu0 %v2219_v13 }
  0x92   :  { %1476 = vmatprep.subr.bf16.mxu1 %v1584_v52 }
  0x94   :  { %1426 = vmatpush3.bf16.msra.mxu0 %v2220_v15 }
  0x95   :  { %1477 = vmatpush3.bf16.msra.mxu1 %v2055_v6  ;;  %1427 = vmatprep.subr.bf16.mxu0 %v2221_v17  ;;  %v2175_v17 = vsub.s32 0, %v862_v7 }
  0x96   :  { %1478 = vmatprep.subr.bf16.mxu1 %v1584_v52 }
  0x98   :  { %1428 = vmatpush3.bf16.msra.mxu0 %v2222_v19 }
  0x99   :  { %1479 = vmatpush3.bf16.msra.mxu1 %v2064_v8  ;;  %1429 = vmatprep.subr.bf16.mxu0 %v2223_v21 }
  0x9a   :  { %1480 = vmatprep.subr.bf16.mxu1 %v1584_v52 }
  0x9c   :  { %1430 = vmatpush3.bf16.msra.mxu0 %v2224_v23 }
  0x9d   :  { %1481 = vmatpush3.bf16.msra.mxu1 %v2073_v10  ;;  %1431 = vmatprep.subr.bf16.mxu0 %v1996_v36 }
  0x9e   :  { %1482 = vmatprep.subr.bf16.mxu1 %v1584_v52 }
  0xa0   :  { %1432 = vmatpush3.bf16.msra.mxu0 %v2004_v33 }
  0xa1   :  { %1483 = vmatpush3.bf16.msra.mxu1 %v2082_v12 }
  0xa3   :  { %1070 = vmatmul.mubr.bf16.vlgmr.msra.gmra.mrb[16].mxu0 %v1251_v25 }
  0xa4   :  { %1485 = vmatmul.mubr.bf16.vlgmr.msra.gmra.mrb[16].mxu1 %v1579_v26 }
  0xf6   :  { %v1270_v27 = vpop.f32.mrb[0].mxu0 }
  0xf7   :  { %v1292_v28 = vpop.f32.mrb[0].mxu1  ;;  %v1271_v29 = vpop.f32.mrb[1].mxu0 }
  0xf8   :  { %v1293_v30 = vpop.f32.mrb[1].mxu1  ;;  %v1272_v31 = vadd.f32 %v1271_v29, %v1270_v27  ;;  %v1273_v39 = vpop.f32.mrb[2].mxu0 }
  0xf9   :  { %v1294_v38 = vadd.f32 %v1293_v30, %v1292_v28  ;;  %v1295_v40 = vpop.f32.mrb[2].mxu1  ;;  %v1274_v41 = vpop.f32.mrb[3].mxu0 }
  0xfa   :  { %v1296_v42 = vpop.f32.mrb[3].mxu1 }
  0xfb   :  { %v711_v43 = vadd.f32 %v1294_v38, %v1272_v31  ;;  %v166_v38 = vld [vmem:[%s2198_s3] sm:$0x1] }
  0xfc   :  { %v874_v42 = vld [vmem:[%s2199_s4] sm:$0xff]  }
 0x116   :  { %v1314_v44 = vpop.f32.mrb[4].mxu0 }
 0x117   :  { %v1315_v45 = vpop.f32.mrb[5].mxu0  ;;  %v1336_v46 = vpop.f32.mrb[4].mxu1 }
 0x118   :  { %v1316_v47 = vadd.f32 %v1315_v45, %v1314_v44  ;;  %v1317_v48 = vpop.f32.mrb[6].mxu0  ;;  %v1337_v49 = vpop.f32.mrb[5].mxu1 }
 0x119   :  { %v1318_v50 = vpop.f32.mrb[7].mxu0  ;;  %v1338_v51 = vadd.f32 %v1337_v49, %v1336_v46  ;;  %v1339_v52 = vpop.f32.mrb[6].mxu1  ;;  %v875_v46 = vunpack.c.l.bf16 %v874_v42 }
 0x11a   :  { %v751_v53 = vadd.f32 %v1316_v47, %v711_v43  ;;  %v1340_v54 = vpop.f32.mrb[7].mxu1 }
 0x11c   :  { %v791_v55 = vadd.f32 %v1338_v51, %v751_v53 }
 0x136   :  { %v830_v57 = vpop.f32.mrb[8].mxu0 }
 0x137   :  { %v831_v58 = vadd.f32 %v830_v57, %v791_v55  ;;  %v1466_v59 = vpop.f32.mrb[9].mxu0  ;;  %v1367_v61 = vpop.f32.mrb[8].mxu1 }
 0x138   :  { %v833_v62 = vpop.f32.mrb[10].mxu0  ;;  %v1368_v63 = vpop.f32.mrb[9].mxu1 }
 0x139   :  { %v836_v32 = vrot.slane %v831_v58, 4  ;;  %v844_v33 = vmul.f32 %v831_v58, %v831_v58  ;;  %v1467_v34 = vpop.f32.mrb[11].mxu0  ;;  %v1369_v35 = vadd.f32 %v1368_v63, %v1367_v61  ;;  %v1370_v36 = vpop.f32.mrb[10].mxu1 }
 0x13a   :  { %v1371_v37 = vpop.f32.mrb[11].mxu1 }
 0x13b   :  { %v837_v60 = vadd.f32 %v836_v32, %v831_v58  ;;  %v845_v0 = vrot.slane %v844_v33, 4 }
 0x13d   :  { %v838_v56 = vrot.slane %v837_v60, 2  ;;  %v846_v2 = vadd.f32 %v845_v0, %v844_v33 }
 0x13f   :  { %v839_v4 = vadd.f32 %v838_v56, %v837_v60  ;;  %v847_v6 = vrot.slane %v846_v2, 2 }
 0x141   :  { %v840_v8 = vrot.slane %v839_v4, 1  ;;  %v848_v10 = vadd.f32 %v847_v6, %v846_v2 }
 0x143   :  { %v841_v12 = vadd.f32 %v840_v8, %v839_v4  ;;  %v849_v14 = vrot.slane %v848_v10, 1 }
 0x145   :  { %v843_v16 = vmul.f32 0.125, %v841_v12  ;;  %v850_v18 = vadd.f32 %v849_v14, %v848_v10 }
 0x147   :  { %v851_v20 = vmul.f32 0.125, %v850_v18  ;;  %v852_v22 = vmul.f32 %v843_v16, %v843_v16 }
 0x149   :  { %v853_v24 = vsub.f32 %v851_v20, %v852_v22 }
 0x14b   :  { %v854_v1 = vmax.f32 %v853_v24, 0.0 }
 0x14d   :  { %v855_v3 = vadd.f32 1e-05, %v854_v1 }
 0x14f   :  { %1580 = vrsqrt.f32 %v855_v3 }
 0x156   :  { %v1389_v9 = vpop.f32.mrb[12].mxu0 }
 0x157   :  { %v1390_v13 = vpop.f32.mrb[13].mxu0  ;;  %v1411_v15 = vpop.f32.mrb[12].mxu1 }
 0x158   :  { %v1391_v19 = vadd.f32 %v1390_v13, %v1389_v9  ;;  %v1392_v21 = vpop.f32.mrb[14].mxu0  ;;  %v1412_v23 = vpop.f32.mrb[13].mxu1  ;;  %v1155_v13 = vunpack.c.h.bf16 %v874_v42 }
 0x159   :  { %v1581_v25 = vpop.eup %1580  ;;  %v1393_v26 = vpop.f32.mrb[15].mxu0  ;;  %v1413_v27 = vadd.f32 %v1412_v23, %v1411_v15 }
 0x15a   :  { %v1414_v28 = vpop.f32.mrb[14].mxu1  ;;  %v857_v29 = vmul.f32 %v1581_v25, %v2173_v11  ;;  %v992_v30 = vadd.f32 %v1391_v19, %v1369_v35 }
 0x15b   :  { %v1415_v31 = vpop.f32.mrb[15].mxu1 }
 0x15c   :  { %v858_v39 = vmul.f32 %v857_v29, %v843_v16  ;;  %v864_v40 = vrot.slane %v857_v29, %v2175_v17  ;;  %v1032_v41 = vadd.f32 %v1413_v27, %v992_v30 }
 0x15e   :  { %v859_v43 = vsub.f32 %v166_v38, %v858_v39  ;;  %v866_v44 = vmul.f32 %v864_v40, %v831_v58 }
 0x160   :  { %v871_v45 = vrot.slane %v859_v43, %v2175_v17 }
 0x162   :  { %v873_v47 = vadd.f32 %v871_v45, %v866_v44 }
 0x164   :  { %v876_v48 = vadd.f32 %v875_v46, %v873_v47 }
 0x166   :  { %v877_v49 = vmax.f32 %v876_v48, 0.0 }
 0x168   :  { %v878_v50 = vpack.c.bf16 %v877_v49, %v877_v49 }
 0x16a   :  { %879 = vst [vmem:[%s2200_s5] sm:$0xf] %v878_v50 }
 0x176   :  { %v1433_v51 = vpop.f32.mrb[16].mxu0 }
 0x177   :  { %v1434_v52 = vpop.f32.mrb[17].mxu0  ;;  %v1111_v53 = vpop.f32.mrb[16].mxu1 }
 0x178   :  { %v1435_v54 = vadd.f32 %v1434_v52, %v1433_v51  ;;  %v1436_v55 = vpop.f32.mrb[18].mxu0  ;;  %v1486_v57 = vpop.f32.mrb[17].mxu1 }
 0x179   :  { %v1437_v59 = vpop.f32.mrb[19].mxu0  ;;  %v1114_v61 = vpop.f32.mrb[18].mxu1 }
 0x17a   :  { %v1072_v58 = vadd.f32 %v1435_v54, %v1032_v41  ;;  %v1487_v62 = vpop.f32.mrb[19].mxu1 }
 0x17c   :  { %v1112_v63 = vadd.f32 %v1111_v53, %v1072_v58 }
 0x17e   :  { %v1117_v32 = vrot.slane %v1112_v63, 4  ;;  %v1124_v33 = vmul.f32 %v1112_v63, %v1112_v63 }
 0x180   :  { %v1118_v34 = vadd.f32 %v1117_v32, %v1112_v63  ;;  %v1125_v35 = vrot.slane %v1124_v33, 4 }
 0x182   :  { %v1119_v36 = vrot.slane %v1118_v34, 2  ;;  %v1126_v37 = vadd.f32 %v1125_v35, %v1124_v33 }
 0x184   :  { %v1120_v60 = vadd.f32 %v1119_v36, %v1118_v34  ;;  %v1127_v0 = vrot.slane %v1126_v37, 2 }
 0x186   :  { %v1121_v56 = vrot.slane %v1120_v60, 1  ;;  %v1128_v2 = vadd.f32 %v1127_v0, %v1126_v37 }
 0x188   :  { %v1122_v4 = vadd.f32 %v1121_v56, %v1120_v60  ;;  %v1129_v6 = vrot.slane %v1128_v2, 1 }
 0x18a   :  { %v1123_v8 = vmul.f32 0.125, %v1122_v4  ;;  %v1130_v10 = vadd.f32 %v1129_v6, %v1128_v2 }
 0x18c   :  { %v1131_v12 = vmul.f32 0.125, %v1130_v10  ;;  %v1132_v14 = vmul.f32 %v1123_v8, %v1123_v8 }
 0x18e   :  { %v1133_v16 = vsub.f32 %v1131_v12, %v1132_v14 }
 0x190   :  { %v1134_v18 = vmax.f32 %v1133_v16, 0.0 }
 0x192   :  { %v1135_v20 = vadd.f32 1e-05, %v1134_v18 }
 0x194   :  { %1582 = vrsqrt.f32 %v1135_v20 }
 0x19e   :  { %v1583_v22 = vpop.eup %1582 }
 0x19f   :  { %v1137_v24 = vmul.f32 %v1583_v22, %v2173_v11 }
 0x1a1   :  { %v1138_v1 = vmul.f32 %v1137_v24, %v1123_v8  ;;  %v1144_v3 = vrot.slane %v1137_v24, %v2175_v17 }
 0x1a3   :  { %v1139_v5 = vsub.f32 %v166_v38, %v1138_v1  ;;  %v1146_v7 = vmul.f32 %v1144_v3, %v1112_v63 }
 0x1a5   :  { %v1151_v9 = vrot.slane %v1139_v5, %v2175_v17 }
 0x1a7   :  { %v1153_v15 = vadd.f32 %v1151_v9, %v1146_v7 }
 0x1a9   :  { %v1156_v19 = vadd.f32 %v1155_v13, %v1153_v15 }
 0x1ab   :  { %v1157_v21 = vmax.f32 %v1156_v19, 0.0 }
 0x1ad   :  { %v1158_v23 = vpack.c.bf16 %v1157_v21, %v1157_v21 }
 0x1af   :  { %1159 = vst [vmem:[%s2200_s5 + $0x4] sm:$0xf] %v1158_v23 }

</bundles_post_ra>
